<compile_context>
chip_gen: v6e
topology: v6e:2x2x1
jax: 0.10.0
libtpu: 0.0.40
codegen_flags: <defaults>
</compile_context>

<pallas_src>
import jax
import jax.numpy as jnp
import numpy as np
from jax.experimental import pallas as pl
from jax.experimental.pallas import tpu as pltpu

# ----- module hyper-parameters -------------------------------------------------
D = 8
W = 256
MULTIRES = 10
MULTIRES_VIEWS = 4
INPUT_CH = 3 + 3 * 2 * MULTIRES              # 63
INPUT_CH_VIEWS = 3 + 3 * 2 * MULTIRES_VIEWS  # 27
PTS_PAD = 64                                 # lane-padded pts embedding width
VIEWS_PAD = 32                               # lane-padded view embedding width
SKIPS = (4,)
CHANNELS = 3
OUT_CH = CHANNELS + 1                        # rgb + alpha = 4
OUT_PAD = 128                                # lane-dense kernel output width
TM = 512                                     # rows per grid step


# ----- plain-JAX glue: standard NeRF positional embedder -----------------------
def positional_embed(x, multires):
    freqs = 2.0 ** jnp.arange(multires, dtype=jnp.float32)
    outs = [x]
    for f in freqs:
        outs.append(jnp.sin(x * f))
        outs.append(jnp.cos(x * f))
    return jnp.concatenate(outs, axis=-1)


# ----- Pallas kernel: the whole MLP on one row-tile -----------------------------
def nerf_mlp_kernel(pts_ref, views_ref, *refs):
    out_ref = refs[-1]
    it = iter(refs[:-1])

    def dot(a, w):
        return jnp.dot(a, w, preferred_element_type=jnp.float32)

    x = pts_ref[...]          # (TM, 64)  bf16  (cols 63:64 are zero)
    v = views_ref[...]        # (TM, 32)  bf16  (cols 27:32 are zero)

    # pts_linears[0..4]
    h = x
    for _ in range(5):
        w, b = next(it)[...], next(it)[...]
        h = jnp.maximum(dot(h, w) + b, 0.0).astype(jnp.bfloat16)

    # skip at i=4:  cat([input_pts, h]) @ W5  ==  x @ W5[:63] + h @ W5[63:]
    w5x, w5h, b5 = next(it)[...], next(it)[...], next(it)[...]
    h = jnp.maximum(dot(x, w5x) + dot(h, w5h) + b5, 0.0).astype(jnp.bfloat16)

    # pts_linears[6..7]
    for _ in range(2):
        w, b = next(it)[...], next(it)[...]
        h = jnp.maximum(dot(h, w) + b, 0.0).astype(jnp.bfloat16)

    # feature_linear (no relu)
    wf, bf_ = next(it)[...], next(it)[...]
    feature = (dot(h, wf) + bf_).astype(jnp.bfloat16)

    # views_linears[0]:  cat([feature, views]) @ Wv == feature @ Wv[:256] + v @ Wv[256:]
    wvf, wvv, bv = next(it)[...], next(it)[...], next(it)[...]
    hv = jnp.maximum(dot(feature, wvf) + dot(v, wvv) + bv, 0.0).astype(jnp.bfloat16)

    # fused lane-dense output head:
    #   cols 0:3 = rgb_linear(hv), col 3 = alpha_linear(h), cols 4:128 = 0
    wr, wa, bo = next(it)[...], next(it)[...], next(it)[...]
    out_ref[...] = dot(hv, wr) + dot(h, wa) + bo


# ----- weight packing: split / pad / cast into the flat kernel arg list ---------
def pack_params(params):
    def w16(w, rows_to=None):
        w = jnp.asarray(w, jnp.float32)
        if rows_to is not None and rows_to > w.shape[0]:
            w = jnp.pad(w, ((0, rows_to - w.shape[0]), (0, 0)))
        return w.astype(jnp.bfloat16)

    def b32(b):
        return jnp.asarray(b, jnp.float32).reshape(1, -1)

    flat = []
    # pts_linears[0]: input rows padded 63 -> 64
    w0, b0 = params[0]
    flat += [w16(w0, PTS_PAD), b32(b0)]
    # pts_linears 1..4
    for i in range(1, 5):
        w, b = params[i]
        flat += [w16(w), b32(b)]
    # layer 5: split skip weight rows, concat order was [input_pts(63) | h(256)]
    w5, b5 = params[5]
    flat += [w16(w5[:INPUT_CH], PTS_PAD), w16(w5[INPUT_CH:]), b32(b5)]
    # layers 6, 7
    for i in range(6, D):
        w, b = params[i]
        flat += [w16(w), b32(b)]
    # feature_linear
    wf, bf_ = params[D]
    flat += [w16(wf), b32(bf_)]
    # views_linears[0]: split rows, concat order was [feature(256) | views(27)]
    wv, bv = params[D + 2]
    flat += [w16(wv[:W]), w16(wv[W:], VIEWS_PAD), b32(bv)]
    # fused output head: rgb_linear padded to 128 lanes, alpha_linear in col CHANNELS
    wa, ba = params[D + 1]
    wr, br = params[D + 3]
    w_rgb = jnp.zeros((W // 2, OUT_PAD), jnp.float32).at[:, :CHANNELS].set(wr)
    w_alpha = jnp.zeros((W, OUT_PAD), jnp.float32).at[:, CHANNELS:CHANNELS + 1].set(wa)
    b_out = (jnp.zeros((1, OUT_PAD), jnp.float32)
             .at[0, :CHANNELS].set(br)
             .at[0, CHANNELS].set(ba[0]))
    flat += [w16(w_rgb), w16(w_alpha), b_out]
    return flat


# ----- wrapper -----------------------------------------------------------------
def nerf_forward(pts, viewdirs, params):
    R, S, _ = pts.shape
    N = R * S
    n_pad = (-N) % TM
    Np = N + n_pad

    pts_flat = pts.reshape(-1, 3)
    emb_pts = positional_embed(pts_flat, MULTIRES)                       # (N, 63) f32
    emb_pts = jnp.pad(emb_pts, ((0, n_pad), (0, PTS_PAD - INPUT_CH))
                      ).astype(jnp.bfloat16)                             # (Np, 64) bf16

    emb_dirs_ray = positional_embed(viewdirs, MULTIRES_VIEWS)            # (R, 27) f32
    emb_dirs = jnp.broadcast_to(emb_dirs_ray[:, None, :],
                                (R, S, INPUT_CH_VIEWS)).reshape(-1, INPUT_CH_VIEWS)
    emb_dirs = jnp.pad(emb_dirs, ((0, n_pad), (0, VIEWS_PAD - INPUT_CH_VIEWS))
                       ).astype(jnp.bfloat16)                            # (Np, 32) bf16

    flat_params = pack_params(params)

    in_specs = [
        pl.BlockSpec((TM, PTS_PAD), lambda i: (i, 0)),
        pl.BlockSpec((TM, VIEWS_PAD), lambda i: (i, 0)),
    ] + [pl.BlockSpec(p.shape, lambda i: (0, 0)) for p in flat_params]

    out = pl.pallas_call(
        nerf_mlp_kernel,
        out_shape=jax.ShapeDtypeStruct((Np, OUT_PAD), jnp.float32),
        grid_spec=pltpu.PrefetchScalarGridSpec(
            num_scalar_prefetch=0,
            grid=(Np // TM,),
            in_specs=in_specs,
            out_specs=pl.BlockSpec((TM, OUT_PAD), lambda i: (i, 0)),
        ),
        compiler_params=pltpu.CompilerParams(
            dimension_semantics=("parallel",)),
    )(emb_pts, emb_dirs, *flat_params)

    return out[:N, :OUT_CH].reshape(R, S, OUT_CH)


# ----- deterministic parameter init (shapes from NeRF.__init__) -----------------
def init_params(key):
    def lin(k, fan_in, fan_out):
        k1, k2 = jax.random.split(k)
        w = jax.random.normal(k1, (fan_in, fan_out), jnp.float32) * 0.05
        b = jax.random.normal(k2, (fan_out,), jnp.float32) * 0.01
        return (w, b)

    keys = jax.random.split(key, D + 4)
    params = []
    in_dim = INPUT_CH
    for i in range(D):                       # pts_linears
        params.append(lin(keys[i], in_dim, W))
        in_dim = W + INPUT_CH if i in SKIPS else W
    params.append(lin(keys[D], W, W))                                # feature_linear
    params.append(lin(keys[D + 1], W, 1))                            # alpha_linear
    params.append(lin(keys[D + 2], W + INPUT_CH_VIEWS, W // 2))      # views_linears[0]
    params.append(lin(keys[D + 3], W // 2, CHANNELS))                # rgb_linear
    return params


# ----- pure-JAX f32 reference for a correctness sanity-check ---------------------
def ref_forward(pts, viewdirs, params):
    pts_flat = pts.reshape(-1, 3)
    ep = positional_embed(pts_flat, MULTIRES)
    dirs = jnp.broadcast_to(viewdirs[:, None, :], pts.shape).reshape(-1, 3)
    ev = positional_embed(dirs, MULTIRES_VIEWS)
    h = ep
    for i in range(D):
        w, b = params[i]
        h = jax.nn.relu(h @ w + b)
        if i in SKIPS:
            h = jnp.concatenate([ep, h], axis=-1)
    wf, bf_ = params[D]
    wa, ba = params[D + 1]
    wv, bv = params[D + 2]
    wr, br = params[D + 3]
    alpha = h @ wa + ba
    feature = h @ wf + bf_
    hv = jax.nn.relu(jnp.concatenate([feature, ev], axis=-1) @ wv + bv)
    rgb = hv @ wr + br
    out = jnp.concatenate([rgb, alpha], axis=-1)
    return out.reshape(*pts.shape[:-1], OUT_CH)


if __name__ == "__main__":
    key = jax.random.PRNGKey(0)
    kp, kpts, kdirs = jax.random.split(key, 3)

    params = init_params(kp)

    # small shapes: 16 rays x 64 samples per ray -> 1024 points (2 row tiles of TM=512)
    pts = jax.random.normal(kpts, (16, 64, 3), jnp.float32)
    viewdirs = jax.random.normal(kdirs, (16, 3), jnp.float32)
    viewdirs = viewdirs / jnp.linalg.norm(viewdirs, axis=-1, keepdims=True)

    out = jax.block_until_ready(nerf_forward(pts, viewdirs, params))
    ref = jax.block_until_ready(ref_forward(pts, viewdirs, params))

    assert out.shape == (16, 64, OUT_CH)
    np.testing.assert_allclose(np.asarray(out), np.asarray(ref),
                               atol=5e-2, rtol=5e-2)
    print("KERNEL_OK")
</pallas_src>

<mosaic_0001>
module attributes {stable_mosaic.version = 11 : i64} {
  func.func @nerf_mlp_kernel(%arg0: i32, %arg1: memref<512x64xbf16, #tpu.memory_space<vmem>>, %arg2: memref<512x32xbf16, #tpu.memory_space<vmem>>, %arg3: memref<64x256xbf16, #tpu.memory_space<vmem>>, %arg4: memref<1x256xf32, #tpu.memory_space<vmem>>, %arg5: memref<256x256xbf16, #tpu.memory_space<vmem>>, %arg6: memref<1x256xf32, #tpu.memory_space<vmem>>, %arg7: memref<256x256xbf16, #tpu.memory_space<vmem>>, %arg8: memref<1x256xf32, #tpu.memory_space<vmem>>, %arg9: memref<256x256xbf16, #tpu.memory_space<vmem>>, %arg10: memref<1x256xf32, #tpu.memory_space<vmem>>, %arg11: memref<256x256xbf16, #tpu.memory_space<vmem>>, %arg12: memref<1x256xf32, #tpu.memory_space<vmem>>, %arg13: memref<64x256xbf16, #tpu.memory_space<vmem>>, %arg14: memref<256x256xbf16, #tpu.memory_space<vmem>>, %arg15: memref<1x256xf32, #tpu.memory_space<vmem>>, %arg16: memref<256x256xbf16, #tpu.memory_space<vmem>>, %arg17: memref<1x256xf32, #tpu.memory_space<vmem>>, %arg18: memref<256x256xbf16, #tpu.memory_space<vmem>>, %arg19: memref<1x256xf32, #tpu.memory_space<vmem>>, %arg20: memref<256x256xbf16, #tpu.memory_space<vmem>>, %arg21: memref<1x256xf32, #tpu.memory_space<vmem>>, %arg22: memref<256x128xbf16, #tpu.memory_space<vmem>>, %arg23: memref<32x128xbf16, #tpu.memory_space<vmem>>, %arg24: memref<1x128xf32, #tpu.memory_space<vmem>>, %arg25: memref<128x128xbf16, #tpu.memory_space<vmem>>, %arg26: memref<256x128xbf16, #tpu.memory_space<vmem>>, %arg27: memref<1x128xf32, #tpu.memory_space<vmem>>, %arg28: memref<512x128xf32, #tpu.memory_space<vmem>>) attributes {dimension_semantics = [#tpu.dimension_semantics<parallel>], iteration_bounds = array<i64: 2>, scalar_prefetch = 0 : i64, scratch_operands = 0 : i64, tpu.core_type = #tpu.core_type<tc>, window_params = [{transform_indices = @transform_0, window_bounds = array<i64: 512, 64>}, {transform_indices = @transform_1, window_bounds = array<i64: 512, 32>}, {pipeline_mode = #tpu.pipeline_mode<synchronous>, transform_indices = @transform_2, window_bounds = array<i64: 64, 256>}, {pipeline_mode = #tpu.pipeline_mode<synchronous>, transform_indices = @transform_3, window_bounds = array<i64: 1, 256>}, {pipeline_mode = #tpu.pipeline_mode<synchronous>, transform_indices = @transform_4, window_bounds = array<i64: 256, 256>}, {pipeline_mode = #tpu.pipeline_mode<synchronous>, transform_indices = @transform_5, window_bounds = array<i64: 1, 256>}, {pipeline_mode = #tpu.pipeline_mode<synchronous>, transform_indices = @transform_6, window_bounds = array<i64: 256, 256>}, {pipeline_mode = #tpu.pipeline_mode<synchronous>, transform_indices = @transform_7, window_bounds = array<i64: 1, 256>}, {pipeline_mode = #tpu.pipeline_mode<synchronous>, transform_indices = @transform_8, window_bounds = array<i64: 256, 256>}, {pipeline_mode = #tpu.pipeline_mode<synchronous>, transform_indices = @transform_9, window_bounds = array<i64: 1, 256>}, {pipeline_mode = #tpu.pipeline_mode<synchronous>, transform_indices = @transform_10, window_bounds = array<i64: 256, 256>}, {pipeline_mode = #tpu.pipeline_mode<synchronous>, transform_indices = @transform_11, window_bounds = array<i64: 1, 256>}, {pipeline_mode = #tpu.pipeline_mode<synchronous>, transform_indices = @transform_12, window_bounds = array<i64: 64, 256>}, {pipeline_mode = #tpu.pipeline_mode<synchronous>, transform_indices = @transform_13, window_bounds = array<i64: 256, 256>}, {pipeline_mode = #tpu.pipeline_mode<synchronous>, transform_indices = @transform_14, window_bounds = array<i64: 1, 256>}, {pipeline_mode = #tpu.pipeline_mode<synchronous>, transform_indices = @transform_15, window_bounds = array<i64: 256, 256>}, {pipeline_mode = #tpu.pipeline_mode<synchronous>, transform_indices = @transform_16, window_bounds = array<i64: 1, 256>}, {pipeline_mode = #tpu.pipeline_mode<synchronous>, transform_indices = @transform_17, window_bounds = array<i64: 256, 256>}, {pipeline_mode = #tpu.pipeline_mode<synchronous>, transform_indices = @transform_18, window_bounds = array<i64: 1, 256>}, {pipeline_mode = #tpu.pipeline_mode<synchronous>, transform_indices = @transform_19, window_bounds = array<i64: 256, 256>}, {pipeline_mode = #tpu.pipeline_mode<synchronous>, transform_indices = @transform_20, window_bounds = array<i64: 1, 256>}, {pipeline_mode = #tpu.pipeline_mode<synchronous>, transform_indices = @transform_21, window_bounds = array<i64: 256, 128>}, {pipeline_mode = #tpu.pipeline_mode<synchronous>, transform_indices = @transform_22, window_bounds = array<i64: 32, 128>}, {pipeline_mode = #tpu.pipeline_mode<synchronous>, transform_indices = @transform_23, window_bounds = array<i64: 1, 128>}, {pipeline_mode = #tpu.pipeline_mode<synchronous>, transform_indices = @transform_24, window_bounds = array<i64: 128, 128>}, {pipeline_mode = #tpu.pipeline_mode<synchronous>, transform_indices = @transform_25, window_bounds = array<i64: 256, 128>}, {pipeline_mode = #tpu.pipeline_mode<synchronous>, transform_indices = @transform_26, window_bounds = array<i64: 1, 128>}, {transform_indices = @transform_27, window_bounds = array<i64: 512, 128>}]} {
    %c0 = arith.constant 0 : index
    %c0_0 = arith.constant 0 : index
    %0 = vector.load %arg1[%c0, %c0_0] : memref<512x64xbf16, #tpu.memory_space<vmem>>, vector<512x64xbf16>
    %c0_1 = arith.constant 0 : index
    %c0_2 = arith.constant 0 : index
    %1 = vector.load %arg2[%c0_1, %c0_2] : memref<512x32xbf16, #tpu.memory_space<vmem>>, vector<512x32xbf16>
    %c0_3 = arith.constant 0 : index
    %c0_4 = arith.constant 0 : index
    %2 = vector.load %arg3[%c0_3, %c0_4] : memref<64x256xbf16, #tpu.memory_space<vmem>>, vector<64x256xbf16>
    %c0_5 = arith.constant 0 : index
    %c0_6 = arith.constant 0 : index
    %3 = vector.load %arg4[%c0_5, %c0_6] : memref<1x256xf32, #tpu.memory_space<vmem>>, vector<1x256xf32>
    %cst = arith.constant dense<0.000000e+00> : vector<512x256xf32>
    %4 = tpu.matmul %0, %2, %cst {dimension_numbers = #tpu.dot_dimension_numbers<[1], [0], [0], [1], [0, 0, 1, 1], [], []>} : vector<512x64xbf16>, vector<64x256xbf16>, vector<512x256xf32> -> vector<512x256xf32>
    %5 = vector.broadcast %3 : vector<1x256xf32> to vector<512x256xf32>
    %6 = arith.addf %4, %5 : vector<512x256xf32>
    %cst_7 = arith.constant 0.000000e+00 : f32
    %7 = vector.broadcast %cst_7 : f32 to vector<512x256xf32>
    %8 = arith.maximumf %6, %7 : vector<512x256xf32>
    %9 = arith.truncf %8 : vector<512x256xf32> to vector<512x256xbf16>
    %c0_8 = arith.constant 0 : index
    %c0_9 = arith.constant 0 : index
    %10 = vector.load %arg5[%c0_8, %c0_9] : memref<256x256xbf16, #tpu.memory_space<vmem>>, vector<256x256xbf16>
    %c0_10 = arith.constant 0 : index
    %c0_11 = arith.constant 0 : index
    %11 = vector.load %arg6[%c0_10, %c0_11] : memref<1x256xf32, #tpu.memory_space<vmem>>, vector<1x256xf32>
    %cst_12 = arith.constant dense<0.000000e+00> : vector<512x256xf32>
    %12 = tpu.matmul %9, %10, %cst_12 {dimension_numbers = #tpu.dot_dimension_numbers<[1], [0], [0], [1], [0, 0, 1, 1], [], []>} : vector<512x256xbf16>, vector<256x256xbf16>, vector<512x256xf32> -> vector<512x256xf32>
    %13 = vector.broadcast %11 : vector<1x256xf32> to vector<512x256xf32>
    %14 = arith.addf %12, %13 : vector<512x256xf32>
    %cst_13 = arith.constant 0.000000e+00 : f32
    %15 = vector.broadcast %cst_13 : f32 to vector<512x256xf32>
    %16 = arith.maximumf %14, %15 : vector<512x256xf32>
    %17 = arith.truncf %16 : vector<512x256xf32> to vector<512x256xbf16>
    %c0_14 = arith.constant 0 : index
    %c0_15 = arith.constant 0 : index
    %18 = vector.load %arg7[%c0_14, %c0_15] : memref<256x256xbf16, #tpu.memory_space<vmem>>, vector<256x256xbf16>
    %c0_16 = arith.constant 0 : index
    %c0_17 = arith.constant 0 : index
    %19 = vector.load %arg8[%c0_16, %c0_17] : memref<1x256xf32, #tpu.memory_space<vmem>>, vector<1x256xf32>
    %cst_18 = arith.constant dense<0.000000e+00> : vector<512x256xf32>
    %20 = tpu.matmul %17, %18, %cst_18 {dimension_numbers = #tpu.dot_dimension_numbers<[1], [0], [0], [1], [0, 0, 1, 1], [], []>} : vector<512x256xbf16>, vector<256x256xbf16>, vector<512x256xf32> -> vector<512x256xf32>
    %21 = vector.broadcast %19 : vector<1x256xf32> to vector<512x256xf32>
    %22 = arith.addf %20, %21 : vector<512x256xf32>
    %cst_19 = arith.constant 0.000000e+00 : f32
    %23 = vector.broadcast %cst_19 : f32 to vector<512x256xf32>
    %24 = arith.maximumf %22, %23 : vector<512x256xf32>
    %25 = arith.truncf %24 : vector<512x256xf32> to vector<512x256xbf16>
    %c0_20 = arith.constant 0 : index
    %c0_21 = arith.constant 0 : index
    %26 = vector.load %arg9[%c0_20, %c0_21] : memref<256x256xbf16, #tpu.memory_space<vmem>>, vector<256x256xbf16>
    %c0_22 = arith.constant 0 : index
    %c0_23 = arith.constant 0 : index
    %27 = vector.load %arg10[%c0_22, %c0_23] : memref<1x256xf32, #tpu.memory_space<vmem>>, vector<1x256xf32>
    %cst_24 = arith.constant dense<0.000000e+00> : vector<512x256xf32>
    %28 = tpu.matmul %25, %26, %cst_24 {dimension_numbers = #tpu.dot_dimension_numbers<[1], [0], [0], [1], [0, 0, 1, 1], [], []>} : vector<512x256xbf16>, vector<256x256xbf16>, vector<512x256xf32> -> vector<512x256xf32>
    %29 = vector.broadcast %27 : vector<1x256xf32> to vector<512x256xf32>
    %30 = arith.addf %28, %29 : vector<512x256xf32>
    %cst_25 = arith.constant 0.000000e+00 : f32
    %31 = vector.broadcast %cst_25 : f32 to vector<512x256xf32>
    %32 = arith.maximumf %30, %31 : vector<512x256xf32>
    %33 = arith.truncf %32 : vector<512x256xf32> to vector<512x256xbf16>
    %c0_26 = arith.constant 0 : index
    %c0_27 = arith.constant 0 : index
    %34 = vector.load %arg11[%c0_26, %c0_27] : memref<256x256xbf16, #tpu.memory_space<vmem>>, vector<256x256xbf16>
    %c0_28 = arith.constant 0 : index
    %c0_29 = arith.constant 0 : index
    %35 = vector.load %arg12[%c0_28, %c0_29] : memref<1x256xf32, #tpu.memory_space<vmem>>, vector<1x256xf32>
    %cst_30 = arith.constant dense<0.000000e+00> : vector<512x256xf32>
    %36 = tpu.matmul %33, %34, %cst_30 {dimension_numbers = #tpu.dot_dimension_numbers<[1], [0], [0], [1], [0, 0, 1, 1], [], []>} : vector<512x256xbf16>, vector<256x256xbf16>, vector<512x256xf32> -> vector<512x256xf32>
    %37 = vector.broadcast %35 : vector<1x256xf32> to vector<512x256xf32>
    %38 = arith.addf %36, %37 : vector<512x256xf32>
    %cst_31 = arith.constant 0.000000e+00 : f32
    %39 = vector.broadcast %cst_31 : f32 to vector<512x256xf32>
    %40 = arith.maximumf %38, %39 : vector<512x256xf32>
    %41 = arith.truncf %40 : vector<512x256xf32> to vector<512x256xbf16>
    %c0_32 = arith.constant 0 : index
    %c0_33 = arith.constant 0 : index
    %42 = vector.load %arg13[%c0_32, %c0_33] : memref<64x256xbf16, #tpu.memory_space<vmem>>, vector<64x256xbf16>
    %c0_34 = arith.constant 0 : index
    %c0_35 = arith.constant 0 : index
    %43 = vector.load %arg14[%c0_34, %c0_35] : memref<256x256xbf16, #tpu.memory_space<vmem>>, vector<256x256xbf16>
    %c0_36 = arith.constant 0 : index
    %c0_37 = arith.constant 0 : index
    %44 = vector.load %arg15[%c0_36, %c0_37] : memref<1x256xf32, #tpu.memory_space<vmem>>, vector<1x256xf32>
    %cst_38 = arith.constant dense<0.000000e+00> : vector<512x256xf32>
    %45 = tpu.matmul %0, %42, %cst_38 {dimension_numbers = #tpu.dot_dimension_numbers<[1], [0], [0], [1], [0, 0, 1, 1], [], []>} : vector<512x64xbf16>, vector<64x256xbf16>, vector<512x256xf32> -> vector<512x256xf32>
    %cst_39 = arith.constant dense<0.000000e+00> : vector<512x256xf32>
    %46 = tpu.matmul %41, %43, %cst_39 {dimension_numbers = #tpu.dot_dimension_numbers<[1], [0], [0], [1], [0, 0, 1, 1], [], []>} : vector<512x256xbf16>, vector<256x256xbf16>, vector<512x256xf32> -> vector<512x256xf32>
    %47 = arith.addf %45, %46 : vector<512x256xf32>
    %48 = vector.broadcast %44 : vector<1x256xf32> to vector<512x256xf32>
    %49 = arith.addf %47, %48 : vector<512x256xf32>
    %cst_40 = arith.constant 0.000000e+00 : f32
    %50 = vector.broadcast %cst_40 : f32 to vector<512x256xf32>
    %51 = arith.maximumf %49, %50 : vector<512x256xf32>
    %52 = arith.truncf %51 : vector<512x256xf32> to vector<512x256xbf16>
    %c0_41 = arith.constant 0 : index
    %c0_42 = arith.constant 0 : index
    %53 = vector.load %arg16[%c0_41, %c0_42] : memref<256x256xbf16, #tpu.memory_space<vmem>>, vector<256x256xbf16>
    %c0_43 = arith.constant 0 : index
    %c0_44 = arith.constant 0 : index
    %54 = vector.load %arg17[%c0_43, %c0_44] : memref<1x256xf32, #tpu.memory_space<vmem>>, vector<1x256xf32>
    %cst_45 = arith.constant dense<0.000000e+00> : vector<512x256xf32>
    %55 = tpu.matmul %52, %53, %cst_45 {dimension_numbers = #tpu.dot_dimension_numbers<[1], [0], [0], [1], [0, 0, 1, 1], [], []>} : vector<512x256xbf16>, vector<256x256xbf16>, vector<512x256xf32> -> vector<512x256xf32>
    %56 = vector.broadcast %54 : vector<1x256xf32> to vector<512x256xf32>
    %57 = arith.addf %55, %56 : vector<512x256xf32>
    %cst_46 = arith.constant 0.000000e+00 : f32
    %58 = vector.broadcast %cst_46 : f32 to vector<512x256xf32>
    %59 = arith.maximumf %57, %58 : vector<512x256xf32>
    %60 = arith.truncf %59 : vector<512x256xf32> to vector<512x256xbf16>
    %c0_47 = arith.constant 0 : index
    %c0_48 = arith.constant 0 : index
    %61 = vector.load %arg18[%c0_47, %c0_48] : memref<256x256xbf16, #tpu.memory_space<vmem>>, vector<256x256xbf16>
    %c0_49 = arith.constant 0 : index
    %c0_50 = arith.constant 0 : index
    %62 = vector.load %arg19[%c0_49, %c0_50] : memref<1x256xf32, #tpu.memory_space<vmem>>, vector<1x256xf32>
    %cst_51 = arith.constant dense<0.000000e+00> : vector<512x256xf32>
    %63 = tpu.matmul %60, %61, %cst_51 {dimension_numbers = #tpu.dot_dimension_numbers<[1], [0], [0], [1], [0, 0, 1, 1], [], []>} : vector<512x256xbf16>, vector<256x256xbf16>, vector<512x256xf32> -> vector<512x256xf32>
    %64 = vector.broadcast %62 : vector<1x256xf32> to vector<512x256xf32>
    %65 = arith.addf %63, %64 : vector<512x256xf32>
    %cst_52 = arith.constant 0.000000e+00 : f32
    %66 = vector.broadcast %cst_52 : f32 to vector<512x256xf32>
    %67 = arith.maximumf %65, %66 : vector<512x256xf32>
    %68 = arith.truncf %67 : vector<512x256xf32> to vector<512x256xbf16>
    %c0_53 = arith.constant 0 : index
    %c0_54 = arith.constant 0 : index
    %69 = vector.load %arg20[%c0_53, %c0_54] : memref<256x256xbf16, #tpu.memory_space<vmem>>, vector<256x256xbf16>
    %c0_55 = arith.constant 0 : index
    %c0_56 = arith.constant 0 : index
    %70 = vector.load %arg21[%c0_55, %c0_56] : memref<1x256xf32, #tpu.memory_space<vmem>>, vector<1x256xf32>
    %cst_57 = arith.constant dense<0.000000e+00> : vector<512x256xf32>
    %71 = tpu.matmul %68, %69, %cst_57 {dimension_numbers = #tpu.dot_dimension_numbers<[1], [0], [0], [1], [0, 0, 1, 1], [], []>} : vector<512x256xbf16>, vector<256x256xbf16>, vector<512x256xf32> -> vector<512x256xf32>
    %72 = vector.broadcast %70 : vector<1x256xf32> to vector<512x256xf32>
    %73 = arith.addf %71, %72 : vector<512x256xf32>
    %74 = arith.truncf %73 : vector<512x256xf32> to vector<512x256xbf16>
    %c0_58 = arith.constant 0 : index
    %c0_59 = arith.constant 0 : index
    %75 = vector.load %arg22[%c0_58, %c0_59] : memref<256x128xbf16, #tpu.memory_space<vmem>>, vector<256x128xbf16>
    %c0_60 = arith.constant 0 : index
    %c0_61 = arith.constant 0 : index
    %76 = vector.load %arg23[%c0_60, %c0_61] : memref<32x128xbf16, #tpu.memory_space<vmem>>, vector<32x128xbf16>
    %c0_62 = arith.constant 0 : index
    %c0_63 = arith.constant 0 : index
    %77 = vector.load %arg24[%c0_62, %c0_63] : memref<1x128xf32, #tpu.memory_space<vmem>>, vector<1x128xf32>
    %cst_64 = arith.constant dense<0.000000e+00> : vector<512x128xf32>
    %78 = tpu.matmul %74, %75, %cst_64 {dimension_numbers = #tpu.dot_dimension_numbers<[1], [0], [0], [1], [0, 0, 1, 1], [], []>} : vector<512x256xbf16>, vector<256x128xbf16>, vector<512x128xf32> -> vector<512x128xf32>
    %cst_65 = arith.constant dense<0.000000e+00> : vector<512x128xf32>
    %79 = tpu.matmul %1, %76, %cst_65 {dimension_numbers = #tpu.dot_dimension_numbers<[1], [0], [0], [1], [0, 0, 1, 1], [], []>} : vector<512x32xbf16>, vector<32x128xbf16>, vector<512x128xf32> -> vector<512x128xf32>
    %80 = arith.addf %78, %79 : vector<512x128xf32>
    %81 = vector.broadcast %77 : vector<1x128xf32> to vector<512x128xf32>
    %82 = arith.addf %80, %81 : vector<512x128xf32>
    %cst_66 = arith.constant 0.000000e+00 : f32
    %83 = vector.broadcast %cst_66 : f32 to vector<512x128xf32>
    %84 = arith.maximumf %82, %83 : vector<512x128xf32>
    %85 = arith.truncf %84 : vector<512x128xf32> to vector<512x128xbf16>
    %c0_67 = arith.constant 0 : index
    %c0_68 = arith.constant 0 : index
    %86 = vector.load %arg25[%c0_67, %c0_68] : memref<128x128xbf16, #tpu.memory_space<vmem>>, vector<128x128xbf16>
    %c0_69 = arith.constant 0 : index
    %c0_70 = arith.constant 0 : index
    %87 = vector.load %arg26[%c0_69, %c0_70] : memref<256x128xbf16, #tpu.memory_space<vmem>>, vector<256x128xbf16>
    %c0_71 = arith.constant 0 : index
    %c0_72 = arith.constant 0 : index
    %88 = vector.load %arg27[%c0_71, %c0_72] : memref<1x128xf32, #tpu.memory_space<vmem>>, vector<1x128xf32>
    %cst_73 = arith.constant dense<0.000000e+00> : vector<512x128xf32>
    %89 = tpu.matmul %85, %86, %cst_73 {dimension_numbers = #tpu.dot_dimension_numbers<[1], [0], [0], [1], [0, 0, 1, 1], [], []>} : vector<512x128xbf16>, vector<128x128xbf16>, vector<512x128xf32> -> vector<512x128xf32>
    %cst_74 = arith.constant dense<0.000000e+00> : vector<512x128xf32>
    %90 = tpu.matmul %68, %87, %cst_74 {dimension_numbers = #tpu.dot_dimension_numbers<[1], [0], [0], [1], [0, 0, 1, 1], [], []>} : vector<512x256xbf16>, vector<256x128xbf16>, vector<512x128xf32> -> vector<512x128xf32>
    %91 = arith.addf %89, %90 : vector<512x128xf32>
    %92 = vector.broadcast %88 : vector<1x128xf32> to vector<512x128xf32>
    %93 = arith.addf %91, %92 : vector<512x128xf32>
    %c0_75 = arith.constant 0 : index
    %c0_76 = arith.constant 0 : index
    %94 = vector.load %arg28[%c0_75, %c0_76] : memref<512x128xf32, #tpu.memory_space<vmem>>, vector<512x128xf32>
    tpu.vector_store %arg28[%c0_75, %c0_76], %93 {strides = array<i32>} : memref<512x128xf32, #tpu.memory_space<vmem>>, vector<512x128xf32>,
    return
  }
  func.func @transform_0(%arg0: i32) -> (i32, i32) {
    %c0_i32 = arith.constant 0 : i32
    %c0_i32_0 = arith.constant 0 : i32
    return %arg0, %c0_i32 : i32, i32
  }
  func.func @transform_1(%arg0: i32) -> (i32, i32) {
    %c0_i32 = arith.constant 0 : i32
    %c0_i32_0 = arith.constant 0 : i32
    return %arg0, %c0_i32 : i32, i32
  }
  func.func @transform_2(%arg0: i32) -> (i32, i32) {
    %c0_i32 = arith.constant 0 : i32
    %c0_i32_0 = arith.constant 0 : i32
    %c0_i32_1 = arith.constant 0 : i32
    return %c0_i32, %c0_i32_0 : i32, i32
  }
  func.func @transform_3(%arg0: i32) -> (i32, i32) {
    %c0_i32 = arith.constant 0 : i32
    %c0_i32_0 = arith.constant 0 : i32
    %c0_i32_1 = arith.constant 0 : i32
    return %c0_i32, %c0_i32_0 : i32, i32
  }
  func.func @transform_4(%arg0: i32) -> (i32, i32) {
    %c0_i32 = arith.constant 0 : i32
    %c0_i32_0 = arith.constant 0 : i32
    %c0_i32_1 = arith.constant 0 : i32
    return %c0_i32, %c0_i32_0 : i32, i32
  }
  func.func @transform_5(%arg0: i32) -> (i32, i32) {
    %c0_i32 = arith.constant 0 : i32
    %c0_i32_0 = arith.constant 0 : i32
    %c0_i32_1 = arith.constant 0 : i32
    return %c0_i32, %c0_i32_0 : i32, i32
  }
  func.func @transform_6(%arg0: i32) -> (i32, i32) {
    %c0_i32 = arith.constant 0 : i32
    %c0_i32_0 = arith.constant 0 : i32
    %c0_i32_1 = arith.constant 0 : i32
    return %c0_i32, %c0_i32_0 : i32, i32
  }
  func.func @transform_7(%arg0: i32) -> (i32, i32) {
    %c0_i32 = arith.constant 0 : i32
    %c0_i32_0 = arith.constant 0 : i32
    %c0_i32_1 = arith.constant 0 : i32
    return %c0_i32, %c0_i32_0 : i32, i32
  }
  func.func @transform_8(%arg0: i32) -> (i32, i32) {
    %c0_i32 = arith.constant 0 : i32
    %c0_i32_0 = arith.constant 0 : i32
    %c0_i32_1 = arith.constant 0 : i32
    return %c0_i32, %c0_i32_0 : i32, i32
  }
  func.func @transform_9(%arg0: i32) -> (i32, i32) {
    %c0_i32 = arith.constant 0 : i32
    %c0_i32_0 = arith.constant 0 : i32
    %c0_i32_1 = arith.constant 0 : i32
    return %c0_i32, %c0_i32_0 : i32, i32
  }
  func.func @transform_10(%arg0: i32) -> (i32, i32) {
    %c0_i32 = arith.constant 0 : i32
    %c0_i32_0 = arith.constant 0 : i32
    %c0_i32_1 = arith.constant 0 : i32
    return %c0_i32, %c0_i32_0 : i32, i32
  }
  func.func @transform_11(%arg0: i32) -> (i32, i32) {
    %c0_i32 = arith.constant 0 : i32
    %c0_i32_0 = arith.constant 0 : i32
    %c0_i32_1 = arith.constant 0 : i32
    return %c0_i32, %c0_i32_0 : i32, i32
  }
  func.func @transform_12(%arg0: i32) -> (i32, i32) {
    %c0_i32 = arith.constant 0 : i32
    %c0_i32_0 = arith.constant 0 : i32
    %c0_i32_1 = arith.constant 0 : i32
    return %c0_i32, %c0_i32_0 : i32, i32
  }
  func.func @transform_13(%arg0: i32) -> (i32, i32) {
    %c0_i32 = arith.constant 0 : i32
    %c0_i32_0 = arith.constant 0 : i32
    %c0_i32_1 = arith.constant 0 : i32
    return %c0_i32, %c0_i32_0 : i32, i32
  }
  func.func @transform_14(%arg0: i32) -> (i32, i32) {
    %c0_i32 = arith.constant 0 : i32
    %c0_i32_0 = arith.constant 0 : i32
    %c0_i32_1 = arith.constant 0 : i32
    return %c0_i32, %c0_i32_0 : i32, i32
  }
  func.func @transform_15(%arg0: i32) -> (i32, i32) {
    %c0_i32 = arith.constant 0 : i32
    %c0_i32_0 = arith.constant 0 : i32
    %c0_i32_1 = arith.constant 0 : i32
    return %c0_i32, %c0_i32_0 : i32, i32
  }
  func.func @transform_16(%arg0: i32) -> (i32, i32) {
    %c0_i32 = arith.constant 0 : i32
    %c0_i32_0 = arith.constant 0 : i32
    %c0_i32_1 = arith.constant 0 : i32
    return %c0_i32, %c0_i32_0 : i32, i32
  }
  func.func @transform_17(%arg0: i32) -> (i32, i32) {
    %c0_i32 = arith.constant 0 : i32
    %c0_i32_0 = arith.constant 0 : i32
    %c0_i32_1 = arith.constant 0 : i32
    return %c0_i32, %c0_i32_0 : i32, i32
  }
  func.func @transform_18(%arg0: i32) -> (i32, i32) {
    %c0_i32 = arith.constant 0 : i32
    %c0_i32_0 = arith.constant 0 : i32
    %c0_i32_1 = arith.constant 0 : i32
    return %c0_i32, %c0_i32_0 : i32, i32
  }
  func.func @transform_19(%arg0: i32) -> (i32, i32) {
    %c0_i32 = arith.constant 0 : i32
    %c0_i32_0 = arith.constant 0 : i32
    %c0_i32_1 = arith.constant 0 : i32
    return %c0_i32, %c0_i32_0 : i32, i32
  }
  func.func @transform_20(%arg0: i32) -> (i32, i32) {
    %c0_i32 = arith.constant 0 : i32
    %c0_i32_0 = arith.constant 0 : i32
    %c0_i32_1 = arith.constant 0 : i32
    return %c0_i32, %c0_i32_0 : i32, i32
  }
  func.func @transform_21(%arg0: i32) -> (i32, i32) {
    %c0_i32 = arith.constant 0 : i32
    %c0_i32_0 = arith.constant 0 : i32
    %c0_i32_1 = arith.constant 0 : i32
    return %c0_i32, %c0_i32_0 : i32, i32
  }
  func.func @transform_22(%arg0: i32) -> (i32, i32) {
    %c0_i32 = arith.constant 0 : i32
    %c0_i32_0 = arith.constant 0 : i32
    %c0_i32_1 = arith.constant 0 : i32
    return %c0_i32, %c0_i32_0 : i32, i32
  }
  func.func @transform_23(%arg0: i32) -> (i32, i32) {
    %c0_i32 = arith.constant 0 : i32
    %c0_i32_0 = arith.constant 0 : i32
    %c0_i32_1 = arith.constant 0 : i32
    return %c0_i32, %c0_i32_0 : i32, i32
  }
  func.func @transform_24(%arg0: i32) -> (i32, i32) {
    %c0_i32 = arith.constant 0 : i32
    %c0_i32_0 = arith.constant 0 : i32
    %c0_i32_1 = arith.constant 0 : i32
    return %c0_i32, %c0_i32_0 : i32, i32
  }
  func.func @transform_25(%arg0: i32) -> (i32, i32) {
    %c0_i32 = arith.constant 0 : i32
    %c0_i32_0 = arith.constant 0 : i32
    %c0_i32_1 = arith.constant 0 : i32
    return %c0_i32, %c0_i32_0 : i32, i32
  }
  func.func @transform_26(%arg0: i32) -> (i32, i32) {
    %c0_i32 = arith.constant 0 : i32
    %c0_i32_0 = arith.constant 0 : i32
    %c0_i32_1 = arith.constant 0 : i32
    return %c0_i32, %c0_i32_0 : i32, i32
  }
  func.func @transform_27(%arg0: i32) -> (i32, i32) {
    %c0_i32 = arith.constant 0 : i32
    %c0_i32_0 = arith.constant 0 : i32
    return %arg0, %c0_i32 : i32, i32
  }
}

</mosaic_0001>

<bundles_post_ra>
// kernel: tpu_custom_call.1
= control target key start
LH: loop header
LB: loop body
LE: loop exit
PB: predicated region body
PF: predicated region fallthrough
CT: control target
= control target key end

     0   :  { %s16608_s0 = inlined_call_operand.vmem [shape: bf16[1024,64], index: 0, kind: input, shape index: {}]   ;;  %s16609_s1 = inlined_call_operand.vmem [shape: bf16[1024,32], index: 1, kind: input, shape index: {}]   ;;  %s16610_s2 = inlined_call_operand.hbm [shape: bf16[64,256], index: 2, kind: input, shape index: {}]   ;;  %s16611_s3 = inlined_call_operand.hbm [shape: f32[1,256], index: 3, kind: input, shape index: {}]   ;;  %s16612_s4 = inlined_call_operand.vmem [shape: bf16[256,256], index: 4, kind: input, shape index: {}]   ;;  %s16613_s5 = inlined_call_operand.hbm [shape: f32[1,256], index: 5, kind: input, shape index: {}]   ;;  %s16614_s6 = inlined_call_operand.vmem [shape: bf16[256,256], index: 6, kind: input, shape index: {}]   ;;  %s16615_s7 = inlined_call_operand.hbm [shape: f32[1,256], index: 7, kind: input, shape index: {}]   ;;  %s16616_s8 = inlined_call_operand.vmem [shape: bf16[256,256], index: 8, kind: input, shape index: {}]   ;;  %s16617_s9 = inlined_call_operand.vmem [shape: f32[1,256], index: 9, kind: input, shape index: {}]   ;;  %s16618_s10 = inlined_call_operand.vmem [shape: bf16[256,256], index: 10, kind: input, shape index: {}]   ;;  %s16619_s11 = inlined_call_operand.vmem [shape: f32[1,256], index: 11, kind: input, shape index: {}]   ;;  %s16620_s12 = inlined_call_operand.hbm [shape: bf16[64,256], index: 12, kind: input, shape index: {}]   ;;  %s16621_s13 = inlined_call_operand.vmem [shape: bf16[256,256], index: 13, kind: input, shape index: {}]   ;;  %s16622_s14 = inlined_call_operand.vmem [shape: f32[1,256], index: 14, kind: input, shape index: {}]   ;;  %s16623_s15 = inlined_call_operand.hbm [shape: bf16[256,256], index: 15, kind: input, shape index: {}]   ;;  %s16624_s16 = inlined_call_operand.vmem [shape: f32[1,256], index: 16, kind: input, shape index: {}]   ;;  %s16625_s17 = inlined_call_operand.hbm [shape: bf16[256,256], index: 17, kind: input, shape index: {}]   ;;  %s16626_s18 = inlined_call_operand.vmem [shape: f32[1,256], index: 18, kind: input, shape index: {}]   ;;  %s16627_s19 = inlined_call_operand.hbm [shape: bf16[256,256], index: 19, kind: input, shape index: {}]   ;;  %s16628_s20 = inlined_call_operand.vmem [shape: f32[1,256], index: 20, kind: input, shape index: {}]   ;;  %s16629_s21 = inlined_call_operand.vmem [shape: bf16[256,128], index: 21, kind: input, shape index: {}]   ;;  %s16630_s22 = inlined_call_operand.vmem [shape: bf16[32,128], index: 22, kind: input, shape index: {}]   ;;  %s16631_s23 = inlined_call_operand.vmem [shape: f32[1,128], index: 23, kind: input, shape index: {}]   ;;  %s16632_s24 = inlined_call_operand.hbm [shape: bf16[128,128], index: 24, kind: input, shape index: {}]   ;;  %s16633_s25 = inlined_call_operand.hbm [shape: bf16[256,128], index: 25, kind: input, shape index: {}]   ;;  %s16634_s26 = inlined_call_operand.vmem [shape: f32[1,128], index: 26, kind: input, shape index: {}]   ;;  %s16635_s27 = inlined_call_operand.hbm [shape: f32[1024,128], index: 27, kind: output, shape index: {}]  }
   0x1   :  { %16677 = sst [smem:[#allocation95_spill]] %s16608_s0 }
   0x2   :  { %16678 = sst [smem:[#allocation96_spill]] %s16609_s1 }
   0x3   :  { %16679 = sst [smem:[#allocation97_spill]] %s16610_s2 }
   0x4   :  { %16680 = sst [smem:[#allocation98_spill]] %s16611_s3 }
   0x5   :  { %16681 = sst [smem:[#allocation99_spill]] %s16612_s4 }
   0x6   :  { %16682 = sst [smem:[#allocation100_spill]] %s16613_s5 }
   0x7   :  { %16683 = sst [smem:[#allocation101_spill]] %s16614_s6 }
   0x8   :  { %16684 = sst [smem:[#allocation102_spill]] %s16615_s7 }
   0x9   :  { %16685 = sst [smem:[#allocation103_spill]] %s16616_s8 }
   0xa   :  { %16686 = sst [smem:[#allocation104_spill]] %s16617_s9 }
   0xb   :  { %16687 = sst [smem:[#allocation105_spill]] %s16618_s10 }
   0xc   :  { %16688 = sst [smem:[#allocation106_spill]] %s16619_s11 }
   0xd   :  { %16689 = sst [smem:[#allocation107_spill]] %s16623_s15 }
   0xe   :  { %16690 = sst [smem:[#allocation108_spill]] %s16627_s19 }
   0xf   :  { %16691 = sst [smem:[#allocation109_spill]] %s16635_s27 }
  0x10   :  { %32 = vsyncpa [#allocation3], 0 }
  0x11   :  { %33 = vsyncpa [#allocation6], 0 }
  0x12   :  { %34 = vsyncpa [#allocation9], 0 }
  0x13   :  { %35 = vsyncpa [#allocation12], 0 }
  0x14   :  { %36 = vsyncpa [#allocation15], 0 }
  0x15   :  { %37 = vsyncpa [#allocation18], 0 }
  0x16   :  { %38 = vsyncpa [#allocation4], 0 }
  0x17   :  { %40 = vsyncpa [#allocation4 + $0x1], 0  ;;  %s12565_s7 = smov 0   ;;  %s12567_s4 = smov 0  }
  0x18   :  { %s12569_s8 = smov 0   ;;  %s12571_s30 = smov 0  }
  0x19 LB: > { %16692 = sst [smem:[#allocation27_spill]] %s12393_s7  ;;  %s12586_s9 = sadd.s32 4294967295, %s12405_s30   ;;  %s12405_s30 = sphi %s12571_s30, %s16921_s30   ;;  %s12401_s8 = sphi %s12569_s8, %s16926_s8   ;;  %s12397_s4 = sphi %s12567_s4, %s16925_s4   ;;  %s12393_s7 = sphi %s12565_s7, %s16924_s7  }
  0x1a   : > { %16693 = sst [smem:[#allocation28_spill]] %s12401_s8  ;;  %s10603_s5 = sadd.s32 4294967294, %s12405_s30  }
  0x1b   : > { %16694 = sst [smem:[#allocation29_spill]] %s12405_s30  ;;  %s12590_s28 = sadd.s32 1, %s12405_s30  }
  0x1c   : > { %16695 = sst [smem:[#allocation30_spill]] %s12590_s28  ;;  %s630_s0 = sadd.s32 1, %s12401_s8 }
  0x1d   : > { %s627_s10 = ssub.s32 %s12405_s30, %s12590_s28  ;;  %p640_p0 = scmp.ne.s32.totalorder %s12401_s8, %s12397_s4 }
  0x1e   : > { %p628_p1 = scmp.eq.s32.totalorder %s627_s10, 0  ;;  %p641_p2 = scmp.eq.s32.totalorder %s12586_s9, 1 }
  0x1f   : > { %p646_p3 = scmp.ne.s32.totalorder %s12397_s4, %s12393_s7  ;;  %p647_p4 = scmp.eq.s32.totalorder %s10603_s5, 1 }
  0x20   : > { %s12601_s29 = scalar_select %p628_p1, %s12401_s8, %s630_s0  }
  0x21   : > { %p12603_p5 = por %p641_p2, %p640_p0  ;;  %p12607_p6 = por %p647_p4, %p646_p3 }
  0x22   : > { %16696 = sst [smem:[#allocation31_spill]] %s12601_s29  ;;  %p10604_p7 = scmp.ge.s32.totalorder %s12405_s30, 1 }
  0x23   : > { %s16697_s1 = scalar_select %p12603_p5, 1, 0 }
  0x24   : > { %s16698_s6 = scalar_select %p12607_p6, 1, 0 }
  0x25   : > { %p654_p8 = scmp.lt.s32.totalorder %s12405_s30, 3  ;;  %p16645_p9 = scmp.eq.s32.totalorder %s12586_s9, 0 }
  0x26   : > { %16699 = sst [smem:[#allocation32_spill]] %s16698_s6  ;;  %s12407_s2 = smov [#allocation5]  }
  0x27   : > { %p12614_p10 = pnand %p10604_p7, %p654_p8  ;;  %s680_s3 = sshll.u32 %s12407_s2, 4  ;;  %s681_s3 = int_to_ptr.vmem [resolvable:$true] %s680_s3 }
  0x28   : > { %s12408_s5 = smov [#allocation8]   ;;  %s12409_s29 = smov [#allocation11]  }
  0x29   : > { %s16700_s11 = scalar_select %p12614_p10, 1, 0 }
  0x2a   : > { %p11410_p11 = pneg %p12614_p10  ;;  %s708_s0 = sshll.u32 %s12408_s5, 4  ;;  %s709_s0 = int_to_ptr.vmem [resolvable:$true] %s708_s0 }
  0x2b   : > { %s749_s8 = sshll.u32 %s12409_s29, 4  ;;  %s12072_s2 = scalar_lea.vmem %s681_s3, 32  ;;  %s750_s8 = int_to_ptr.vmem [resolvable:$true] %s749_s8 }
  0x2c   : > { %p12622_p12 = pnand %p16645_p9, %p11410_p11  ;;  %p12073_p0 = scmp.ne.s32.totalorder %s681_s3, %s12072_s2 }
  0x2d   : > { %p12080_p3 = scmp.lt.s32.totalorder %s681_s3, %s681_s3  ;;  %p12081_p4 = scmp.lt.s32.totalorder %s12072_s2, %s12072_s2 }
  0x2e   : > { %p12628_p13 = pneg %p12622_p12 }
  0x2f   : > { %p12082_p7 = por %p12081_p4, %p12080_p3 }
  0x30   : > { %p12075_p1 = pnand %p12073_p0, %p12628_p13 }
  0x32   : > { %p12076_p2 = pneg %p12075_p1 }
  0x34   : > { %p12083_p8 = pnand %p12082_p7, %p12076_p2 }
  0x36   : > { %12086 = shalt.err (!%p12083_p8)
}
  0x37   : > { %s16703_s6 = sld [smem:[#allocation98_spill]]  ;;  %s12098_s7 = scalar_lea.vmem %s709_s0, 32 }
  0x38   : > { %p12099_p11 = scmp.ne.s32.totalorder %s709_s0, %s12098_s7  ;;  %p12106_p5 = scmp.lt.s32.totalorder %s709_s0, %s709_s0 }
  0x39   : > { %p12107_p0 = scmp.lt.s32.totalorder %s12098_s7, %s12098_s7 }
  0x3a   : > { %p12101_p9 = pnand %p12099_p11, %p12628_p13 }
  0x3b   : > { %p12108_p1 = por %p12107_p0, %p12106_p5 }
  0x3c   : > { %p12102_p6 = pneg %p12101_p9 }
  0x3d   : > { %11416 = dma.hbm_to_vmem [thread:$0]  (!%p12622_p12), %s16703_s6, 32, %s681_s3, [#allocation6]  }
  0x3e   : > { %p12109_p10 = pnand %p12108_p1, %p12102_p6 }
  0x40   : > { %12112 = shalt.err (!%p12109_p10)
}
  0x41   : > { %s16704_s27 = sld [smem:[#allocation102_spill]]  ;;  %s12124_s5 = scalar_lea.vmem %s750_s8, 4096 }
  0x42   : > { %p12125_p2 = scmp.ne.s32.totalorder %s750_s8, %s12124_s5  ;;  %p12132_p7 = scmp.lt.s32.totalorder %s750_s8, %s750_s8 }
  0x43   : > { %p12133_p9 = scmp.lt.s32.totalorder %s12124_s5, %s12124_s5 }
  0x44   : > { %p12127_p3 = pnand %p12125_p2, %p12628_p13 }
  0x45   : > { %p12134_p8 = por %p12133_p9, %p12132_p7 }
  0x46   : > { %p12128_p4 = pneg %p12127_p3 }
  0x47   : > { %11422 = dma.hbm_to_vmem [thread:$0]  (!%p12622_p12), %s16704_s27, 32, %s709_s0, [#allocation9]  }
  0x48   : > { %p12135_p11 = pnand %p12134_p8, %p12128_p4 }
  0x4a   : > { %12138 = shalt.err (!%p12135_p11)
}
  0x4b   : > { %s12410_s7 = smov 128   ;;  %s12411_s6 = smov 8  }
  0x4c   : > { %s16705_s15 = sld [smem:[#allocation107_spill]]  ;;  %s12412_s3 = smov [#allocation14]  }
  0x4d   : > { %s781_s0 = sshll.u32 %s12412_s3, 4  ;;  %s12413_s29 = smov [#allocation2]   ;;  %s782_s0 = int_to_ptr.vmem [resolvable:$true] %s781_s0 }
  0x4e   : > { %s666_s2 = sshll.u32 %s12413_s29, 4  ;;  %s12150_s5 = scalar_lea.vmem %s782_s0, 4096  ;;  %s667_s2 = int_to_ptr.vmem [resolvable:$true] %s666_s2 }
  0x4f   : > { %p12151_p5 = scmp.ne.s32.totalorder %s782_s0, %s12150_s5  ;;  %p12158_p0 = scmp.lt.s32.totalorder %s782_s0, %s782_s0 }
  0x50   : > { %p12159_p1 = scmp.lt.s32.totalorder %s12150_s5, %s12150_s5 }
  0x51   : > { %p12153_p6 = pnand %p12151_p5, %p12628_p13 }
  0x52   : > { %11428 = dma.hbm_to_vmem [thread:$0]  (!%p12622_p12), %s16705_s15, 4096, %s750_s8, [#allocation12], %s12410_s7, %s12410_s7, %s12411_s6  }
  0x53   : > { %p12154_p10 = pneg %p12153_p6  ;;  %p12160_p2 = por %p12159_p1, %p12158_p0 }
  0x55   : > { %p12161_p3 = pnand %p12160_p2, %p12154_p10 }
  0x57   : > { %12164 = shalt.err (!%p12161_p3)
}
  0x58   : > { %s16706_s19 = sld [smem:[#allocation108_spill]]  ;;  %s12176_s30 = scalar_lea.vmem %s667_s2, 1024 }
  0x59   : > { %p12177_p4 = scmp.ne.s32.totalorder %s667_s2, %s12176_s30  ;;  %p12184_p8 = scmp.lt.s32.totalorder %s667_s2, %s667_s2 }
  0x5a   : > { %p12185_p11 = scmp.lt.s32.totalorder %s12176_s30, %s12176_s30 }
  0x5b   : > { %p12179_p7 = pnand %p12177_p4, %p12628_p13 }
  0x5c   : > { %p12186_p5 = por %p12185_p11, %p12184_p8 }
  0x5d   : > { %p12180_p9 = pneg %p12179_p7 }
  0x5e   : > { %11434 = dma.hbm_to_vmem [thread:$0]  (!%p12622_p12), %s16706_s19, 4096, %s782_s0, [#allocation15], %s12410_s7, %s12410_s7, %s12411_s6  }
  0x5f   : > { %p12187_p6 = pnand %p12186_p5, %p12180_p9 }
  0x61   : > { %12190 = shalt.err (!%p12187_p6)
}
  0x62   : > { %s16707_s5 = sld [smem:[#allocation97_spill]]  ;;  %s12414_s0 = smov [#allocation7]  }
  0x63   : > { %s694_s8 = sshll.u32 %s12414_s0, 4  ;;  %s12415_s27 = smov [#allocation10]   ;;  %s695_s8 = int_to_ptr.vmem [resolvable:$true] %s694_s8 }
  0x64   : > { %s730_s15 = sshll.u32 %s12415_s27, 4  ;;  %s12202_s19 = scalar_lea.vmem %s695_s8, 32  ;;  %s731_s15 = int_to_ptr.vmem [resolvable:$true] %s730_s15 }
  0x65   : > { %p12203_p10 = scmp.ne.s32.totalorder %s695_s8, %s12202_s19  ;;  %p12210_p2 = scmp.lt.s32.totalorder %s695_s8, %s695_s8 }
  0x66   : > { %p12211_p3 = scmp.lt.s32.totalorder %s12202_s19, %s12202_s19 }
  0x67   : > { %p12205_p0 = pnand %p12203_p10, %p12628_p13 }
  0x68   : > { %11413 = dma.hbm_to_vmem [thread:$0]  (!%p12622_p12), %s16707_s5, 1024, %s667_s2, [#allocation3], %s12410_s7, %s12410_s7, %s12411_s6  }
  0x69   : > { %p12206_p1 = pneg %p12205_p0  ;;  %p12212_p4 = por %p12211_p3, %p12210_p2 }
  0x6b   : > { %p12213_p7 = pnand %p12212_p4, %p12206_p1 }
  0x6d   : > { %12216 = shalt.err (!%p12213_p7)
}
  0x6e   : > { %s16708_s2 = sld [smem:[#allocation100_spill]]  ;;  %s12228_s29 = scalar_lea.vmem %s731_s15, 1024 }
  0x6f   : > { %p12229_p9 = scmp.ne.s32.totalorder %s731_s15, %s12228_s29  ;;  %p12236_p5 = scmp.lt.s32.totalorder %s731_s15, %s731_s15 }
  0x70   : > { %p12237_p6 = scmp.lt.s32.totalorder %s12228_s29, %s12228_s29 }
  0x71   : > { %p12231_p8 = pnand %p12229_p9, %p12628_p13 }
  0x72   : > { %p12238_p10 = por %p12237_p6, %p12236_p5 }
  0x73   : > { %p12232_p11 = pneg %p12231_p8 }
  0x74   : > { %11419 = dma.hbm_to_vmem [thread:$0]  (!%p12622_p12), %s16708_s2, 32, %s695_s8, [#allocation6]  }
  0x75   : > { %p12239_p0 = pnand %p12238_p10, %p12232_p11 }
  0x77   : > { %12242 = shalt.err (!%p12239_p0)
}
  0x78   : > { %11425 = dma.hbm_to_vmem [thread:$0]  (!%p12622_p12), %s16620_s12, 1024, %s731_s15, [#allocation9], %s12410_s7, %s12410_s7, %s12411_s6  }
  0x79   : > { %s12416_s0 = smov [#allocation13]   ;;  %s12417_s27 = smov [#allocation16]  }
  0x7a   : > { %s765_s8 = sshll.u32 %s12416_s0, 4  ;;  %s806_s30 = sshll.u32 %s12417_s27, 4  ;;  %s766_s8 = int_to_ptr.vmem [resolvable:$true] %s765_s8  ;;  %s807_s30 = int_to_ptr.vmem [resolvable:$true] %s806_s30 }
  0x7b   : > { %s12254_s3 = scalar_lea.vmem %s766_s8, 4096  ;;  %p12262_p4 = scmp.lt.s32.totalorder %s766_s8, %s766_s8 }
  0x7c   : > { %p12255_p1 = scmp.ne.s32.totalorder %s766_s8, %s12254_s3  ;;  %p12263_p7 = scmp.lt.s32.totalorder %s12254_s3, %s12254_s3 }
  0x7e   : > { %p12257_p2 = pnand %p12255_p1, %p12628_p13  ;;  %p12264_p9 = por %p12263_p7, %p12262_p4 }
  0x80   : > { %p12258_p3 = pneg %p12257_p2 }
  0x82   : > { %p12265_p8 = pnand %p12264_p9, %p12258_p3 }
  0x84   : > { %12268 = shalt.err (!%p12265_p8)
}
  0x85   : > { %11431 = dma.hbm_to_vmem [thread:$0]  (!%p12622_p12), %s16625_s17, 4096, %s766_s8, [#allocation12], %s12410_s7, %s12410_s7, %s12411_s6  }
  0x86   : > { %s12280_s29 = scalar_lea.vmem %s807_s30, 1024  ;;  %p12288_p10 = scmp.lt.s32.totalorder %s807_s30, %s807_s30 }
  0x87   : > { %p12281_p11 = scmp.ne.s32.totalorder %s807_s30, %s12280_s29  ;;  %p12289_p0 = scmp.lt.s32.totalorder %s12280_s29, %s12280_s29 }
  0x89   : > { %p12283_p5 = pnand %p12281_p11, %p12628_p13  ;;  %p12290_p1 = por %p12289_p0, %p12288_p10 }
  0x8b   : > { %p12284_p6 = pneg %p12283_p5 }
  0x8d   : > { %p12291_p2 = pnand %p12290_p1, %p12284_p6 }
  0x8f   : > { %12294 = shalt.err (!%p12291_p2)
}
  0x90   : > { %s12418_s19 = smov 64   ;;  %s12419_s5 = smov 4  }
  0x91   : > { %11437 = dma.hbm_to_vmem [thread:$0]  (!%p12622_p12), %s16632_s24, 1024, %s807_s30, [#allocation15], %s12418_s19, %s12418_s19, %s12419_s5  }
  0x92   : > { %s12420_s7 = smov [#allocation17]  }
  0x93   : > { %s819_s6 = sshll.u32 %s12420_s7, 4  ;;  %s820_s6 = int_to_ptr.vmem [resolvable:$true] %s819_s6 }
  0x94   : > { %s12306_s8 = scalar_lea.vmem %s820_s6, 2048  ;;  %p12314_p9 = scmp.lt.s32.totalorder %s820_s6, %s820_s6 }
  0x95   : > { %p12307_p3 = scmp.ne.s32.totalorder %s820_s6, %s12306_s8  ;;  %p12315_p8 = scmp.lt.s32.totalorder %s12306_s8, %s12306_s8 }
  0x97   : > { %p12309_p4 = pnand %p12307_p3, %p12628_p13  ;;  %p12316_p11 = por %p12315_p8, %p12314_p9 }
  0x99   : > { %p12310_p7 = pneg %p12309_p4 }
  0x9b   : > { %p12317_p5 = pnand %p12316_p11, %p12310_p7 }
  0x9d   : > { %12320 = shalt.err (!%p12317_p5)
}
  0x9e   : > { %11440 = dma.hbm_to_vmem [thread:$0]  (!%p12622_p12), %s16633_s25, 2048, %s820_s6, [#allocation18], %s12418_s19, %s12418_s19, %s12419_s5  }
  0x9f   : > { %p16709_p6 = scmp.ne.s32.totalorder %s16700_s11, 0 }
  0xa1   : > { %856 = sbr.rel (%p16709_p6) target bundleno = 2851 (0xb23), region = 128 }
  0xa6   : > { %p16710_p10 = scmp.eq.s32.totalorder %s12586_s9, 0 }
  0xa8   : > { %12364 = dma.done.wait (%p16710_p10), [#allocation3], 1024   ;;  %p16711_p13 = pmov %p16710_p10 }
  0xa9   : > { %p16712_p0 = pmov %p16710_p10 }
  0xaa   : > { %12366 = vsyncadd (%p16711_p13), [#allocation3], 4294966272 }
  0xab   : > { %12368 = dma.done.wait (%p16712_p0), [#allocation6], 64   ;;  %p16713_p1 = pmov %p16712_p0 }
  0xac   : > { %p16714_p2 = pmov %p16712_p0 }
  0xad   : > { %12370 = vsyncadd (%p16713_p1), [#allocation6], 4294967232 }
  0xae   : > { %12372 = dma.done.wait (%p16714_p2), [#allocation9], 1056   ;;  %p16715_p12 = pmov %p16712_p0 }
  0xaf   : > { %p16716_p3 = pmov %p16712_p0 }
  0xb0   : > { %12374 = vsyncadd (%p16715_p12), [#allocation9], 4294966240 }
  0xb1   : > { %12376 = dma.done.wait (%p16716_p3), [#allocation12], 8192   ;;  %p16717_p4 = pmov %p16712_p0 }
  0xb2   : > { %p16718_p7 = pmov %p16712_p0 }
  0xb3   : > { %12378 = vsyncadd (%p16717_p4), [#allocation12], 4294959104 }
  0xb4   : > { %12380 = dma.done.wait (%p16718_p7), [#allocation15], 5120   ;;  %p16719_p9 = pmov %p16712_p0 }
  0xb5   : > { %p16720_p8 = pmov %p16712_p0 }
  0xb6   : > { %12382 = vsyncadd (%p16719_p9), [#allocation15], 4294962176 }
  0xb7   : > { %12384 = dma.done.wait (%p16720_p8), [#allocation18], 2048   ;;  %p16721_p11 = pmov %p16712_p0 }
  0xb8   : > { %s10628_s28 = sshll.u32 %s12586_s9, 6  ;;  %v12421_v0 = vmov 0   ;;  %v11515_v1 = vld [vmem:[#allocation2 + $0x34] ss:$8 sps:$4 sm:$0xff]   ;;  %v11517_v2 = vld [vmem:[#allocation2 + $0x30] ss:$8 sps:$4 sm:$0xff]  }
  0xb9   : > { %12386 = vsyncadd (%p16721_p11), [#allocation18], 4294965248  ;;  %1460 = vmatprep.mubr.bf16.mxu0 %v12421_v0  ;;  %p970_p5 = scmp.lt.s32.totalorder %s10628_s28, 127  ;;  %1436 = vmatprep.subr.bf16.mxu0 %v11515_v1  ;;  %v11518_v3 = vld [vmem:[#allocation2 + $0x24] ss:$8 sps:$4 sm:$0xff]   ;;  %s16722_s2 = sld [smem:[#allocation95_spill]] }
  0xba   : > { %1437 = vmatpush1.bf16.msra.mxu0 %v11517_v2  ;;  %v11520_v4 = vld [vmem:[#allocation2 + $0x20] ss:$8 sps:$4 sm:$0xff]   ;;  %v11521_v5 = vld [vmem:[#allocation2 + $0x14] ss:$8 sps:$4 sm:$0xff]   ;;  %v11523_v6 = vld [vmem:[#allocation2 + $0x10] ss:$8 sps:$4 sm:$0xff]  }
  0xbb   : > { %s16928_s28 = smov (!%p970_p5, %s10628_s28), 127  ;;  %1438 = vmatprep.subr.bf16.mxu0 %v11518_v3  ;;  %v11524_v7 = vld [vmem:[#allocation2 + $0x4] ss:$8 sps:$4 sm:$0xff]   ;;  %v11526_v8 = vld [vmem:[#allocation2] ss:$8 sps:$4 sm:$0xff]   ;;  %vm1331_vm0 = vcmask 523264  }
  0xbc   : > { %s10629_s11 = sshll.u32 %s16928_s28, 2  ;;  %s16723_s0 = sld [smem:[#allocation99_spill]]  ;;  %vm8575_vm1 = vcmask 261120  }
  0xbd   : > { %s16724_s15 = sld [smem:[#allocation101_spill]]  ;;  %s11113_s27 = sshll.u32 %s12586_s9, 13 }
  0xbe   : > { %1439 = vmatpush1.bf16.msra.mxu0 %v11520_v4  ;;  %s16725_s10 = sld [smem:[#allocation103_spill]]  ;;  %p16916_p10 = scmp.ne.s32.totalorder %s16697_s1, 0 }
  0xbf   : > { %s12753_s29 = scalar_lea.vmem %s16722_s2, %s10629_s11  ;;  %1440 = vmatprep.subr.bf16.mxu0 %v11521_v5  ;;  %s16726_s2 = sld [smem:[#allocation105_spill]] }
  0xc0   : > { %v11527_v9 = vld [vmem:[%s12753_s29] sm:$0xff]   ;;  %v11528_v10 = vld [vmem:[%s12753_s29 + $0x8] sm:$0xff]   ;;  %v11529_v13 = vld [vmem:[%s12753_s29 + $0x10] sm:$0xff]   ;;  %s16727_s19 = sld [smem:[#allocation104_spill]]  ;;  %s12422_s28 = smov [#allocation19]  }
  0xc1   : > { %v11530_v18 = vld [vmem:[%s12753_s29 + $0x18] sm:$0xff]   ;;  %v11531_v24 = vld [vmem:[%s12753_s29 + $0x20] sm:$0xff]   ;;  %v11532_v30 = vld [vmem:[%s12753_s29 + $0x28] sm:$0xff]   ;;  %s16728_s30 = sld [smem:[#allocation106_spill]] }
  0xc2   : > { %1441 = vmatpush1.bf16.msra.mxu0 %v11523_v6  ;;  %v11545_v11 = vld [vmem:[%s16723_s0 + $0x74] ss:$8 sps:$4 sm:$0xff]   ;;  %v11547_v12 = vld [vmem:[%s16723_s0 + $0x70] ss:$8 sps:$4 sm:$0xff]   ;;  %v11549_v14 = vld [vmem:[%s16723_s0 + $0x64] ss:$8 sps:$4 sm:$0xff]  }
  0xc3   : > { %1442 = vmatprep.subr.bf16.mxu0 %v11524_v7  ;;  %2177 = vmatprep.subr.bf16.mxu1 %v11545_v11  ;;  %v11551_v15 = vld [vmem:[%s16723_s0 + $0x60] ss:$8 sps:$4 sm:$0xff]   ;;  %v11552_v16 = vld [vmem:[%s16723_s0 + $0x54] ss:$8 sps:$4 sm:$0xff]   ;;  %v11554_v17 = vld [vmem:[%s16723_s0 + $0x50] ss:$8 sps:$4 sm:$0xff]  }
  0xc4   : > { %2178 = vmatpush1.bf16.msra.mxu1 %v11547_v12  ;;  %v11556_v19 = vld [vmem:[%s16723_s0 + $0x44] ss:$8 sps:$4 sm:$0xff]   ;;  %v11558_v20 = vld [vmem:[%s16723_s0 + $0x40] ss:$8 sps:$4 sm:$0xff]   ;;  %v11559_v21 = vld [vmem:[%s16724_s15 + $0x70] ss:$8 sps:$4 sm:$0xff]  }
  0xc5   : > { %2179 = vmatprep.subr.bf16.mxu1 %v11549_v14  ;;  %v11561_v22 = vld [vmem:[%s16724_s15 + $0x74] ss:$8 sps:$4 sm:$0xff]   ;;  %v11564_v25 = vld [vmem:[%s16723_s0 + $0x30] ss:$8 sps:$4 sm:$0xff]   ;;  %v11566_v26 = vld [vmem:[%s16723_s0 + $0x24] ss:$8 sps:$4 sm:$0xff]  }
  0xc6   : > { %1443 = vmatpush1.bf16.msra.mxu0 %v11526_v8  ;;  %v11562_v23 = vld [vmem:[%s16723_s0 + $0x34] ss:$8 sps:$4 sm:$0xff]   ;;  %v11568_v27 = vld [vmem:[%s16723_s0 + $0x20] ss:$8 sps:$4 sm:$0xff]   ;;  %v11571_v29 = vld [vmem:[%s16723_s0 + $0x10] ss:$8 sps:$4 sm:$0xff]  }
  0xc7   : > { %2926 = vmatprep.subr.bf16.mxu0 %v11561_v22  ;;  %v11569_v28 = vld [vmem:[%s16723_s0 + $0x14] ss:$8 sps:$4 sm:$0xff]   ;;  %v11573_v31 = vld [vmem:[%s16723_s0 + $0x4] ss:$8 sps:$4 sm:$0xff]   ;;  %v11575_v32 = vld [vmem:[%s16723_s0] ss:$8 sps:$4 sm:$0xff]   ;;  %v1121_v22 = vlaneseq }
  0xc8   : > { %2180 = vmatpush1.bf16.msra.mxu1 %v11551_v15  ;;  %v11576_v33 = vld [vmem:[%s16724_s15 + $0x60] ss:$8 sps:$4 sm:$0xff]   ;;  %v11578_v34 = vld [vmem:[%s16724_s15 + $0x64] ss:$8 sps:$4 sm:$0xff]   ;;  %v11579_v35 = vld [vmem:[%s16723_s0 + $0xf4] ss:$8 sps:$4 sm:$0xff]  }
  0xc9   : > { %10672 = vmatmul.mubr.msk.bf16.vlgmr.msra.gmra.mxu0 %vm1331_vm0, %v11527_v9  ;;  %2181 = vmatprep.subr.bf16.mxu1 %v11552_v16  ;;  %v11533_v36 = vld [vmem:[%s12753_s29 + $0x30] sm:$0xff]   ;;  %v11583_v38 = vld [vmem:[%s16723_s0 + $0xe4] ss:$8 sps:$4 sm:$0xff]   ;;  %v11585_v39 = vld [vmem:[%s16723_s0 + $0xe0] ss:$8 sps:$4 sm:$0xff]   ;;  %s16729_s5 = sld [smem:[#allocation96_spill]] }
  0xca   : > { %1470 = vmatprep.mubr.bf16.mxu0 %v12421_v0  ;;  %2927 = vmatpush1.bf16.msra.mxu0 %v11559_v21  ;;  %v11581_v37 = vld [vmem:[%s16723_s0 + $0xf0] ss:$8 sps:$4 sm:$0xff]   ;;  %v11586_v40 = vld [vmem:[%s16723_s0 + $0xd4] ss:$8 sps:$4 sm:$0xff]   ;;  %v11590_v43 = vld [vmem:[%s16723_s0 + $0xc4] ss:$8 sps:$4 sm:$0xff]  }
  0xcb   : > { %2928 = vmatprep.subr.bf16.mxu0 %v11578_v34  ;;  %v11588_v41 = vld [vmem:[%s16723_s0 + $0xd0] ss:$8 sps:$4 sm:$0xff]   ;;  %v11592_v44 = vld [vmem:[%s16723_s0 + $0xc0] ss:$8 sps:$4 sm:$0xff]   ;;  %v11595_v46 = vld [vmem:[%s16724_s15 + $0x54] ss:$8 sps:$4 sm:$0xff]  }
  0xcc   : > { %2182 = vmatpush1.bf16.msra.mxu1 %v11554_v17  ;;  %v11534_v42 = vld [vmem:[%s12753_s29 + $0x38] sm:$0xff]   ;;  %v11535_v48 = vld [vmem:[%s12753_s29 + $0x40] sm:$0xff]   ;;  %v11536_v52 = vld [vmem:[%s12753_s29 + $0x48] sm:$0xff]   ;;  %s16914_s8 = sld [smem:[#allocation109_spill]] }
  0xcd   : > { %2183 = vmatprep.subr.bf16.mxu1 %v11556_v19  ;;  %v11593_v45 = vld [vmem:[%s16724_s15 + $0x50] ss:$8 sps:$4 sm:$0xff]   ;;  %v11596_v47 = vld [vmem:[%s16723_s0 + $0xb4] ss:$8 sps:$4 sm:$0xff]   ;;  %v11600_v50 = vld [vmem:[%s16723_s0 + $0xa4] ss:$8 sps:$4 sm:$0xff]  }
  0xce   : > { %2929 = vmatpush1.bf16.msra.mxu0 %v11576_v33  ;;  %v11598_v49 = vld [vmem:[%s16723_s0 + $0xb0] ss:$8 sps:$4 sm:$0xff]   ;;  %v11602_v51 = vld [vmem:[%s16723_s0 + $0xa0] ss:$8 sps:$4 sm:$0xff]   ;;  %v11603_v53 = vld [vmem:[%s16723_s0 + $0x94] ss:$8 sps:$4 sm:$0xff]  }
  0xcf   : > { %2930 = vmatprep.subr.bf16.mxu0 %v11595_v46  ;;  %v11605_v54 = vld [vmem:[%s16723_s0 + $0x90] ss:$8 sps:$4 sm:$0xff]   ;;  %v11607_v55 = vld [vmem:[%s16723_s0 + $0x84] ss:$8 sps:$4 sm:$0xff]   ;;  %v11609_v56 = vld [vmem:[%s16723_s0 + $0x80] ss:$8 sps:$4 sm:$0xff]  }
  0xd0   : > { %2184 = vmatpush1.bf16.msra.mxu1 %v11558_v20  ;;  %v11537_v57 = vld [vmem:[%s12753_s29 + $0x50] sm:$0xff]   ;;  %v11610_v58 = vld [vmem:[%s16724_s15 + $0x40] ss:$8 sps:$4 sm:$0xff]   ;;  %v11612_v59 = vld [vmem:[%s16724_s15 + $0x44] ss:$8 sps:$4 sm:$0xff]  }
  0xd1   : > { %10673 = vmatmul.mubr.msk.bf16.gmra.mxu0 %vm1331_vm0, %v11528_v10  ;;  %2185 = vmatprep.subr.bf16.mxu1 %v11562_v23  ;;  %v11538_v60 = vld [vmem:[%s12753_s29 + $0x58] sm:$0xff]   ;;  %v11539_v61 = vld [vmem:[%s12753_s29 + $0x60] sm:$0xff]   ;;  %v11540_v1 = vld [vmem:[%s12753_s29 + $0x68] sm:$0xff]   ;;  %v1122_v23 = vshrl.u32 %v1121_v22, 7 }
  0xd2   : > { %1480 = vmatprep.mubr.bf16.mxu0 %v12421_v0  ;;  %2931 = vmatpush1.bf16.msra.mxu0 %v11593_v45  ;;  %v11615_v62 = vld [vmem:[%s16724_s15 + $0x30] ss:$8 sps:$4 sm:$0xff]   ;;  %v11617_v63 = vld [vmem:[%s16724_s15 + $0x34] ss:$8 sps:$4 sm:$0xff]   ;;  %v11620_v3 = vld [vmem:[%s16724_s15 + $0x20] ss:$8 sps:$4 sm:$0xff]   ;;  %s16915_s3 = smov %s16914_s8 }
  0xd3   : > { %2932 = vmatprep.subr.bf16.mxu0 %v11612_v59  ;;  %v11541_v2 = vld [vmem:[%s12753_s29 + $0x70] sm:$0xff]   ;;  %v11622_v4 = vld [vmem:[%s16724_s15 + $0x24] ss:$8 sps:$4 sm:$0xff]   ;;  %v11542_v5 = vld [vmem:[%s12753_s29 + $0x78] sm:$0xff]  }
  0xd4   : > { %2186 = vmatpush1.bf16.msra.mxu1 %v11564_v25  ;;  %v11543_v6 = vld [vmem:[%s12753_s29 + $0x80] sm:$0xff]   ;;  %v11625_v7 = vld [vmem:[%s16724_s15 + $0x10] ss:$8 sps:$4 sm:$0xff]   ;;  %v11627_v8 = vld [vmem:[%s16724_s15 + $0x14] ss:$8 sps:$4 sm:$0xff]   ;;  %v12984_v25 = vsub.s32 1, %v1122_v23 }
  0xd5   : > { %2187 = vmatprep.subr.bf16.mxu1 %v11566_v26  ;;  %v11544_v9 = vld [vmem:[%s12753_s29 + $0x88] sm:$0xff]   ;;  %v11548_v10 = vld [vmem:[%s12753_s29 + $0x90] sm:$0xff]   ;;  %v11565_v14 = vld [vmem:[%s12753_s29 + $0xa0] sm:$0xff]  }
  0xd6   : > { %2933 = vmatpush1.bf16.msra.mxu0 %v11610_v58  ;;  %v11628_v11 = vld [vmem:[%s16724_s15] ss:$8 sps:$4 sm:$0xff]   ;;  %v11630_v12 = vld [vmem:[%s16724_s15 + $0x4] ss:$8 sps:$4 sm:$0xff]   ;;  %v11631_v15 = vld [vmem:[%s16724_s15 + $0xf0] ss:$8 sps:$4 sm:$0xff]  }
  0xd7   : > { %2934 = vmatprep.subr.bf16.mxu0 %v11617_v63  ;;  %v11633_v16 = vld [vmem:[%s16724_s15 + $0xf4] ss:$8 sps:$4 sm:$0xff]   ;;  %v11572_v17 = vld [vmem:[%s12753_s29 + $0xa8] sm:$0xff]   ;;  %v11637_v26 = vld [vmem:[%s16724_s15 + $0xd0] ss:$8 sps:$4 sm:$0xff]  }
  0xd8   : > { %2188 = vmatpush1.bf16.msra.mxu1 %v11568_v27  ;;  %v11634_v19 = vld [vmem:[%s16724_s15 + $0xe0] ss:$8 sps:$4 sm:$0xff]   ;;  %v11636_v20 = vld [vmem:[%s16724_s15 + $0xe4] ss:$8 sps:$4 sm:$0xff]   ;;  %v11589_v21 = vld [vmem:[%s12753_s29 + $0xb8] sm:$0xff]  }
  0xd9   : > { %10674 = vmatmul.mubr.msk.bf16.gmra.mxu0 %vm1331_vm0, %v11529_v13  ;;  %2189 = vmatprep.subr.bf16.mxu1 %v11569_v28  ;;  %v11555_v13 = vld [vmem:[%s12753_s29 + $0x98] sm:$0xff]   ;;  %v12992_v28 = vsub.s32 0, %v1122_v23 }
  0xda   : > { %1490 = vmatprep.mubr.bf16.mxu0 %v12421_v0  ;;  %2935 = vmatpush1.bf16.msra.mxu0 %v11615_v62  ;;  %v11639_v27 = vld [vmem:[%s16724_s15 + $0xd4] ss:$8 sps:$4 sm:$0xff]   ;;  %v11643_v22 = vld [vmem:[%s16724_s15 + $0xb0] ss:$8 sps:$4 sm:$0xff]  }
  0xdb   : > { %2936 = vmatprep.subr.bf16.mxu0 %v11622_v4  ;;  %v11614_v4 = vld [vmem:[%s12753_s29 + $0xd8] sm:$0xff]  }
  0xdc   : > { %2190 = vmatpush1.bf16.msra.mxu1 %v11571_v29  ;;  %v1119_v29 = vld [vmem:[#allocation5] sm:$0x3]  ;;  %v11645_v23 = vld [vmem:[%s16724_s15 + $0xb4] ss:$8 sps:$4 sm:$0xff]  }
  0xdd   : > { %2191 = vmatprep.subr.bf16.mxu1 %v11573_v31  ;;  %v12996_v31 = vrot.slane %v1119_v29, %v12984_v25 }
  0xde   : > { %2937 = vmatpush1.bf16.msra.mxu0 %v11620_v3 }
  0xdf   : > { %2938 = vmatprep.subr.bf16.mxu0 %v11627_v8 }
  0xe0   : > { %2192 = vmatpush1.bf16.msra.mxu1 %v11575_v32  ;;  %v13000_v32 = vrot.slane %v1119_v29, %v12992_v28 }
  0xe1   : > { %10675 = vmatmul.mubr.msk.bf16.gmra.mxu0 %vm1331_vm0, %v11530_v18  ;;  %2193 = vmatprep.subr.bf16.mxu1 %v11579_v35  ;;  %v11582_v18 = vld [vmem:[%s12753_s29 + $0xb0] sm:$0xff]   ;;  %v11606_v35 = vld [vmem:[%s12753_s29 + $0xc8] sm:$0xff]  }
  0xe2   : > { %1500 = vmatprep.mubr.bf16.mxu0 %v12421_v0  ;;  %2939 = vmatpush1.bf16.msra.mxu0 %v11625_v7 }
  0xe3   : > { %2940 = vmatprep.subr.bf16.mxu0 %v11630_v12 }
  0xe4   : > { %2194 = vmatpush2.bf16.msra.mxu1 %v11581_v37 }
  0xe5   : > { %2195 = vmatprep.subr.bf16.mxu1 %v11583_v38 }
  0xe6   : > { %2941 = vmatpush1.bf16.msra.mxu0 %v11628_v11 }
  0xe7   : > { %2942 = vmatprep.subr.bf16.mxu0 %v11633_v16 }
  0xe8   : > { %2196 = vmatpush2.bf16.msra.mxu1 %v11585_v39 }
  0xe9   : > { %10676 = vmatmul.mubr.msk.bf16.gmra.mxu0 %vm1331_vm0, %v11531_v24  ;;  %2197 = vmatprep.subr.bf16.mxu1 %v11586_v40  ;;  %v11599_v24 = vld [vmem:[%s12753_s29 + $0xc0] sm:$0xff]  }
  0xea   : > { %1510 = vmatprep.mubr.bf16.mxu0 %v12421_v0  ;;  %2943 = vmatpush2.bf16.msra.mxu0 %v11631_v15 }
  0xeb   : > { %2944 = vmatprep.subr.bf16.mxu0 %v11636_v20 }
  0xec   : > { %2198 = vmatpush2.bf16.msra.mxu1 %v11588_v41 }
  0xed   : > { %2199 = vmatprep.subr.bf16.mxu1 %v11590_v43 }
  0xee   : > { %2945 = vmatpush2.bf16.msra.mxu0 %v11634_v19  ;;  %v11618_v19 = vld [vmem:[%s12753_s29 + $0xe0] sm:$0xff]  }
  0xef   : > { %2946 = vmatprep.subr.bf16.mxu0 %v11639_v27 }
  0xf0   : > { %2200 = vmatpush2.bf16.msra.mxu1 %v11592_v44 }
  0xf1   : > { %10677 = vmatmul.mubr.msk.bf16.gmra.mxu0 %vm1331_vm0, %v11532_v30  ;;  %2201 = vmatprep.subr.bf16.mxu1 %v11596_v47 }
  0xf2   : > { %1520 = vmatprep.mubr.bf16.mxu0 %v12421_v0  ;;  %2947 = vmatpush2.bf16.msra.mxu0 %v11637_v26 }
  0xf4   : > { %2202 = vmatpush2.bf16.msra.mxu1 %v11598_v49 }
  0xf5   : > { %2203 = vmatprep.subr.bf16.mxu1 %v11600_v50  ;;  %v11613_v50 = vld [vmem:[%s12753_s29 + $0xd0] sm:$0xff]  }
  0xf8   : > { %2204 = vmatpush2.bf16.msra.mxu1 %v11602_v51 }
  0xf9   : > { %10678 = vmatmul.mubr.msk.bf16.gmra.mxu0 %vm1331_vm0, %v11533_v36  ;;  %2205 = vmatprep.subr.bf16.mxu1 %v11603_v53  ;;  %v11640_v53 = vld [vmem:[%s16724_s15 + $0xc0] ss:$8 sps:$4 sm:$0xff]  }
  0xfa   : > { %1530 = vmatprep.mubr.bf16.mxu0 %v12421_v0 }
  0xfc   : > { %2206 = vmatpush2.bf16.msra.mxu1 %v11605_v54  ;;  %v11642_v54 = vld [vmem:[%s16724_s15 + $0xc4] ss:$8 sps:$4 sm:$0xff]  }
  0xfd   : > { %2207 = vmatprep.subr.bf16.mxu1 %v11607_v55  ;;  %2948 = vmatprep.subr.bf16.mxu0 %v11642_v54  ;;  %v11648_v54 = vld [vmem:[%s16725_s10 + $0x74] ss:$8 sps:$4 sm:$0xff]  }
  0xfe   : > { %2949 = vmatpush2.bf16.msra.mxu0 %v11640_v53  ;;  %v11646_v53 = vld [vmem:[%s16725_s10 + $0x70] ss:$8 sps:$4 sm:$0xff]  }
  0xff   : > { %2950 = vmatprep.subr.bf16.mxu0 %v11645_v23 }
 0x100   : > { %2208 = vmatpush2.bf16.msra.mxu1 %v11609_v56 }
 0x101   : > { %10679 = vmatmul.mubr.msk.bf16.gmra.mxu0 %vm1331_vm0, %v11534_v42  ;;  %3675 = vmatprep.subr.bf16.mxu1 %v11648_v54 }
 0x102   : > { %1540 = vmatprep.mubr.bf16.mxu0 %v12421_v0  ;;  %2951 = vmatpush2.bf16.msra.mxu0 %v11643_v22 }
 0x109   : > { %10680 = vmatmul.mubr.msk.bf16.gmra.mxu0 %vm1331_vm0, %v11535_v48 }
 0x10a   : > { %1550 = vmatprep.mubr.bf16.mxu0 %v12421_v0 }
 0x111   : > { %10681 = vmatmul.mubr.msk.bf16.gmra.mxu0 %vm1331_vm0, %v11536_v52 }
 0x112   : > { %1560 = vmatprep.mubr.bf16.mxu0 %v12421_v0 }
 0x119   : > { %10682 = vmatmul.mubr.msk.bf16.gmra.mxu0 %vm1331_vm0, %v11537_v57 }
 0x11a   : > { %1570 = vmatprep.mubr.bf16.mxu0 %v12421_v0 }
 0x121   : > { %10683 = vmatmul.mubr.msk.bf16.gmra.mxu0 %vm1331_vm0, %v11538_v60 }
 0x122   : > { %1580 = vmatprep.mubr.bf16.mxu0 %v12421_v0 }
 0x129   : > { %10684 = vmatmul.mubr.msk.bf16.gmra.mxu0 %vm1331_vm0, %v11539_v61 }
 0x12a   : > { %1590 = vmatprep.mubr.bf16.mxu0 %v12421_v0 }
 0x131   : > { %10685 = vmatmul.mubr.msk.bf16.gmra.mxu0 %vm1331_vm0, %v11540_v1 }
 0x132   : > { %1600 = vmatprep.mubr.bf16.mxu0 %v12421_v0 }
 0x139   : > { %10686 = vmatmul.mubr.msk.bf16.gmra.mxu0 %vm1331_vm0, %v11541_v2 }
 0x13a   : > { %1610 = vmatprep.mubr.bf16.mxu0 %v12421_v0 }
 0x141   : > { %10687 = vmatmul.mubr.msk.bf16.gmra.mxu0 %vm1331_vm0, %v11542_v5 }
 0x142   : > { %1620 = vmatprep.mubr.bf16.mxu0 %v12421_v0 }
 0x149   : > { %10688 = vmatmul.mubr.msk.bf16.gmra.mxu0 %vm1331_vm0, %v11543_v6 }
 0x14a   : > { %1630 = vmatprep.mubr.bf16.mxu0 %v12421_v0 }
 0x151   : > { %10689 = vmatmul.mubr.msk.bf16.gmra.mxu0 %vm1331_vm0, %v11544_v9 }
 0x152   : > { %1640 = vmatprep.mubr.bf16.mxu0 %v12421_v0 }
 0x159   : > { %10690 = vmatmul.mubr.msk.bf16.gmra.mxu0 %vm1331_vm0, %v11548_v10 }
 0x15a   : > { %1650 = vmatprep.mubr.bf16.mxu0 %v12421_v0 }
 0x161   : > { %10691 = vmatmul.mubr.msk.bf16.gmra.mxu0 %vm1331_vm0, %v11555_v13 }
 0x162   : > { %1660 = vmatprep.mubr.bf16.mxu0 %v12421_v0 }
 0x169   : > { %10692 = vmatmul.mubr.msk.bf16.gmra.mxu0 %vm1331_vm0, %v11565_v14 }
 0x16a   : > { %1670 = vmatprep.mubr.bf16.mxu0 %v12421_v0 }
 0x171   : > { %10693 = vmatmul.mubr.msk.bf16.gmra.mxu0 %vm1331_vm0, %v11572_v17 }
 0x172   : > { %1680 = vmatprep.mubr.bf16.mxu0 %v12421_v0 }
 0x179   : > { %10694 = vmatmul.mubr.msk.bf16.gmra.mxu0 %vm1331_vm0, %v11582_v18 }
 0x17a   : > { %1690 = vmatprep.mubr.bf16.mxu0 %v12421_v0 }
 0x181   : > { %10695 = vmatmul.mubr.msk.bf16.gmra.mxu0 %vm1331_vm0, %v11589_v21 }
 0x182   : > { %1700 = vmatprep.mubr.bf16.mxu0 %v12421_v0 }
 0x189   : > { %v1462_v30 = vpop.f32.mrf.mxu0  ;;  %10696 = vmatmul.mubr.msk.bf16.gmra.mxu0 %vm1331_vm0, %v11599_v24 }
 0x18a   : > { %1710 = vmatprep.mubr.bf16.mxu0 %v12421_v0  ;;  %v1463_v38 = vadd.f32 %v1462_v30, %v13000_v32 }
 0x18b   : > { %v1464_v33 = vpop.f32.mrf.mxu0 }
 0x18c   : > { %v1465_v36 = vadd.f32 %v1464_v33, %v12996_v31  ;;  %v1781_v45 = vmax.f32 %v1463_v38, 0.0 }
 0x18d   : > { %v1466_v34 = vpop.f32.mrf.mxu0 }
 0x18e   : > { %v1467_v37 = vadd.f32 %v1466_v34, %v13000_v32  ;;  %v1782_v43 = vmax.f32 %v1465_v36, 0.0 }
 0x18f   : > { %v1468_v39 = vpop.f32.mrf.mxu0 }
 0x190   : > { %v1469_v40 = vadd.f32 %v1468_v39, %v12996_v31  ;;  %v1783_v41 = vmax.f32 %v1467_v37, 0.0 }
 0x191   : > { %v1472_v42 = vpop.f32.mrf.mxu0  ;;  %10697 = vmatmul.mubr.msk.bf16.gmra.mxu0 %vm1331_vm0, %v11606_v35 }
 0x192   : > { %v1784_v44 = vmax.f32 %v1469_v40, 0.0  ;;  %1720 = vmatprep.mubr.bf16.mxu0 %v12421_v0  ;;  %v1909_v48 = vpack.c.bf16 %v1783_v41, %v1781_v45  ;;  %v1473_v55 = vadd.f32 %v1472_v42, %v13000_v32  ;;  %v11619_v40 = vld [vmem:[%s12753_s29 + $0xe8] sm:$0xff]  }
 0x193   : > { %v1474_v46 = vpop.f32.mrf.mxu0 }
 0x194   : > { %v1910_v47 = vpack.c.bf16 %v1784_v44, %v1782_v43  ;;  %v1475_v51 = vadd.f32 %v1474_v46, %v12996_v31  ;;  %v1785_v62 = vmax.f32 %v1473_v55, 0.0 }
 0x195   : > { %v1476_v49 = vpop.f32.mrf.mxu0 }
 0x196   : > { %v1477_v52 = vadd.f32 %v1476_v49, %v13000_v32  ;;  %2209 = vmatprep.mubr.bf16.mxu1 %v1910_v47  ;;  %v1786_v60 = vmax.f32 %v1475_v51, 0.0 }
 0x197   : > { %v1478_v56 = vpop.f32.mrf.mxu0  ;;  %2210 = vmatmul.mubr.bf16.vlgmr.msra.gmra.mxu1 %v1909_v48 }
 0x198   : > { %v1479_v57 = vadd.f32 %v1478_v56, %v12996_v31  ;;  %v1787_v58 = vmax.f32 %v1477_v52, 0.0  ;;  %3676 = vmatpush1.bf16.msra.mxu1 %v11646_v53 }
 0x199   : > { %v1482_v59 = vpop.f32.mrf.mxu0  ;;  %10698 = vmatmul.mubr.msk.bf16.gmra.mxu0 %vm1331_vm0, %v11613_v50 }
 0x19a   : > { %v1788_v61 = vmax.f32 %v1479_v57, 0.0  ;;  %1730 = vmatprep.mubr.bf16.mxu0 %v12421_v0  ;;  %v1911_v2 = vpack.c.bf16 %v1787_v58, %v1785_v62  ;;  %v1483_v7 = vadd.f32 %v1482_v59, %v13000_v32  ;;  %v11623_v57 = vld [vmem:[%s12753_s29 + $0xf0] sm:$0xff]  }
 0x19b   : > { %v1484_v63 = vpop.f32.mrf.mxu0 }
 0x19c   : > { %v1912_v1 = vpack.c.bf16 %v1788_v61, %v1786_v60  ;;  %v1485_v5 = vadd.f32 %v1484_v63, %v12996_v31  ;;  %v1789_v14 = vmax.f32 %v1483_v7, 0.0  ;;  %v11649_v60 = vld [vmem:[%s16724_s15 + $0xa0] ss:$8 sps:$4 sm:$0xff]   ;;  %v11651_v61 = vld [vmem:[%s16724_s15 + $0xa4] ss:$8 sps:$4 sm:$0xff]  }
 0x19d   : > { %v1486_v3 = vpop.f32.mrf.mxu0  ;;  %2952 = vmatprep.subr.bf16.mxu0 %v11651_v61  ;;  %v11660_v61 = vld [vmem:[%s16725_s10 + $0x54] ss:$8 sps:$4 sm:$0xff]  }
 0x19e   : > { %v1487_v6 = vadd.f32 %v1486_v3, %v13000_v32  ;;  %2219 = vmatprep.mubr.bf16.mxu1 %v1912_v1  ;;  %v1790_v12 = vmax.f32 %v1485_v5, 0.0  ;;  %2953 = vmatpush2.bf16.msra.mxu0 %v11649_v60  ;;  %v11658_v60 = vld [vmem:[%s16725_s10 + $0x50] ss:$8 sps:$4 sm:$0xff]  }
 0x19f   : > { %v1488_v8 = vpop.f32.mrf.mxu0  ;;  %2220 = vmatmul.mubr.bf16.gmra.mxu1 %v1911_v2 }
 0x1a0   : > { %v1489_v9 = vadd.f32 %v1488_v8, %v12996_v31  ;;  %v1791_v10 = vmax.f32 %v1487_v6, 0.0 }
 0x1a1   : > { %v1492_v11 = vpop.f32.mrf.mxu0  ;;  %10699 = vmatmul.mubr.msk.bf16.gmra.mxu0 %vm1331_vm0, %v11614_v4 }
 0x1a2   : > { %v1792_v13 = vmax.f32 %v1489_v9, 0.0  ;;  %1740 = vmatprep.mubr.bf16.mxu0 %v12421_v0  ;;  %v1913_v17 = vpack.c.bf16 %v1791_v10, %v1789_v14  ;;  %v1493_v24 = vadd.f32 %v1492_v11, %v13000_v32  ;;  %v11624_v11 = vld [vmem:[%s12753_s29 + $0xf8] sm:$0xff]  }
 0x1a3   : > { %v1494_v15 = vpop.f32.mrf.mxu0 }
 0x1a4   : > { %v1914_v16 = vpack.c.bf16 %v1792_v13, %v1790_v12  ;;  %v1495_v20 = vadd.f32 %v1494_v15, %v12996_v31  ;;  %v1793_v35 = vmax.f32 %v1493_v24, 0.0  ;;  %v11652_v24 = vld [vmem:[%s16725_s10 + $0x60] ss:$8 sps:$4 sm:$0xff]  }
 0x1a5   : > { %v1496_v18 = vpop.f32.mrf.mxu0 }
 0x1a6   : > { %v1497_v21 = vadd.f32 %v1496_v18, %v13000_v32  ;;  %2229 = vmatprep.mubr.bf16.mxu1 %v1914_v16  ;;  %v1794_v33 = vmax.f32 %v1495_v20, 0.0 }
 0x1a7   : > { %v1498_v26 = vpop.f32.mrf.mxu0  ;;  %2230 = vmatmul.mubr.bf16.gmra.mxu1 %v1913_v17 }
 0x1a8   : > { %v1499_v27 = vadd.f32 %v1498_v26, %v12996_v31  ;;  %v1795_v29 = vmax.f32 %v1497_v21, 0.0  ;;  %v11654_v26 = vld [vmem:[%s16725_s10 + $0x64] ss:$8 sps:$4 sm:$0xff]  }
 0x1a9   : > { %v1502_v30 = vpop.f32.mrf.mxu0  ;;  %10700 = vmatmul.mubr.msk.bf16.gmra.mxu0 %vm1331_vm0, %v11618_v19  ;;  %3677 = vmatprep.subr.bf16.mxu1 %v11654_v26 }
 0x1aa   : > { %v1796_v34 = vmax.f32 %v1499_v27, 0.0  ;;  %1750 = vmatprep.mubr.bf16.mxu0 %v12421_v0  ;;  %v1915_v38 = vpack.c.bf16 %v1795_v29, %v1793_v35  ;;  %v1503_v43 = vadd.f32 %v1502_v30, %v13000_v32  ;;  %v11657_v35 = vld [vmem:[%s16724_s15 + $0x94] ss:$8 sps:$4 sm:$0xff]   ;;  %3678 = vmatpush1.bf16.msra.mxu1 %v11652_v24 }
 0x1ab   : > { %v1504_v36 = vpop.f32.mrf.mxu0  ;;  %2954 = vmatprep.subr.bf16.mxu0 %v11657_v35  ;;  %3679 = vmatprep.subr.bf16.mxu1 %v11660_v61 }
 0x1ac   : > { %v1916_v37 = vpack.c.bf16 %v1796_v34, %v1794_v33  ;;  %v1505_v41 = vadd.f32 %v1504_v36, %v12996_v31  ;;  %v1797_v50 = vmax.f32 %v1503_v43, 0.0  ;;  %v11655_v34 = vld [vmem:[%s16724_s15 + $0x90] ss:$8 sps:$4 sm:$0xff]  }
 0x1ad   : > { %v1506_v39 = vpop.f32.mrf.mxu0  ;;  %2955 = vmatpush2.bf16.msra.mxu0 %v11655_v34  ;;  %v11666_v34 = vld [vmem:[%s16725_s10 + $0x44] ss:$8 sps:$4 sm:$0xff]  }
 0x1ae   : > { %v1507_v42 = vadd.f32 %v1506_v39, %v13000_v32  ;;  %2239 = vmatprep.mubr.bf16.mxu1 %v1916_v37  ;;  %v1798_v48 = vmax.f32 %v1505_v41, 0.0  ;;  %3680 = vmatpush1.bf16.msra.mxu1 %v11658_v60 }
 0x1af   : > { %v1508_v44 = vpop.f32.mrf.mxu0  ;;  %2240 = vmatmul.mubr.bf16.gmra.mxu1 %v1915_v38  ;;  %3681 = vmatprep.subr.bf16.mxu1 %v11666_v34  ;;  %v11670_v34 = vld [vmem:[%s16725_s10 + $0x20] ss:$8 sps:$4 sm:$0xff]  }
 0x1b0   : > { %v1509_v45 = vadd.f32 %v1508_v44, %v12996_v31  ;;  %v1799_v46 = vmax.f32 %v1507_v42, 0.0 }
 0x1b1   : > { %v1512_v47 = vpop.f32.mrf.mxu0  ;;  %10701 = vmatmul.mubr.msk.bf16.gmra.mxu0 %vm1331_vm0, %v11619_v40 }
 0x1b2   : > { %v1800_v49 = vmax.f32 %v1509_v45, 0.0  ;;  %1760 = vmatprep.mubr.bf16.mxu0 %v12421_v0  ;;  %v1917_v55 = vpack.c.bf16 %v1799_v46, %v1797_v50  ;;  %v1513_v62 = vadd.f32 %v1512_v47, %v13000_v32 }
 0x1b3   : > { %v1514_v51 = vpop.f32.mrf.mxu0 }
 0x1b4   : > { %v1918_v52 = vpack.c.bf16 %v1800_v49, %v1798_v48  ;;  %v1515_v58 = vadd.f32 %v1514_v51, %v12996_v31  ;;  %v1801_v6 = vmax.f32 %v1513_v62, 0.0 }
 0x1b5   : > { %v1516_v56 = vpop.f32.mrf.mxu0 }
 0x1b6   : > { %v1517_v59 = vadd.f32 %v1516_v56, %v13000_v32  ;;  %2249 = vmatprep.mubr.bf16.mxu1 %v1918_v52  ;;  %v1802_v4 = vmax.f32 %v1515_v58, 0.0 }
 0x1b7   : > { %v1518_v63 = vpop.f32.mrf.mxu0  ;;  %2250 = vmatmul.mubr.bf16.gmra.mxu1 %v1917_v55 }
 0x1b8   : > { %v1519_v1 = vadd.f32 %v1518_v63, %v12996_v31  ;;  %v1803_v2 = vmax.f32 %v1517_v59, 0.0 }
 0x1b9   : > { %v1522_v3 = vpop.f32.mrf.mxu0  ;;  %10702 = vmatmul.mubr.msk.bf16.gmra.mxu0 %vm1331_vm0, %v11623_v57 }
 0x1ba   : > { %v1804_v5 = vmax.f32 %v1519_v1, 0.0  ;;  %1770 = vmatprep.mubr.bf16.mxu0 %v12421_v0  ;;  %v1919_v9 = vpack.c.bf16 %v1803_v2, %v1801_v6  ;;  %v1523_v14 = vadd.f32 %v1522_v3, %v13000_v32  ;;  %v11661_v3 = vld [vmem:[%s16724_s15 + $0x80] ss:$8 sps:$4 sm:$0xff]  }
 0x1bb   : > { %v1524_v7 = vpop.f32.mrf.mxu0 }
 0x1bc   : > { %v1920_v8 = vpack.c.bf16 %v1804_v5, %v1802_v4  ;;  %v1525_v12 = vadd.f32 %v1524_v7, %v12996_v31  ;;  %v1805_v21 = vmax.f32 %v1523_v14, 0.0  ;;  %v11663_v4 = vld [vmem:[%s16724_s15 + $0x84] ss:$8 sps:$4 sm:$0xff]  }
 0x1bd   : > { %v1526_v10 = vpop.f32.mrf.mxu0  ;;  %2956 = vmatprep.subr.bf16.mxu0 %v11663_v4 }
 0x1be   : > { %v1527_v13 = vadd.f32 %v1526_v10, %v13000_v32  ;;  %2259 = vmatprep.mubr.bf16.mxu1 %v1920_v8  ;;  %v1806_v19 = vmax.f32 %v1525_v12, 0.0  ;;  %2957 = vmatpush2.bf16.msra.mxu0 %v11661_v3 }
 0x1bf   : > { %v1528_v15 = vpop.f32.mrf.mxu0  ;;  %2260 = vmatmul.mubr.bf16.gmra.mxu1 %v1919_v9 }
 0x1c0   : > { %v1529_v16 = vadd.f32 %v1528_v15, %v12996_v31  ;;  %v1807_v17 = vmax.f32 %v1527_v13, 0.0 }
 0x1c1   : > { %v1532_v18 = vpop.f32.mrf.mxu0  ;;  %10703 = vmatmul.mubr.msk.bf16.gmra.mxu0 %vm1331_vm0, %v11624_v11 }
 0x1c2   : > { %v1808_v20 = vmax.f32 %v1529_v16, 0.0  ;;  %v1921_v27 = vpack.c.bf16 %v1807_v17, %v1805_v21  ;;  %v1533_v36 = vadd.f32 %v1532_v18, %v13000_v32 }
 0x1c3   : > { %v1534_v22 = vpop.f32.mrf.mxu0 }
 0x1c4   : > { %v1922_v23 = vpack.c.bf16 %v1808_v20, %v1806_v19  ;;  %v1535_v30 = vadd.f32 %v1534_v22, %v12996_v31  ;;  %v1809_v43 = vmax.f32 %v1533_v36, 0.0 }
 0x1c5   : > { %v1536_v29 = vpop.f32.mrf.mxu0 }
 0x1c6   : > { %v1537_v33 = vadd.f32 %v1536_v29, %v13000_v32  ;;  %2269 = vmatprep.mubr.bf16.mxu1 %v1922_v23  ;;  %v1810_v41 = vmax.f32 %v1535_v30, 0.0 }
 0x1c7   : > { %v1538_v37 = vpop.f32.mrf.mxu0  ;;  %2270 = vmatmul.mubr.bf16.gmra.mxu1 %v1921_v27 }
 0x1c8   : > { %v1539_v38 = vadd.f32 %v1538_v37, %v12996_v31  ;;  %v1811_v39 = vmax.f32 %v1537_v33, 0.0  ;;  %v11664_v33 = vld [vmem:[%s16725_s10 + $0x40] ss:$8 sps:$4 sm:$0xff]  }
 0x1c9   : > { %v1542_v40 = vpop.f32.mrf.mxu0  ;;  %3682 = vmatpush1.bf16.msra.mxu1 %v11664_v33 }
 0x1ca   : > { %v1812_v42 = vmax.f32 %v1539_v38, 0.0  ;;  %v1923_v46 = vpack.c.bf16 %v1811_v39, %v1809_v43  ;;  %v1543_v50 = vadd.f32 %v1542_v40, %v13000_v32 }
 0x1cb   : > { %v1544_v44 = vpop.f32.mrf.mxu0 }
 0x1cc   : > { %v1924_v45 = vpack.c.bf16 %v1812_v42, %v1810_v41  ;;  %v1545_v48 = vadd.f32 %v1544_v44, %v12996_v31  ;;  %v1813_v57 = vmax.f32 %v1543_v50, 0.0 }
 0x1cd   : > { %v1546_v47 = vpop.f32.mrf.mxu0 }
 0x1ce   : > { %v1547_v49 = vadd.f32 %v1546_v47, %v13000_v32  ;;  %2279 = vmatprep.mubr.bf16.mxu1 %v1924_v45  ;;  %v1814_v55 = vmax.f32 %v1545_v48, 0.0 }
 0x1cf   : > { %v1548_v51 = vpop.f32.mrf.mxu0  ;;  %2280 = vmatmul.mubr.bf16.gmra.mxu1 %v1923_v46 }
 0x1d0   : > { %v1549_v52 = vadd.f32 %v1548_v51, %v12996_v31  ;;  %v1815_v53 = vmax.f32 %v1547_v49, 0.0 }
 0x1d1   : > { %v1552_v54 = vpop.f32.mrf.mxu0 }
 0x1d2   : > { %v1816_v56 = vmax.f32 %v1549_v52, 0.0  ;;  %v1925_v62 = vpack.c.bf16 %v1815_v53, %v1813_v57  ;;  %v1553_v5 = vadd.f32 %v1552_v54, %v13000_v32 }
 0x1d3   : > { %v1554_v58 = vpop.f32.mrf.mxu0 }
 0x1d4   : > { %v1926_v59 = vpack.c.bf16 %v1816_v56, %v1814_v55  ;;  %v1555_v1 = vadd.f32 %v1554_v58, %v12996_v31  ;;  %v1817_v12 = vmax.f32 %v1553_v5, 0.0 }
 0x1d5   : > { %v1556_v63 = vpop.f32.mrf.mxu0 }
 0x1d6   : > { %v1557_v2 = vadd.f32 %v1556_v63, %v13000_v32  ;;  %2289 = vmatprep.mubr.bf16.mxu1 %v1926_v59  ;;  %v1818_v10 = vmax.f32 %v1555_v1, 0.0  ;;  %v11667_v63 = vld [vmem:[%s16725_s10 + $0x30] ss:$8 sps:$4 sm:$0xff]   ;;  %v11669_v1 = vld [vmem:[%s16725_s10 + $0x34] ss:$8 sps:$4 sm:$0xff]  }
 0x1d7   : > { %v1558_v6 = vpop.f32.mrf.mxu0  ;;  %2290 = vmatmul.mubr.bf16.gmra.mxu1 %v1925_v62  ;;  %3683 = vmatprep.subr.bf16.mxu1 %v11669_v1  ;;  %v11673_v1 = vld [vmem:[%s16725_s10 + $0x10] ss:$8 sps:$4 sm:$0xff]  }
 0x1d8   : > { %v1559_v7 = vadd.f32 %v1558_v6, %v12996_v31  ;;  %v1819_v8 = vmax.f32 %v1557_v2, 0.0  ;;  %3684 = vmatpush1.bf16.msra.mxu1 %v11667_v63 }
 0x1d9   : > { %v1562_v9 = vpop.f32.mrf.mxu0 }
 0x1da   : > { %v1820_v11 = vmax.f32 %v1559_v7, 0.0  ;;  %v1927_v15 = vpack.c.bf16 %v1819_v8, %v1817_v12  ;;  %v1563_v19 = vadd.f32 %v1562_v9, %v13000_v32 }
 0x1db   : > { %v1564_v13 = vpop.f32.mrf.mxu0 }
 0x1dc   : > { %v1928_v14 = vpack.c.bf16 %v1820_v11, %v1818_v10  ;;  %v1565_v17 = vadd.f32 %v1564_v13, %v12996_v31  ;;  %v1821_v27 = vmax.f32 %v1563_v19, 0.0 }
 0x1dd   : > { %v1566_v16 = vpop.f32.mrf.mxu0 }
 0x1de   : > { %v1567_v18 = vadd.f32 %v1566_v16, %v13000_v32  ;;  %2299 = vmatprep.mubr.bf16.mxu1 %v1928_v14  ;;  %v1822_v24 = vmax.f32 %v1565_v17, 0.0 }
 0x1df   : > { %v1568_v20 = vpop.f32.mrf.mxu0  ;;  %2300 = vmatmul.mubr.bf16.gmra.mxu1 %v1927_v15 }
 0x1e0   : > { %v1569_v21 = vadd.f32 %v1568_v20, %v12996_v31  ;;  %v1823_v22 = vmax.f32 %v1567_v18, 0.0 }
 0x1e1   : > { %v1572_v23 = vpop.f32.mrf.mxu0 }
 0x1e2   : > { %v1824_v26 = vmax.f32 %v1569_v21, 0.0  ;;  %v1929_v35 = vpack.c.bf16 %v1823_v22, %v1821_v27  ;;  %v1573_v39 = vadd.f32 %v1572_v23, %v13000_v32 }
 0x1e3   : > { %v1574_v29 = vpop.f32.mrf.mxu0 }
 0x1e4   : > { %v1930_v30 = vpack.c.bf16 %v1824_v26, %v1822_v24  ;;  %v1575_v37 = vadd.f32 %v1574_v29, %v12996_v31  ;;  %v1825_v46 = vmax.f32 %v1573_v39, 0.0 }
 0x1e5   : > { %v1576_v36 = vpop.f32.mrf.mxu0 }
 0x1e6   : > { %v1577_v38 = vadd.f32 %v1576_v36, %v13000_v32  ;;  %2309 = vmatprep.mubr.bf16.mxu1 %v1930_v30  ;;  %v1826_v44 = vmax.f32 %v1575_v37, 0.0 }
 0x1e7   : > { %v1578_v40 = vpop.f32.mrf.mxu0  ;;  %2310 = vmatmul.mubr.bf16.gmra.mxu1 %v1929_v35  ;;  %v11672_v35 = vld [vmem:[%s16725_s10 + $0x24] ss:$8 sps:$4 sm:$0xff]  }
 0x1e8   : > { %v1579_v41 = vadd.f32 %v1578_v40, %v12996_v31  ;;  %v1827_v42 = vmax.f32 %v1577_v38, 0.0  ;;  %3685 = vmatprep.subr.bf16.mxu1 %v11672_v35  ;;  %v11676_v35 = vld [vmem:[%s16725_s10] ss:$8 sps:$4 sm:$0xff]  }
 0x1e9   : > { %v1582_v43 = vpop.f32.mrf.mxu0  ;;  %3686 = vmatpush1.bf16.msra.mxu1 %v11670_v34 }
 0x1ea   : > { %v1828_v45 = vmax.f32 %v1579_v41, 0.0  ;;  %v1931_v49 = vpack.c.bf16 %v1827_v42, %v1825_v46  ;;  %v1583_v53 = vadd.f32 %v1582_v43, %v13000_v32 }
 0x1eb   : > { %v1584_v47 = vpop.f32.mrf.mxu0 }
 0x1ec   : > { %v1932_v48 = vpack.c.bf16 %v1828_v45, %v1826_v44  ;;  %v1585_v51 = vadd.f32 %v1584_v47, %v12996_v31  ;;  %v1829_v60 = vmax.f32 %v1583_v53, 0.0 }
 0x1ed   : > { %v1586_v50 = vpop.f32.mrf.mxu0 }
 0x1ee   : > { %v1587_v52 = vadd.f32 %v1586_v50, %v13000_v32  ;;  %2319 = vmatprep.mubr.bf16.mxu1 %v1932_v48  ;;  %v1830_v58 = vmax.f32 %v1585_v51, 0.0 }
 0x1ef   : > { %v1588_v54 = vpop.f32.mrf.mxu0  ;;  %2320 = vmatmul.mubr.bf16.gmra.mxu1 %v1931_v49 }
 0x1f0   : > { %v1589_v55 = vadd.f32 %v1588_v54, %v12996_v31  ;;  %v1831_v56 = vmax.f32 %v1587_v52, 0.0 }
 0x1f1   : > { %v1592_v57 = vpop.f32.mrf.mxu0 }
 0x1f2   : > { %v1832_v59 = vmax.f32 %v1589_v55, 0.0  ;;  %v1933_v2 = vpack.c.bf16 %v1831_v56, %v1829_v60  ;;  %v1593_v6 = vadd.f32 %v1592_v57, %v13000_v32 }
 0x1f3   : > { %v1594_v61 = vpop.f32.mrf.mxu0 }
 0x1f4   : > { %v1934_v62 = vpack.c.bf16 %v1832_v59, %v1830_v58  ;;  %v1595_v4 = vadd.f32 %v1594_v61, %v12996_v31  ;;  %v1833_v13 = vmax.f32 %v1593_v6, 0.0 }
 0x1f5   : > { %v1596_v3 = vpop.f32.mrf.mxu0 }
 0x1f6   : > { %v1597_v5 = vadd.f32 %v1596_v3, %v13000_v32  ;;  %2329 = vmatprep.mubr.bf16.mxu1 %v1934_v62  ;;  %v1834_v11 = vmax.f32 %v1595_v4, 0.0 }
 0x1f7   : > { %v1598_v7 = vpop.f32.mrf.mxu0  ;;  %2330 = vmatmul.mubr.bf16.gmra.mxu1 %v1933_v2  ;;  %v11675_v2 = vld [vmem:[%s16725_s10 + $0x14] ss:$8 sps:$4 sm:$0xff]  }
 0x1f8   : > { %v1599_v8 = vadd.f32 %v1598_v7, %v12996_v31  ;;  %v1835_v9 = vmax.f32 %v1597_v5, 0.0  ;;  %3687 = vmatprep.subr.bf16.mxu1 %v11675_v2  ;;  %v11679_v2 = vld [vmem:[%s16725_s10 + $0xf0] ss:$8 sps:$4 sm:$0xff]  }
 0x1f9   : > { %v1602_v10 = vpop.f32.mrf.mxu0  ;;  %3688 = vmatpush1.bf16.msra.mxu1 %v11673_v1 }
 0x1fa   : > { %v1836_v12 = vmax.f32 %v1599_v8, 0.0  ;;  %v1935_v16 = vpack.c.bf16 %v1835_v9, %v1833_v13  ;;  %v1603_v20 = vadd.f32 %v1602_v10, %v13000_v32 }
 0x1fb   : > { %v1604_v14 = vpop.f32.mrf.mxu0 }
 0x1fc   : > { %v1936_v15 = vpack.c.bf16 %v1836_v12, %v1834_v11  ;;  %v1605_v18 = vadd.f32 %v1604_v14, %v12996_v31  ;;  %v1837_v29 = vmax.f32 %v1603_v20, 0.0 }
 0x1fd   : > { %v1606_v17 = vpop.f32.mrf.mxu0 }
 0x1fe   : > { %v1607_v19 = vadd.f32 %v1606_v17, %v13000_v32  ;;  %2339 = vmatprep.mubr.bf16.mxu1 %v1936_v15  ;;  %v1838_v26 = vmax.f32 %v1605_v18, 0.0 }
 0x1ff   : > { %v1608_v21 = vpop.f32.mrf.mxu0  ;;  %2340 = vmatmul.mubr.bf16.gmra.mxu1 %v1935_v16 }
 0x200   : > { %v1609_v22 = vadd.f32 %v1608_v21, %v12996_v31  ;;  %v1839_v23 = vmax.f32 %v1607_v19, 0.0 }
 0x201   : > { %v1612_v24 = vpop.f32.mrf.mxu0 }
 0x202   : > { %v1840_v27 = vmax.f32 %v1609_v22, 0.0  ;;  %v1937_v36 = vpack.c.bf16 %v1839_v23, %v1837_v29  ;;  %v1613_v40 = vadd.f32 %v1612_v24, %v13000_v32 }
 0x203   : > { %v1614_v30 = vpop.f32.mrf.mxu0 }
 0x204   : > { %v1938_v33 = vpack.c.bf16 %v1840_v27, %v1838_v26  ;;  %v1615_v38 = vadd.f32 %v1614_v30, %v12996_v31  ;;  %v1841_v47 = vmax.f32 %v1613_v40, 0.0 }
 0x205   : > { %v1616_v37 = vpop.f32.mrf.mxu0 }
 0x206   : > { %v1617_v39 = vadd.f32 %v1616_v37, %v13000_v32  ;;  %2349 = vmatprep.mubr.bf16.mxu1 %v1938_v33  ;;  %v1842_v45 = vmax.f32 %v1615_v38, 0.0 }
 0x207   : > { %v1618_v41 = vpop.f32.mrf.mxu0  ;;  %2350 = vmatmul.mubr.bf16.gmra.mxu1 %v1937_v36  ;;  %v11678_v36 = vld [vmem:[%s16725_s10 + $0x4] ss:$8 sps:$4 sm:$0xff]  }
 0x208   : > { %v1619_v42 = vadd.f32 %v1618_v41, %v12996_v31  ;;  %v1843_v43 = vmax.f32 %v1617_v39, 0.0  ;;  %3689 = vmatprep.subr.bf16.mxu1 %v11678_v36  ;;  %v11682_v36 = vld [vmem:[%s16725_s10 + $0xe0] ss:$8 sps:$4 sm:$0xff]  }
 0x209   : > { %v1622_v44 = vpop.f32.mrf.mxu0  ;;  %3690 = vmatpush1.bf16.msra.mxu1 %v11676_v35 }
 0x20a   : > { %v1844_v46 = vmax.f32 %v1619_v42, 0.0  ;;  %v1939_v50 = vpack.c.bf16 %v1843_v43, %v1841_v47  ;;  %v1623_v54 = vadd.f32 %v1622_v44, %v13000_v32 }
 0x20b   : > { %v1624_v48 = vpop.f32.mrf.mxu0 }
 0x20c   : > { %v1940_v49 = vpack.c.bf16 %v1844_v46, %v1842_v45  ;;  %v1625_v52 = vadd.f32 %v1624_v48, %v12996_v31  ;;  %v1845_v61 = vmax.f32 %v1623_v54, 0.0 }
 0x20d   : > { %v1626_v51 = vpop.f32.mrf.mxu0 }
 0x20e   : > { %v1627_v53 = vadd.f32 %v1626_v51, %v13000_v32  ;;  %2359 = vmatprep.mubr.bf16.mxu1 %v1940_v49  ;;  %v1846_v59 = vmax.f32 %v1625_v52, 0.0 }
 0x20f   : > { %v1628_v55 = vpop.f32.mrf.mxu0  ;;  %2360 = vmatmul.mubr.bf16.gmra.mxu1 %v1939_v50 }
 0x210   : > { %v1629_v56 = vadd.f32 %v1628_v55, %v12996_v31  ;;  %v1847_v57 = vmax.f32 %v1627_v53, 0.0 }
 0x211   : > { %v1632_v58 = vpop.f32.mrf.mxu0 }
 0x212   : > { %v1848_v60 = vmax.f32 %v1629_v56, 0.0  ;;  %v1941_v3 = vpack.c.bf16 %v1847_v57, %v1845_v61  ;;  %v1633_v7 = vadd.f32 %v1632_v58, %v13000_v32 }
 0x213   : > { %v1634_v62 = vpop.f32.mrf.mxu0 }
 0x214   : > { %v1942_v63 = vpack.c.bf16 %v1848_v60, %v1846_v59  ;;  %v1635_v5 = vadd.f32 %v1634_v62, %v12996_v31  ;;  %v1849_v14 = vmax.f32 %v1633_v7, 0.0 }
 0x215   : > { %v1636_v4 = vpop.f32.mrf.mxu0 }
 0x216   : > { %v1637_v6 = vadd.f32 %v1636_v4, %v13000_v32  ;;  %2369 = vmatprep.mubr.bf16.mxu1 %v1942_v63  ;;  %v1850_v12 = vmax.f32 %v1635_v5, 0.0 }
 0x217   : > { %v1638_v8 = vpop.f32.mrf.mxu0  ;;  %2370 = vmatmul.mubr.bf16.gmra.mxu1 %v1941_v3  ;;  %v11681_v3 = vld [vmem:[%s16725_s10 + $0xf4] ss:$8 sps:$4 sm:$0xff]  }
 0x218   : > { %v1639_v9 = vadd.f32 %v1638_v8, %v12996_v31  ;;  %v1851_v10 = vmax.f32 %v1637_v6, 0.0  ;;  %3691 = vmatprep.subr.bf16.mxu1 %v11681_v3  ;;  %v11685_v3 = vld [vmem:[%s16725_s10 + $0xd0] ss:$8 sps:$4 sm:$0xff]  }
 0x219   : > { %v1642_v11 = vpop.f32.mrf.mxu0  ;;  %3692 = vmatpush2.bf16.msra.mxu1 %v11679_v2 }
 0x21a   : > { %v1852_v13 = vmax.f32 %v1639_v9, 0.0  ;;  %v1943_v17 = vpack.c.bf16 %v1851_v10, %v1849_v14  ;;  %v1643_v21 = vadd.f32 %v1642_v11, %v13000_v32 }
 0x21b   : > { %v1644_v15 = vpop.f32.mrf.mxu0 }
 0x21c   : > { %v1944_v16 = vpack.c.bf16 %v1852_v13, %v1850_v12  ;;  %v1645_v19 = vadd.f32 %v1644_v15, %v12996_v31  ;;  %v1853_v30 = vmax.f32 %v1643_v21, 0.0 }
 0x21d   : > { %v1646_v18 = vpop.f32.mrf.mxu0 }
 0x21e   : > { %v1647_v20 = vadd.f32 %v1646_v18, %v13000_v32  ;;  %2379 = vmatprep.mubr.bf16.mxu1 %v1944_v16  ;;  %v1854_v27 = vmax.f32 %v1645_v19, 0.0 }
 0x21f   : > { %v1648_v22 = vpop.f32.mrf.mxu0  ;;  %2380 = vmatmul.mubr.bf16.gmra.mxu1 %v1943_v17 }
 0x220   : > { %v1649_v23 = vadd.f32 %v1648_v22, %v12996_v31  ;;  %v1855_v24 = vmax.f32 %v1647_v20, 0.0 }
 0x221   : > { %v1652_v26 = vpop.f32.mrf.mxu0 }
 0x222   : > { %v1856_v29 = vmax.f32 %v1649_v23, 0.0  ;;  %v1945_v37 = vpack.c.bf16 %v1855_v24, %v1853_v30  ;;  %v1653_v41 = vadd.f32 %v1652_v26, %v13000_v32 }
 0x223   : > { %v1654_v33 = vpop.f32.mrf.mxu0 }
 0x224   : > { %v1946_v34 = vpack.c.bf16 %v1856_v29, %v1854_v27  ;;  %v1655_v39 = vadd.f32 %v1654_v33, %v12996_v31  ;;  %v1857_v48 = vmax.f32 %v1653_v41, 0.0 }
 0x225   : > { %v1656_v38 = vpop.f32.mrf.mxu0 }
 0x226   : > { %v1657_v40 = vadd.f32 %v1656_v38, %v13000_v32  ;;  %2389 = vmatprep.mubr.bf16.mxu1 %v1946_v34  ;;  %v1858_v46 = vmax.f32 %v1655_v39, 0.0 }
 0x227   : > { %v1658_v42 = vpop.f32.mrf.mxu0  ;;  %2390 = vmatmul.mubr.bf16.gmra.mxu1 %v1945_v37  ;;  %v11684_v37 = vld [vmem:[%s16725_s10 + $0xe4] ss:$8 sps:$4 sm:$0xff]  }
 0x228   : > { %v1659_v43 = vadd.f32 %v1658_v42, %v12996_v31  ;;  %v1859_v44 = vmax.f32 %v1657_v40, 0.0  ;;  %3693 = vmatprep.subr.bf16.mxu1 %v11684_v37 }
 0x229   : > { %v1662_v45 = vpop.f32.mrf.mxu0  ;;  %3694 = vmatpush2.bf16.msra.mxu1 %v11682_v36 }
 0x22a   : > { %v1860_v47 = vmax.f32 %v1659_v43, 0.0  ;;  %v1947_v51 = vpack.c.bf16 %v1859_v44, %v1857_v48  ;;  %v1663_v55 = vadd.f32 %v1662_v45, %v13000_v32 }
 0x22b   : > { %v1664_v49 = vpop.f32.mrf.mxu0 }
 0x22c   : > { %v1948_v50 = vpack.c.bf16 %v1860_v47, %v1858_v46  ;;  %v1665_v53 = vadd.f32 %v1664_v49, %v12996_v31  ;;  %v1861_v62 = vmax.f32 %v1663_v55, 0.0 }
 0x22d   : > { %v1666_v52 = vpop.f32.mrf.mxu0 }
 0x22e   : > { %v1667_v54 = vadd.f32 %v1666_v52, %v13000_v32  ;;  %2399 = vmatprep.mubr.bf16.mxu1 %v1948_v50  ;;  %v1862_v60 = vmax.f32 %v1665_v53, 0.0 }
 0x22f   : > { %v1668_v56 = vpop.f32.mrf.mxu0  ;;  %2400 = vmatmul.mubr.bf16.gmra.mxu1 %v1947_v51 }
 0x230   : > { %v1669_v57 = vadd.f32 %v1668_v56, %v12996_v31  ;;  %v1863_v58 = vmax.f32 %v1667_v54, 0.0 }
 0x231   : > { %v1672_v59 = vpop.f32.mrf.mxu0 }
 0x232   : > { %v1864_v61 = vmax.f32 %v1669_v57, 0.0  ;;  %v1949_v4 = vpack.c.bf16 %v1863_v58, %v1861_v62  ;;  %v1673_v8 = vadd.f32 %v1672_v59, %v13000_v32 }
 0x233   : > { %v1674_v63 = vpop.f32.mrf.mxu0 }
 0x234   : > { %v1950_v1 = vpack.c.bf16 %v1864_v61, %v1862_v60  ;;  %v1675_v6 = vadd.f32 %v1674_v63, %v12996_v31  ;;  %v1865_v15 = vmax.f32 %v1673_v8, 0.0 }
 0x235   : > { %v1676_v5 = vpop.f32.mrf.mxu0 }
 0x236   : > { %v1677_v7 = vadd.f32 %v1676_v5, %v13000_v32  ;;  %2409 = vmatprep.mubr.bf16.mxu1 %v1950_v1  ;;  %v1866_v13 = vmax.f32 %v1675_v6, 0.0 }
 0x237   : > { %v1678_v9 = vpop.f32.mrf.mxu0  ;;  %2410 = vmatmul.mubr.bf16.gmra.mxu1 %v1949_v4  ;;  %v11687_v4 = vld [vmem:[%s16725_s10 + $0xd4] ss:$8 sps:$4 sm:$0xff]  }
 0x238   : > { %v1679_v10 = vadd.f32 %v1678_v9, %v12996_v31  ;;  %v1867_v11 = vmax.f32 %v1677_v7, 0.0  ;;  %3695 = vmatprep.subr.bf16.mxu1 %v11687_v4 }
 0x239   : > { %v1682_v12 = vpop.f32.mrf.mxu0  ;;  %3696 = vmatpush2.bf16.msra.mxu1 %v11685_v3 }
 0x23a   : > { %v1868_v14 = vmax.f32 %v1679_v10, 0.0  ;;  %v1951_v18 = vpack.c.bf16 %v1867_v11, %v1865_v15  ;;  %v1683_v22 = vadd.f32 %v1682_v12, %v13000_v32  ;;  %v2005_v11 = vld [vmem:[#allocation7] sm:$0x3] }
 0x23b   : > { %v1684_v16 = vpop.f32.mrf.mxu0 }
 0x23c   : > { %v1952_v17 = vpack.c.bf16 %v1868_v14, %v1866_v13  ;;  %v1685_v20 = vadd.f32 %v1684_v16, %v12996_v31  ;;  %v1869_v33 = vmax.f32 %v1683_v22, 0.0  ;;  %v13223_v16 = vrot.slane %v2005_v11, %v12984_v25 }
 0x23d   : > { %v1686_v19 = vpop.f32.mrf.mxu0 }
 0x23e   : > { %v1687_v21 = vadd.f32 %v1686_v19, %v13000_v32  ;;  %2419 = vmatprep.mubr.bf16.mxu1 %v1952_v17  ;;  %v1870_v29 = vmax.f32 %v1685_v20, 0.0  ;;  %v13226_v20 = vrot.slane %v2005_v11, %v12992_v28 }
 0x23f   : > { %v1688_v23 = vpop.f32.mrf.mxu0  ;;  %2420 = vmatmul.mubr.bf16.gmra.mxu1 %v1951_v18 }
 0x240   : > { %v1689_v24 = vadd.f32 %v1688_v23, %v12996_v31  ;;  %v1871_v26 = vmax.f32 %v1687_v21, 0.0 }
 0x241   : > { %v1692_v27 = vpop.f32.mrf.mxu0 }
 0x242   : > { %v1872_v30 = vmax.f32 %v1689_v24, 0.0  ;;  %v1953_v38 = vpack.c.bf16 %v1871_v26, %v1869_v33  ;;  %v1693_v42 = vadd.f32 %v1692_v27, %v13000_v32 }
 0x243   : > { %v1694_v34 = vpop.f32.mrf.mxu0 }
 0x244   : > { %v1954_v35 = vpack.c.bf16 %v1872_v30, %v1870_v29  ;;  %v1695_v40 = vadd.f32 %v1694_v34, %v12996_v31  ;;  %v1873_v49 = vmax.f32 %v1693_v42, 0.0 }
 0x245   : > { %v1696_v39 = vpop.f32.mrf.mxu0 }
 0x246   : > { %v1697_v41 = vadd.f32 %v1696_v39, %v13000_v32  ;;  %2429 = vmatprep.mubr.bf16.mxu1 %v1954_v35  ;;  %v1874_v47 = vmax.f32 %v1695_v40, 0.0 }
 0x247   : > { %v1698_v43 = vpop.f32.mrf.mxu0  ;;  %2430 = vmatmul.mubr.bf16.gmra.mxu1 %v1953_v38 }
 0x248   : > { %v1699_v44 = vadd.f32 %v1698_v43, %v12996_v31  ;;  %v1875_v45 = vmax.f32 %v1697_v41, 0.0 }
 0x249   : > { %v1702_v46 = vpop.f32.mrf.mxu0 }
 0x24a   : > { %v1876_v48 = vmax.f32 %v1699_v44, 0.0  ;;  %v1955_v52 = vpack.c.bf16 %v1875_v45, %v1873_v49  ;;  %v1703_v56 = vadd.f32 %v1702_v46, %v13000_v32 }
 0x24b   : > { %v1704_v50 = vpop.f32.mrf.mxu0 }
 0x24c   : > { %v1956_v51 = vpack.c.bf16 %v1876_v48, %v1874_v47  ;;  %v1705_v54 = vadd.f32 %v1704_v50, %v12996_v31  ;;  %v1877_v63 = vmax.f32 %v1703_v56, 0.0 }
 0x24d   : > { %v1706_v53 = vpop.f32.mrf.mxu0 }
 0x24e   : > { %v1707_v55 = vadd.f32 %v1706_v53, %v13000_v32  ;;  %2439 = vmatprep.mubr.bf16.mxu1 %v1956_v51  ;;  %v1878_v61 = vmax.f32 %v1705_v54, 0.0 }
 0x24f   : > { %v1708_v57 = vpop.f32.mrf.mxu0  ;;  %2440 = vmatmul.mubr.bf16.gmra.mxu1 %v1955_v52 }
 0x250   : > { %v1709_v58 = vadd.f32 %v1708_v57, %v12996_v31  ;;  %v1879_v59 = vmax.f32 %v1707_v55, 0.0  ;;  %v11688_v57 = vld [vmem:[%s16725_s10 + $0xc0] ss:$8 sps:$4 sm:$0xff]  }
 0x251   : > { %v1712_v60 = vpop.f32.mrf.mxu0 }
 0x252   : > { %v1880_v62 = vmax.f32 %v1709_v58, 0.0  ;;  %v1957_v5 = vpack.c.bf16 %v1879_v59, %v1877_v63  ;;  %v1713_v9 = vadd.f32 %v1712_v60, %v13000_v32  ;;  %v11690_v58 = vld [vmem:[%s16725_s10 + $0xc4] ss:$8 sps:$4 sm:$0xff]  }
 0x253   : > { %v1714_v1 = vpop.f32.mrf.mxu0  ;;  %3697 = vmatprep.subr.bf16.mxu1 %v11690_v58  ;;  %v11691_v58 = vld [vmem:[%s16725_s10 + $0xb0] ss:$8 sps:$4 sm:$0xff]  }
 0x254   : > { %v1958_v2 = vpack.c.bf16 %v1880_v62, %v1878_v61  ;;  %v1715_v7 = vadd.f32 %v1714_v1, %v12996_v31  ;;  %v1881_v21 = vmax.f32 %v1713_v9, 0.0  ;;  %3698 = vmatpush2.bf16.msra.mxu1 %v11688_v57 }
 0x255   : > { %v1716_v6 = vpop.f32.mrf.mxu0 }
 0x256   : > { %v1717_v8 = vadd.f32 %v1716_v6, %v13000_v32  ;;  %2449 = vmatprep.mubr.bf16.mxu1 %v1958_v2  ;;  %v1882_v18 = vmax.f32 %v1715_v7, 0.0 }
 0x257   : > { %v1718_v10 = vpop.f32.mrf.mxu0  ;;  %v2211_v12 = vpop.f32.mrf.mxu1  ;;  %2450 = vmatmul.mubr.bf16.gmra.mxu1 %v1957_v5 }
 0x258   : > { %v1719_v13 = vadd.f32 %v1718_v10, %v12996_v31  ;;  %v1883_v14 = vmax.f32 %v1717_v8, 0.0  ;;  %v2212_v34 = vadd.f32 %v2211_v12, %v13226_v20 }
 0x259   : > { %v1722_v15 = vpop.f32.mrf.mxu0  ;;  %v2213_v17 = vpop.f32.mrf.mxu1 }
 0x25a   : > { %v1884_v19 = vmax.f32 %v1719_v13, 0.0  ;;  %v1959_v27 = vpack.c.bf16 %v1883_v14, %v1881_v21  ;;  %v2214_v29 = vadd.f32 %v2213_v17, %v13223_v16  ;;  %v1723_v40 = vadd.f32 %v1722_v15, %v13000_v32 }
 0x25b   : > { %v1724_v22 = vpop.f32.mrf.mxu0  ;;  %v2215_v23 = vpop.f32.mrf.mxu1  ;;  %v2530_v47 = vmax.f32 %v2212_v34, 0.0 }
 0x25c   : > { %v2216_v24 = vadd.f32 %v2215_v23, %v13226_v20  ;;  %v1960_v26 = vpack.c.bf16 %v1884_v19, %v1882_v18  ;;  %v1725_v37 = vadd.f32 %v1724_v22, %v12996_v31  ;;  %v2531_v44 = vmax.f32 %v2214_v29, 0.0 }
 0x25d   : > { %v1726_v30 = vpop.f32.mrf.mxu0  ;;  %v2217_v33 = vpop.f32.mrf.mxu1  ;;  %v1885_v54 = vmax.f32 %v1723_v40, 0.0 }
 0x25e   : > { %v1727_v35 = vadd.f32 %v1726_v30, %v13000_v32  ;;  %v2218_v36 = vadd.f32 %v2217_v33, %v13223_v16  ;;  %2459 = vmatprep.mubr.bf16.mxu1 %v1960_v26  ;;  %v2532_v41 = vmax.f32 %v2216_v24, 0.0  ;;  %v1886_v50 = vmax.f32 %v1725_v37, 0.0 }
 0x25f   : > { %v1728_v38 = vpop.f32.mrf.mxu0  ;;  %v2221_v39 = vpop.f32.mrf.mxu1  ;;  %2460 = vmatmul.mubr.bf16.gmra.mxu1 %v1959_v27 }
 0x260   : > { %v2533_v42 = vmax.f32 %v2218_v36, 0.0  ;;  %v1729_v43 = vadd.f32 %v1728_v38, %v12996_v31  ;;  %v1887_v48 = vmax.f32 %v1727_v35, 0.0  ;;  %v2658_v55 = vpack.c.bf16 %v2532_v41, %v2530_v47 }
 0x261   : > { %v1732_v45 = vpop.f32.mrf.mxu0  ;;  %v2223_v46 = vpop.f32.mrf.mxu1  ;;  %v2222_v59 = vadd.f32 %v2221_v39, %v13226_v20 }
 0x262   : > { %v1888_v49 = vmax.f32 %v1729_v43, 0.0  ;;  %v2659_v53 = vpack.c.bf16 %v2533_v42, %v2531_v44  ;;  %v2224_v60 = vadd.f32 %v2223_v46, %v13223_v16  ;;  %v1961_v1 = vpack.c.bf16 %v1887_v48, %v1885_v54 }
 0x263   : > { %v1734_v51 = vpop.f32.mrf.mxu0  ;;  %v2225_v52 = vpop.f32.mrf.mxu1  ;;  %v1733_v7 = vadd.f32 %v1732_v45, %v13000_v32  ;;  %v2534_v14 = vmax.f32 %v2222_v59, 0.0  ;;  %v11693_v59 = vld [vmem:[%s16725_s10 + $0xb4] ss:$8 sps:$4 sm:$0xff]  }
 0x264   : > { %v2226_v56 = vadd.f32 %v2225_v52, %v13226_v20  ;;  %2958 = vmatprep.mubr.bf16.mxu0 %v2659_v53  ;;  %v1962_v63 = vpack.c.bf16 %v1888_v49, %v1886_v50  ;;  %v1735_v4 = vadd.f32 %v1734_v51, %v12996_v31  ;;  %v2535_v11 = vmax.f32 %v2224_v60, 0.0  ;;  %3699 = vmatprep.subr.bf16.mxu1 %v11693_v59 }
 0x265   : > { %v1736_v61 = vpop.f32.mrf.mxu0  ;;  %v2227_v62 = vpop.f32.mrf.mxu1  ;;  %2959 = vmatmul.mubr.bf16.vlgmr.msra.gmra.mxu0 %v2658_v55  ;;  %v1889_v23 = vmax.f32 %v1733_v7, 0.0  ;;  %3700 = vmatpush2.bf16.msra.mxu1 %v11691_v58 }
 0x266   : > { %v1737_v2 = vadd.f32 %v1736_v61, %v13000_v32  ;;  %v2228_v3 = vadd.f32 %v2227_v62, %v13223_v16  ;;  %2469 = vmatprep.mubr.bf16.mxu1 %v1962_v63  ;;  %v2536_v8 = vmax.f32 %v2226_v56, 0.0  ;;  %v1890_v18 = vmax.f32 %v1735_v4, 0.0 }
 0x267   : > { %v1738_v5 = vpop.f32.mrf.mxu0  ;;  %v2231_v6 = vpop.f32.mrf.mxu1  ;;  %2470 = vmatmul.mubr.bf16.gmra.mxu1 %v1961_v1 }
 0x268   : > { %v2537_v9 = vmax.f32 %v2228_v3, 0.0  ;;  %v1739_v10 = vadd.f32 %v1738_v5, %v12996_v31  ;;  %v1891_v15 = vmax.f32 %v1737_v2, 0.0  ;;  %v2660_v24 = vpack.c.bf16 %v2536_v8, %v2534_v14 }
 0x269   : > { %v1742_v12 = vpop.f32.mrf.mxu0  ;;  %v2233_v13 = vpop.f32.mrf.mxu1  ;;  %v2232_v35 = vadd.f32 %v2231_v6, %v13226_v20 }
 0x26a   : > { %v1892_v17 = vmax.f32 %v1739_v10, 0.0  ;;  %v2661_v22 = vpack.c.bf16 %v2537_v9, %v2535_v11  ;;  %v2234_v27 = vadd.f32 %v2233_v13, %v13223_v16  ;;  %v1963_v34 = vpack.c.bf16 %v1891_v15, %v1889_v23 }
 0x26b   : > { %v1744_v19 = vpop.f32.mrf.mxu0  ;;  %v2235_v21 = vpop.f32.mrf.mxu1  ;;  %v1743_v41 = vadd.f32 %v1742_v12, %v13000_v32  ;;  %v2538_v48 = vmax.f32 %v2232_v35, 0.0 }
 0x26c   : > { %v2236_v26 = vadd.f32 %v2235_v21, %v13226_v20  ;;  %2968 = vmatprep.mubr.bf16.mxu0 %v2661_v22  ;;  %v1964_v33 = vpack.c.bf16 %v1892_v17, %v1890_v18  ;;  %v1745_v38 = vadd.f32 %v1744_v19, %v12996_v31  ;;  %v2539_v45 = vmax.f32 %v2234_v27, 0.0 }
 0x26d   : > { %v1746_v29 = vpop.f32.mrf.mxu0  ;;  %v2237_v30 = vpop.f32.mrf.mxu1  ;;  %2969 = vmatmul.mubr.bf16.gmra.mxu0 %v2660_v24  ;;  %v1893_v55 = vmax.f32 %v1743_v41, 0.0 }
 0x26e   : > { %v1747_v36 = vadd.f32 %v1746_v29, %v13000_v32  ;;  %v2238_v37 = vadd.f32 %v2237_v30, %v13223_v16  ;;  %2479 = vmatprep.mubr.bf16.mxu1 %v1964_v33  ;;  %v2540_v42 = vmax.f32 %v2236_v26, 0.0  ;;  %v1894_v51 = vmax.f32 %v1745_v38, 0.0 }
 0x26f   : > { %v1748_v39 = vpop.f32.mrf.mxu0  ;;  %v2241_v40 = vpop.f32.mrf.mxu1  ;;  %2480 = vmatmul.mubr.bf16.gmra.mxu1 %v1963_v34 }
 0x270   : > { %v2541_v43 = vmax.f32 %v2238_v37, 0.0  ;;  %v1749_v44 = vadd.f32 %v1748_v39, %v12996_v31  ;;  %v1895_v49 = vmax.f32 %v1747_v36, 0.0  ;;  %v2662_v56 = vpack.c.bf16 %v2540_v42, %v2538_v48 }
 0x271   : > { %v1752_v46 = vpop.f32.mrf.mxu0  ;;  %v2243_v47 = vpop.f32.mrf.mxu1  ;;  %v2242_v60 = vadd.f32 %v2241_v40, %v13226_v20 }
 0x272   : > { %v1896_v50 = vmax.f32 %v1749_v44, 0.0  ;;  %v2663_v54 = vpack.c.bf16 %v2541_v43, %v2539_v45  ;;  %v2244_v61 = vadd.f32 %v2243_v47, %v13223_v16  ;;  %v1965_v2 = vpack.c.bf16 %v1895_v49, %v1893_v55 }
 0x273   : > { %v1754_v52 = vpop.f32.mrf.mxu0  ;;  %v2245_v53 = vpop.f32.mrf.mxu1  ;;  %v1753_v8 = vadd.f32 %v1752_v46, %v13000_v32  ;;  %v2542_v15 = vmax.f32 %v2242_v60, 0.0 }
 0x274   : > { %v2246_v57 = vadd.f32 %v2245_v53, %v13226_v20  ;;  %2978 = vmatprep.mubr.bf16.mxu0 %v2663_v54  ;;  %v1966_v1 = vpack.c.bf16 %v1896_v50, %v1894_v51  ;;  %v1755_v5 = vadd.f32 %v1754_v52, %v12996_v31  ;;  %v2543_v12 = vmax.f32 %v2244_v61, 0.0  ;;  %v11694_v52 = vld [vmem:[%s16726_s2 + $0x70] ss:$8 sps:$4 sm:$0xff]   ;;  %v11696_v53 = vld [vmem:[%s16726_s2 + $0x74] ss:$8 sps:$4 sm:$0xff]  }
 0x275   : > { %v1756_v62 = vpop.f32.mrf.mxu0  ;;  %v2247_v63 = vpop.f32.mrf.mxu1  ;;  %2979 = vmatmul.mubr.bf16.gmra.mxu0 %v2662_v56  ;;  %v1897_v24 = vmax.f32 %v1753_v8, 0.0  ;;  %4424 = vmatprep.subr.bf16.mxu0 %v11696_v53 }
 0x276   : > { %v1757_v3 = vadd.f32 %v1756_v62, %v13000_v32  ;;  %v2248_v4 = vadd.f32 %v2247_v63, %v13223_v16  ;;  %2489 = vmatprep.mubr.bf16.mxu1 %v1966_v1  ;;  %v2544_v9 = vmax.f32 %v2246_v57, 0.0  ;;  %v1898_v19 = vmax.f32 %v1755_v5, 0.0  ;;  %v11697_v62 = vld [vmem:[%s16725_s10 + $0xa0] ss:$8 sps:$4 sm:$0xff]   ;;  %v11699_v63 = vld [vmem:[%s16725_s10 + $0xa4] ss:$8 sps:$4 sm:$0xff]   ;;  %4425 = vmatpush1.bf16.msra.mxu0 %v11694_v52 }
 0x277   : > { %v1758_v6 = vpop.f32.mrf.mxu0  ;;  %v2251_v7 = vpop.f32.mrf.mxu1  ;;  %2490 = vmatmul.mubr.bf16.gmra.mxu1 %v1965_v2  ;;  %3701 = vmatprep.subr.bf16.mxu1 %v11699_v63 }
 0x278   : > { %v2545_v10 = vmax.f32 %v2248_v4, 0.0  ;;  %v1759_v11 = vadd.f32 %v1758_v6, %v12996_v31  ;;  %v1899_v17 = vmax.f32 %v1757_v3, 0.0  ;;  %v2664_v26 = vpack.c.bf16 %v2544_v9, %v2542_v15  ;;  %3702 = vmatpush2.bf16.msra.mxu1 %v11697_v62 }
 0x279   : > { %v1762_v13 = vpop.f32.mrf.mxu0  ;;  %v2253_v14 = vpop.f32.mrf.mxu1  ;;  %v2252_v36 = vadd.f32 %v2251_v7, %v13226_v20 }
 0x27a   : > { %v1900_v18 = vmax.f32 %v1759_v11, 0.0  ;;  %v2665_v23 = vpack.c.bf16 %v2545_v10, %v2543_v12  ;;  %v2254_v29 = vadd.f32 %v2253_v14, %v13223_v16  ;;  %v1967_v35 = vpack.c.bf16 %v1899_v17, %v1897_v24 }
 0x27b   : > { %v1764_v21 = vpop.f32.mrf.mxu0  ;;  %v2255_v22 = vpop.f32.mrf.mxu1  ;;  %v1763_v39 = vadd.f32 %v1762_v13, %v13000_v32  ;;  %v2546_v50 = vmax.f32 %v2252_v36, 0.0 }
 0x27c   : > { %v2256_v27 = vadd.f32 %v2255_v22, %v13226_v20  ;;  %2988 = vmatprep.mubr.bf16.mxu0 %v2665_v23  ;;  %v1968_v34 = vpack.c.bf16 %v1900_v18, %v1898_v19  ;;  %v1765_v40 = vadd.f32 %v1764_v21, %v12996_v31  ;;  %v2547_v46 = vmax.f32 %v2254_v29, 0.0 }
 0x27d   : > { %v1766_v30 = vpop.f32.mrf.mxu0  ;;  %v2257_v33 = vpop.f32.mrf.mxu1  ;;  %2989 = vmatmul.mubr.bf16.gmra.mxu0 %v2664_v26  ;;  %v1901_v54 = vmax.f32 %v1763_v39, 0.0 }
 0x27e   : > { %v1767_v37 = vadd.f32 %v1766_v30, %v13000_v32  ;;  %v2258_v38 = vadd.f32 %v2257_v33, %v13223_v16  ;;  %2499 = vmatprep.mubr.bf16.mxu1 %v1968_v34  ;;  %v2548_v43 = vmax.f32 %v2256_v27, 0.0  ;;  %v1902_v55 = vmax.f32 %v1765_v40, 0.0 }
 0x27f   : > { %v1768_v41 = vpop.f32.mrf.mxu0  ;;  %v2261_v42 = vpop.f32.mrf.mxu1  ;;  %2500 = vmatmul.mubr.bf16.gmra.mxu1 %v1967_v35 }
 0x280   : > { %v2549_v44 = vmax.f32 %v2258_v38, 0.0  ;;  %v1769_v45 = vadd.f32 %v1768_v41, %v12996_v31  ;;  %v1903_v47 = vmax.f32 %v1767_v37, 0.0  ;;  %v2666_v59 = vpack.c.bf16 %v2548_v43, %v2546_v50  ;;  %v11700_v43 = vld [vmem:[%s16726_s2 + $0x60] ss:$8 sps:$4 sm:$0xff]   ;;  %v11705_v50 = vld [vmem:[%s16725_s10 + $0x94] ss:$8 sps:$4 sm:$0xff]  }
 0x281   : > { %v1772_v48 = vpop.f32.mrf.mxu0  ;;  %v2263_v49 = vpop.f32.mrf.mxu1  ;;  %v2262_v2 = vadd.f32 %v2261_v42, %v13226_v20  ;;  %3703 = vmatprep.subr.bf16.mxu1 %v11705_v50  ;;  %v11714_v50 = vld [vmem:[%s16726_s2 + $0x44] ss:$8 sps:$4 sm:$0xff]  }
 0x282   : > { %v1904_v51 = vmax.f32 %v1769_v45, 0.0  ;;  %v2667_v58 = vpack.c.bf16 %v2549_v44, %v2547_v46  ;;  %v2264_v60 = vadd.f32 %v2263_v49, %v13223_v16  ;;  %v1969_v1 = vpack.c.bf16 %v1903_v47, %v1901_v54  ;;  %v11702_v44 = vld [vmem:[%s16726_s2 + $0x64] ss:$8 sps:$4 sm:$0xff]   ;;  %v11703_v49 = vld [vmem:[%s16725_s10 + $0x90] ss:$8 sps:$4 sm:$0xff]  }
 0x283   : > { %v1774_v56 = vpop.f32.mrf.mxu0  ;;  %v2265_v57 = vpop.f32.mrf.mxu1  ;;  %v1773_v9 = vadd.f32 %v1772_v48, %v13000_v32  ;;  %v2550_v17 = vmax.f32 %v2262_v2, 0.0  ;;  %4426 = vmatprep.subr.bf16.mxu0 %v11702_v44  ;;  %3704 = vmatpush2.bf16.msra.mxu1 %v11703_v49  ;;  %v11712_v49 = vld [vmem:[%s16726_s2 + $0x40] ss:$8 sps:$4 sm:$0xff]  }
 0x284   : > { %v2266_v61 = vadd.f32 %v2265_v57, %v13226_v20  ;;  %2998 = vmatprep.mubr.bf16.mxu0 %v2667_v58  ;;  %v1970_v5 = vpack.c.bf16 %v1904_v51, %v1902_v55  ;;  %v1775_v6 = vadd.f32 %v1774_v56, %v12996_v31  ;;  %v2551_v12 = vmax.f32 %v2264_v60, 0.0  ;;  %4427 = vmatpush1.bf16.msra.mxu0 %v11700_v43 }
 0x285   : > { %v1776_v3 = vpop.f32.mrf.mxu0  ;;  %v2267_v4 = vpop.f32.mrf.mxu1  ;;  %2999 = vmatmul.mubr.bf16.gmra.mxu0 %v2666_v59  ;;  %v1905_v24 = vmax.f32 %v1773_v9, 0.0 }
 0x286   : > { %v1777_v7 = vadd.f32 %v1776_v3, %v13000_v32  ;;  %v2268_v8 = vadd.f32 %v2267_v4, %v13223_v16  ;;  %2509 = vmatprep.mubr.bf16.mxu1 %v1970_v5  ;;  %v2552_v13 = vmax.f32 %v2266_v61, 0.0  ;;  %v1906_v19 = vmax.f32 %v1775_v6, 0.0 }
 0x287   : > { %v1778_v10 = vpop.f32.mrf.mxu0  ;;  %v2271_v11 = vpop.f32.mrf.mxu1  ;;  %2510 = vmatmul.mubr.bf16.gmra.mxu1 %v1969_v1 }
 0x288   : > { %v2553_v14 = vmax.f32 %v2268_v8, 0.0  ;;  %v1779_v15 = vadd.f32 %v1778_v10, %v12996_v31  ;;  %v1907_v21 = vmax.f32 %v1777_v7, 0.0  ;;  %v2668_v27 = vpack.c.bf16 %v2552_v13, %v2550_v17  ;;  %v11708_v13 = vld [vmem:[%s16726_s2 + $0x54] ss:$8 sps:$4 sm:$0xff]  }
 0x289   : > { %v2273_v18 = vpop.f32.mrf.mxu1  ;;  %v2272_v31 = vadd.f32 %v2271_v11, %v13226_v20  ;;  %4428 = vmatprep.subr.bf16.mxu0 %v11708_v13 }
 0x28a   : > { %v1908_v22 = vmax.f32 %v1779_v15, 0.0  ;;  %v2669_v23 = vpack.c.bf16 %v2553_v14, %v2551_v12  ;;  %v2274_v32 = vadd.f32 %v2273_v18, %v13223_v16  ;;  %v1971_v34 = vpack.c.bf16 %v1907_v21, %v1905_v24  ;;  %v11706_v12 = vld [vmem:[%s16726_s2 + $0x50] ss:$8 sps:$4 sm:$0xff]   ;;  %v11711_v21 = vld [vmem:[%s16725_s10 + $0x84] ss:$8 sps:$4 sm:$0xff]  }
 0x28b   : > { %v2275_v26 = vpop.f32.mrf.mxu1  ;;  %v2554_v41 = vmax.f32 %v2272_v31, 0.0  ;;  %4429 = vmatpush1.bf16.msra.mxu0 %v11706_v12  ;;  %3705 = vmatprep.subr.bf16.mxu1 %v11711_v21 }
 0x28c   : > { %v2276_v29 = vadd.f32 %v2275_v26, %v13226_v20  ;;  %3008 = vmatprep.mubr.bf16.mxu0 %v2669_v23  ;;  %v1972_v30 = vpack.c.bf16 %v1908_v22, %v1906_v19  ;;  %v2555_v37 = vmax.f32 %v2274_v32, 0.0  ;;  %v11709_v19 = vld [vmem:[%s16725_s10 + $0x80] ss:$8 sps:$4 sm:$0xff]   ;;  %4430 = vmatprep.subr.bf16.mxu0 %v11714_v50 }
 0x28d   : > { %v2277_v33 = vpop.f32.mrf.mxu1  ;;  %3009 = vmatmul.mubr.bf16.gmra.mxu0 %v2668_v27  ;;  %3706 = vmatpush2.bf16.msra.mxu1 %v11709_v19  ;;  %v11718_v50 = vld [vmem:[%s16726_s2 + $0x20] ss:$8 sps:$4 sm:$0xff]  }
 0x28e   : > { %v2278_v35 = vadd.f32 %v2277_v33, %v13223_v16  ;;  %2519 = vmatprep.mubr.bf16.mxu1 %v1972_v30  ;;  %v2556_v38 = vmax.f32 %v2276_v29, 0.0 }
 0x28f   : > { %v2281_v36 = vpop.f32.mrf.mxu1  ;;  %2520 = vmatmul.mubr.bf16.gmra.mxu1 %v1971_v34  ;;  %4431 = vmatpush1.bf16.msra.mxu0 %v11712_v49 }
 0x290   : > { %v2557_v39 = vmax.f32 %v2278_v35, 0.0  ;;  %v2670_v46 = vpack.c.bf16 %v2556_v38, %v2554_v41  ;;  %v2282_v52 = vadd.f32 %v2281_v36, %v13226_v20 }
 0x291   : > { %v2283_v40 = vpop.f32.mrf.mxu1 }
 0x292   : > { %v2671_v42 = vpack.c.bf16 %v2557_v39, %v2555_v37  ;;  %v2284_v47 = vadd.f32 %v2283_v40, %v13223_v16  ;;  %v2558_v59 = vmax.f32 %v2282_v52, 0.0 }
 0x293   : > { %v2285_v45 = vpop.f32.mrf.mxu1 }
 0x294   : > { %v2286_v48 = vadd.f32 %v2285_v45, %v13226_v20  ;;  %3018 = vmatprep.mubr.bf16.mxu0 %v2671_v42  ;;  %v2559_v55 = vmax.f32 %v2284_v47, 0.0 }
 0x295   : > { %v2287_v51 = vpop.f32.mrf.mxu1  ;;  %3019 = vmatmul.mubr.bf16.gmra.mxu0 %v2670_v46 }
 0x296   : > { %v2288_v53 = vadd.f32 %v2287_v51, %v13223_v16  ;;  %v2560_v56 = vmax.f32 %v2286_v48, 0.0 }
 0x297   : > { %v2291_v54 = vpop.f32.mrf.mxu1 }
 0x298   : > { %v2561_v57 = vmax.f32 %v2288_v53, 0.0  ;;  %v2672_v62 = vpack.c.bf16 %v2560_v56, %v2558_v59  ;;  %v2292_v3 = vadd.f32 %v2291_v54, %v13226_v20 }
 0x299   : > { %v2293_v58 = vpop.f32.mrf.mxu1 }
 0x29a   : > { %v2673_v60 = vpack.c.bf16 %v2561_v57, %v2559_v55  ;;  %v2294_v63 = vadd.f32 %v2293_v58, %v13223_v16  ;;  %v2562_v10 = vmax.f32 %v2292_v3, 0.0 }
 0x29b   : > { %v2295_v61 = vpop.f32.mrf.mxu1 }
 0x29c   : > { %v2296_v1 = vadd.f32 %v2295_v61, %v13226_v20  ;;  %3028 = vmatprep.mubr.bf16.mxu0 %v2673_v60  ;;  %v2563_v6 = vmax.f32 %v2294_v63, 0.0 }
 0x29d   : > { %v2297_v2 = vpop.f32.mrf.mxu1  ;;  %3029 = vmatmul.mubr.bf16.gmra.mxu0 %v2672_v62 }
 0x29e   : > { %v2298_v4 = vadd.f32 %v2297_v2, %v13223_v16  ;;  %v2564_v7 = vmax.f32 %v2296_v1, 0.0 }
 0x29f   : > { %v2301_v5 = vpop.f32.mrf.mxu1 }
 0x2a0   : > { %v2565_v8 = vmax.f32 %v2298_v4, 0.0  ;;  %v2674_v15 = vpack.c.bf16 %v2564_v7, %v2562_v10  ;;  %v2302_v23 = vadd.f32 %v2301_v5, %v13226_v20 }
 0x2a1   : > { %v2303_v9 = vpop.f32.mrf.mxu1 }
 0x2a2   : > { %v2675_v11 = vpack.c.bf16 %v2565_v8, %v2563_v6  ;;  %v2304_v17 = vadd.f32 %v2303_v9, %v13223_v16  ;;  %v2566_v33 = vmax.f32 %v2302_v23, 0.0 }
 0x2a3   : > { %v2305_v14 = vpop.f32.mrf.mxu1 }
 0x2a4   : > { %v2306_v18 = vadd.f32 %v2305_v14, %v13226_v20  ;;  %3038 = vmatprep.mubr.bf16.mxu0 %v2675_v11  ;;  %v2567_v27 = vmax.f32 %v2304_v17, 0.0  ;;  %v11715_v17 = vld [vmem:[%s16726_s2 + $0x30] ss:$8 sps:$4 sm:$0xff]  }
 0x2a5   : > { %v2307_v22 = vpop.f32.mrf.mxu1  ;;  %3039 = vmatmul.mubr.bf16.gmra.mxu0 %v2674_v15 }
 0x2a6   : > { %v2308_v24 = vadd.f32 %v2307_v22, %v13223_v16  ;;  %v2568_v32 = vmax.f32 %v2306_v18, 0.0  ;;  %v11717_v18 = vld [vmem:[%s16726_s2 + $0x34] ss:$8 sps:$4 sm:$0xff]  }
 0x2a7   : > { %v2311_v26 = vpop.f32.mrf.mxu1  ;;  %4432 = vmatprep.subr.bf16.mxu0 %v11717_v18  ;;  %v11721_v18 = vld [vmem:[%s16726_s2 + $0x10] ss:$8 sps:$4 sm:$0xff]  }
 0x2a8   : > { %v2569_v29 = vmax.f32 %v2308_v24, 0.0  ;;  %v2676_v35 = vpack.c.bf16 %v2568_v32, %v2566_v33  ;;  %v2312_v39 = vadd.f32 %v2311_v26, %v13226_v20  ;;  %4433 = vmatpush1.bf16.msra.mxu0 %v11715_v17 }
 0x2a9   : > { %v2313_v30 = vpop.f32.mrf.mxu1 }
 0x2aa   : > { %v2677_v34 = vpack.c.bf16 %v2569_v29, %v2567_v27  ;;  %v2314_v36 = vadd.f32 %v2313_v30, %v13223_v16  ;;  %v2570_v46 = vmax.f32 %v2312_v39, 0.0 }
 0x2ab   : > { %v2315_v31 = vpop.f32.mrf.mxu1 }
 0x2ac   : > { %v2316_v37 = vadd.f32 %v2315_v31, %v13226_v20  ;;  %3048 = vmatprep.mubr.bf16.mxu0 %v2677_v34  ;;  %v2571_v42 = vmax.f32 %v2314_v36, 0.0 }
 0x2ad   : > { %v2317_v38 = vpop.f32.mrf.mxu1  ;;  %3049 = vmatmul.mubr.bf16.gmra.mxu0 %v2676_v35 }
 0x2ae   : > { %v2318_v40 = vadd.f32 %v2317_v38, %v13223_v16  ;;  %v2572_v43 = vmax.f32 %v2316_v37, 0.0 }
 0x2af   : > { %v2321_v41 = vpop.f32.mrf.mxu1 }
 0x2b0   : > { %v2573_v44 = vmax.f32 %v2318_v40, 0.0  ;;  %v2678_v51 = vpack.c.bf16 %v2572_v43, %v2570_v46  ;;  %v2322_v55 = vadd.f32 %v2321_v41, %v13226_v20 }
 0x2b1   : > { %v2323_v45 = vpop.f32.mrf.mxu1 }
 0x2b2   : > { %v2679_v47 = vpack.c.bf16 %v2573_v44, %v2571_v42  ;;  %v2324_v52 = vadd.f32 %v2323_v45, %v13223_v16  ;;  %v2574_v62 = vmax.f32 %v2322_v55, 0.0 }
 0x2b3   : > { %v2325_v48 = vpop.f32.mrf.mxu1 }
 0x2b4   : > { %v2326_v53 = vadd.f32 %v2325_v48, %v13226_v20  ;;  %3058 = vmatprep.mubr.bf16.mxu0 %v2679_v47  ;;  %v2575_v58 = vmax.f32 %v2324_v52, 0.0 }
 0x2b5   : > { %v2327_v54 = vpop.f32.mrf.mxu1  ;;  %3059 = vmatmul.mubr.bf16.gmra.mxu0 %v2678_v51  ;;  %v11720_v51 = vld [vmem:[%s16726_s2 + $0x24] ss:$8 sps:$4 sm:$0xff]  }
 0x2b6   : > { %v2328_v56 = vadd.f32 %v2327_v54, %v13223_v16  ;;  %v2576_v59 = vmax.f32 %v2326_v53, 0.0  ;;  %4434 = vmatprep.subr.bf16.mxu0 %v11720_v51  ;;  %v11724_v51 = vld [vmem:[%s16726_s2] ss:$8 sps:$4 sm:$0xff]  }
 0x2b7   : > { %v2331_v57 = vpop.f32.mrf.mxu1  ;;  %4435 = vmatpush1.bf16.msra.mxu0 %v11718_v50 }
 0x2b8   : > { %v2577_v60 = vmax.f32 %v2328_v56, 0.0  ;;  %v2680_v2 = vpack.c.bf16 %v2576_v59, %v2574_v62  ;;  %v2332_v6 = vadd.f32 %v2331_v57, %v13226_v20 }
 0x2b9   : > { %v2333_v61 = vpop.f32.mrf.mxu1 }
 0x2ba   : > { %v2681_v63 = vpack.c.bf16 %v2577_v60, %v2575_v58  ;;  %v2334_v3 = vadd.f32 %v2333_v61, %v13223_v16  ;;  %v2578_v13 = vmax.f32 %v2332_v6, 0.0 }
 0x2bb   : > { %v2335_v1 = vpop.f32.mrf.mxu1 }
 0x2bc   : > { %v2336_v4 = vadd.f32 %v2335_v1, %v13226_v20  ;;  %3068 = vmatprep.mubr.bf16.mxu0 %v2681_v63  ;;  %v2579_v9 = vmax.f32 %v2334_v3, 0.0 }
 0x2bd   : > { %v2337_v5 = vpop.f32.mrf.mxu1  ;;  %3069 = vmatmul.mubr.bf16.gmra.mxu0 %v2680_v2 }
 0x2be   : > { %v2338_v7 = vadd.f32 %v2337_v5, %v13223_v16  ;;  %v2580_v10 = vmax.f32 %v2336_v4, 0.0 }
 0x2bf   : > { %v2341_v8 = vpop.f32.mrf.mxu1 }
 0x2c0   : > { %v2581_v11 = vmax.f32 %v2338_v7, 0.0  ;;  %v2682_v19 = vpack.c.bf16 %v2580_v10, %v2578_v13  ;;  %v2342_v24 = vadd.f32 %v2341_v8, %v13226_v20 }
 0x2c1   : > { %v2343_v12 = vpop.f32.mrf.mxu1 }
 0x2c2   : > { %v2683_v14 = vpack.c.bf16 %v2581_v11, %v2579_v9  ;;  %v2344_v21 = vadd.f32 %v2343_v12, %v13223_v16  ;;  %v2582_v34 = vmax.f32 %v2342_v24, 0.0 }
 0x2c3   : > { %v2345_v15 = vpop.f32.mrf.mxu1 }
 0x2c4   : > { %v2346_v22 = vadd.f32 %v2345_v15, %v13226_v20  ;;  %3078 = vmatprep.mubr.bf16.mxu0 %v2683_v14  ;;  %v2583_v32 = vmax.f32 %v2344_v21, 0.0 }
 0x2c5   : > { %v2347_v23 = vpop.f32.mrf.mxu1  ;;  %3079 = vmatmul.mubr.bf16.gmra.mxu0 %v2682_v19  ;;  %v11723_v19 = vld [vmem:[%s16726_s2 + $0x14] ss:$8 sps:$4 sm:$0xff]  }
 0x2c6   : > { %v2348_v26 = vadd.f32 %v2347_v23, %v13223_v16  ;;  %v2584_v29 = vmax.f32 %v2346_v22, 0.0  ;;  %4436 = vmatprep.subr.bf16.mxu0 %v11723_v19  ;;  %v11727_v19 = vld [vmem:[%s16726_s2 + $0xf0] ss:$8 sps:$4 sm:$0xff]  }
 0x2c7   : > { %v2351_v27 = vpop.f32.mrf.mxu1  ;;  %4437 = vmatpush1.bf16.msra.mxu0 %v11721_v18 }
 0x2c8   : > { %v2585_v30 = vmax.f32 %v2348_v26, 0.0  ;;  %v2684_v36 = vpack.c.bf16 %v2584_v29, %v2582_v34  ;;  %v2352_v40 = vadd.f32 %v2351_v27, %v13226_v20 }
 0x2c9   : > { %v2353_v33 = vpop.f32.mrf.mxu1 }
 0x2ca   : > { %v2685_v31 = vpack.c.bf16 %v2585_v30, %v2583_v32  ;;  %v2354_v37 = vadd.f32 %v2353_v33, %v13223_v16  ;;  %v2586_v47 = vmax.f32 %v2352_v40, 0.0 }
 0x2cb   : > { %v2355_v35 = vpop.f32.mrf.mxu1 }
 0x2cc   : > { %v2356_v38 = vadd.f32 %v2355_v35, %v13226_v20  ;;  %3088 = vmatprep.mubr.bf16.mxu0 %v2685_v31  ;;  %v2587_v43 = vmax.f32 %v2354_v37, 0.0 }
 0x2cd   : > { %v2357_v39 = vpop.f32.mrf.mxu1  ;;  %3089 = vmatmul.mubr.bf16.gmra.mxu0 %v2684_v36 }
 0x2ce   : > { %v2358_v41 = vadd.f32 %v2357_v39, %v13223_v16  ;;  %v2588_v44 = vmax.f32 %v2356_v38, 0.0 }
 0x2cf   : > { %v2361_v42 = vpop.f32.mrf.mxu1 }
 0x2d0   : > { %v2589_v45 = vmax.f32 %v2358_v41, 0.0  ;;  %v2686_v52 = vpack.c.bf16 %v2588_v44, %v2586_v47  ;;  %v2362_v56 = vadd.f32 %v2361_v42, %v13226_v20 }
 0x2d1   : > { %v2363_v46 = vpop.f32.mrf.mxu1 }
 0x2d2   : > { %v2687_v48 = vpack.c.bf16 %v2589_v45, %v2587_v43  ;;  %v2364_v53 = vadd.f32 %v2363_v46, %v13223_v16  ;;  %v2590_v63 = vmax.f32 %v2362_v56, 0.0 }
 0x2d3   : > { %v2365_v49 = vpop.f32.mrf.mxu1 }
 0x2d4   : > { %v2366_v54 = vadd.f32 %v2365_v49, %v13226_v20  ;;  %3098 = vmatprep.mubr.bf16.mxu0 %v2687_v48  ;;  %v2591_v59 = vmax.f32 %v2364_v53, 0.0 }
 0x2d5   : > { %v2367_v55 = vpop.f32.mrf.mxu1  ;;  %3099 = vmatmul.mubr.bf16.gmra.mxu0 %v2686_v52  ;;  %v11726_v52 = vld [vmem:[%s16726_s2 + $0x4] ss:$8 sps:$4 sm:$0xff]  }
 0x2d6   : > { %v2368_v57 = vadd.f32 %v2367_v55, %v13223_v16  ;;  %v2592_v60 = vmax.f32 %v2366_v54, 0.0  ;;  %4438 = vmatprep.subr.bf16.mxu0 %v11726_v52  ;;  %v11730_v52 = vld [vmem:[%s16726_s2 + $0xe0] ss:$8 sps:$4 sm:$0xff]  }
 0x2d7   : > { %v2371_v58 = vpop.f32.mrf.mxu1  ;;  %4439 = vmatpush1.bf16.msra.mxu0 %v11724_v51 }
 0x2d8   : > { %v2593_v61 = vmax.f32 %v2368_v57, 0.0  ;;  %v2688_v3 = vpack.c.bf16 %v2592_v60, %v2590_v63  ;;  %v2372_v7 = vadd.f32 %v2371_v58, %v13226_v20 }
 0x2d9   : > { %v2373_v62 = vpop.f32.mrf.mxu1 }
 0x2da   : > { %v2689_v1 = vpack.c.bf16 %v2593_v61, %v2591_v59  ;;  %v2374_v4 = vadd.f32 %v2373_v62, %v13223_v16  ;;  %v2594_v14 = vmax.f32 %v2372_v7, 0.0 }
 0x2db   : > { %v2375_v2 = vpop.f32.mrf.mxu1 }
 0x2dc   : > { %v2376_v5 = vadd.f32 %v2375_v2, %v13226_v20  ;;  %3108 = vmatprep.mubr.bf16.mxu0 %v2689_v1  ;;  %v2595_v10 = vmax.f32 %v2374_v4, 0.0 }
 0x2dd   : > { %v2377_v6 = vpop.f32.mrf.mxu1  ;;  %3109 = vmatmul.mubr.bf16.gmra.mxu0 %v2688_v3 }
 0x2de   : > { %v2378_v8 = vadd.f32 %v2377_v6, %v13223_v16  ;;  %v2596_v11 = vmax.f32 %v2376_v5, 0.0 }
 0x2df   : > { %v2381_v9 = vpop.f32.mrf.mxu1 }
 0x2e0   : > { %v2597_v12 = vmax.f32 %v2378_v8, 0.0  ;;  %v2690_v21 = vpack.c.bf16 %v2596_v11, %v2594_v14  ;;  %v2382_v26 = vadd.f32 %v2381_v9, %v13226_v20 }
 0x2e1   : > { %v2383_v13 = vpop.f32.mrf.mxu1 }
 0x2e2   : > { %v2691_v15 = vpack.c.bf16 %v2597_v12, %v2595_v10  ;;  %v2384_v22 = vadd.f32 %v2383_v13, %v13223_v16  ;;  %v2598_v31 = vmax.f32 %v2382_v26, 0.0 }
 0x2e3   : > { %v2385_v17 = vpop.f32.mrf.mxu1 }
 0x2e4   : > { %v2386_v23 = vadd.f32 %v2385_v17, %v13226_v20  ;;  %3118 = vmatprep.mubr.bf16.mxu0 %v2691_v15  ;;  %v2599_v29 = vmax.f32 %v2384_v22, 0.0 }
 0x2e5   : > { %v2387_v24 = vpop.f32.mrf.mxu1  ;;  %3119 = vmatmul.mubr.bf16.gmra.mxu0 %v2690_v21  ;;  %v11729_v21 = vld [vmem:[%s16726_s2 + $0xf4] ss:$8 sps:$4 sm:$0xff]  }
 0x2e6   : > { %v2388_v27 = vadd.f32 %v2387_v24, %v13223_v16  ;;  %v2600_v30 = vmax.f32 %v2386_v23, 0.0  ;;  %4440 = vmatprep.subr.bf16.mxu0 %v11729_v21  ;;  %v11733_v21 = vld [vmem:[%s16726_s2 + $0xd0] ss:$8 sps:$4 sm:$0xff]  }
 0x2e7   : > { %v2391_v32 = vpop.f32.mrf.mxu1  ;;  %4441 = vmatpush2.bf16.msra.mxu0 %v11727_v19 }
 0x2e8   : > { %v2601_v33 = vmax.f32 %v2388_v27, 0.0  ;;  %v2692_v37 = vpack.c.bf16 %v2600_v30, %v2598_v31  ;;  %v2392_v41 = vadd.f32 %v2391_v32, %v13226_v20 }
 0x2e9   : > { %v2393_v34 = vpop.f32.mrf.mxu1 }
 0x2ea   : > { %v2693_v35 = vpack.c.bf16 %v2601_v33, %v2599_v29  ;;  %v2394_v38 = vadd.f32 %v2393_v34, %v13223_v16  ;;  %v2602_v48 = vmax.f32 %v2392_v41, 0.0 }
 0x2eb   : > { %v2395_v36 = vpop.f32.mrf.mxu1 }
 0x2ec   : > { %v2396_v39 = vadd.f32 %v2395_v36, %v13226_v20  ;;  %3128 = vmatprep.mubr.bf16.mxu0 %v2693_v35  ;;  %v2603_v44 = vmax.f32 %v2394_v38, 0.0 }
 0x2ed   : > { %v2397_v40 = vpop.f32.mrf.mxu1  ;;  %3129 = vmatmul.mubr.bf16.gmra.mxu0 %v2692_v37 }
 0x2ee   : > { %v2398_v42 = vadd.f32 %v2397_v40, %v13223_v16  ;;  %v2604_v45 = vmax.f32 %v2396_v39, 0.0 }
 0x2ef   : > { %v2401_v43 = vpop.f32.mrf.mxu1 }
 0x2f0   : > { %v2605_v46 = vmax.f32 %v2398_v42, 0.0  ;;  %v2694_v53 = vpack.c.bf16 %v2604_v45, %v2602_v48  ;;  %v2402_v57 = vadd.f32 %v2401_v43, %v13226_v20 }
 0x2f1   : > { %v2403_v47 = vpop.f32.mrf.mxu1 }
 0x2f2   : > { %v2695_v49 = vpack.c.bf16 %v2605_v46, %v2603_v44  ;;  %v2404_v54 = vadd.f32 %v2403_v47, %v13223_v16  ;;  %v2606_v1 = vmax.f32 %v2402_v57, 0.0 }
 0x2f3   : > { %v2405_v50 = vpop.f32.mrf.mxu1 }
 0x2f4   : > { %v2406_v55 = vadd.f32 %v2405_v50, %v13226_v20  ;;  %3138 = vmatprep.mubr.bf16.mxu0 %v2695_v49  ;;  %v2607_v60 = vmax.f32 %v2404_v54, 0.0 }
 0x2f5   : > { %v2407_v56 = vpop.f32.mrf.mxu1  ;;  %3139 = vmatmul.mubr.bf16.gmra.mxu0 %v2694_v53  ;;  %v11732_v53 = vld [vmem:[%s16726_s2 + $0xe4] ss:$8 sps:$4 sm:$0xff]  }
 0x2f6   : > { %v2408_v58 = vadd.f32 %v2407_v56, %v13223_v16  ;;  %v2608_v61 = vmax.f32 %v2406_v55, 0.0  ;;  %4442 = vmatprep.subr.bf16.mxu0 %v11732_v53 }
 0x2f7   : > { %v2411_v59 = vpop.f32.mrf.mxu1  ;;  %4443 = vmatpush2.bf16.msra.mxu0 %v11730_v52 }
 0x2f8   : > { %v2609_v62 = vmax.f32 %v2408_v58, 0.0  ;;  %v2696_v4 = vpack.c.bf16 %v2608_v61, %v2606_v1  ;;  %v2412_v8 = vadd.f32 %v2411_v59, %v13226_v20 }
 0x2f9   : > { %v2413_v63 = vpop.f32.mrf.mxu1 }
 0x2fa   : > { %v2697_v2 = vpack.c.bf16 %v2609_v62, %v2607_v60  ;;  %v2414_v5 = vadd.f32 %v2413_v63, %v13223_v16  ;;  %v2610_v15 = vmax.f32 %v2412_v8, 0.0 }
 0x2fb   : > { %v2415_v3 = vpop.f32.mrf.mxu1 }
 0x2fc   : > { %v2416_v6 = vadd.f32 %v2415_v3, %v13226_v20  ;;  %3148 = vmatprep.mubr.bf16.mxu0 %v2697_v2  ;;  %v2611_v11 = vmax.f32 %v2414_v5, 0.0 }
 0x2fd   : > { %v2417_v7 = vpop.f32.mrf.mxu1  ;;  %3149 = vmatmul.mubr.bf16.gmra.mxu0 %v2696_v4 }
 0x2fe   : > { %v2418_v9 = vadd.f32 %v2417_v7, %v13223_v16  ;;  %v2612_v12 = vmax.f32 %v2416_v6, 0.0 }
 0x2ff   : > { %v2421_v10 = vpop.f32.mrf.mxu1 }
 0x300   : > { %v2613_v13 = vmax.f32 %v2418_v9, 0.0  ;;  %v2698_v22 = vpack.c.bf16 %v2612_v12, %v2610_v15  ;;  %v2422_v27 = vadd.f32 %v2421_v10, %v13226_v20 }
 0x301   : > { %v2423_v14 = vpop.f32.mrf.mxu1 }
 0x302   : > { %v2699_v17 = vpack.c.bf16 %v2613_v13, %v2611_v11  ;;  %v2424_v23 = vadd.f32 %v2423_v14, %v13223_v16  ;;  %v2614_v35 = vmax.f32 %v2422_v27, 0.0 }
 0x303   : > { %v2425_v18 = vpop.f32.mrf.mxu1 }
 0x304   : > { %v2426_v24 = vadd.f32 %v2425_v18, %v13226_v20  ;;  %3158 = vmatprep.mubr.bf16.mxu0 %v2699_v17  ;;  %v2615_v30 = vmax.f32 %v2424_v23, 0.0 }
 0x305   : > { %v2427_v26 = vpop.f32.mrf.mxu1  ;;  %3159 = vmatmul.mubr.bf16.gmra.mxu0 %v2698_v22  ;;  %v11735_v22 = vld [vmem:[%s16726_s2 + $0xd4] ss:$8 sps:$4 sm:$0xff]  }
 0x306   : > { %v2428_v32 = vadd.f32 %v2427_v26, %v13223_v16  ;;  %v2616_v33 = vmax.f32 %v2426_v24, 0.0  ;;  %4444 = vmatprep.subr.bf16.mxu0 %v11735_v22 }
 0x307   : > { %v2431_v29 = vpop.f32.mrf.mxu1  ;;  %4445 = vmatpush2.bf16.msra.mxu0 %v11733_v21 }
 0x308   : > { %v2617_v34 = vmax.f32 %v2428_v32, 0.0  ;;  %v2700_v38 = vpack.c.bf16 %v2616_v33, %v2614_v35  ;;  %v2432_v42 = vadd.f32 %v2431_v29, %v13226_v20 }
 0x309   : > { %v2433_v31 = vpop.f32.mrf.mxu1 }
 0x30a   : > { %v2701_v36 = vpack.c.bf16 %v2617_v34, %v2615_v30  ;;  %v2434_v39 = vadd.f32 %v2433_v31, %v13223_v16  ;;  %v2618_v49 = vmax.f32 %v2432_v42, 0.0  ;;  %v2754_v30 = vld [vmem:[#allocation8] sm:$0x3] }
 0x30b   : > { %v2435_v37 = vpop.f32.mrf.mxu1 }
 0x30c   : > { %v2436_v40 = vadd.f32 %v2435_v37, %v13226_v20  ;;  %3168 = vmatprep.mubr.bf16.mxu0 %v2701_v36  ;;  %v2619_v45 = vmax.f32 %v2434_v39, 0.0  ;;  %v13453_v37 = vrot.slane %v2754_v30, %v12984_v25  ;;  %v13456_v39 = vrot.slane %v2754_v30, %v12992_v28 }
 0x30d   : > { %v2437_v41 = vpop.f32.mrf.mxu1  ;;  %3169 = vmatmul.mubr.bf16.gmra.mxu0 %v2700_v38 }
 0x30e   : > { %v2438_v43 = vadd.f32 %v2437_v41, %v13223_v16  ;;  %v2620_v46 = vmax.f32 %v2436_v40, 0.0 }
 0x30f   : > { %v2441_v44 = vpop.f32.mrf.mxu1 }
 0x310   : > { %v2621_v47 = vmax.f32 %v2438_v43, 0.0  ;;  %v2702_v54 = vpack.c.bf16 %v2620_v46, %v2618_v49  ;;  %v2442_v58 = vadd.f32 %v2441_v44, %v13226_v20 }
 0x311   : > { %v2443_v48 = vpop.f32.mrf.mxu1 }
 0x312   : > { %v2703_v50 = vpack.c.bf16 %v2621_v47, %v2619_v45  ;;  %v2444_v55 = vadd.f32 %v2443_v48, %v13223_v16  ;;  %v2622_v2 = vmax.f32 %v2442_v58, 0.0 }
 0x313   : > { %v2445_v51 = vpop.f32.mrf.mxu1 }
 0x314   : > { %v2446_v56 = vadd.f32 %v2445_v51, %v13226_v20  ;;  %3178 = vmatprep.mubr.bf16.mxu0 %v2703_v50  ;;  %v2623_v61 = vmax.f32 %v2444_v55, 0.0 }
 0x315   : > { %v2447_v57 = vpop.f32.mrf.mxu1  ;;  %3179 = vmatmul.mubr.bf16.gmra.mxu0 %v2702_v54 }
 0x316   : > { %v2448_v59 = vadd.f32 %v2447_v57, %v13223_v16  ;;  %v2624_v62 = vmax.f32 %v2446_v56, 0.0 }
 0x317   : > { %v2451_v60 = vpop.f32.mrf.mxu1 }
 0x318   : > { %v2625_v63 = vmax.f32 %v2448_v59, 0.0  ;;  %v2704_v5 = vpack.c.bf16 %v2624_v62, %v2622_v2  ;;  %v2452_v9 = vadd.f32 %v2451_v60, %v13226_v20 }
 0x319   : > { %v2453_v1 = vpop.f32.mrf.mxu1 }
 0x31a   : > { %v2705_v3 = vpack.c.bf16 %v2625_v63, %v2623_v61  ;;  %v2454_v6 = vadd.f32 %v2453_v1, %v13223_v16  ;;  %v2626_v17 = vmax.f32 %v2452_v9, 0.0  ;;  %v11736_v9 = vld [vmem:[%s16726_s2 + $0xc0] ss:$8 sps:$4 sm:$0xff]  }
 0x31b   : > { %v2455_v4 = vpop.f32.mrf.mxu1 }
 0x31c   : > { %v2456_v7 = vadd.f32 %v2455_v4, %v13226_v20  ;;  %3188 = vmatprep.mubr.bf16.mxu0 %v2705_v3  ;;  %v2627_v12 = vmax.f32 %v2454_v6, 0.0 }
 0x31d   : > { %v2457_v8 = vpop.f32.mrf.mxu1  ;;  %3189 = vmatmul.mubr.bf16.gmra.mxu0 %v2704_v5 }
 0x31e   : > { %v2458_v10 = vadd.f32 %v2457_v8, %v13223_v16  ;;  %v2628_v13 = vmax.f32 %v2456_v7, 0.0 }
 0x31f   : > { %v2461_v11 = vpop.f32.mrf.mxu1 }
 0x320   : > { %v2629_v14 = vmax.f32 %v2458_v10, 0.0  ;;  %v2706_v23 = vpack.c.bf16 %v2628_v13, %v2626_v17  ;;  %v2462_v32 = vadd.f32 %v2461_v11, %v13226_v20  ;;  %v11738_v10 = vld [vmem:[%s16726_s2 + $0xc4] ss:$8 sps:$4 sm:$0xff]  }
 0x321   : > { %v2463_v15 = vpop.f32.mrf.mxu1  ;;  %4446 = vmatprep.subr.bf16.mxu0 %v11738_v10  ;;  %v11739_v10 = vld [vmem:[%s16726_s2 + $0xb0] ss:$8 sps:$4 sm:$0xff]  }
 0x322   : > { %v2707_v18 = vpack.c.bf16 %v2629_v14, %v2627_v12  ;;  %v2464_v24 = vadd.f32 %v2463_v15, %v13223_v16  ;;  %v2630_v40 = vmax.f32 %v2462_v32, 0.0  ;;  %4447 = vmatpush2.bf16.msra.mxu0 %v11736_v9 }
 0x323   : > { %v2465_v19 = vpop.f32.mrf.mxu1 }
 0x324   : > { %v2466_v26 = vadd.f32 %v2465_v19, %v13226_v20  ;;  %3198 = vmatprep.mubr.bf16.mxu0 %v2707_v18  ;;  %v2631_v34 = vmax.f32 %v2464_v24, 0.0 }
 0x325   : > { %v2467_v27 = vpop.f32.mrf.mxu1  ;;  %v2960_v33 = vpop.f32.mrf.mxu0  ;;  %3199 = vmatmul.mubr.bf16.gmra.mxu0 %v2706_v23 }
 0x326   : > { %v2468_v29 = vadd.f32 %v2467_v27, %v13223_v16  ;;  %v2632_v31 = vmax.f32 %v2466_v26, 0.0  ;;  %v2961_v49 = vadd.f32 %v2960_v33, %v13456_v39 }
 0x327   : > { %v2471_v36 = vpop.f32.mrf.mxu1  ;;  %v2962_v38 = vpop.f32.mrf.mxu0 }
 0x328   : > { %v2633_v35 = vmax.f32 %v2468_v29, 0.0  ;;  %v2708_v45 = vpack.c.bf16 %v2632_v31, %v2630_v40  ;;  %v2963_v46 = vadd.f32 %v2962_v38, %v13453_v37  ;;  %v2472_v55 = vadd.f32 %v2471_v36, %v13226_v20 }
 0x329   : > { %v2473_v41 = vpop.f32.mrf.mxu1  ;;  %v2964_v42 = vpop.f32.mrf.mxu0  ;;  %v3279_v62 = vmax.f32 %v2961_v49, 0.0 }
 0x32a   : > { %v2709_v43 = vpack.c.bf16 %v2633_v35, %v2631_v34  ;;  %v2965_v44 = vadd.f32 %v2964_v42, %v13456_v39  ;;  %v2474_v52 = vadd.f32 %v2473_v41, %v13223_v16  ;;  %v3280_v59 = vmax.f32 %v2963_v46, 0.0 }
 0x32b   : > { %v2475_v47 = vpop.f32.mrf.mxu1  ;;  %v2966_v48 = vpop.f32.mrf.mxu0  ;;  %v2634_v6 = vmax.f32 %v2472_v55, 0.0 }
 0x32c   : > { %3208 = vmatprep.mubr.bf16.mxu0 %v2709_v43  ;;  %v2476_v50 = vadd.f32 %v2475_v47, %v13226_v20  ;;  %v2967_v51 = vadd.f32 %v2966_v48, %v13453_v37  ;;  %v3281_v56 = vmax.f32 %v2965_v44, 0.0  ;;  %v2635_v2 = vmax.f32 %v2474_v52, 0.0 }
 0x32d   : > { %v2477_v53 = vpop.f32.mrf.mxu1  ;;  %v2970_v54 = vpop.f32.mrf.mxu0  ;;  %3209 = vmatmul.mubr.bf16.gmra.mxu0 %v2708_v45 }
 0x32e   : > { %v3282_v57 = vmax.f32 %v2967_v51, 0.0  ;;  %v2478_v58 = vadd.f32 %v2477_v53, %v13223_v16  ;;  %v2636_v63 = vmax.f32 %v2476_v50, 0.0  ;;  %v3407_v7 = vpack.c.bf16 %v3281_v56, %v3279_v62 }
 0x32f   : > { %v2481_v60 = vpop.f32.mrf.mxu1  ;;  %v2972_v61 = vpop.f32.mrf.mxu0  ;;  %v2971_v11 = vadd.f32 %v2970_v54, %v13456_v39 }
 0x330   : > { %v2637_v1 = vmax.f32 %v2478_v58, 0.0  ;;  %v3408_v5 = vpack.c.bf16 %v3282_v57, %v3280_v59  ;;  %v2973_v12 = vadd.f32 %v2972_v61, %v13453_v37  ;;  %v2710_v17 = vpack.c.bf16 %v2636_v63, %v2634_v6 }
 0x331   : > { %v2483_v3 = vpop.f32.mrf.mxu1  ;;  %v2974_v4 = vpop.f32.mrf.mxu0  ;;  %v2482_v24 = vadd.f32 %v2481_v60, %v13226_v20  ;;  %v3283_v34 = vmax.f32 %v2971_v11, 0.0  ;;  %v11741_v11 = vld [vmem:[%s16726_s2 + $0xb4] ss:$8 sps:$4 sm:$0xff]  }
 0x332   : > { %v2975_v8 = vadd.f32 %v2974_v4, %v13456_v39  ;;  %3707 = vmatprep.mubr.bf16.mxu1 %v3408_v5  ;;  %v2711_v15 = vpack.c.bf16 %v2637_v1, %v2635_v2  ;;  %v2484_v21 = vadd.f32 %v2483_v3, %v13223_v16  ;;  %v3284_v29 = vmax.f32 %v2973_v12, 0.0  ;;  %4448 = vmatprep.subr.bf16.mxu0 %v11741_v11 }
 0x333   : > { %v2485_v13 = vpop.f32.mrf.mxu1  ;;  %v2976_v14 = vpop.f32.mrf.mxu0  ;;  %3708 = vmatmul.mubr.bf16.vlgmr.msra.gmra.mxu1 %v3407_v7  ;;  %v2638_v42 = vmax.f32 %v2482_v24, 0.0  ;;  %4449 = vmatpush2.bf16.msra.mxu0 %v11739_v10 }
 0x334   : > { %v2486_v18 = vadd.f32 %v2485_v13, %v13226_v20  ;;  %v2977_v19 = vadd.f32 %v2976_v14, %v13453_v37  ;;  %3218 = vmatprep.mubr.bf16.mxu0 %v2711_v15  ;;  %v3285_v26 = vmax.f32 %v2975_v8, 0.0  ;;  %v2639_v36 = vmax.f32 %v2484_v21, 0.0 }
 0x335   : > { %v2487_v22 = vpop.f32.mrf.mxu1  ;;  %v2980_v23 = vpop.f32.mrf.mxu0  ;;  %3219 = vmatmul.mubr.bf16.gmra.mxu0 %v2710_v17 }
 0x336   : > { %v3286_v27 = vmax.f32 %v2977_v19, 0.0  ;;  %v2488_v32 = vadd.f32 %v2487_v22, %v13223_v16  ;;  %v2640_v31 = vmax.f32 %v2486_v18, 0.0  ;;  %v3409_v43 = vpack.c.bf16 %v3285_v26, %v3283_v34 }
 0x337   : > { %v2491_v30 = vpop.f32.mrf.mxu1  ;;  %v2982_v33 = vpop.f32.mrf.mxu0  ;;  %v2981_v50 = vadd.f32 %v2980_v23, %v13456_v39 }
 0x338   : > { %v2641_v35 = vmax.f32 %v2488_v32, 0.0  ;;  %v3410_v41 = vpack.c.bf16 %v3286_v27, %v3284_v29  ;;  %v2983_v45 = vadd.f32 %v2982_v33, %v13453_v37  ;;  %v2712_v49 = vpack.c.bf16 %v2640_v31, %v2638_v42 }
 0x339   : > { %v2493_v38 = vpop.f32.mrf.mxu1  ;;  %v2984_v40 = vpop.f32.mrf.mxu0  ;;  %v2492_v56 = vadd.f32 %v2491_v30, %v13226_v20  ;;  %v3287_v63 = vmax.f32 %v2981_v50, 0.0 }
 0x33a   : > { %v2985_v44 = vadd.f32 %v2984_v40, %v13456_v39  ;;  %3717 = vmatprep.mubr.bf16.mxu1 %v3410_v41  ;;  %v2713_v48 = vpack.c.bf16 %v2641_v35, %v2639_v36  ;;  %v2494_v53 = vadd.f32 %v2493_v38, %v13223_v16  ;;  %v3288_v60 = vmax.f32 %v2983_v45, 0.0 }
 0x33b   : > { %v2495_v46 = vpop.f32.mrf.mxu1  ;;  %v2986_v47 = vpop.f32.mrf.mxu0  ;;  %3718 = vmatmul.mubr.bf16.gmra.mxu1 %v3409_v43  ;;  %v2642_v7 = vmax.f32 %v2492_v56, 0.0 }
 0x33c   : > { %v2496_v51 = vadd.f32 %v2495_v46, %v13226_v20  ;;  %v2987_v52 = vadd.f32 %v2986_v47, %v13453_v37  ;;  %3228 = vmatprep.mubr.bf16.mxu0 %v2713_v48  ;;  %v3289_v57 = vmax.f32 %v2985_v44, 0.0  ;;  %v2643_v3 = vmax.f32 %v2494_v53, 0.0 }
 0x33d   : > { %v2497_v54 = vpop.f32.mrf.mxu1  ;;  %v2990_v55 = vpop.f32.mrf.mxu0  ;;  %3229 = vmatmul.mubr.bf16.gmra.mxu0 %v2712_v49 }
 0x33e   : > { %v3290_v58 = vmax.f32 %v2987_v52, 0.0  ;;  %v2498_v59 = vadd.f32 %v2497_v54, %v13223_v16  ;;  %v2644_v1 = vmax.f32 %v2496_v51, 0.0  ;;  %v3411_v8 = vpack.c.bf16 %v3289_v57, %v3287_v63 }
 0x33f   : > { %v2501_v61 = vpop.f32.mrf.mxu1  ;;  %v2992_v62 = vpop.f32.mrf.mxu0  ;;  %v2991_v12 = vadd.f32 %v2990_v55, %v13456_v39 }
 0x340   : > { %v2645_v2 = vmax.f32 %v2498_v59, 0.0  ;;  %v3412_v6 = vpack.c.bf16 %v3290_v58, %v3288_v60  ;;  %v2993_v13 = vadd.f32 %v2992_v62, %v13453_v37  ;;  %v2714_v18 = vpack.c.bf16 %v2644_v1, %v2642_v7 }
 0x341   : > { %v2503_v4 = vpop.f32.mrf.mxu1  ;;  %v2994_v5 = vpop.f32.mrf.mxu0  ;;  %v2502_v26 = vadd.f32 %v2501_v61, %v13226_v20  ;;  %v3291_v31 = vmax.f32 %v2991_v12, 0.0  ;;  %v11742_v12 = vld [vmem:[%s16726_s2 + $0xa0] ss:$8 sps:$4 sm:$0xff]  }
 0x342   : > { %v2995_v9 = vadd.f32 %v2994_v5, %v13456_v39  ;;  %3727 = vmatprep.mubr.bf16.mxu1 %v3412_v6  ;;  %v2715_v17 = vpack.c.bf16 %v2645_v2, %v2643_v3  ;;  %v2504_v22 = vadd.f32 %v2503_v4, %v13223_v16  ;;  %v3292_v30 = vmax.f32 %v2993_v13, 0.0  ;;  %v11744_v13 = vld [vmem:[%s16726_s2 + $0xa4] ss:$8 sps:$4 sm:$0xff]  }
 0x343   : > { %v2505_v14 = vpop.f32.mrf.mxu1  ;;  %v2996_v15 = vpop.f32.mrf.mxu0  ;;  %3728 = vmatmul.mubr.bf16.gmra.mxu1 %v3411_v8  ;;  %v2646_v43 = vmax.f32 %v2502_v26, 0.0  ;;  %4450 = vmatprep.subr.bf16.mxu0 %v11744_v13 }
 0x344   : > { %v2506_v19 = vadd.f32 %v2505_v14, %v13226_v20  ;;  %v2997_v21 = vadd.f32 %v2996_v15, %v13453_v37  ;;  %3238 = vmatprep.mubr.bf16.mxu0 %v2715_v17  ;;  %v3293_v27 = vmax.f32 %v2995_v9, 0.0  ;;  %v2647_v38 = vmax.f32 %v2504_v22, 0.0  ;;  %4451 = vmatpush2.bf16.msra.mxu0 %v11742_v12 }
 0x345   : > { %v2507_v23 = vpop.f32.mrf.mxu1  ;;  %v3000_v24 = vpop.f32.mrf.mxu0  ;;  %3239 = vmatmul.mubr.bf16.gmra.mxu0 %v2714_v18 }
 0x346   : > { %v3294_v32 = vmax.f32 %v2997_v21, 0.0  ;;  %v2508_v29 = vadd.f32 %v2507_v23, %v13223_v16  ;;  %v2648_v35 = vmax.f32 %v2506_v19, 0.0  ;;  %v3413_v44 = vpack.c.bf16 %v3293_v27, %v3291_v31 }
 0x347   : > { %v2511_v33 = vpop.f32.mrf.mxu1  ;;  %v3002_v34 = vpop.f32.mrf.mxu0  ;;  %v3001_v51 = vadd.f32 %v3000_v24, %v13456_v39 }
 0x348   : > { %v2649_v36 = vmax.f32 %v2508_v29, 0.0  ;;  %v3414_v42 = vpack.c.bf16 %v3294_v32, %v3292_v30  ;;  %v3003_v46 = vadd.f32 %v3002_v34, %v13453_v37  ;;  %v2716_v50 = vpack.c.bf16 %v2648_v35, %v2646_v43 }
 0x349   : > { %v2513_v40 = vpop.f32.mrf.mxu1  ;;  %v3004_v41 = vpop.f32.mrf.mxu0  ;;  %v2512_v54 = vadd.f32 %v2511_v33, %v13226_v20  ;;  %v3295_v2 = vmax.f32 %v3001_v51, 0.0 }
 0x34a   : > { %v3005_v45 = vadd.f32 %v3004_v41, %v13456_v39  ;;  %3737 = vmatprep.mubr.bf16.mxu1 %v3414_v42  ;;  %v2717_v49 = vpack.c.bf16 %v2649_v36, %v2647_v38  ;;  %v2514_v55 = vadd.f32 %v2513_v40, %v13223_v16  ;;  %v3296_v61 = vmax.f32 %v3003_v46, 0.0 }
 0x34b   : > { %v2515_v47 = vpop.f32.mrf.mxu1  ;;  %v3006_v48 = vpop.f32.mrf.mxu0  ;;  %3738 = vmatmul.mubr.bf16.gmra.mxu1 %v3413_v44  ;;  %v2650_v4 = vmax.f32 %v2512_v54, 0.0 }
 0x34c   : > { %v2516_v52 = vadd.f32 %v2515_v47, %v13226_v20  ;;  %v3007_v53 = vadd.f32 %v3006_v48, %v13453_v37  ;;  %3248 = vmatprep.mubr.bf16.mxu0 %v2717_v49  ;;  %v3297_v58 = vmax.f32 %v3005_v45, 0.0  ;;  %v2651_v5 = vmax.f32 %v2514_v55, 0.0 }
 0x34d   : > { %v2517_v56 = vpop.f32.mrf.mxu1  ;;  %v3010_v57 = vpop.f32.mrf.mxu0  ;;  %3249 = vmatmul.mubr.bf16.gmra.mxu0 %v2716_v50 }
 0x34e   : > { %v3298_v59 = vmax.f32 %v3007_v53, 0.0  ;;  %v2518_v60 = vadd.f32 %v2517_v56, %v13223_v16  ;;  %v2652_v62 = vmax.f32 %v2516_v52, 0.0  ;;  %v3415_v9 = vpack.c.bf16 %v3297_v58, %v3295_v2 }
 0x34f   : > { %v2521_v63 = vpop.f32.mrf.mxu1  ;;  %v3012_v1 = vpop.f32.mrf.mxu0  ;;  %v3011_v15 = vadd.f32 %v3010_v57, %v13456_v39 }
 0x350   : > { %v2653_v3 = vmax.f32 %v2518_v60, 0.0  ;;  %v3416_v8 = vpack.c.bf16 %v3298_v59, %v3296_v61  ;;  %v3013_v10 = vadd.f32 %v3012_v1, %v13453_v37  ;;  %v2718_v14 = vpack.c.bf16 %v2652_v62, %v2650_v4  ;;  %v11745_v60 = vld [vmem:[%s16726_s2 + $0x90] ss:$8 sps:$4 sm:$0xff]   ;;  %v11747_v61 = vld [vmem:[%s16726_s2 + $0x94] ss:$8 sps:$4 sm:$0xff]  }
 0x351   : > { %v2523_v6 = vpop.f32.mrf.mxu1  ;;  %v3014_v7 = vpop.f32.mrf.mxu0  ;;  %v2522_v24 = vadd.f32 %v2521_v63, %v13226_v20  ;;  %v3299_v34 = vmax.f32 %v3011_v15, 0.0  ;;  %4452 = vmatprep.subr.bf16.mxu0 %v11747_v61 }
 0x352   : > { %v3015_v11 = vadd.f32 %v3014_v7, %v13456_v39  ;;  %3747 = vmatprep.mubr.bf16.mxu1 %v3416_v8  ;;  %v2719_v19 = vpack.c.bf16 %v2653_v3, %v2651_v5  ;;  %v2524_v21 = vadd.f32 %v2523_v6, %v13223_v16  ;;  %v3300_v32 = vmax.f32 %v3013_v10, 0.0  ;;  %4453 = vmatpush2.bf16.msra.mxu0 %v11745_v60 }
 0x353   : > { %v2525_v17 = vpop.f32.mrf.mxu1  ;;  %v3016_v18 = vpop.f32.mrf.mxu0  ;;  %3748 = vmatmul.mubr.bf16.gmra.mxu1 %v3415_v9  ;;  %v2654_v41 = vmax.f32 %v2522_v24, 0.0 }
 0x354   : > { %v2526_v22 = vadd.f32 %v2525_v17, %v13226_v20  ;;  %v3017_v23 = vadd.f32 %v3016_v18, %v13453_v37  ;;  %3258 = vmatprep.mubr.bf16.mxu0 %v2719_v19  ;;  %v3301_v29 = vmax.f32 %v3015_v11, 0.0  ;;  %v2655_v35 = vmax.f32 %v2524_v21, 0.0 }
 0x355   : > { %v2527_v26 = vpop.f32.mrf.mxu1  ;;  %v3020_v27 = vpop.f32.mrf.mxu0  ;;  %3259 = vmatmul.mubr.bf16.gmra.mxu0 %v2718_v14 }
 0x356   : > { %v3302_v30 = vmax.f32 %v3017_v23, 0.0  ;;  %v2528_v33 = vadd.f32 %v2527_v26, %v13223_v16  ;;  %v2656_v36 = vmax.f32 %v2526_v22, 0.0  ;;  %v3417_v43 = vpack.c.bf16 %v3301_v29, %v3299_v34 }
 0x357   : > { %v3022_v31 = vpop.f32.mrf.mxu0  ;;  %v3021_v16 = vadd.f32 %v3020_v27, %v13456_v39 }
 0x358   : > { %v2657_v38 = vmax.f32 %v2528_v33, 0.0  ;;  %v3418_v40 = vpack.c.bf16 %v3302_v30, %v3300_v32  ;;  %v3023_v20 = vadd.f32 %v3022_v31, %v13453_v37  ;;  %v2720_v47 = vpack.c.bf16 %v2656_v36, %v2654_v41  ;;  %v11748_v30 = vld [vmem:[%s16726_s2 + $0x80] ss:$8 sps:$4 sm:$0xff]   ;;  %v11750_v33 = vld [vmem:[%s16726_s2 + $0x84] ss:$8 sps:$4 sm:$0xff]  }
 0x359   : > { %v3024_v42 = vpop.f32.mrf.mxu0  ;;  %v3303_v54 = vmax.f32 %v3021_v16, 0.0  ;;  %4454 = vmatprep.subr.bf16.mxu0 %v11750_v33 }
 0x35a   : > { %v3025_v44 = vadd.f32 %v3024_v42, %v13456_v39  ;;  %3757 = vmatprep.mubr.bf16.mxu1 %v3418_v40  ;;  %v2721_v45 = vpack.c.bf16 %v2657_v38, %v2655_v35  ;;  %v3304_v50 = vmax.f32 %v3023_v20, 0.0  ;;  %4455 = vmatpush2.bf16.msra.mxu0 %v11748_v30 }
 0x35b   : > { %v3026_v46 = vpop.f32.mrf.mxu0  ;;  %3758 = vmatmul.mubr.bf16.gmra.mxu1 %v3417_v43 }
 0x35c   : > { %v3027_v48 = vadd.f32 %v3026_v46, %v13453_v37  ;;  %3268 = vmatprep.mubr.bf16.mxu0 %v2721_v45  ;;  %v3305_v51 = vmax.f32 %v3025_v44, 0.0 }
 0x35d   : > { %v3030_v49 = vpop.f32.mrf.mxu0  ;;  %3269 = vmatmul.mubr.bf16.gmra.mxu0 %v2720_v47 }
 0x35e   : > { %v3306_v52 = vmax.f32 %v3027_v48, 0.0  ;;  %v3419_v57 = vpack.c.bf16 %v3305_v51, %v3303_v54  ;;  %v3031_v63 = vadd.f32 %v3030_v49, %v13456_v39 }
 0x35f   : > { %v3032_v53 = vpop.f32.mrf.mxu0 }
 0x360   : > { %v3420_v55 = vpack.c.bf16 %v3306_v52, %v3304_v50  ;;  %v3033_v58 = vadd.f32 %v3032_v53, %v13453_v37  ;;  %v3307_v7 = vmax.f32 %v3031_v63, 0.0 }
 0x361   : > { %v3034_v56 = vpop.f32.mrf.mxu0 }
 0x362   : > { %v3035_v59 = vadd.f32 %v3034_v56, %v13456_v39  ;;  %3767 = vmatprep.mubr.bf16.mxu1 %v3420_v55  ;;  %v3308_v3 = vmax.f32 %v3033_v58, 0.0 }
 0x363   : > { %v3036_v62 = vpop.f32.mrf.mxu0  ;;  %3768 = vmatmul.mubr.bf16.gmra.mxu1 %v3419_v57 }
 0x364   : > { %v3037_v1 = vadd.f32 %v3036_v62, %v13453_v37  ;;  %v3309_v4 = vmax.f32 %v3035_v59, 0.0 }
 0x365   : > { %v3040_v2 = vpop.f32.mrf.mxu0 }
 0x366   : > { %v3310_v5 = vmax.f32 %v3037_v1, 0.0  ;;  %v3421_v10 = vpack.c.bf16 %v3309_v4, %v3307_v7  ;;  %v3041_v14 = vadd.f32 %v3040_v2, %v13456_v39  ;;  %v13563_v2 = vld [vmem:[%s16621_s13 + $0x70] ss:$8 sps:$4 sm:$0xff]  }
 0x367   : > { %v3042_v6 = vpop.f32.mrf.mxu0 }
 0x368   : > { %v3422_v8 = vpack.c.bf16 %v3310_v5, %v3308_v3  ;;  %v3043_v11 = vadd.f32 %v3042_v6, %v13453_v37  ;;  %v3311_v23 = vmax.f32 %v3041_v14, 0.0  ;;  %v11753_v3 = vld [vmem:[%s16621_s13 + $0x74] ss:$8 sps:$4 sm:$0xff]  }
 0x369   : > { %v3044_v9 = vpop.f32.mrf.mxu0  ;;  %5170 = vmatprep.subr.bf16.mxu0 %v11753_v3  ;;  %11336 = vmatprep.subr.bf16.mxu1 %v11753_v3 }
 0x36a   : > { %v3045_v12 = vadd.f32 %v3044_v9, %v13456_v39  ;;  %3777 = vmatprep.mubr.bf16.mxu1 %v3422_v8  ;;  %v3312_v18 = vmax.f32 %v3043_v11, 0.0  ;;  %11352 = vmatpush1.bf16.msra.mxu1 %v13563_v2 }
 0x36b   : > { %v3046_v13 = vpop.f32.mrf.mxu0  ;;  %3778 = vmatmul.mubr.bf16.gmra.mxu1 %v3421_v10 }
 0x36c   : > { %v3047_v15 = vadd.f32 %v3046_v13, %v13453_v37  ;;  %v3313_v19 = vmax.f32 %v3045_v12, 0.0 }
 0x36d   : > { %v3050_v17 = vpop.f32.mrf.mxu0 }
 0x36e   : > { %v3314_v21 = vmax.f32 %v3047_v15, 0.0  ;;  %v3423_v27 = vpack.c.bf16 %v3313_v19, %v3311_v23  ;;  %v3051_v31 = vadd.f32 %v3050_v17, %v13456_v39 }
 0x36f   : > { %v3052_v22 = vpop.f32.mrf.mxu0 }
 0x370   : > { %v3424_v24 = vpack.c.bf16 %v3314_v21, %v3312_v18  ;;  %v3053_v32 = vadd.f32 %v3052_v22, %v13453_v37  ;;  %v3315_v43 = vmax.f32 %v3051_v31, 0.0 }
 0x371   : > { %v3054_v26 = vpop.f32.mrf.mxu0 }
 0x372   : > { %v3055_v29 = vadd.f32 %v3054_v26, %v13456_v39  ;;  %3787 = vmatprep.mubr.bf16.mxu1 %v3424_v24  ;;  %v3316_v38 = vmax.f32 %v3053_v32, 0.0 }
 0x373   : > { %v3056_v34 = vpop.f32.mrf.mxu0  ;;  %3788 = vmatmul.mubr.bf16.gmra.mxu1 %v3423_v27 }
 0x374   : > { %v3057_v35 = vadd.f32 %v3056_v34, %v13453_v37  ;;  %v3317_v40 = vmax.f32 %v3055_v29, 0.0 }
 0x375   : > { %v3060_v36 = vpop.f32.mrf.mxu0 }
 0x376   : > { %v3318_v41 = vmax.f32 %v3057_v35, 0.0  ;;  %v3425_v45 = vpack.c.bf16 %v3317_v40, %v3315_v43  ;;  %v3061_v48 = vadd.f32 %v3060_v36, %v13456_v39  ;;  %v13580_v36 = vld [vmem:[%s16621_s13 + $0x60] ss:$8 sps:$4 sm:$0xff]  }
 0x377   : > { %v3062_v42 = vpop.f32.mrf.mxu0 }
 0x378   : > { %v3426_v20 = vpack.c.bf16 %v3318_v41, %v3316_v38  ;;  %v3063_v46 = vadd.f32 %v3062_v42, %v13453_v37  ;;  %v3319_v55 = vmax.f32 %v3061_v48, 0.0  ;;  %v13585_v38 = vld [vmem:[%s16621_s13 + $0x64] ss:$8 sps:$4 sm:$0xff]  }
 0x379   : > { %v3064_v44 = vpop.f32.mrf.mxu0  ;;  %11337 = vmatprep.subr.bf16.mxu1 %v13585_v38 }
 0x37a   : > { %v3065_v47 = vadd.f32 %v3064_v44, %v13456_v39  ;;  %3797 = vmatprep.mubr.bf16.mxu1 %v3426_v20  ;;  %v3320_v51 = vmax.f32 %v3063_v46, 0.0  ;;  %11353 = vmatpush1.bf16.msra.mxu1 %v13580_v36 }
 0x37b   : > { %v3066_v16 = vpop.f32.mrf.mxu0  ;;  %3798 = vmatmul.mubr.bf16.gmra.mxu1 %v3425_v45 }
 0x37c   : > { %v3067_v49 = vadd.f32 %v3066_v16, %v13453_v37  ;;  %v3321_v52 = vmax.f32 %v3065_v47, 0.0 }
 0x37d   : > { %v3070_v50 = vpop.f32.mrf.mxu0 }
 0x37e   : > { %v3322_v53 = vmax.f32 %v3067_v49, 0.0  ;;  %v3427_v58 = vpack.c.bf16 %v3321_v52, %v3319_v55  ;;  %v3071_v62 = vadd.f32 %v3070_v50, %v13456_v39 }
 0x37f   : > { %v3072_v54 = vpop.f32.mrf.mxu0 }
 0x380   : > { %v3428_v56 = vpack.c.bf16 %v3322_v53, %v3320_v51  ;;  %v3073_v59 = vadd.f32 %v3072_v54, %v13453_v37  ;;  %v3323_v8 = vmax.f32 %v3071_v62, 0.0 }
 0x381   : > { %v3074_v57 = vpop.f32.mrf.mxu0 }
 0x382   : > { %v3075_v60 = vadd.f32 %v3074_v57, %v13456_v39  ;;  %3807 = vmatprep.mubr.bf16.mxu1 %v3428_v56  ;;  %v3324_v4 = vmax.f32 %v3073_v59, 0.0 }
 0x383   : > { %v3076_v61 = vpop.f32.mrf.mxu0  ;;  %3808 = vmatmul.mubr.bf16.gmra.mxu1 %v3427_v58 }
 0x384   : > { %v3077_v63 = vadd.f32 %v3076_v61, %v13453_v37  ;;  %v3325_v5 = vmax.f32 %v3075_v60, 0.0 }
 0x385   : > { %v3080_v1 = vpop.f32.mrf.mxu0 }
 0x386   : > { %v3326_v6 = vmax.f32 %v3077_v63, 0.0  ;;  %v3429_v11 = vpack.c.bf16 %v3325_v5, %v3323_v8  ;;  %v3081_v15 = vadd.f32 %v3080_v1, %v13456_v39  ;;  %v13605_v5 = vld [vmem:[%s16621_s13 + $0x54] ss:$8 sps:$4 sm:$0xff]  }
 0x387   : > { %v3082_v7 = vpop.f32.mrf.mxu0  ;;  %11338 = vmatprep.subr.bf16.mxu1 %v13605_v5 }
 0x388   : > { %v3430_v9 = vpack.c.bf16 %v3326_v6, %v3324_v4  ;;  %v3083_v12 = vadd.f32 %v3082_v7, %v13453_v37  ;;  %v3327_v24 = vmax.f32 %v3081_v15, 0.0  ;;  %v13600_v4 = vld [vmem:[%s16621_s13 + $0x50] ss:$8 sps:$4 sm:$0xff]  }
 0x389   : > { %v3084_v10 = vpop.f32.mrf.mxu0  ;;  %11354 = vmatpush1.bf16.msra.mxu1 %v13600_v4 }
 0x38a   : > { %v3085_v13 = vadd.f32 %v3084_v10, %v13456_v39  ;;  %3817 = vmatprep.mubr.bf16.mxu1 %v3430_v9  ;;  %v3328_v19 = vmax.f32 %v3083_v12, 0.0 }
 0x38b   : > { %v3086_v14 = vpop.f32.mrf.mxu0  ;;  %3818 = vmatmul.mubr.bf16.gmra.mxu1 %v3429_v11 }
 0x38c   : > { %v3087_v17 = vadd.f32 %v3086_v14, %v13453_v37  ;;  %v3329_v21 = vmax.f32 %v3085_v13, 0.0 }
 0x38d   : > { %v3090_v18 = vpop.f32.mrf.mxu0 }
 0x38e   : > { %v3330_v22 = vmax.f32 %v3087_v17, 0.0  ;;  %v3431_v32 = vpack.c.bf16 %v3329_v21, %v3327_v24  ;;  %v3091_v34 = vadd.f32 %v3090_v18, %v13456_v39 }
 0x38f   : > { %v3092_v23 = vpop.f32.mrf.mxu0 }
 0x390   : > { %v3432_v26 = vpack.c.bf16 %v3330_v22, %v3328_v19  ;;  %v3093_v29 = vadd.f32 %v3092_v23, %v13453_v37  ;;  %v3331_v20 = vmax.f32 %v3091_v34, 0.0 }
 0x391   : > { %v3094_v27 = vpop.f32.mrf.mxu0 }
 0x392   : > { %v3095_v30 = vadd.f32 %v3094_v27, %v13456_v39  ;;  %3827 = vmatprep.mubr.bf16.mxu1 %v3432_v26  ;;  %v3332_v40 = vmax.f32 %v3093_v29, 0.0 }
 0x393   : > { %v3096_v33 = vpop.f32.mrf.mxu0  ;;  %3828 = vmatmul.mubr.bf16.gmra.mxu1 %v3431_v32 }
 0x394   : > { %v3097_v31 = vadd.f32 %v3096_v33, %v13453_v37  ;;  %v3333_v41 = vmax.f32 %v3095_v30, 0.0 }
 0x395   : > { %v3100_v35 = vpop.f32.mrf.mxu0 }
 0x396   : > { %v3334_v42 = vmax.f32 %v3097_v31, 0.0  ;;  %v3433_v46 = vpack.c.bf16 %v3333_v41, %v3331_v20  ;;  %v3101_v49 = vadd.f32 %v3100_v35, %v13456_v39 }
 0x397   : > { %v3102_v43 = vpop.f32.mrf.mxu0 }
 0x398   : > { %v3434_v44 = vpack.c.bf16 %v3334_v42, %v3332_v40  ;;  %v3103_v47 = vadd.f32 %v3102_v43, %v13453_v37  ;;  %v3335_v56 = vmax.f32 %v3101_v49, 0.0  ;;  %v13620_v42 = vld [vmem:[%s16621_s13 + $0x40] ss:$8 sps:$4 sm:$0xff]   ;;  %v13625_v43 = vld [vmem:[%s16621_s13 + $0x44] ss:$8 sps:$4 sm:$0xff]  }
 0x399   : > { %v3104_v45 = vpop.f32.mrf.mxu0  ;;  %11339 = vmatprep.subr.bf16.mxu1 %v13625_v43 }
 0x39a   : > { %v3105_v16 = vadd.f32 %v3104_v45, %v13456_v39  ;;  %3837 = vmatprep.mubr.bf16.mxu1 %v3434_v44  ;;  %v3336_v52 = vmax.f32 %v3103_v47, 0.0  ;;  %11355 = vmatpush1.bf16.msra.mxu1 %v13620_v42 }
 0x39b   : > { %v3106_v48 = vpop.f32.mrf.mxu0  ;;  %3838 = vmatmul.mubr.bf16.gmra.mxu1 %v3433_v46 }
 0x39c   : > { %v3107_v50 = vadd.f32 %v3106_v48, %v13453_v37  ;;  %v3337_v53 = vmax.f32 %v3105_v16, 0.0 }
 0x39d   : > { %v3110_v51 = vpop.f32.mrf.mxu0 }
 0x39e   : > { %v3338_v54 = vmax.f32 %v3107_v50, 0.0  ;;  %v3435_v59 = vpack.c.bf16 %v3337_v53, %v3335_v56  ;;  %v3111_v63 = vadd.f32 %v3110_v51, %v13456_v39 }
 0x39f   : > { %v3112_v55 = vpop.f32.mrf.mxu0 }
 0x3a0   : > { %v3436_v57 = vpack.c.bf16 %v3338_v54, %v3336_v52  ;;  %v3113_v60 = vadd.f32 %v3112_v55, %v13453_v37  ;;  %v3339_v10 = vmax.f32 %v3111_v63, 0.0 }
 0x3a1   : > { %v3114_v58 = vpop.f32.mrf.mxu0 }
 0x3a2   : > { %v3115_v61 = vadd.f32 %v3114_v58, %v13456_v39  ;;  %3847 = vmatprep.mubr.bf16.mxu1 %v3436_v57  ;;  %v3340_v6 = vmax.f32 %v3113_v60, 0.0 }
 0x3a3   : > { %v3116_v62 = vpop.f32.mrf.mxu0  ;;  %3848 = vmatmul.mubr.bf16.gmra.mxu1 %v3435_v59 }
 0x3a4   : > { %v3117_v1 = vadd.f32 %v3116_v62, %v13453_v37  ;;  %v3341_v7 = vmax.f32 %v3115_v61, 0.0 }
 0x3a5   : > { %v3120_v3 = vpop.f32.mrf.mxu0 }
 0x3a6   : > { %v3342_v8 = vmax.f32 %v3117_v1, 0.0  ;;  %v3437_v13 = vpack.c.bf16 %v3341_v7, %v3339_v10  ;;  %v3121_v18 = vadd.f32 %v3120_v3, %v13456_v39  ;;  %v13640_v10 = vld [vmem:[%s16621_s13 + $0x30] ss:$8 sps:$4 sm:$0xff]  }
 0x3a7   : > { %v3122_v9 = vpop.f32.mrf.mxu0 }
 0x3a8   : > { %v3438_v11 = vpack.c.bf16 %v3342_v8, %v3340_v6  ;;  %v3123_v14 = vadd.f32 %v3122_v9, %v13453_v37  ;;  %v3343_v27 = vmax.f32 %v3121_v18, 0.0 }
 0x3a9   : > { %v3124_v12 = vpop.f32.mrf.mxu0 }
 0x3aa   : > { %v3125_v15 = vadd.f32 %v3124_v12, %v13456_v39  ;;  %3857 = vmatprep.mubr.bf16.mxu1 %v3438_v11  ;;  %v3344_v22 = vmax.f32 %v3123_v14, 0.0  ;;  %v13645_v11 = vld [vmem:[%s16621_s13 + $0x34] ss:$8 sps:$4 sm:$0xff]  }
 0x3ab   : > { %v3126_v17 = vpop.f32.mrf.mxu0  ;;  %3858 = vmatmul.mubr.bf16.gmra.mxu1 %v3437_v13  ;;  %11340 = vmatprep.subr.bf16.mxu1 %v13645_v11 }
 0x3ac   : > { %v3127_v19 = vadd.f32 %v3126_v17, %v13453_v37  ;;  %v3345_v23 = vmax.f32 %v3125_v15, 0.0  ;;  %11356 = vmatpush1.bf16.msra.mxu1 %v13640_v10 }
 0x3ad   : > { %v3130_v21 = vpop.f32.mrf.mxu0 }
 0x3ae   : > { %v3346_v24 = vmax.f32 %v3127_v19, 0.0  ;;  %v3439_v30 = vpack.c.bf16 %v3345_v23, %v3343_v27  ;;  %v3131_v35 = vadd.f32 %v3130_v21, %v13456_v39 }
 0x3af   : > { %v3132_v26 = vpop.f32.mrf.mxu0 }
 0x3b0   : > { %v3440_v32 = vpack.c.bf16 %v3346_v24, %v3344_v22  ;;  %v3133_v33 = vadd.f32 %v3132_v26, %v13453_v37  ;;  %v3347_v47 = vmax.f32 %v3131_v35, 0.0 }
 0x3b1   : > { %v3134_v29 = vpop.f32.mrf.mxu0 }
 0x3b2   : > { %v3135_v34 = vadd.f32 %v3134_v29, %v13456_v39  ;;  %3867 = vmatprep.mubr.bf16.mxu1 %v3440_v32  ;;  %v3348_v20 = vmax.f32 %v3133_v33, 0.0 }
 0x3b3   : > { %v3136_v31 = vpop.f32.mrf.mxu0  ;;  %3868 = vmatmul.mubr.bf16.gmra.mxu1 %v3439_v30 }
 0x3b4   : > { %v3137_v40 = vadd.f32 %v3136_v31, %v13453_v37  ;;  %v3349_v44 = vmax.f32 %v3135_v34, 0.0 }
 0x3b5   : > { %v3140_v41 = vpop.f32.mrf.mxu0 }
 0x3b6   : > { %v3350_v45 = vmax.f32 %v3137_v40, 0.0  ;;  %v3441_v49 = vpack.c.bf16 %v3349_v44, %v3347_v47  ;;  %v3141_v53 = vadd.f32 %v3140_v41, %v13456_v39 }
 0x3b7   : > { %v3142_v46 = vpop.f32.mrf.mxu0 }
 0x3b8   : > { %v3442_v16 = vpack.c.bf16 %v3350_v45, %v3348_v20  ;;  %v3143_v50 = vadd.f32 %v3142_v46, %v13453_v37  ;;  %v3351_v60 = vmax.f32 %v3141_v53, 0.0 }
 0x3b9   : > { %v3144_v48 = vpop.f32.mrf.mxu0 }
 0x3ba   : > { %v3145_v51 = vadd.f32 %v3144_v48, %v13456_v39  ;;  %3877 = vmatprep.mubr.bf16.mxu1 %v3442_v16  ;;  %v3352_v56 = vmax.f32 %v3143_v50, 0.0  ;;  %v13660_v48 = vld [vmem:[%s16621_s13 + $0x20] ss:$8 sps:$4 sm:$0xff]  }
 0x3bb   : > { %v3146_v52 = vpop.f32.mrf.mxu0  ;;  %3878 = vmatmul.mubr.bf16.gmra.mxu1 %v3441_v49  ;;  %v13665_v49 = vld [vmem:[%s16621_s13 + $0x24] ss:$8 sps:$4 sm:$0xff]  }
 0x3bc   : > { %v3147_v54 = vadd.f32 %v3146_v52, %v13453_v37  ;;  %v3353_v57 = vmax.f32 %v3145_v51, 0.0  ;;  %11341 = vmatprep.subr.bf16.mxu1 %v13665_v49 }
 0x3bd   : > { %v3150_v55 = vpop.f32.mrf.mxu0  ;;  %11357 = vmatpush1.bf16.msra.mxu1 %v13660_v48 }
 0x3be   : > { %v3354_v58 = vmax.f32 %v3147_v54, 0.0  ;;  %v3443_v63 = vpack.c.bf16 %v3353_v57, %v3351_v60  ;;  %v3151_v7 = vadd.f32 %v3150_v55, %v13456_v39 }
 0x3bf   : > { %v3152_v59 = vpop.f32.mrf.mxu0 }
 0x3c0   : > { %v3444_v61 = vpack.c.bf16 %v3354_v58, %v3352_v56  ;;  %v3153_v1 = vadd.f32 %v3152_v59, %v13453_v37  ;;  %v3355_v17 = vmax.f32 %v3151_v7, 0.0 }
 0x3c1   : > { %v3154_v62 = vpop.f32.mrf.mxu0 }
 0x3c2   : > { %v3155_v3 = vadd.f32 %v3154_v62, %v13456_v39  ;;  %3887 = vmatprep.mubr.bf16.mxu1 %v3444_v61  ;;  %v3356_v12 = vmax.f32 %v3153_v1, 0.0 }
 0x3c3   : > { %v3156_v6 = vpop.f32.mrf.mxu0  ;;  %3888 = vmatmul.mubr.bf16.gmra.mxu1 %v3443_v63 }
 0x3c4   : > { %v3157_v8 = vadd.f32 %v3156_v6, %v13453_v37  ;;  %v3357_v13 = vmax.f32 %v3155_v3, 0.0 }
 0x3c5   : > { %v3160_v9 = vpop.f32.mrf.mxu0 }
 0x3c6   : > { %v3358_v14 = vmax.f32 %v3157_v8, 0.0  ;;  %v3445_v21 = vpack.c.bf16 %v3357_v13, %v3355_v17  ;;  %v3161_v26 = vadd.f32 %v3160_v9, %v13456_v39 }
 0x3c7   : > { %v3162_v15 = vpop.f32.mrf.mxu0 }
 0x3c8   : > { %v3446_v18 = vpack.c.bf16 %v3358_v14, %v3356_v12  ;;  %v3163_v22 = vadd.f32 %v3162_v15, %v13453_v37  ;;  %v3359_v31 = vmax.f32 %v3161_v26, 0.0 }
 0x3c9   : > { %v3164_v19 = vpop.f32.mrf.mxu0 }
 0x3ca   : > { %v3165_v23 = vadd.f32 %v3164_v19, %v13456_v39  ;;  %3897 = vmatprep.mubr.bf16.mxu1 %v3446_v18  ;;  %v3360_v29 = vmax.f32 %v3163_v22, 0.0  ;;  %v13680_v22 = vld [vmem:[%s16621_s13 + $0x10] ss:$8 sps:$4 sm:$0xff]  }
 0x3cb   : > { %v3166_v24 = vpop.f32.mrf.mxu0  ;;  %3898 = vmatmul.mubr.bf16.gmra.mxu1 %v3445_v21 }
 0x3cc   : > { %v3167_v27 = vadd.f32 %v3166_v24, %v13453_v37  ;;  %v3361_v30 = vmax.f32 %v3165_v23, 0.0  ;;  %v13685_v23 = vld [vmem:[%s16621_s13 + $0x14] ss:$8 sps:$4 sm:$0xff]  }
 0x3cd   : > { %v3170_v32 = vpop.f32.mrf.mxu0  ;;  %11342 = vmatprep.subr.bf16.mxu1 %v13685_v23 }
 0x3ce   : > { %v3362_v33 = vmax.f32 %v3167_v27, 0.0  ;;  %v3447_v41 = vpack.c.bf16 %v3361_v30, %v3359_v31  ;;  %v3171_v46 = vadd.f32 %v3170_v32, %v13456_v39  ;;  %11358 = vmatpush1.bf16.msra.mxu1 %v13680_v22 }
 0x3cf   : > { %v3172_v34 = vpop.f32.mrf.mxu0 }
 0x3d0   : > { %v3448_v35 = vpack.c.bf16 %v3362_v33, %v3360_v29  ;;  %v3173_v20 = vadd.f32 %v3172_v34, %v13453_v37  ;;  %v3363_v54 = vmax.f32 %v3171_v46, 0.0 }
 0x3d1   : > { %v3174_v40 = vpop.f32.mrf.mxu0 }
 0x3d2   : > { %v3175_v44 = vadd.f32 %v3174_v40, %v13456_v39  ;;  %3907 = vmatprep.mubr.bf16.mxu1 %v3448_v35  ;;  %v3364_v50 = vmax.f32 %v3173_v20, 0.0 }
 0x3d3   : > { %v3176_v45 = vpop.f32.mrf.mxu0  ;;  %3908 = vmatmul.mubr.bf16.gmra.mxu1 %v3447_v41 }
 0x3d4   : > { %v3177_v47 = vadd.f32 %v3176_v45, %v13453_v37  ;;  %v3365_v51 = vmax.f32 %v3175_v44, 0.0 }
 0x3d5   : > { %v3180_v16 = vpop.f32.mrf.mxu0 }
 0x3d6   : > { %v3366_v52 = vmax.f32 %v3177_v47, 0.0  ;;  %v3449_v57 = vpack.c.bf16 %v3365_v51, %v3363_v54  ;;  %v3181_v61 = vadd.f32 %v3180_v16, %v13456_v39 }
 0x3d7   : > { %v3182_v53 = vpop.f32.mrf.mxu0 }
 0x3d8   : > { %v3450_v55 = vpack.c.bf16 %v3366_v52, %v3364_v50  ;;  %v3183_v58 = vadd.f32 %v3182_v53, %v13453_v37  ;;  %v3367_v8 = vmax.f32 %v3181_v61, 0.0  ;;  %v13703_v61 = vld [vmem:[%s16621_s13] ss:$8 sps:$4 sm:$0xff]  }
 0x3d9   : > { %v3184_v56 = vpop.f32.mrf.mxu0 }
 0x3da   : > { %v3185_v59 = vadd.f32 %v3184_v56, %v13456_v39  ;;  %3917 = vmatprep.mubr.bf16.mxu1 %v3450_v55  ;;  %v3368_v1 = vmax.f32 %v3183_v58, 0.0 }
 0x3db   : > { %v3186_v60 = vpop.f32.mrf.mxu0  ;;  %3918 = vmatmul.mubr.bf16.gmra.mxu1 %v3449_v57 }
 0x3dc   : > { %v3187_v62 = vadd.f32 %v3186_v60, %v13453_v37  ;;  %v3369_v3 = vmax.f32 %v3185_v59, 0.0  ;;  %v3503_v59 = vld [vmem:[%s16727_s19] sm:$0x3] }
 0x3dd   : > { %v3190_v63 = vpop.f32.mrf.mxu0 }
 0x3de   : > { %v3370_v6 = vmax.f32 %v3187_v62, 0.0  ;;  %v3451_v13 = vpack.c.bf16 %v3369_v3, %v3367_v8  ;;  %v3191_v18 = vadd.f32 %v3190_v63, %v13456_v39  ;;  %v13708_v62 = vld [vmem:[%s16621_s13 + $0x4] ss:$8 sps:$4 sm:$0xff]  }
 0x3df   : > { %v3192_v7 = vpop.f32.mrf.mxu0  ;;  %11343 = vmatprep.subr.bf16.mxu1 %v13708_v62 }
 0x3e0   : > { %v3452_v9 = vpack.c.bf16 %v3370_v6, %v3368_v1  ;;  %v3193_v14 = vadd.f32 %v3192_v7, %v13453_v37  ;;  %v3371_v29 = vmax.f32 %v3191_v18, 0.0  ;;  %v13711_v7 = vrot.slane %v3503_v59, %v12984_v25  ;;  %11359 = vmatpush1.bf16.msra.mxu1 %v13703_v61 }
 0x3e1   : > { %v3194_v12 = vpop.f32.mrf.mxu0 }
 0x3e2   : > { %v3195_v15 = vadd.f32 %v3194_v12, %v13456_v39  ;;  %3927 = vmatprep.mubr.bf16.mxu1 %v3452_v9  ;;  %v3372_v24 = vmax.f32 %v3193_v14, 0.0  ;;  %v13714_v9 = vrot.slane %v3503_v59, %v12992_v28 }
 0x3e3   : > { %v3196_v17 = vpop.f32.mrf.mxu0  ;;  %3928 = vmatmul.mubr.bf16.gmra.mxu1 %v3451_v13 }
 0x3e4   : > { %v3197_v19 = vadd.f32 %v3196_v17, %v13453_v37  ;;  %v3373_v26 = vmax.f32 %v3195_v15, 0.0 }
 0x3e5   : > { %v3200_v21 = vpop.f32.mrf.mxu0 }
 0x3e6   : > { %v3374_v27 = vmax.f32 %v3197_v19, 0.0  ;;  %v3453_v34 = vpack.c.bf16 %v3373_v26, %v3371_v29  ;;  %v3201_v41 = vadd.f32 %v3200_v21, %v13456_v39 }
 0x3e7   : > { %v3202_v32 = vpop.f32.mrf.mxu0 }
 0x3e8   : > { %v3454_v30 = vpack.c.bf16 %v3374_v27, %v3372_v24  ;;  %v3203_v31 = vadd.f32 %v3202_v32, %v13453_v37  ;;  %v3375_v50 = vmax.f32 %v3201_v41, 0.0 }
 0x3e9   : > { %v3204_v33 = vpop.f32.mrf.mxu0 }
 0x3ea   : > { %v3205_v35 = vadd.f32 %v3204_v33, %v13456_v39  ;;  %3937 = vmatprep.mubr.bf16.mxu1 %v3454_v30  ;;  %v3376_v45 = vmax.f32 %v3203_v31, 0.0 }
 0x3eb   : > { %v3206_v40 = vpop.f32.mrf.mxu0  ;;  %3938 = vmatmul.mubr.bf16.gmra.mxu1 %v3453_v34 }
 0x3ec   : > { %v3207_v20 = vadd.f32 %v3206_v40, %v13453_v37  ;;  %v3377_v46 = vmax.f32 %v3205_v35, 0.0 }
 0x3ed   : > { %v3210_v44 = vpop.f32.mrf.mxu0 }
 0x3ee   : > { %v3378_v47 = vmax.f32 %v3207_v20, 0.0  ;;  %v3455_v53 = vpack.c.bf16 %v3377_v46, %v3375_v50  ;;  %v3211_v57 = vadd.f32 %v3210_v44, %v13456_v39 }
 0x3ef   : > { %v3212_v16 = vpop.f32.mrf.mxu0 }
 0x3f0   : > { %v3456_v51 = vpack.c.bf16 %v3378_v47, %v3376_v45  ;;  %v3213_v54 = vadd.f32 %v3212_v16, %v13453_v37  ;;  %v3379_v12 = vmax.f32 %v3211_v57, 0.0 }
 0x3f1   : > { %v3214_v52 = vpop.f32.mrf.mxu0 }
 0x3f2   : > { %v3215_v55 = vadd.f32 %v3214_v52, %v13456_v39  ;;  %3947 = vmatprep.mubr.bf16.mxu1 %v3456_v51  ;;  %v3380_v63 = vmax.f32 %v3213_v54, 0.0 }
 0x3f3   : > { %v3216_v56 = vpop.f32.mrf.mxu0  ;;  %v3709_v60 = vpop.f32.mrf.mxu1  ;;  %3948 = vmatmul.mubr.bf16.gmra.mxu1 %v3455_v53 }
 0x3f4   : > { %v3217_v58 = vadd.f32 %v3216_v56, %v13453_v37  ;;  %v3381_v1 = vmax.f32 %v3215_v55, 0.0  ;;  %v3710_v26 = vadd.f32 %v3709_v60, %v13714_v9 }
 0x3f5   : > { %v3220_v6 = vpop.f32.mrf.mxu0  ;;  %v3711_v8 = vpop.f32.mrf.mxu1 }
 0x3f6   : > { %v3382_v3 = vmax.f32 %v3217_v58, 0.0  ;;  %v3457_v18 = vpack.c.bf16 %v3381_v1, %v3379_v12  ;;  %v3712_v19 = vadd.f32 %v3711_v8, %v13711_v7  ;;  %v3221_v34 = vadd.f32 %v3220_v6, %v13456_v39 }
 0x3f7   : > { %v3222_v13 = vpop.f32.mrf.mxu0  ;;  %v3713_v14 = vpop.f32.mrf.mxu1  ;;  %v4028_v45 = vmax.f32 %v3710_v26, 0.0 }
 0x3f8   : > { %v3458_v15 = vpack.c.bf16 %v3382_v3, %v3380_v63  ;;  %v3714_v17 = vadd.f32 %v3713_v14, %v13714_v9  ;;  %v3223_v29 = vadd.f32 %v3222_v13, %v13453_v37  ;;  %v4029_v41 = vmax.f32 %v3712_v19, 0.0 }
 0x3f9   : > { %v3224_v21 = vpop.f32.mrf.mxu0  ;;  %v3715_v24 = vpop.f32.mrf.mxu1  ;;  %v3383_v53 = vmax.f32 %v3221_v34, 0.0 }
 0x3fa   : > { %3957 = vmatprep.mubr.bf16.mxu1 %v3458_v15  ;;  %v3225_v27 = vadd.f32 %v3224_v21, %v13456_v39  ;;  %v3716_v32 = vadd.f32 %v3715_v24, %v13711_v7  ;;  %v4030_v31 = vmax.f32 %v3714_v17, 0.0  ;;  %v3384_v16 = vmax.f32 %v3223_v29, 0.0 }
 0x3fb   : > { %v3226_v30 = vpop.f32.mrf.mxu0  ;;  %v3719_v33 = vpop.f32.mrf.mxu1  ;;  %3958 = vmatmul.mubr.bf16.gmra.mxu1 %v3457_v18  ;;  %v13739_v18 = vld [vmem:[%s16621_s13 + $0xf0] ss:$8 sps:$4 sm:$0xff]  }
 0x3fc   : > { %v4031_v35 = vmax.f32 %v3716_v32, 0.0  ;;  %v3227_v40 = vadd.f32 %v3226_v30, %v13453_v37  ;;  %v3385_v46 = vmax.f32 %v3225_v27, 0.0  ;;  %v4156_v54 = vpack.c.bf16 %v4030_v31, %v4028_v45 }
 0x3fd   : > { %v3230_v20 = vpop.f32.mrf.mxu0  ;;  %v3721_v44 = vpop.f32.mrf.mxu1  ;;  %v3720_v63 = vadd.f32 %v3719_v33, %v13714_v9 }
 0x3fe   : > { %v3386_v47 = vmax.f32 %v3227_v40, 0.0  ;;  %v4157_v52 = vpack.c.bf16 %v4031_v35, %v4029_v41  ;;  %v3722_v56 = vadd.f32 %v3721_v44, %v13711_v7  ;;  %v3459_v60 = vpack.c.bf16 %v3385_v46, %v3383_v53 }
 0x3ff   : > { %v3232_v50 = vpop.f32.mrf.mxu0  ;;  %v3723_v51 = vpop.f32.mrf.mxu1  ;;  %v3231_v13 = vadd.f32 %v3230_v20, %v13456_v39  ;;  %v4032_v26 = vmax.f32 %v3720_v63, 0.0 }
 0x400   : > { %v3724_v55 = vadd.f32 %v3723_v51, %v13714_v9  ;;  %4456 = vmatprep.mubr.bf16.mxu0 %v4157_v52  ;;  %v3460_v59 = vpack.c.bf16 %v3386_v47, %v3384_v16  ;;  %v3233_v6 = vadd.f32 %v3232_v50, %v13453_v37  ;;  %v4033_v19 = vmax.f32 %v3722_v56, 0.0 }
 0x401   : > { %v3234_v57 = vpop.f32.mrf.mxu0  ;;  %v3725_v58 = vpop.f32.mrf.mxu1  ;;  %4457 = vmatmul.mubr.bf16.vlgmr.msra.gmra.mxu0 %v4156_v54  ;;  %v3387_v34 = vmax.f32 %v3231_v13, 0.0 }
 0x402   : > { %v3235_v1 = vadd.f32 %v3234_v57, %v13456_v39  ;;  %v3726_v3 = vadd.f32 %v3725_v58, %v13711_v7  ;;  %5171 = vmatpush1.bf16.msra.mxu0 %v13563_v2  ;;  %3967 = vmatprep.mubr.bf16.mxu1 %v3460_v59  ;;  %v4034_v14 = vmax.f32 %v3724_v55, 0.0  ;;  %v13744_v2 = vld [vmem:[%s16621_s13 + $0xf4] ss:$8 sps:$4 sm:$0xff]   ;;  %v3388_v29 = vmax.f32 %v3233_v6, 0.0 }
 0x403   : > { %v3236_v8 = vpop.f32.mrf.mxu0  ;;  %v3729_v12 = vpop.f32.mrf.mxu1  ;;  %3968 = vmatmul.mubr.bf16.gmra.mxu1 %v3459_v60  ;;  %5172 = vmatprep.subr.bf16.mxu0 %v13585_v38 }
 0x404   : > { %v4035_v15 = vmax.f32 %v3726_v3, 0.0  ;;  %v3237_v17 = vadd.f32 %v3236_v8, %v13453_v37  ;;  %v3389_v27 = vmax.f32 %v3235_v1, 0.0  ;;  %11344 = vmatprep.subr.bf16.mxu1 %v13744_v2  ;;  %v4158_v31 = vpack.c.bf16 %v4034_v14, %v4032_v26 }
 0x405   : > { %v3240_v21 = vpop.f32.mrf.mxu0  ;;  %v3731_v24 = vpop.f32.mrf.mxu1  ;;  %11360 = vmatpush2.bf16.msra.mxu1 %v13739_v18  ;;  %v3730_v46 = vadd.f32 %v3729_v12, %v13714_v9 }
 0x406   : > { %v3390_v32 = vmax.f32 %v3237_v17, 0.0  ;;  %v4159_v33 = vpack.c.bf16 %v4035_v15, %v4033_v19  ;;  %5173 = vmatpush1.bf16.msra.mxu0 %v13580_v36  ;;  %v3732_v40 = vadd.f32 %v3731_v24, %v13711_v7  ;;  %v3461_v45 = vpack.c.bf16 %v3389_v27, %v3387_v34 }
 0x407   : > { %v3242_v38 = vpop.f32.mrf.mxu0  ;;  %v3733_v30 = vpop.f32.mrf.mxu1  ;;  %5174 = vmatprep.subr.bf16.mxu0 %v13605_v5  ;;  %v3241_v5 = vadd.f32 %v3240_v21, %v13456_v39  ;;  %v4036_v58 = vmax.f32 %v3730_v46, 0.0 }
 0x408   : > { %v3734_v35 = vadd.f32 %v3733_v30, %v13714_v9  ;;  %4466 = vmatprep.mubr.bf16.mxu0 %v4159_v33  ;;  %v3462_v44 = vpack.c.bf16 %v3390_v32, %v3388_v29  ;;  %v3243_v16 = vadd.f32 %v3242_v38, %v13453_v37  ;;  %v4037_v55 = vmax.f32 %v3732_v40, 0.0  ;;  %v13775_v30 = vld [vmem:[%s16621_s13 + $0xe0] ss:$8 sps:$4 sm:$0xff]   ;;  %v13780_v33 = vld [vmem:[%s16621_s13 + $0xe4] ss:$8 sps:$4 sm:$0xff]  }
 0x409   : > { %v3244_v41 = vpop.f32.mrf.mxu0  ;;  %v3735_v20 = vpop.f32.mrf.mxu1  ;;  %4467 = vmatmul.mubr.bf16.gmra.mxu0 %v4158_v31  ;;  %11345 = vmatprep.subr.bf16.mxu1 %v13780_v33 }
 0x40a   : > { %v3245_v47 = vadd.f32 %v3244_v41, %v13456_v39  ;;  %v3736_v36 = vadd.f32 %v3735_v20, %v13711_v7  ;;  %3977 = vmatprep.mubr.bf16.mxu1 %v3462_v44  ;;  %5175 = vmatpush1.bf16.msra.mxu0 %v13600_v4  ;;  %v4038_v52 = vmax.f32 %v3734_v35, 0.0  ;;  %v3392_v63 = vmax.f32 %v3243_v16, 0.0 }
 0x40b   : > { %v3246_v50 = vpop.f32.mrf.mxu0  ;;  %v3739_v51 = vpop.f32.mrf.mxu1  ;;  %3978 = vmatmul.mubr.bf16.gmra.mxu1 %v3461_v45  ;;  %5176 = vmatprep.subr.bf16.mxu0 %v13625_v43  ;;  %v3391_v4 = vmax.f32 %v3241_v5, 0.0 }
 0x40c   : > { %v4039_v53 = vmax.f32 %v3736_v36, 0.0  ;;  %v3247_v54 = vadd.f32 %v3246_v50, %v13453_v37  ;;  %v3393_v59 = vmax.f32 %v3245_v47, 0.0  ;;  %v4160_v8 = vpack.c.bf16 %v4038_v52, %v4036_v58  ;;  %11361 = vmatpush2.bf16.msra.mxu1 %v13775_v30 }
 0x40d   : > { %v3250_v56 = vpop.f32.mrf.mxu0  ;;  %v3741_v57 = vpop.f32.mrf.mxu1  ;;  %v3740_v19 = vadd.f32 %v3739_v51, %v13714_v9 }
 0x40e   : > { %v3394_v60 = vmax.f32 %v3247_v54, 0.0  ;;  %v4161_v6 = vpack.c.bf16 %v4039_v53, %v4037_v55  ;;  %5177 = vmatpush1.bf16.msra.mxu0 %v13620_v42  ;;  %v3742_v43 = vadd.f32 %v3741_v57, %v13711_v7  ;;  %v3463_v17 = vpack.c.bf16 %v3393_v59, %v3391_v4 }
 0x40f   : > { %v3252_v1 = vpop.f32.mrf.mxu0  ;;  %v3743_v3 = vpop.f32.mrf.mxu1  ;;  %5178 = vmatprep.subr.bf16.mxu0 %v13645_v11  ;;  %v3251_v11 = vadd.f32 %v3250_v56, %v13456_v39  ;;  %v4040_v35 = vmax.f32 %v3740_v19, 0.0 }
 0x410   : > { %v3744_v12 = vadd.f32 %v3743_v3, %v13714_v9  ;;  %4476 = vmatprep.mubr.bf16.mxu0 %v4161_v6  ;;  %v3464_v15 = vpack.c.bf16 %v3394_v60, %v3392_v63  ;;  %v3253_v42 = vadd.f32 %v3252_v1, %v13453_v37 }
 0x411   : > { %v3254_v13 = vpop.f32.mrf.mxu0  ;;  %v3745_v14 = vpop.f32.mrf.mxu1  ;;  %4477 = vmatmul.mubr.bf16.gmra.mxu0 %v4160_v8  ;;  %v3395_v46 = vmax.f32 %v3251_v11, 0.0 }
 0x412   : > { %v3255_v21 = vadd.f32 %v3254_v13, %v13456_v39  ;;  %v3746_v24 = vadd.f32 %v3745_v14, %v13711_v7  ;;  %3987 = vmatprep.mubr.bf16.mxu1 %v3464_v15  ;;  %5179 = vmatpush1.bf16.msra.mxu0 %v13640_v10  ;;  %v4042_v32 = vmax.f32 %v3744_v12, 0.0  ;;  %v4041_v10 = vmax.f32 %v3742_v43, 0.0 }
 0x413   : > { %v3256_v26 = vpop.f32.mrf.mxu0  ;;  %v3749_v27 = vpop.f32.mrf.mxu1  ;;  %3988 = vmatmul.mubr.bf16.gmra.mxu1 %v3463_v17  ;;  %5180 = vmatprep.subr.bf16.mxu0 %v13665_v49  ;;  %v3396_v20 = vmax.f32 %v3253_v42, 0.0 }
 0x414   : > { %v4043_v29 = vmax.f32 %v3746_v24, 0.0  ;;  %v3257_v38 = vadd.f32 %v3256_v26, %v13453_v37  ;;  %v3397_v40 = vmax.f32 %v3255_v21, 0.0  ;;  %v4162_v47 = vpack.c.bf16 %v4042_v32, %v4040_v35  ;;  %v11781_v35 = vld [vmem:[%s16621_s13 + $0xd0] ss:$8 sps:$4 sm:$0xff]  }
 0x415   : > { %v3260_v34 = vpop.f32.mrf.mxu0  ;;  %v3751_v31 = vpop.f32.mrf.mxu1  ;;  %v3750_v53 = vadd.f32 %v3749_v27, %v13714_v9 }
 0x416   : > { %v3398_v41 = vmax.f32 %v3257_v38, 0.0  ;;  %v4163_v45 = vpack.c.bf16 %v4043_v29, %v4041_v10  ;;  %5181 = vmatpush1.bf16.msra.mxu0 %v13660_v48  ;;  %v3752_v16 = vadd.f32 %v3751_v31, %v13711_v7  ;;  %v3465_v52 = vpack.c.bf16 %v3397_v40, %v3395_v46  ;;  %v11783_v40 = vld [vmem:[%s16621_s13 + $0xd4] ss:$8 sps:$4 sm:$0xff]  }
 0x417   : > { %v3262_v49 = vpop.f32.mrf.mxu0  ;;  %v3753_v44 = vpop.f32.mrf.mxu1  ;;  %5182 = vmatprep.subr.bf16.mxu0 %v13685_v23  ;;  %v3261_v23 = vadd.f32 %v3260_v34, %v13456_v39  ;;  %v4044_v6 = vmax.f32 %v3750_v53, 0.0  ;;  %11346 = vmatprep.subr.bf16.mxu1 %v11783_v40 }
 0x418   : > { %v3754_v36 = vadd.f32 %v3753_v44, %v13714_v9  ;;  %4486 = vmatprep.mubr.bf16.mxu0 %v4163_v45  ;;  %v3466_v5 = vpack.c.bf16 %v3398_v41, %v3396_v20  ;;  %v3263_v55 = vadd.f32 %v3262_v49, %v13453_v37  ;;  %v4045_v63 = vmax.f32 %v3752_v16, 0.0  ;;  %11362 = vmatpush2.bf16.msra.mxu1 %v11781_v35 }
 0x419   : > { %v3264_v50 = vpop.f32.mrf.mxu0  ;;  %v3755_v51 = vpop.f32.mrf.mxu1  ;;  %4487 = vmatmul.mubr.bf16.gmra.mxu0 %v4162_v47 }
 0x41a   : > { %v3265_v54 = vadd.f32 %v3264_v50, %v13456_v39  ;;  %v3756_v48 = vadd.f32 %v3755_v51, %v13711_v7  ;;  %3997 = vmatprep.mubr.bf16.mxu1 %v3466_v5  ;;  %5183 = vmatpush1.bf16.msra.mxu0 %v13680_v22  ;;  %v4046_v58 = vmax.f32 %v3754_v36, 0.0  ;;  %v3400_v12 = vmax.f32 %v3263_v55, 0.0 }
 0x41b   : > { %v3266_v56 = vpop.f32.mrf.mxu0  ;;  %v3759_v57 = vpop.f32.mrf.mxu1  ;;  %3998 = vmatmul.mubr.bf16.gmra.mxu1 %v3465_v52  ;;  %5184 = vmatprep.subr.bf16.mxu0 %v13708_v62  ;;  %v3399_v22 = vmax.f32 %v3261_v23, 0.0 }
 0x41c   : > { %v4047_v59 = vmax.f32 %v3756_v48, 0.0  ;;  %v3267_v60 = vadd.f32 %v3266_v56, %v13453_v37  ;;  %v3401_v4 = vmax.f32 %v3265_v54, 0.0  ;;  %v4164_v15 = vpack.c.bf16 %v4046_v58, %v4044_v6 }
 0x41d   : > { %v3270_v1 = vpop.f32.mrf.mxu0  ;;  %v3761_v3 = vpop.f32.mrf.mxu1  ;;  %v3760_v62 = vadd.f32 %v3759_v57, %v13714_v9 }
 0x41e   : > { %v3402_v8 = vmax.f32 %v3267_v60, 0.0  ;;  %v4165_v14 = vpack.c.bf16 %v4047_v59, %v4045_v63  ;;  %5185 = vmatpush1.bf16.msra.mxu0 %v13703_v61  ;;  %v3762_v17 = vadd.f32 %v3761_v3, %v13711_v7  ;;  %v3467_v26 = vpack.c.bf16 %v3401_v4, %v3399_v22 }
 0x41f   : > { %v3272_v43 = vpop.f32.mrf.mxu0  ;;  %v3763_v13 = vpop.f32.mrf.mxu1  ;;  %5186 = vmatprep.subr.bf16.mxu0 %v13744_v2  ;;  %v3271_v2 = vadd.f32 %v3270_v1, %v13456_v39  ;;  %v4048_v41 = vmax.f32 %v3760_v62, 0.0 }
 0x420   : > { %v3764_v19 = vadd.f32 %v3763_v13, %v13714_v9  ;;  %4496 = vmatprep.mubr.bf16.mxu0 %v4165_v14  ;;  %v3468_v42 = vpack.c.bf16 %v3402_v8, %v3400_v12  ;;  %v3273_v27 = vadd.f32 %v3272_v43, %v13453_v37  ;;  %v4049_v10 = vmax.f32 %v3762_v17, 0.0  ;;  %v11784_v12 = vld [vmem:[%s16621_s13 + $0xc0] ss:$8 sps:$4 sm:$0xff]   ;;  %v11786_v43 = vld [vmem:[%s16621_s13 + $0xc4] ss:$8 sps:$4 sm:$0xff]  }
 0x421   : > { %v3274_v21 = vpop.f32.mrf.mxu0  ;;  %v3765_v24 = vpop.f32.mrf.mxu1  ;;  %4497 = vmatmul.mubr.bf16.gmra.mxu0 %v4164_v15  ;;  %11347 = vmatprep.subr.bf16.mxu1 %v11786_v43 }
 0x422   : > { %v3275_v11 = vadd.f32 %v3274_v21, %v13456_v39  ;;  %v3766_v61 = vadd.f32 %v3765_v24, %v13711_v7  ;;  %v4050_v32 = vmax.f32 %v3764_v19, 0.0  ;;  %4007 = vmatprep.mubr.bf16.mxu1 %v3468_v42  ;;  %5187 = vmatpush2.bf16.msra.mxu0 %v13739_v18  ;;  %v3404_v18 = vmax.f32 %v3273_v27, 0.0 }
 0x423   : > { %v3276_v29 = vpop.f32.mrf.mxu0  ;;  %v3769_v38 = vpop.f32.mrf.mxu1  ;;  %4008 = vmatmul.mubr.bf16.gmra.mxu1 %v3467_v26  ;;  %5188 = vmatprep.subr.bf16.mxu0 %v13780_v33  ;;  %v3403_v33 = vmax.f32 %v3271_v2, 0.0 }
 0x424   : > { %v4051_v34 = vmax.f32 %v3766_v61, 0.0  ;;  %v3277_v31 = vadd.f32 %v3276_v29, %v13453_v37  ;;  %v3405_v49 = vmax.f32 %v3275_v11, 0.0  ;;  %v4166_v45 = vpack.c.bf16 %v4050_v32, %v4048_v41  ;;  %11363 = vmatpush2.bf16.msra.mxu1 %v11784_v12 }
 0x425   : > { %v3771_v20 = vpop.f32.mrf.mxu1  ;;  %v3770_v51 = vadd.f32 %v3769_v38, %v13714_v9 }
 0x426   : > { %v3406_v39 = vmax.f32 %v3277_v31, 0.0  ;;  %v4167_v44 = vpack.c.bf16 %v4051_v34, %v4049_v10  ;;  %5189 = vmatpush2.bf16.msra.mxu0 %v13775_v30  ;;  %v3772_v46 = vadd.f32 %v3771_v20, %v13711_v7  ;;  %v3469_v50 = vpack.c.bf16 %v3405_v49, %v3403_v33 }
 0x427   : > { %v3773_v37 = vpop.f32.mrf.mxu1  ;;  %5190 = vmatprep.subr.bf16.mxu0 %v11783_v40  ;;  %v4052_v55 = vmax.f32 %v3770_v51, 0.0 }
 0x428   : > { %v3774_v47 = vadd.f32 %v3773_v37, %v13714_v9  ;;  %4506 = vmatprep.mubr.bf16.mxu0 %v4167_v44  ;;  %v3470_v36 = vpack.c.bf16 %v3406_v39, %v3404_v18  ;;  %v4053_v30 = vmax.f32 %v3772_v46, 0.0  ;;  %v11787_v44 = vld [vmem:[%s16621_s13 + $0xb0] ss:$8 sps:$4 sm:$0xff]  }
 0x429   : > { %v3775_v16 = vpop.f32.mrf.mxu1  ;;  %4507 = vmatmul.mubr.bf16.gmra.mxu0 %v4166_v45  ;;  %v11789_v45 = vld [vmem:[%s16621_s13 + $0xb4] ss:$8 sps:$4 sm:$0xff]  }
 0x42a   : > { %v3776_v5 = vadd.f32 %v3775_v16, %v13711_v7  ;;  %4017 = vmatprep.mubr.bf16.mxu1 %v3470_v36  ;;  %5191 = vmatpush2.bf16.msra.mxu0 %v11781_v35  ;;  %v4054_v53 = vmax.f32 %v3774_v47, 0.0 }
 0x42b   : > { %v3779_v52 = vpop.f32.mrf.mxu1  ;;  %4018 = vmatmul.mubr.bf16.gmra.mxu1 %v3469_v50  ;;  %5192 = vmatprep.subr.bf16.mxu0 %v11786_v43 }
 0x42c   : > { %v4055_v54 = vmax.f32 %v3776_v5, 0.0  ;;  %v4168_v58 = vpack.c.bf16 %v4054_v53, %v4052_v55  ;;  %v3780_v63 = vadd.f32 %v3779_v52, %v13714_v9  ;;  %11348 = vmatprep.subr.bf16.mxu1 %v11789_v45 }
 0x42d   : > { %v3781_v48 = vpop.f32.mrf.mxu1  ;;  %11364 = vmatpush2.bf16.msra.mxu1 %v11787_v44 }
 0x42e   : > { %v4169_v56 = vpack.c.bf16 %v4055_v54, %v4053_v30  ;;  %v3782_v57 = vadd.f32 %v3781_v48, %v13711_v7  ;;  %v4056_v14 = vmax.f32 %v3780_v63, 0.0  ;;  %5193 = vmatpush2.bf16.msra.mxu0 %v11784_v12 }
 0x42f   : > { %v3783_v23 = vpop.f32.mrf.mxu1  ;;  %5194 = vmatprep.subr.bf16.mxu0 %v11789_v45 }
 0x430   : > { %v3784_v59 = vadd.f32 %v3783_v23, %v13714_v9  ;;  %4516 = vmatprep.mubr.bf16.mxu0 %v4169_v56  ;;  %v4057_v3 = vmax.f32 %v3782_v57, 0.0 }
 0x431   : > { %v3785_v60 = vpop.f32.mrf.mxu1  ;;  %4517 = vmatmul.mubr.bf16.gmra.mxu0 %v4168_v58 }
 0x432   : > { %v3786_v1 = vadd.f32 %v3785_v60, %v13711_v7  ;;  %v4058_v4 = vmax.f32 %v3784_v59, 0.0  ;;  %5195 = vmatpush2.bf16.msra.mxu0 %v11787_v44  ;;  %v11798_v44 = vld [vmem:[%s16621_s13 + $0x84] ss:$8 sps:$4 sm:$0xff]  }
 0x433   : > { %v3789_v6 = vpop.f32.mrf.mxu1 }
 0x434   : > { %v4059_v8 = vmax.f32 %v3786_v1, 0.0  ;;  %v4170_v17 = vpack.c.bf16 %v4058_v4, %v4056_v14  ;;  %v3790_v24 = vadd.f32 %v3789_v6, %v13714_v9  ;;  %v11792_v14 = vld [vmem:[%s16621_s13 + $0xa4] ss:$8 sps:$4 sm:$0xff]  }
 0x435   : > { %v3791_v13 = vpop.f32.mrf.mxu1  ;;  %5196 = vmatprep.subr.bf16.mxu0 %v11792_v14  ;;  %11349 = vmatprep.subr.bf16.mxu1 %v11792_v14 }
 0x436   : > { %v4171_v22 = vpack.c.bf16 %v4059_v8, %v4057_v3  ;;  %v3792_v19 = vadd.f32 %v3791_v13, %v13711_v7  ;;  %v4060_v29 = vmax.f32 %v3790_v24, 0.0  ;;  %v11790_v13 = vld [vmem:[%s16621_s13 + $0xa0] ss:$8 sps:$4 sm:$0xff]  }
 0x437   : > { %v3793_v15 = vpop.f32.mrf.mxu1  ;;  %5197 = vmatpush2.bf16.msra.mxu0 %v11790_v13  ;;  %11365 = vmatpush2.bf16.msra.mxu1 %v11790_v13 }
 0x438   : > { %v3794_v62 = vadd.f32 %v3793_v15, %v13714_v9  ;;  %4526 = vmatprep.mubr.bf16.mxu0 %v4171_v22  ;;  %v4061_v27 = vmax.f32 %v3792_v19, 0.0 }
 0x439   : > { %v3795_v21 = vpop.f32.mrf.mxu1  ;;  %4527 = vmatmul.mubr.bf16.gmra.mxu0 %v4170_v17 }
 0x43a   : > { %v3796_v42 = vadd.f32 %v3795_v21, %v13711_v7  ;;  %v4062_v11 = vmax.f32 %v3794_v62, 0.0 }
 0x43b   : > { %v3799_v26 = vpop.f32.mrf.mxu1 }
 0x43c   : > { %v4063_v61 = vmax.f32 %v3796_v42, 0.0  ;;  %v4172_v34 = vpack.c.bf16 %v4062_v11, %v4060_v29  ;;  %v3800_v40 = vadd.f32 %v3799_v26, %v13714_v9 }
 0x43d   : > { %v3801_v32 = vpop.f32.mrf.mxu1 }
 0x43e   : > { %v4173_v38 = vpack.c.bf16 %v4063_v61, %v4061_v27  ;;  %v3802_v2 = vadd.f32 %v3801_v32, %v13711_v7  ;;  %v4064_v33 = vmax.f32 %v3800_v40, 0.0 }
 0x43f   : > { %v3803_v10 = vpop.f32.mrf.mxu1 }
 0x440   : > { %v3804_v31 = vadd.f32 %v3803_v10, %v13714_v9  ;;  %4536 = vmatprep.mubr.bf16.mxu0 %v4173_v38  ;;  %v4065_v20 = vmax.f32 %v3802_v2, 0.0 }
 0x441   : > { %v3805_v35 = vpop.f32.mrf.mxu1  ;;  %4537 = vmatmul.mubr.bf16.gmra.mxu0 %v4172_v34  ;;  %v11795_v34 = vld [vmem:[%s16621_s13 + $0x94] ss:$8 sps:$4 sm:$0xff]  }
 0x442   : > { %v3806_v41 = vadd.f32 %v3805_v35, %v13711_v7  ;;  %v4066_v49 = vmax.f32 %v3804_v31, 0.0  ;;  %11350 = vmatprep.subr.bf16.mxu1 %v11795_v34  ;;  %5198 = vmatprep.subr.bf16.mxu0 %v11795_v34 }
 0x443   : > { %v3809_v18 = vpop.f32.mrf.mxu1 }
 0x444   : > { %v4067_v39 = vmax.f32 %v3806_v41, 0.0  ;;  %v4174_v36 = vpack.c.bf16 %v4066_v49, %v4064_v33  ;;  %v3810_v5 = vadd.f32 %v3809_v18, %v13714_v9  ;;  %v11793_v41 = vld [vmem:[%s16621_s13 + $0x90] ss:$8 sps:$4 sm:$0xff]  }
 0x445   : > { %v3811_v37 = vpop.f32.mrf.mxu1  ;;  %11366 = vmatpush2.bf16.msra.mxu1 %v11793_v41  ;;  %5199 = vmatpush2.bf16.msra.mxu0 %v11793_v41 }
 0x446   : > { %v4175_v46 = vpack.c.bf16 %v4067_v39, %v4065_v20  ;;  %v3812_v16 = vadd.f32 %v3811_v37, %v13711_v7  ;;  %v4068_v56 = vmax.f32 %v3810_v5, 0.0  ;;  %11351 = vmatprep.subr.bf16.mxu1 %v11798_v44  ;;  %5200 = vmatprep.subr.bf16.mxu0 %v11798_v44 }
 0x447   : > { %v3813_v47 = vpop.f32.mrf.mxu1 }
 0x448   : > { %v3814_v50 = vadd.f32 %v3813_v47, %v13714_v9  ;;  %4546 = vmatprep.mubr.bf16.mxu0 %v4175_v46  ;;  %v4069_v53 = vmax.f32 %v3812_v16, 0.0  ;;  %v11796_v46 = vld [vmem:[%s16621_s13 + $0x80] ss:$8 sps:$4 sm:$0xff]  }
 0x449   : > { %v3815_v51 = vpop.f32.mrf.mxu1  ;;  %4547 = vmatmul.mubr.bf16.gmra.mxu0 %v4174_v36  ;;  %11367 = vmatpush2.bf16.msra.mxu1 %v11796_v46 }
 0x44a   : > { %v3816_v52 = vadd.f32 %v3815_v51, %v13711_v7  ;;  %v4070_v54 = vmax.f32 %v3814_v50, 0.0  ;;  %5201 = vmatpush2.bf16.msra.mxu0 %v11796_v46 }
 0x44b   : > { %v3819_v30 = vpop.f32.mrf.mxu1 }
 0x44c   : > { %v4071_v48 = vmax.f32 %v3816_v52, 0.0  ;;  %v4176_v58 = vpack.c.bf16 %v4070_v54, %v4068_v56  ;;  %v3820_v1 = vadd.f32 %v3819_v30, %v13714_v9 }
 0x44d   : > { %v3821_v55 = vpop.f32.mrf.mxu1 }
 0x44e   : > { %v4177_v57 = vpack.c.bf16 %v4071_v48, %v4069_v53  ;;  %v3822_v59 = vadd.f32 %v3821_v55, %v13711_v7  ;;  %v4072_v22 = vmax.f32 %v3820_v1, 0.0 }
 0x44f   : > { %v3823_v23 = vpop.f32.mrf.mxu1 }
 0x450   : > { %v3824_v60 = vadd.f32 %v3823_v23, %v13714_v9  ;;  %4556 = vmatprep.mubr.bf16.mxu0 %v4177_v57  ;;  %v4073_v4 = vmax.f32 %v3822_v59, 0.0 }
 0x451   : > { %v3825_v63 = vpop.f32.mrf.mxu1  ;;  %4557 = vmatmul.mubr.bf16.gmra.mxu0 %v4176_v58 }
 0x452   : > { %v3826_v3 = vadd.f32 %v3825_v63, %v13711_v7  ;;  %v4074_v8 = vmax.f32 %v3824_v60, 0.0 }
 0x453   : > { %v3829_v6 = vpop.f32.mrf.mxu1 }
 0x454   : > { %v4075_v12 = vmax.f32 %v3826_v3, 0.0  ;;  %v4178_v19 = vpack.c.bf16 %v4074_v8, %v4072_v22  ;;  %v3830_v42 = vadd.f32 %v3829_v6, %v13714_v9 }
 0x455   : > { %v3831_v43 = vpop.f32.mrf.mxu1 }
 0x456   : > { %v4179_v15 = vpack.c.bf16 %v4075_v12, %v4073_v4  ;;  %v3832_v62 = vadd.f32 %v3831_v43, %v13711_v7  ;;  %v4076_v38 = vmax.f32 %v3830_v42, 0.0 }
 0x457   : > { %v3833_v17 = vpop.f32.mrf.mxu1 }
 0x458   : > { %v3834_v21 = vadd.f32 %v3833_v17, %v13714_v9  ;;  %4566 = vmatprep.mubr.bf16.mxu0 %v4179_v15  ;;  %v4077_v11 = vmax.f32 %v3832_v62, 0.0 }
 0x459   : > { %v3835_v24 = vpop.f32.mrf.mxu1  ;;  %4567 = vmatmul.mubr.bf16.gmra.mxu0 %v4178_v19 }
 0x45a   : > { %v3836_v26 = vadd.f32 %v3835_v24, %v13711_v7  ;;  %v4078_v61 = vmax.f32 %v3834_v21, 0.0 }
 0x45b   : > { %v3839_v27 = vpop.f32.mrf.mxu1 }
 0x45c   : > { %v4079_v32 = vmax.f32 %v3836_v26, 0.0  ;;  %v4180_v31 = vpack.c.bf16 %v4078_v61, %v4076_v38  ;;  %v3840_v18 = vadd.f32 %v3839_v27, %v13714_v9 }
 0x45d   : > { %v3841_v29 = vpop.f32.mrf.mxu1 }
 0x45e   : > { %v4181_v2 = vpack.c.bf16 %v4079_v32, %v4077_v11  ;;  %v3842_v35 = vadd.f32 %v3841_v29, %v13711_v7  ;;  %v4080_v36 = vmax.f32 %v3840_v18, 0.0 }
 0x45f   : > { %v3843_v10 = vpop.f32.mrf.mxu1 }
 0x460   : > { %v3844_v40 = vadd.f32 %v3843_v10, %v13714_v9  ;;  %4576 = vmatprep.mubr.bf16.mxu0 %v4181_v2  ;;  %v4081_v45 = vmax.f32 %v3842_v35, 0.0 }
 0x461   : > { %v3845_v20 = vpop.f32.mrf.mxu1  ;;  %4577 = vmatmul.mubr.bf16.gmra.mxu0 %v4180_v31 }
 0x462   : > { %v3846_v49 = vadd.f32 %v3845_v20, %v13711_v7  ;;  %v4082_v37 = vmax.f32 %v3844_v40, 0.0 }
 0x463   : > { %v3849_v39 = vpop.f32.mrf.mxu1 }
 0x464   : > { %v4083_v33 = vmax.f32 %v3846_v49, 0.0  ;;  %v4182_v51 = vpack.c.bf16 %v4082_v37, %v4080_v36  ;;  %v3850_v53 = vadd.f32 %v3849_v39, %v13714_v9  ;;  %v11801_v39 = vld [vmem:[#allocation10 + $0x34] ss:$8 sps:$4 sm:$0xff]  }
 0x465   : > { %v3851_v47 = vpop.f32.mrf.mxu1  ;;  %5571 = vmatprep.subr.bf16.mxu0 %v11801_v39 }
 0x466   : > { %v4183_v16 = vpack.c.bf16 %v4083_v33, %v4081_v45  ;;  %v3852_v5 = vadd.f32 %v3851_v47, %v13711_v7  ;;  %v4084_v58 = vmax.f32 %v3850_v53, 0.0  ;;  %v11804_v33 = vld [vmem:[#allocation11 + $0x74] ss:$8 sps:$4 sm:$0xff]  }
 0x467   : > { %v3853_v50 = vpop.f32.mrf.mxu1  ;;  %6451 = vmatprep.subr.bf16.mxu1 %v11804_v33 }
 0x468   : > { %v3854_v52 = vadd.f32 %v3853_v50, %v13714_v9  ;;  %4586 = vmatprep.mubr.bf16.mxu0 %v4183_v16  ;;  %v4085_v55 = vmax.f32 %v3852_v5, 0.0 }
 0x469   : > { %v3855_v30 = vpop.f32.mrf.mxu1  ;;  %4587 = vmatmul.mubr.bf16.gmra.mxu0 %v4182_v51 }
 0x46a   : > { %v3856_v54 = vadd.f32 %v3855_v30, %v13711_v7  ;;  %v4086_v56 = vmax.f32 %v3854_v52, 0.0 }
 0x46b   : > { %v3859_v48 = vpop.f32.mrf.mxu1 }
 0x46c   : > { %v4087_v57 = vmax.f32 %v3856_v54, 0.0  ;;  %v4184_v63 = vpack.c.bf16 %v4086_v56, %v4084_v58  ;;  %v3860_v4 = vadd.f32 %v3859_v48, %v13714_v9 }
 0x46d   : > { %v3861_v23 = vpop.f32.mrf.mxu1 }
 0x46e   : > { %v4185_v59 = vpack.c.bf16 %v4087_v57, %v4085_v55  ;;  %v3862_v1 = vadd.f32 %v3861_v23, %v13711_v7  ;;  %v4088_v15 = vmax.f32 %v3860_v4, 0.0 }
 0x46f   : > { %v3863_v60 = vpop.f32.mrf.mxu1 }
 0x470   : > { %v3864_v3 = vadd.f32 %v3863_v60, %v13714_v9  ;;  %4596 = vmatprep.mubr.bf16.mxu0 %v4185_v59  ;;  %v4089_v43 = vmax.f32 %v3862_v1, 0.0 }
 0x471   : > { %v3865_v6 = vpop.f32.mrf.mxu1  ;;  %4597 = vmatmul.mubr.bf16.gmra.mxu0 %v4184_v63 }
 0x472   : > { %v3866_v8 = vadd.f32 %v3865_v6, %v13711_v7  ;;  %v4090_v13 = vmax.f32 %v3864_v3, 0.0 }
 0x473   : > { %v3869_v12 = vpop.f32.mrf.mxu1 }
 0x474   : > { %v4091_v14 = vmax.f32 %v3866_v8, 0.0  ;;  %v4186_v62 = vpack.c.bf16 %v4090_v13, %v4088_v15  ;;  %v3870_v26 = vadd.f32 %v3869_v12, %v13714_v9 }
 0x475   : > { %v3871_v22 = vpop.f32.mrf.mxu1 }
 0x476   : > { %v4187_v17 = vpack.c.bf16 %v4091_v14, %v4089_v43  ;;  %v3872_v21 = vadd.f32 %v3871_v22, %v13711_v7  ;;  %v4092_v2 = vmax.f32 %v3870_v26, 0.0 }
 0x477   : > { %v3873_v19 = vpop.f32.mrf.mxu1 }
 0x478   : > { %v3874_v24 = vadd.f32 %v3873_v19, %v13714_v9  ;;  %4606 = vmatprep.mubr.bf16.mxu0 %v4187_v17  ;;  %v4093_v61 = vmax.f32 %v3872_v21, 0.0 }
 0x479   : > { %v3875_v42 = vpop.f32.mrf.mxu1  ;;  %4607 = vmatmul.mubr.bf16.gmra.mxu0 %v4186_v62 }
 0x47a   : > { %v3876_v27 = vadd.f32 %v3875_v42, %v13711_v7  ;;  %v4094_v32 = vmax.f32 %v3874_v24, 0.0 }
 0x47b   : > { %v3879_v11 = vpop.f32.mrf.mxu1 }
 0x47c   : > { %v4095_v29 = vmax.f32 %v3876_v27, 0.0  ;;  %v4188_v31 = vpack.c.bf16 %v4094_v32, %v4092_v2  ;;  %v3880_v20 = vadd.f32 %v3879_v11, %v13714_v9 }
 0x47d   : > { %v3881_v38 = vpop.f32.mrf.mxu1 }
 0x47e   : > { %v4189_v10 = vpack.c.bf16 %v4095_v29, %v4093_v61  ;;  %v3882_v35 = vadd.f32 %v3881_v38, %v13711_v7  ;;  %v4096_v47 = vmax.f32 %v3880_v20, 0.0 }
 0x47f   : > { %v3883_v34 = vpop.f32.mrf.mxu1 }
 0x480   : > { %v3884_v40 = vadd.f32 %v3883_v34, %v13714_v9  ;;  %4616 = vmatprep.mubr.bf16.mxu0 %v4189_v10  ;;  %v4097_v44 = vmax.f32 %v3882_v35, 0.0 }
 0x481   : > { %v3885_v41 = vpop.f32.mrf.mxu1  ;;  %4617 = vmatmul.mubr.bf16.gmra.mxu0 %v4188_v31 }
 0x482   : > { %v3886_v18 = vadd.f32 %v3885_v41, %v13711_v7  ;;  %v4098_v45 = vmax.f32 %v3884_v40, 0.0 }
 0x483   : > { %v3889_v49 = vpop.f32.mrf.mxu1 }
 0x484   : > { %v4099_v37 = vmax.f32 %v3886_v18, 0.0  ;;  %v4190_v50 = vpack.c.bf16 %v4098_v45, %v4096_v47  ;;  %v3890_v30 = vadd.f32 %v3889_v49, %v13714_v9 }
 0x485   : > { %v3891_v46 = vpop.f32.mrf.mxu1 }
 0x486   : > { %v4191_v36 = vpack.c.bf16 %v4099_v37, %v4097_v44  ;;  %v3892_v51 = vadd.f32 %v3891_v46, %v13711_v7  ;;  %v4100_v23 = vmax.f32 %v3890_v30, 0.0 }
 0x487   : > { %v3893_v16 = vpop.f32.mrf.mxu1 }
 0x488   : > { %v3894_v5 = vadd.f32 %v3893_v16, %v13714_v9  ;;  %4626 = vmatprep.mubr.bf16.mxu0 %v4191_v36  ;;  %v4101_v48 = vmax.f32 %v3892_v51, 0.0 }
 0x489   : > { %v3895_v52 = vpop.f32.mrf.mxu1  ;;  %4627 = vmatmul.mubr.bf16.gmra.mxu0 %v4190_v50 }
 0x48a   : > { %v3896_v53 = vadd.f32 %v3895_v52, %v13711_v7  ;;  %v4102_v55 = vmax.f32 %v3894_v5, 0.0 }
 0x48b   : > { %v3899_v54 = vpop.f32.mrf.mxu1 }
 0x48c   : > { %v4103_v56 = vmax.f32 %v3896_v53, 0.0  ;;  %v4192_v60 = vpack.c.bf16 %v4102_v55, %v4100_v23  ;;  %v3900_v6 = vadd.f32 %v3899_v54, %v13714_v9 }
 0x48d   : > { %v3901_v57 = vpop.f32.mrf.mxu1 }
 0x48e   : > { %v4193_v58 = vpack.c.bf16 %v4103_v56, %v4101_v48  ;;  %v3902_v63 = vadd.f32 %v3901_v57, %v13711_v7  ;;  %v4104_v22 = vmax.f32 %v3900_v6, 0.0 }
 0x48f   : > { %v3903_v59 = vpop.f32.mrf.mxu1 }
 0x490   : > { %v3904_v1 = vadd.f32 %v3903_v59, %v13714_v9  ;;  %4636 = vmatprep.mubr.bf16.mxu0 %v4193_v58  ;;  %v4105_v12 = vmax.f32 %v3902_v63, 0.0 }
 0x491   : > { %v3905_v3 = vpop.f32.mrf.mxu1  ;;  %4637 = vmatmul.mubr.bf16.gmra.mxu0 %v4192_v60 }
 0x492   : > { %v3906_v4 = vadd.f32 %v3905_v3, %v13711_v7  ;;  %v4106_v43 = vmax.f32 %v3904_v1, 0.0 }
 0x493   : > { %v3909_v8 = vpop.f32.mrf.mxu1 }
 0x494   : > { %v4107_v13 = vmax.f32 %v3906_v4, 0.0  ;;  %v4194_v19 = vpack.c.bf16 %v4106_v43, %v4104_v22  ;;  %v3910_v42 = vadd.f32 %v3909_v8, %v13714_v9 }
 0x495   : > { %v3911_v14 = vpop.f32.mrf.mxu1 }
 0x496   : > { %v4195_v15 = vpack.c.bf16 %v4107_v13, %v4105_v12  ;;  %v3912_v62 = vadd.f32 %v3911_v14, %v13711_v7  ;;  %v4108_v38 = vmax.f32 %v3910_v42, 0.0 }
 0x497   : > { %v3913_v17 = vpop.f32.mrf.mxu1 }
 0x498   : > { %v3914_v21 = vadd.f32 %v3913_v17, %v13714_v9  ;;  %4646 = vmatprep.mubr.bf16.mxu0 %v4195_v15  ;;  %v4109_v11 = vmax.f32 %v3912_v62, 0.0 }
 0x499   : > { %v3915_v24 = vpop.f32.mrf.mxu1  ;;  %4647 = vmatmul.mubr.bf16.gmra.mxu0 %v4194_v19 }
 0x49a   : > { %v3916_v26 = vadd.f32 %v3915_v24, %v13711_v7  ;;  %v4110_v61 = vmax.f32 %v3914_v21, 0.0 }
 0x49b   : > { %v3919_v27 = vpop.f32.mrf.mxu1 }
 0x49c   : > { %v4111_v32 = vmax.f32 %v3916_v26, 0.0  ;;  %v4196_v34 = vpack.c.bf16 %v4110_v61, %v4108_v38  ;;  %v3920_v41 = vadd.f32 %v3919_v27, %v13714_v9 }
 0x49d   : > { %v3921_v29 = vpop.f32.mrf.mxu1 }
 0x49e   : > { %v4197_v2 = vpack.c.bf16 %v4111_v32, %v4109_v11  ;;  %v3922_v31 = vadd.f32 %v3921_v29, %v13711_v7  ;;  %v4112_v37 = vmax.f32 %v3920_v41, 0.0 }
 0x49f   : > { %v3923_v10 = vpop.f32.mrf.mxu1 }
 0x4a0   : > { %v3924_v35 = vadd.f32 %v3923_v10, %v13714_v9  ;;  %4656 = vmatprep.mubr.bf16.mxu0 %v4197_v2  ;;  %v4113_v49 = vmax.f32 %v3922_v31, 0.0 }
 0x4a1   : > { %v3925_v40 = vpop.f32.mrf.mxu1  ;;  %4657 = vmatmul.mubr.bf16.gmra.mxu0 %v4196_v34 }
 0x4a2   : > { %v3926_v20 = vadd.f32 %v3925_v40, %v13711_v7  ;;  %v4114_v39 = vmax.f32 %v3924_v35, 0.0 }
 0x4a3   : > { %v3929_v18 = vpop.f32.mrf.mxu1 }
 0x4a4   : > { %v4115_v44 = vmax.f32 %v3926_v20, 0.0  ;;  %v4198_v47 = vpack.c.bf16 %v4114_v39, %v4112_v37  ;;  %v3930_v51 = vadd.f32 %v3929_v18, %v13714_v9 }
 0x4a5   : > { %v3931_v45 = vpop.f32.mrf.mxu1 }
 0x4a6   : > { %v4199_v33 = vpack.c.bf16 %v4115_v44, %v4113_v49  ;;  %v3932_v36 = vadd.f32 %v3931_v45, %v13711_v7  ;;  %v4116_v55 = vmax.f32 %v3930_v51, 0.0 }
 0x4a7   : > { %v3933_v46 = vpop.f32.mrf.mxu1 }
 0x4a8   : > { %v3934_v16 = vadd.f32 %v3933_v46, %v13714_v9  ;;  %4666 = vmatprep.mubr.bf16.mxu0 %v4199_v33  ;;  %v4117_v30 = vmax.f32 %v3932_v36, 0.0 }
 0x4a9   : > { %v3935_v50 = vpop.f32.mrf.mxu1  ;;  %4667 = vmatmul.mubr.bf16.gmra.mxu0 %v4198_v47 }
 0x4aa   : > { %v3936_v5 = vadd.f32 %v3935_v50, %v13711_v7  ;;  %v4118_v53 = vmax.f32 %v3934_v16, 0.0 }
 0x4ab   : > { %v3939_v52 = vpop.f32.mrf.mxu1 }
 0x4ac   : > { %v4119_v54 = vmax.f32 %v3936_v5, 0.0  ;;  %v4200_v23 = vpack.c.bf16 %v4118_v53, %v4116_v55  ;;  %v3940_v63 = vadd.f32 %v3939_v52, %v13714_v9 }
 0x4ad   : > { %v3941_v48 = vpop.f32.mrf.mxu1 }
 0x4ae   : > { %v4201_v56 = vpack.c.bf16 %v4119_v54, %v4117_v30  ;;  %v3942_v58 = vadd.f32 %v3941_v48, %v13711_v7  ;;  %v4120_v43 = vmax.f32 %v3940_v63, 0.0 }
 0x4af   : > { %v3943_v57 = vpop.f32.mrf.mxu1 }
 0x4b0   : > { %v3944_v59 = vadd.f32 %v3943_v57, %v13714_v9  ;;  %4676 = vmatprep.mubr.bf16.mxu0 %v4201_v56  ;;  %v4121_v6 = vmax.f32 %v3942_v58, 0.0 }
 0x4b1   : > { %v3945_v60 = vpop.f32.mrf.mxu1  ;;  %4677 = vmatmul.mubr.bf16.gmra.mxu0 %v4200_v23 }
 0x4b2   : > { %v3946_v1 = vadd.f32 %v3945_v60, %v13711_v7  ;;  %v4122_v4 = vmax.f32 %v3944_v59, 0.0 }
 0x4b3   : > { %v3949_v3 = vpop.f32.mrf.mxu1 }
 0x4b4   : > { %v4123_v8 = vmax.f32 %v3946_v1, 0.0  ;;  %v4202_v22 = vpack.c.bf16 %v4122_v4, %v4120_v43  ;;  %v3950_v62 = vadd.f32 %v3949_v3, %v13714_v9 }
 0x4b5   : > { %v3951_v12 = vpop.f32.mrf.mxu1 }
 0x4b6   : > { %v4203_v13 = vpack.c.bf16 %v4123_v8, %v4121_v6  ;;  %v3952_v15 = vadd.f32 %v3951_v12, %v13711_v7  ;;  %v4124_v61 = vmax.f32 %v3950_v62, 0.0 }
 0x4b7   : > { %v3953_v14 = vpop.f32.mrf.mxu1 }
 0x4b8   : > { %v3954_v17 = vadd.f32 %v3953_v14, %v13714_v9  ;;  %4686 = vmatprep.mubr.bf16.mxu0 %v4203_v13  ;;  %v4125_v42 = vmax.f32 %v3952_v15, 0.0 }
 0x4b9   : > { %v3955_v19 = vpop.f32.mrf.mxu1  ;;  %4687 = vmatmul.mubr.bf16.gmra.mxu0 %v4202_v22 }
 0x4ba   : > { %v3956_v21 = vadd.f32 %v3955_v19, %v13711_v7  ;;  %v4126_v26 = vmax.f32 %v3954_v17, 0.0 }
 0x4bb   : > { %v3959_v24 = vpop.f32.mrf.mxu1 }
 0x4bc   : > { %v4127_v27 = vmax.f32 %v3956_v21, 0.0  ;;  %v4204_v38 = vpack.c.bf16 %v4126_v26, %v4124_v61  ;;  %v3960_v31 = vadd.f32 %v3959_v24, %v13714_v9  ;;  %v4252_v61 = vld [vmem:[%s16728_s30] sm:$0x3]  ;;  %s966_s30 = sand.u32 1, %s12397_s4  }
 0x4bd   : > { %v3961_v11 = vpop.f32.mrf.mxu1  ;;  %s10627_s19 = sshll.u32 %s966_s30, 9  ;;  %s16568_s9 = scalar_lea.sflag [#allocation4], %s966_s30 }
 0x4be   : > { %v4205_v32 = vpack.c.bf16 %v4127_v27, %v4125_v42  ;;  %v3962_v2 = vadd.f32 %v3961_v11, %v13711_v7  ;;  %v4128_v44 = vmax.f32 %v3960_v31, 0.0 }
 0x4bf   : > { %v3963_v29 = vpop.f32.mrf.mxu1 }
 0x4c0   : > { %v3964_v10 = vadd.f32 %v3963_v29, %v13714_v9  ;;  %4696 = vmatprep.mubr.bf16.mxu0 %v4205_v32  ;;  %v4129_v41 = vmax.f32 %v3962_v2, 0.0 }
 0x4c1   : > { %v3965_v34 = vpop.f32.mrf.mxu1  ;;  %v13925_v40 = vpop.f32.mrf.mxu0  ;;  %4697 = vmatmul.mubr.bf16.gmra.mxu0 %v4204_v38 }
 0x4c2   : > { %v3966_v35 = vadd.f32 %v3965_v34, %v13711_v7  ;;  %v4130_v20 = vmax.f32 %v3964_v10, 0.0 }
 0x4c3   : > { %v3969_v49 = vpop.f32.mrf.mxu1  ;;  %v13927_v39 = vpop.f32.mrf.mxu0 }
 0x4c4   : > { %v4131_v18 = vmax.f32 %v3966_v35, 0.0  ;;  %v4206_v46 = vpack.c.bf16 %v4130_v20, %v4128_v44  ;;  %v3970_v52 = vadd.f32 %v3969_v49, %v13714_v9  ;;  %v13965_v35 = vrot.slane %v4252_v61, %v12992_v28 }
 0x4c5   : > { %v3971_v45 = vpop.f32.mrf.mxu1  ;;  %v13929_v37 = vpop.f32.mrf.mxu0 }
 0x4c6   : > { %v4207_v33 = vpack.c.bf16 %v4131_v18, %v4129_v41  ;;  %v3972_v50 = vadd.f32 %v3971_v45, %v13711_v7  ;;  %v4132_v58 = vmax.f32 %v3970_v52, 0.0  ;;  %v13968_v18 = vrot.slane %v4252_v61, %v12984_v25 }
 0x4c7   : > { %v3973_v47 = vpop.f32.mrf.mxu1  ;;  %v13931_v36 = vpop.f32.mrf.mxu0 }
 0x4c8   : > { %4706 = vmatprep.mubr.bf16.mxu0 %v4207_v33  ;;  %v3974_v16 = vadd.f32 %v3973_v47, %v13714_v9  ;;  %v4133_v56 = vmax.f32 %v3972_v50, 0.0 }
 0x4c9   : > { %v3975_v51 = vpop.f32.mrf.mxu1  ;;  %v13935_v5 = vpop.f32.mrf.mxu0  ;;  %4707 = vmatmul.mubr.bf16.gmra.mxu0 %v4206_v46 }
 0x4ca   : > { %v3976_v30 = vadd.f32 %v3975_v51, %v13711_v7  ;;  %v4134_v48 = vmax.f32 %v3974_v16, 0.0 }
 0x4cb   : > { %v3979_v53 = vpop.f32.mrf.mxu1  ;;  %v13939_v54 = vpop.f32.mrf.mxu0 }
 0x4cc   : > { %v4135_v55 = vmax.f32 %v3976_v30, 0.0  ;;  %v4208_v1 = vpack.c.bf16 %v4134_v48, %v4132_v58  ;;  %v3980_v12 = vadd.f32 %v3979_v53, %v13714_v9 }
 0x4cd   : > { %v3981_v57 = vpop.f32.mrf.mxu1  ;;  %v13941_v23 = vpop.f32.mrf.mxu0 }
 0x4ce   : > { %v4209_v63 = vpack.c.bf16 %v4135_v55, %v4133_v56  ;;  %v3982_v6 = vadd.f32 %v3981_v57, %v13711_v7  ;;  %v4136_v21 = vmax.f32 %v3980_v12, 0.0 }
 0x4cf   : > { %v3983_v59 = vpop.f32.mrf.mxu1  ;;  %v13943_v60 = vpop.f32.mrf.mxu0 }
 0x4d0   : > { %v3984_v3 = vadd.f32 %v3983_v59, %v13714_v9  ;;  %4716 = vmatprep.mubr.bf16.mxu0 %v4209_v63  ;;  %v4137_v17 = vmax.f32 %v3982_v6, 0.0 }
 0x4d1   : > { %v3985_v4 = vpop.f32.mrf.mxu1  ;;  %v13947_v8 = vpop.f32.mrf.mxu0  ;;  %4717 = vmatmul.mubr.bf16.gmra.mxu0 %v4208_v1 }
 0x4d2   : > { %v3986_v43 = vadd.f32 %v3985_v4, %v13711_v7  ;;  %v4138_v22 = vmax.f32 %v3984_v3, 0.0 }
 0x4d3   : > { %v3989_v13 = vpop.f32.mrf.mxu1  ;;  %v13951_v14 = vpop.f32.mrf.mxu0 }
 0x4d4   : > { %v4139_v15 = vmax.f32 %v3986_v43, 0.0  ;;  %v4210_v27 = vpack.c.bf16 %v4138_v22, %v4136_v21  ;;  %v3990_v2 = vadd.f32 %v3989_v13, %v13714_v9  ;;  %v11802_v21 = vld [vmem:[#allocation11 + $0x70] ss:$8 sps:$4 sm:$0xff]  }
 0x4d5   : > { %v3991_v19 = vpop.f32.mrf.mxu1  ;;  %v13953_v62 = vpop.f32.mrf.mxu0 }
 0x4d6   : > { %v4211_v26 = vpack.c.bf16 %v4139_v15, %v4137_v17  ;;  %v3992_v32 = vadd.f32 %v3991_v19, %v13711_v7  ;;  %v4140_v33 = vmax.f32 %v3990_v2, 0.0 }
 0x4d7   : > { %v3993_v24 = vpop.f32.mrf.mxu1  ;;  %v13955_v42 = vpop.f32.mrf.mxu0 }
 0x4d8   : > { %v3994_v11 = vadd.f32 %v3993_v24, %v13714_v9  ;;  %4726 = vmatprep.mubr.bf16.mxu0 %v4211_v26  ;;  %v4141_v49 = vmax.f32 %v3992_v32, 0.0 }
 0x4d9   : > { %v3995_v29 = vpop.f32.mrf.mxu1  ;;  %v4488_v38 = vpop.f32.mrf.mxu0  ;;  %4727 = vmatmul.mubr.bf16.gmra.mxu0 %v4210_v27 }
 0x4da   : > { %v3996_v10 = vadd.f32 %v3995_v29, %v13711_v7  ;;  %v4142_v41 = vmax.f32 %v3994_v11, 0.0  ;;  %v4489_v30 = vadd.f32 %v4488_v38, %v13965_v35  ;;  %v11813_v11 = vld [vmem:[#allocation11 + $0x64] ss:$8 sps:$4 sm:$0xff]  }
 0x4db   : > { %v3999_v34 = vpop.f32.mrf.mxu1  ;;  %v4490_v31 = vpop.f32.mrf.mxu0 }
 0x4dc   : > { %v4143_v20 = vmax.f32 %v3996_v10, 0.0  ;;  %v4491_v47 = vadd.f32 %v4490_v31, %v13968_v18  ;;  %v4212_v52 = vpack.c.bf16 %v4142_v41, %v4140_v33  ;;  %v4000_v58 = vadd.f32 %v3999_v34, %v13714_v9 }
 0x4dd   : > { %v4001_v44 = vpop.f32.mrf.mxu1  ;;  %v4492_v45 = vpop.f32.mrf.mxu0  ;;  %v4789_v12 = vmax.f32 %v4489_v30, 0.0 }
 0x4de   : > { %v4493_v46 = vadd.f32 %v4492_v45, %v13965_v35  ;;  %v4213_v51 = vpack.c.bf16 %v4143_v20, %v4141_v49  ;;  %v4002_v55 = vadd.f32 %v4001_v44, %v13711_v7  ;;  %v4790_v3 = vmax.f32 %v4491_v47, 0.0  ;;  %v11811_v44 = vld [vmem:[#allocation11 + $0x60] ss:$8 sps:$4 sm:$0xff]  }
 0x4df   : > { %v4003_v16 = vpop.f32.mrf.mxu1  ;;  %v4494_v50 = vpop.f32.mrf.mxu0  ;;  %v4144_v24 = vmax.f32 %v4000_v58, 0.0 }
 0x4e0   : > { %v4004_v53 = vadd.f32 %v4003_v16, %v13714_v9  ;;  %v4495_v48 = vadd.f32 %v4494_v50, %v13968_v18  ;;  %4736 = vmatprep.mubr.bf16.mxu0 %v4213_v51  ;;  %v4791_v59 = vmax.f32 %v4493_v46, 0.0  ;;  %v4145_v22 = vmax.f32 %v4002_v55, 0.0  ;;  %v11819_v16 = vld [vmem:[#allocation11 + $0x54] ss:$8 sps:$4 sm:$0xff]  }
 0x4e1   : > { %v4005_v56 = vpop.f32.mrf.mxu1  ;;  %v4498_v57 = vpop.f32.mrf.mxu0  ;;  %4737 = vmatmul.mubr.bf16.gmra.mxu0 %v4212_v52 }
 0x4e2   : > { %v4792_v63 = vmax.f32 %v4495_v48, 0.0  ;;  %v4006_v1 = vadd.f32 %v4005_v56, %v13711_v7  ;;  %v4146_v43 = vmax.f32 %v4004_v53, 0.0  ;;  %v4911_v26 = vpack.c.bf16 %v4791_v59, %v4789_v12  ;;  %v11817_v59 = vld [vmem:[#allocation11 + $0x50] ss:$8 sps:$4 sm:$0xff]  }
 0x4e3   : > { %v4009_v6 = vpop.f32.mrf.mxu1  ;;  %v4500_v4 = vpop.f32.mrf.mxu0  ;;  %v4499_v10 = vadd.f32 %v4498_v57, %v13965_v35 }
 0x4e4   : > { %v4147_v13 = vmax.f32 %v4006_v1, 0.0  ;;  %v4912_v19 = vpack.c.bf16 %v4792_v63, %v4790_v3  ;;  %v4501_v61 = vadd.f32 %v4500_v4, %v13968_v18  ;;  %v4214_v2 = vpack.c.bf16 %v4146_v43, %v4144_v24  ;;  %v11822_v4 = vld [vmem:[#allocation11 + $0x44] ss:$8 sps:$4 sm:$0xff]  }
 0x4e5   : > { %v4011_v15 = vpop.f32.mrf.mxu1  ;;  %v4502_v17 = vpop.f32.mrf.mxu0  ;;  %v4010_v45 = vadd.f32 %v4009_v6, %v13714_v9  ;;  %v4793_v30 = vmax.f32 %v4499_v10, 0.0  ;;  %v4465_v24 = vadd.f32 %v13931_v36, %v13968_v18  ;;  %v11825_v10 = vld [vmem:[#allocation11 + $0x34] ss:$8 sps:$4 sm:$0xff]  }
 0x4e6   : > { %v4503_v27 = vadd.f32 %v4502_v17, %v13965_v35  ;;  %5232 = vmatprep.mubr.bf16.mxu1 %v4912_v19  ;;  %v4215_v38 = vpack.c.bf16 %v4147_v13, %v4145_v22  ;;  %v4012_v41 = vadd.f32 %v4011_v15, %v13711_v7  ;;  %v4794_v50 = vmax.f32 %v4501_v61, 0.0  ;;  %v11820_v61 = vld [vmem:[#allocation11 + $0x40] ss:$8 sps:$4 sm:$0xff]  }
 0x4e7   : > { %v4013_v32 = vpop.f32.mrf.mxu1  ;;  %v4504_v29 = vpop.f32.mrf.mxu0  ;;  %5233 = vmatmul.mubr.bf16.vlgmr.msra.gmra.mxu1 %v4911_v26  ;;  %v4148_v63 = vmax.f32 %v4010_v45, 0.0  ;;  %v4780_v45 = vmax.f32 %v4465_v24, 0.0 }
 0x4e8   : > { %v4014_v34 = vadd.f32 %v4013_v32, %v13714_v9  ;;  %v4505_v31 = vadd.f32 %v4504_v29, %v13968_v18  ;;  %4746 = vmatprep.mubr.bf16.mxu0 %v4215_v38  ;;  %6452 = vmatpush1.bf16.msra.mxu1 %v11802_v21  ;;  %v4795_v33 = vmax.f32 %v4503_v27, 0.0  ;;  %v4149_v55 = vmax.f32 %v4012_v41, 0.0 }
 0x4e9   : > { %v4015_v20 = vpop.f32.mrf.mxu1  ;;  %v4508_v49 = vpop.f32.mrf.mxu0  ;;  %4747 = vmatmul.mubr.bf16.gmra.mxu0 %v4214_v2  ;;  %6453 = vmatprep.subr.bf16.mxu1 %v11813_v11 }
 0x4ea   : > { %v4796_v46 = vmax.f32 %v4505_v31, 0.0  ;;  %v4016_v47 = vadd.f32 %v4015_v20, %v13711_v7  ;;  %v4150_v53 = vmax.f32 %v4014_v34, 0.0  ;;  %v4913_v1 = vpack.c.bf16 %v4795_v33, %v4793_v30 }
 0x4eb   : > { %v4019_v51 = vpop.f32.mrf.mxu1  ;;  %v4510_v52 = vpop.f32.mrf.mxu0  ;;  %v4509_v12 = vadd.f32 %v4508_v49, %v13965_v35  ;;  %v4461_v34 = vadd.f32 %v13927_v39, %v13968_v18  ;;  %v11828_v39 = vld [vmem:[#allocation11 + $0x24] ss:$8 sps:$4 sm:$0xff]  }
 0x4ec   : > { %v4151_v48 = vmax.f32 %v4016_v47, 0.0  ;;  %v4914_v58 = vpack.c.bf16 %v4796_v46, %v4794_v50  ;;  %6454 = vmatpush1.bf16.msra.mxu1 %v11811_v44  ;;  %v4511_v3 = vadd.f32 %v4510_v52, %v13968_v18  ;;  %v4216_v15 = vpack.c.bf16 %v4150_v53, %v4148_v63 }
 0x4ed   : > { %v4021_v56 = vpop.f32.mrf.mxu1  ;;  %v4512_v57 = vpop.f32.mrf.mxu0  ;;  %6455 = vmatprep.subr.bf16.mxu1 %v11819_v16  ;;  %v4020_v32 = vadd.f32 %v4019_v51, %v13714_v9  ;;  %v4797_v31 = vmax.f32 %v4509_v12, 0.0  ;;  %v4778_v51 = vmax.f32 %v4461_v34, 0.0  ;;  %v4463_v52 = vadd.f32 %v13929_v37, %v13965_v35 }
 0x4ee   : > { %v4513_v6 = vadd.f32 %v4512_v57, %v13965_v35  ;;  %5242 = vmatprep.mubr.bf16.mxu1 %v4914_v58  ;;  %v4217_v22 = vpack.c.bf16 %v4151_v48, %v4149_v55  ;;  %v4022_v17 = vadd.f32 %v4021_v56, %v13711_v7  ;;  %v4798_v29 = vmax.f32 %v4511_v3, 0.0 }
 0x4ef   : > { %v4023_v43 = vpop.f32.mrf.mxu1  ;;  %v4514_v13 = vpop.f32.mrf.mxu0  ;;  %5243 = vmatmul.mubr.bf16.gmra.mxu1 %v4913_v1  ;;  %v4152_v47 = vmax.f32 %v4020_v32, 0.0  ;;  %v4475_v56 = vadd.f32 %v13943_v60, %v13968_v18  ;;  %v4906_v58 = vpack.c.bf16 %v4780_v45, %v4778_v51  ;;  %v4459_v63 = vadd.f32 %v13925_v40, %v13965_v35 }
 0x4f0   : > { %v4024_v19 = vadd.f32 %v4023_v43, %v13714_v9  ;;  %v4515_v21 = vadd.f32 %v4514_v13, %v13968_v18  ;;  %v4799_v26 = vmax.f32 %v4513_v6, 0.0  ;;  %4756 = vmatprep.mubr.bf16.mxu0 %v4217_v22  ;;  %6456 = vmatpush1.bf16.msra.mxu1 %v11817_v59  ;;  %v4153_v41 = vmax.f32 %v4022_v17, 0.0  ;;  %v11823_v9 = vld [vmem:[#allocation11 + $0x30] ss:$8 sps:$4 sm:$0xff]   ;;  %v11826_v59 = vld [vmem:[#allocation11 + $0x20] ss:$8 sps:$4 sm:$0xff]  }
 0x4f1   : > { %v4025_v27 = vpop.f32.mrf.mxu1  ;;  %v4518_v11 = vpop.f32.mrf.mxu0  ;;  %4757 = vmatmul.mubr.bf16.gmra.mxu0 %v4216_v15  ;;  %6457 = vmatprep.subr.bf16.mxu1 %v11822_v4  ;;  %v11831_v6 = vld [vmem:[#allocation11 + $0x14] ss:$8 sps:$4 sm:$0xff]   ;;  %v4471_v4 = vadd.f32 %v13939_v54, %v13968_v18  ;;  %v4779_v43 = vmax.f32 %v4463_v52, 0.0  ;;  %v4784_v22 = vmax.f32 %v4475_v56, 0.0  ;;  %v11829_v17 = vld [vmem:[#allocation11 + $0x10] ss:$8 sps:$4 sm:$0xff]   ;;  %v4473_v54 = vadd.f32 %v13941_v23, %v13965_v35 }
 0x4f2   : > { %v4800_v38 = vmax.f32 %v4515_v21, 0.0  ;;  %v4026_v2 = vadd.f32 %v4025_v27, %v13711_v7  ;;  %v4154_v20 = vmax.f32 %v4024_v19, 0.0  ;;  %v4915_v33 = vpack.c.bf16 %v4799_v26, %v4797_v31  ;;  %v11834_v26 = vld [vmem:[#allocation11 + $0x4] ss:$8 sps:$4 sm:$0xff]   ;;  %v11808_v56 = vld [vmem:[#allocation10 + $0x10] ss:$8 sps:$4 sm:$0xff]  }
 0x4f3   : > { %v4520_v36 = vpop.f32.mrf.mxu0  ;;  %v4519_v48 = vadd.f32 %v4518_v11, %v13965_v35  ;;  %v4777_v19 = vmax.f32 %v4459_v63, 0.0  ;;  %v4782_v27 = vmax.f32 %v4471_v4, 0.0  ;;  %v4485_v34 = vadd.f32 %v13955_v42, %v13968_v18  ;;  %v11816_v63 = vld [vmem:[#allocation10 + $0x4] ss:$8 sps:$4 sm:$0xff]  }
 0x4f4   : > { %v4155_v49 = vmax.f32 %v4026_v2, 0.0  ;;  %v4916_v44 = vpack.c.bf16 %v4800_v38, %v4798_v29  ;;  %6458 = vmatpush1.bf16.msra.mxu1 %v11820_v61  ;;  %v4521_v7 = vadd.f32 %v4520_v36, %v13968_v18  ;;  %v4218_v53 = vpack.c.bf16 %v4154_v20, %v4152_v47  ;;  %v11799_v61 = vld [vmem:[#allocation10 + $0x30] ss:$8 sps:$4 sm:$0xff]   ;;  %v11807_v2 = vld [vmem:[#allocation10 + $0x24] ss:$8 sps:$4 sm:$0xff]  }
 0x4f5   : > { %v4522_v46 = vpop.f32.mrf.mxu0  ;;  %6459 = vmatprep.subr.bf16.mxu1 %v11825_v10  ;;  %v4801_v60 = vmax.f32 %v4519_v48, 0.0  ;;  %v4905_v32 = vpack.c.bf16 %v4779_v43, %v4777_v19  ;;  %v4469_v10 = vadd.f32 %v13935_v5, %v13965_v35  ;;  %v4908_v36 = vpack.c.bf16 %v4784_v22, %v4782_v27  ;;  %v11810_v47 = vld [vmem:[#allocation10 + $0x14] ss:$8 sps:$4 sm:$0xff]  }
 0x4f6   : > { %v4523_v16 = vadd.f32 %v4522_v46, %v13965_v35  ;;  %5252 = vmatprep.mubr.bf16.mxu1 %v4916_v44  ;;  %v4219_v50 = vpack.c.bf16 %v4155_v49, %v4153_v41  ;;  %v4802_v1 = vmax.f32 %v4521_v7, 0.0  ;;  %v11832_v41 = vld [vmem:[#allocation11] ss:$8 sps:$4 sm:$0xff]   ;;  %v11837_v44 = vld [vmem:[#allocation11 + $0xf4] ss:$8 sps:$4 sm:$0xff]   ;;  %v4783_v45 = vmax.f32 %v4473_v54, 0.0 }
 0x4f7   : > { %v4524_v30 = vpop.f32.mrf.mxu0  ;;  %5253 = vmatmul.mubr.bf16.gmra.mxu1 %v4915_v33  ;;  %v4481_v33 = vadd.f32 %v13951_v14, %v13968_v18  ;;  %v11805_v46 = vld [vmem:[#allocation10 + $0x20] ss:$8 sps:$4 sm:$0xff]   ;;  %v4781_v7 = vmax.f32 %v4469_v10, 0.0  ;;  %v11840_v14 = vld [vmem:[#allocation11 + $0xe4] ss:$8 sps:$4 sm:$0xff]  }
 0x4f8   : > { %v4525_v55 = vadd.f32 %v4524_v30, %v13968_v18  ;;  %4766 = vmatprep.mubr.bf16.mxu0 %v4219_v50  ;;  %6460 = vmatpush1.bf16.msra.mxu1 %v11823_v9  ;;  %v4803_v37 = vmax.f32 %v4523_v16, 0.0  ;;  %v4788_v16 = vmax.f32 %v4485_v34, 0.0 }
 0x4f9   : > { %v4528_v57 = vpop.f32.mrf.mxu0  ;;  %4767 = vmatmul.mubr.bf16.gmra.mxu0 %v4218_v53  ;;  %6461 = vmatprep.subr.bf16.mxu1 %v11828_v39  ;;  %v11835_v39 = vld [vmem:[#allocation11 + $0xf0] ss:$8 sps:$4 sm:$0xff]   ;;  %v4907_v53 = vpack.c.bf16 %v4783_v45, %v4781_v7  ;;  %v4786_v48 = vmax.f32 %v4481_v33, 0.0 }
 0x4fa   : > { %v4804_v3 = vmax.f32 %v4525_v55, 0.0  ;;  %5202 = vmatprep.mubr.bf16.mxu0 %v4906_v58  ;;  %v4917_v40 = vpack.c.bf16 %v4803_v37, %v4801_v60  ;;  %v4529_v29 = vadd.f32 %v4528_v57, %v13965_v35  ;;  %v4483_v57 = vadd.f32 %v13953_v62, %v13965_v35  ;;  %v11814_v60 = vld [vmem:[#allocation10] ss:$8 sps:$4 sm:$0xff]  }
 0x4fb   : > { %v4530_v12 = vpop.f32.mrf.mxu0  ;;  %v4910_v37 = vpack.c.bf16 %v4788_v16, %v4786_v48 }
 0x4fc   : > { %v4918_v13 = vpack.c.bf16 %v4804_v3, %v4802_v1  ;;  %6462 = vmatpush1.bf16.msra.mxu1 %v11826_v59  ;;  %v4531_v21 = vadd.f32 %v4530_v12, %v13968_v18  ;;  %v4805_v9 = vmax.f32 %v4529_v29, 0.0  ;;  %v11838_v3 = vld [vmem:[#allocation11 + $0xe0] ss:$8 sps:$4 sm:$0xff]  }
 0x4fd   : > { %v4532_v15 = vpop.f32.mrf.mxu0  ;;  %6463 = vmatprep.subr.bf16.mxu1 %v11831_v6  ;;  %v4479_v6 = vadd.f32 %v13947_v8, %v13965_v35 }
 0x4fe   : > { %v4533_v24 = vadd.f32 %v4532_v15, %v13965_v35  ;;  %5262 = vmatprep.mubr.bf16.mxu1 %v4918_v13  ;;  %v4806_v23 = vmax.f32 %v4531_v21, 0.0  ;;  %v4787_v13 = vmax.f32 %v4483_v57, 0.0 }
 0x4ff   : > { %v4534_v11 = vpop.f32.mrf.mxu0  ;;  %5263 = vmatmul.mubr.bf16.gmra.mxu1 %v4917_v40  ;;  %v4785_v19 = vmax.f32 %v4479_v6, 0.0 }
 0x500   : > { %v4535_v38 = vadd.f32 %v4534_v11, %v13968_v18  ;;  %6464 = vmatpush1.bf16.msra.mxu1 %v11829_v17  ;;  %v4807_v20 = vmax.f32 %v4533_v24, 0.0 }
 0x501   : > { %v4538_v31 = vpop.f32.mrf.mxu0  ;;  %5203 = vmatmul.mubr.bf16.vlgmr.msra.gmra.mxu0 %v4905_v32  ;;  %6465 = vmatprep.subr.bf16.mxu1 %v11834_v26  ;;  %v4909_v26 = vpack.c.bf16 %v4787_v13, %v4785_v19 }
 0x502   : > { %v4808_v49 = vmax.f32 %v4535_v38, 0.0  ;;  %5572 = vmatpush1.bf16.msra.mxu0 %v11799_v61  ;;  %5212 = vmatprep.mubr.bf16.mxu0 %v4908_v36  ;;  %v4919_v51 = vpack.c.bf16 %v4807_v20, %v4805_v9  ;;  %v4539_v58 = vadd.f32 %v4538_v31, %v13965_v35  ;;  %v11841_v31 = vld [vmem:[#allocation11 + $0xd0] ss:$8 sps:$4 sm:$0xff]   ;;  %v11843_v36 = vld [vmem:[#allocation11 + $0xd4] ss:$8 sps:$4 sm:$0xff]  }
 0x503   : > { %v4540_v5 = vpop.f32.mrf.mxu0  ;;  %5573 = vmatprep.subr.bf16.mxu0 %v11807_v2 }
 0x504   : > { %v4920_v42 = vpack.c.bf16 %v4808_v49, %v4806_v23  ;;  %6466 = vmatpush1.bf16.msra.mxu1 %v11832_v41  ;;  %v4541_v52 = vadd.f32 %v4540_v5, %v13968_v18  ;;  %v4809_v22 = vmax.f32 %v4539_v58, 0.0  ;;  %v12030_v58 = vld [vmem:[%s12753_s29 + $0x8] sm:$0xff]  }
 0x505   : > { %v4542_v50 = vpop.f32.mrf.mxu0  ;;  %6467 = vmatprep.subr.bf16.mxu1 %v11837_v44 }
 0x506   : > { %v4543_v30 = vadd.f32 %v4542_v50, %v13965_v35  ;;  %5272 = vmatprep.mubr.bf16.mxu1 %v4920_v42  ;;  %5574 = vmatpush1.bf16.msra.mxu0 %v11805_v46  ;;  %v4810_v4 = vmax.f32 %v4541_v52, 0.0  ;;  %v12029_v42 = vld [vmem:[%s12753_s29] sm:$0xff]  }
 0x507   : > { %v4544_v55 = vpop.f32.mrf.mxu0  ;;  %5273 = vmatmul.mubr.bf16.gmra.mxu1 %v4919_v51  ;;  %5575 = vmatprep.subr.bf16.mxu0 %v11810_v47 }
 0x508   : > { %v4545_v59 = vadd.f32 %v4544_v55, %v13968_v18  ;;  %6468 = vmatpush2.bf16.msra.mxu1 %v11835_v39  ;;  %v4811_v12 = vmax.f32 %v4543_v30, 0.0 }
 0x509   : > { %v4548_v1 = vpop.f32.mrf.mxu0  ;;  %5213 = vmatmul.mubr.bf16.gmra.mxu0 %v4907_v53  ;;  %6469 = vmatprep.subr.bf16.mxu1 %v11840_v14 }
 0x50a   : > { %v4812_v43 = vmax.f32 %v4545_v59, 0.0  ;;  %5222 = vmatprep.mubr.bf16.mxu0 %v4910_v37  ;;  %5576 = vmatpush1.bf16.msra.mxu0 %v11808_v56  ;;  %v4921_v40 = vpack.c.bf16 %v4811_v12, %v4809_v22  ;;  %v4549_v27 = vadd.f32 %v4548_v1, %v13965_v35  ;;  %v11846_v1 = vld [vmem:[#allocation11 + $0xc4] ss:$8 sps:$4 sm:$0xff]  }
 0x50b   : > { %v4550_v62 = vpop.f32.mrf.mxu0  ;;  %5577 = vmatprep.subr.bf16.mxu0 %v11816_v63  ;;  %v11844_v63 = vld [vmem:[#allocation11 + $0xc0] ss:$8 sps:$4 sm:$0xff]  }
 0x50c   : > { %v4922_v15 = vpack.c.bf16 %v4812_v43, %v4810_v4  ;;  %6470 = vmatpush2.bf16.msra.mxu1 %v11838_v3  ;;  %v4551_v21 = vadd.f32 %v4550_v62, %v13968_v18  ;;  %v4813_v2 = vmax.f32 %v4549_v27, 0.0 }
 0x50d   : > { %v4552_v17 = vpop.f32.mrf.mxu0  ;;  %6471 = vmatprep.subr.bf16.mxu1 %v11843_v36 }
 0x50e   : > { %v4553_v8 = vadd.f32 %v4552_v17, %v13965_v35  ;;  %5282 = vmatprep.mubr.bf16.mxu1 %v4922_v15  ;;  %5578 = vmatpush1.bf16.msra.mxu0 %v11814_v60  ;;  %v4814_v61 = vmax.f32 %v4551_v21, 0.0 }
 0x50f   : > { %v4554_v24 = vpop.f32.mrf.mxu0  ;;  %5283 = vmatmul.mubr.bf16.gmra.mxu1 %v4921_v40  ;;  %v12031_v40 = vld [vmem:[%s12753_s29 + $0x10] sm:$0xff]  }
 0x510   : > { %v4555_v54 = vadd.f32 %v4554_v24, %v13968_v18  ;;  %v4815_v32 = vmax.f32 %v4553_v8, 0.0  ;;  %6472 = vmatpush2.bf16.msra.mxu1 %v11841_v31  ;;  %v12032_v31 = vld [vmem:[%s12753_s29 + $0x18] sm:$0xff]  }
 0x511   : > { %v4558_v11 = vpop.f32.mrf.mxu0  ;;  %5223 = vmatmul.mubr.bf16.gmra.mxu0 %v4909_v26  ;;  %6473 = vmatprep.subr.bf16.mxu1 %v11846_v1 }
 0x512   : > { %v4816_v29 = vmax.f32 %v4555_v54, 0.0  ;;  %5595 = vmatprep.mubr.bf16.mxu0 %v12421_v0  ;;  %v4923_v41 = vpack.c.bf16 %v4815_v32, %v4813_v2  ;;  %v4559_v44 = vadd.f32 %v4558_v11, %v13965_v35 }
 0x513   : > { %v4560_v38 = vpop.f32.mrf.mxu0 }
 0x514   : > { %v4924_v10 = vpack.c.bf16 %v4816_v29, %v4814_v61  ;;  %v4561_v23 = vadd.f32 %v4560_v38, %v13968_v18  ;;  %v4817_v7 = vmax.f32 %v4559_v44, 0.0  ;;  %6474 = vmatpush2.bf16.msra.mxu1 %v11844_v63 }
 0x515   : > { %v4562_v34 = vpop.f32.mrf.mxu0 }
 0x516   : > { %v4563_v20 = vadd.f32 %v4562_v34, %v13965_v35  ;;  %5292 = vmatprep.mubr.bf16.mxu1 %v4924_v10  ;;  %v4818_v5 = vmax.f32 %v4561_v23, 0.0  ;;  %v11849_v23 = vld [vmem:[#allocation11 + $0xb4] ss:$8 sps:$4 sm:$0xff]  }
 0x517   : > { %v4564_v49 = vpop.f32.mrf.mxu0  ;;  %5293 = vmatmul.mubr.bf16.gmra.mxu1 %v4923_v41  ;;  %v11847_v41 = vld [vmem:[#allocation11 + $0xb0] ss:$8 sps:$4 sm:$0xff]   ;;  %6475 = vmatprep.subr.bf16.mxu1 %v11849_v23 }
 0x518   : > { %v4565_v45 = vadd.f32 %v4564_v49, %v13968_v18  ;;  %v4819_v46 = vmax.f32 %v4563_v20, 0.0  ;;  %6476 = vmatpush2.bf16.msra.mxu1 %v11847_v41 }
 0x519   : > { %v4568_v33 = vpop.f32.mrf.mxu0  ;;  %10872 = vmatmul.mubr.msk.bf16.vlgmr.msra.gmra.mxu0 %vm1331_vm0, %v12029_v42 }
 0x51a   : > { %v4820_v9 = vmax.f32 %v4565_v45, 0.0  ;;  %5605 = vmatprep.mubr.bf16.mxu0 %v12421_v0  ;;  %v4925_v39 = vpack.c.bf16 %v4819_v46, %v4817_v7  ;;  %v4569_v14 = vadd.f32 %v4568_v33, %v13965_v35 }
 0x51b   : > { %v4570_v47 = vpop.f32.mrf.mxu0 }
 0x51c   : > { %v4926_v16 = vpack.c.bf16 %v4820_v9, %v4818_v5  ;;  %v4571_v51 = vadd.f32 %v4570_v47, %v13968_v18  ;;  %v4821_v37 = vmax.f32 %v4569_v14, 0.0 }
 0x51d   : > { %v4572_v50 = vpop.f32.mrf.mxu0 }
 0x51e   : > { %v4573_v52 = vadd.f32 %v4572_v50, %v13965_v35  ;;  %5302 = vmatprep.mubr.bf16.mxu1 %v4926_v16  ;;  %v4822_v55 = vmax.f32 %v4571_v51, 0.0 }
 0x51f   : > { %v4574_v30 = vpop.f32.mrf.mxu0  ;;  %5303 = vmatmul.mubr.bf16.gmra.mxu1 %v4925_v39  ;;  %v12033_v39 = vld [vmem:[%s12753_s29 + $0x20] sm:$0xff]  }
 0x520   : > { %v4575_v53 = vadd.f32 %v4574_v30, %v13968_v18  ;;  %v4823_v56 = vmax.f32 %v4573_v52, 0.0  ;;  %v11850_v52 = vld [vmem:[#allocation13 + $0x70] ss:$8 sps:$4 sm:$0xff]   ;;  %v11852_v30 = vld [vmem:[#allocation13 + $0x74] ss:$8 sps:$4 sm:$0xff]  }
 0x521   : > { %v4578_v48 = vpop.f32.mrf.mxu0  ;;  %10873 = vmatmul.mubr.msk.bf16.gmra.mxu0 %vm1331_vm0, %v12030_v58  ;;  %7200 = vmatprep.subr.bf16.mxu0 %v11852_v30  ;;  %v11864_v30 = vld [vmem:[#allocation13 + $0x54] ss:$8 sps:$4 sm:$0xff]  }
 0x522   : > { %v4824_v57 = vmax.f32 %v4575_v53, 0.0  ;;  %5615 = vmatprep.mubr.bf16.mxu0 %v12421_v0  ;;  %v4927_v4 = vpack.c.bf16 %v4823_v56, %v4821_v37  ;;  %v4579_v60 = vadd.f32 %v4578_v48, %v13965_v35  ;;  %7201 = vmatpush1.bf16.msra.mxu0 %v11850_v52  ;;  %v11862_v52 = vld [vmem:[#allocation13 + $0x50] ss:$8 sps:$4 sm:$0xff]  }
 0x523   : > { %v4580_v59 = vpop.f32.mrf.mxu0 }
 0x524   : > { %v4928_v3 = vpack.c.bf16 %v4824_v57, %v4822_v55  ;;  %v4581_v12 = vadd.f32 %v4580_v59, %v13968_v18  ;;  %v4825_v8 = vmax.f32 %v4579_v60, 0.0 }
 0x525   : > { %v4582_v6 = vpop.f32.mrf.mxu0 }
 0x526   : > { %v4583_v43 = vadd.f32 %v4582_v6, %v13965_v35  ;;  %5312 = vmatprep.mubr.bf16.mxu1 %v4928_v3  ;;  %v4826_v15 = vmax.f32 %v4581_v12, 0.0 }
 0x527   : > { %v4584_v62 = vpop.f32.mrf.mxu0  ;;  %5313 = vmatmul.mubr.bf16.gmra.mxu1 %v4927_v4  ;;  %v12034_v4 = vld [vmem:[%s12753_s29 + $0x28] sm:$0xff]  }
 0x528   : > { %v4585_v13 = vadd.f32 %v4584_v62, %v13968_v18  ;;  %v4827_v17 = vmax.f32 %v4583_v43, 0.0  ;;  %v11853_v43 = vld [vmem:[#allocation11 + $0xa0] ss:$8 sps:$4 sm:$0xff]   ;;  %v11855_v62 = vld [vmem:[#allocation11 + $0xa4] ss:$8 sps:$4 sm:$0xff]  }
 0x529   : > { %v4588_v22 = vpop.f32.mrf.mxu0  ;;  %10874 = vmatmul.mubr.msk.bf16.gmra.mxu0 %vm1331_vm0, %v12031_v40  ;;  %6477 = vmatprep.subr.bf16.mxu1 %v11855_v62  ;;  %v11865_v62 = vld [vmem:[#allocation11 + $0x80] ss:$8 sps:$4 sm:$0xff]  }
 0x52a   : > { %v4828_v19 = vmax.f32 %v4585_v13, 0.0  ;;  %5625 = vmatprep.mubr.bf16.mxu0 %v12421_v0  ;;  %v4929_v27 = vpack.c.bf16 %v4827_v17, %v4825_v8  ;;  %v4589_v32 = vadd.f32 %v4588_v22, %v13965_v35  ;;  %6478 = vmatpush2.bf16.msra.mxu1 %v11853_v43  ;;  %v11858_v8 = vld [vmem:[#allocation13 + $0x64] ss:$8 sps:$4 sm:$0xff]  }
 0x52b   : > { %v4590_v21 = vpop.f32.mrf.mxu0  ;;  %7202 = vmatprep.subr.bf16.mxu0 %v11858_v8 }
 0x52c   : > { %v4930_v24 = vpack.c.bf16 %v4828_v19, %v4826_v15  ;;  %v4591_v54 = vadd.f32 %v4590_v21, %v13968_v18  ;;  %v4829_v20 = vmax.f32 %v4589_v32, 0.0  ;;  %v11856_v21 = vld [vmem:[#allocation13 + $0x60] ss:$8 sps:$4 sm:$0xff]  }
 0x52d   : > { %v4592_v26 = vpop.f32.mrf.mxu0  ;;  %v12035_v32 = vld [vmem:[%s12753_s29 + $0x30] sm:$0xff]   ;;  %7203 = vmatpush1.bf16.msra.mxu0 %v11856_v21  ;;  %v12038_v21 = vld [vmem:[%s12753_s29 + $0x48] sm:$0xff]  }
 0x52e   : > { %v4593_v11 = vadd.f32 %v4592_v26, %v13965_v35  ;;  %5322 = vmatprep.mubr.bf16.mxu1 %v4930_v24  ;;  %v4830_v2 = vmax.f32 %v4591_v54, 0.0  ;;  %7204 = vmatprep.subr.bf16.mxu0 %v11864_v30 }
 0x52f   : > { %v4594_v61 = vpop.f32.mrf.mxu0  ;;  %5323 = vmatmul.mubr.bf16.gmra.mxu1 %v4929_v27 }
 0x530   : > { %v4595_v29 = vadd.f32 %v4594_v61, %v13968_v18  ;;  %v4831_v10 = vmax.f32 %v4593_v11, 0.0 }
 0x531   : > { %v4598_v38 = vpop.f32.mrf.mxu0  ;;  %10875 = vmatmul.mubr.msk.bf16.gmra.mxu0 %vm1331_vm0, %v12032_v31 }
 0x532   : > { %v4832_v34 = vmax.f32 %v4595_v29, 0.0  ;;  %5635 = vmatprep.mubr.bf16.mxu0 %v12421_v0  ;;  %v4931_v45 = vpack.c.bf16 %v4831_v10, %v4829_v20  ;;  %v4599_v9 = vadd.f32 %v4598_v38, %v13965_v35  ;;  %v11859_v10 = vld [vmem:[#allocation11 + $0x90] ss:$8 sps:$4 sm:$0xff]   ;;  %7205 = vmatpush1.bf16.msra.mxu0 %v11862_v52 }
 0x533   : > { %v4600_v36 = vpop.f32.mrf.mxu0 }
 0x534   : > { %v4932_v49 = vpack.c.bf16 %v4832_v34, %v4830_v2  ;;  %v4601_v33 = vadd.f32 %v4600_v36, %v13968_v18  ;;  %v4833_v14 = vmax.f32 %v4599_v9, 0.0  ;;  %v11861_v34 = vld [vmem:[#allocation11 + $0x94] ss:$8 sps:$4 sm:$0xff]  }
 0x535   : > { %v4602_v44 = vpop.f32.mrf.mxu0  ;;  %6479 = vmatprep.subr.bf16.mxu1 %v11861_v34  ;;  %v12036_v9 = vld [vmem:[%s12753_s29 + $0x38] sm:$0xff]  }
 0x536   : > { %v4603_v5 = vadd.f32 %v4602_v44, %v13965_v35  ;;  %5332 = vmatprep.mubr.bf16.mxu1 %v4932_v49  ;;  %v4834_v7 = vmax.f32 %v4601_v33, 0.0  ;;  %6480 = vmatpush2.bf16.msra.mxu1 %v11859_v10 }
 0x537   : > { %v4604_v46 = vpop.f32.mrf.mxu0  ;;  %5333 = vmatmul.mubr.bf16.gmra.mxu1 %v4931_v45 }
 0x538   : > { %v4605_v42 = vadd.f32 %v4604_v46, %v13968_v18  ;;  %v4835_v16 = vmax.f32 %v4603_v5, 0.0 }
 0x539   : > { %v4608_v47 = vpop.f32.mrf.mxu0  ;;  %10876 = vmatmul.mubr.msk.bf16.gmra.mxu0 %vm1331_vm0, %v12033_v39 }
 0x53a   : > { %v4836_v50 = vmax.f32 %v4605_v42, 0.0  ;;  %5645 = vmatprep.mubr.bf16.mxu0 %v12421_v0  ;;  %v4933_v55 = vpack.c.bf16 %v4835_v16, %v4833_v14  ;;  %v4609_v59 = vadd.f32 %v4608_v47, %v13965_v35 }
 0x53b   : > { %v4610_v51 = vpop.f32.mrf.mxu0 }
 0x53c   : > { %v4934_v53 = vpack.c.bf16 %v4836_v50, %v4834_v7  ;;  %v4611_v56 = vadd.f32 %v4610_v51, %v13968_v18  ;;  %v4837_v60 = vmax.f32 %v4609_v59, 0.0  ;;  %v12037_v59 = vld [vmem:[%s12753_s29 + $0x40] sm:$0xff]  }
 0x53d   : > { %v4612_v48 = vpop.f32.mrf.mxu0 }
 0x53e   : > { %v4613_v57 = vadd.f32 %v4612_v48, %v13965_v35  ;;  %5342 = vmatprep.mubr.bf16.mxu1 %v4934_v53  ;;  %v4838_v37 = vmax.f32 %v4611_v56, 0.0 }
 0x53f   : > { %v4614_v58 = vpop.f32.mrf.mxu0  ;;  %5343 = vmatmul.mubr.bf16.gmra.mxu1 %v4933_v55 }
 0x540   : > { %v4615_v63 = vadd.f32 %v4614_v58, %v13968_v18  ;;  %v4839_v3 = vmax.f32 %v4613_v57, 0.0 }
 0x541   : > { %v4618_v1 = vpop.f32.mrf.mxu0  ;;  %10877 = vmatmul.mubr.msk.bf16.gmra.mxu0 %vm1331_vm0, %v12034_v4 }
 0x542   : > { %v4840_v6 = vmax.f32 %v4615_v63, 0.0  ;;  %5655 = vmatprep.mubr.bf16.mxu0 %v12421_v0  ;;  %v4935_v15 = vpack.c.bf16 %v4839_v3, %v4837_v60  ;;  %v4619_v24 = vadd.f32 %v4618_v1, %v13965_v35  ;;  %v11867_v60 = vld [vmem:[#allocation11 + $0x84] ss:$8 sps:$4 sm:$0xff]  }
 0x543   : > { %v4620_v12 = vpop.f32.mrf.mxu0  ;;  %6481 = vmatprep.subr.bf16.mxu1 %v11867_v60  ;;  %v11871_v60 = vld [vmem:[#allocation13 + $0x30] ss:$8 sps:$4 sm:$0xff]  }
 0x544   : > { %v4936_v13 = vpack.c.bf16 %v4840_v6, %v4838_v37  ;;  %v4621_v17 = vadd.f32 %v4620_v12, %v13968_v18  ;;  %v4841_v38 = vmax.f32 %v4619_v24, 0.0  ;;  %6482 = vmatpush2.bf16.msra.mxu1 %v11865_v62 }
 0x545   : > { %v4622_v22 = vpop.f32.mrf.mxu0 }
 0x546   : > { %v4623_v19 = vadd.f32 %v4622_v22, %v13965_v35  ;;  %5352 = vmatprep.mubr.bf16.mxu1 %v4936_v13  ;;  %v4842_v54 = vmax.f32 %v4621_v17, 0.0 }
 0x547   : > { %v4624_v40 = vpop.f32.mrf.mxu0  ;;  %5353 = vmatmul.mubr.bf16.gmra.mxu1 %v4935_v15 }
 0x548   : > { %v4625_v26 = vadd.f32 %v4624_v40, %v13968_v18  ;;  %v4843_v11 = vmax.f32 %v4623_v19, 0.0 }
 0x549   : > { %v4628_v27 = vpop.f32.mrf.mxu0  ;;  %10878 = vmatmul.mubr.msk.bf16.gmra.mxu0 %vm1331_vm0, %v12035_v32 }
 0x54a   : > { %v4844_v61 = vmax.f32 %v4625_v26, 0.0  ;;  %5665 = vmatprep.mubr.bf16.mxu0 %v12421_v0  ;;  %v4937_v36 = vpack.c.bf16 %v4843_v11, %v4841_v38  ;;  %v4629_v49 = vadd.f32 %v4628_v27, %v13965_v35 }
 0x54b   : > { %v4630_v29 = vpop.f32.mrf.mxu0 }
 0x54c   : > { %v4938_v2 = vpack.c.bf16 %v4844_v61, %v4842_v54  ;;  %v4631_v41 = vadd.f32 %v4630_v29, %v13968_v18  ;;  %v4845_v47 = vmax.f32 %v4629_v49, 0.0 }
 0x54d   : > { %v4632_v31 = vpop.f32.mrf.mxu0 }
 0x54e   : > { %v4633_v23 = vadd.f32 %v4632_v31, %v13965_v35  ;;  %5362 = vmatprep.mubr.bf16.mxu1 %v4938_v2  ;;  %v4846_v33 = vmax.f32 %v4631_v41, 0.0 }
 0x54f   : > { %v4634_v20 = vpop.f32.mrf.mxu0  ;;  %5363 = vmatmul.mubr.bf16.gmra.mxu1 %v4937_v36  ;;  %v12039_v36 = vld [vmem:[%s12753_s29 + $0x50] sm:$0xff]  }
 0x550   : > { %v4635_v44 = vadd.f32 %v4634_v20, %v13968_v18  ;;  %v4847_v5 = vmax.f32 %v4633_v23, 0.0 }
 0x551   : > { %v4638_v45 = vpop.f32.mrf.mxu0  ;;  %10879 = vmatmul.mubr.msk.bf16.gmra.mxu0 %vm1331_vm0, %v12036_v9 }
 0x552   : > { %v4848_v46 = vmax.f32 %v4635_v44, 0.0  ;;  %5675 = vmatprep.mubr.bf16.mxu0 %v12421_v0  ;;  %v4939_v50 = vpack.c.bf16 %v4847_v5, %v4845_v47  ;;  %v4639_v53 = vadd.f32 %v4638_v45, %v13965_v35  ;;  %v11868_v44 = vld [vmem:[#allocation13 + $0x40] ss:$8 sps:$4 sm:$0xff]   ;;  %v11870_v45 = vld [vmem:[#allocation13 + $0x44] ss:$8 sps:$4 sm:$0xff]  }
 0x553   : > { %v4640_v42 = vpop.f32.mrf.mxu0  ;;  %7206 = vmatprep.subr.bf16.mxu0 %v11870_v45 }
 0x554   : > { %v4940_v7 = vpack.c.bf16 %v4848_v46, %v4846_v33  ;;  %v4641_v39 = vadd.f32 %v4640_v42, %v13968_v18  ;;  %v4849_v1 = vmax.f32 %v4639_v53, 0.0  ;;  %7207 = vmatpush1.bf16.msra.mxu0 %v11868_v44  ;;  %v12043_v44 = vld [vmem:[%s12753_s29 + $0x70] sm:$0xff]  }
 0x555   : > { %v4642_v16 = vpop.f32.mrf.mxu0 }
 0x556   : > { %v4643_v51 = vadd.f32 %v4642_v16, %v13965_v35  ;;  %5372 = vmatprep.mubr.bf16.mxu1 %v4940_v7  ;;  %v4850_v56 = vmax.f32 %v4641_v39, 0.0 }
 0x557   : > { %v4644_v14 = vpop.f32.mrf.mxu0  ;;  %5373 = vmatmul.mubr.bf16.gmra.mxu1 %v4939_v50 }
 0x558   : > { %v4645_v48 = vadd.f32 %v4644_v14, %v13968_v18  ;;  %v4851_v57 = vmax.f32 %v4643_v51, 0.0  ;;  %v12040_v51 = vld [vmem:[%s12753_s29 + $0x58] sm:$0xff]  }
 0x559   : > { %v4648_v55 = vpop.f32.mrf.mxu0  ;;  %10880 = vmatmul.mubr.msk.bf16.gmra.mxu0 %vm1331_vm0, %v12037_v59 }
 0x55a   : > { %v4852_v58 = vmax.f32 %v4645_v48, 0.0  ;;  %5685 = vmatprep.mubr.bf16.mxu0 %v12421_v0  ;;  %v4941_v6 = vpack.c.bf16 %v4851_v57, %v4849_v1  ;;  %v4649_v13 = vadd.f32 %v4648_v55, %v13965_v35 }
 0x55b   : > { %v4650_v63 = vpop.f32.mrf.mxu0 }
 0x55c   : > { %v4942_v37 = vpack.c.bf16 %v4852_v58, %v4850_v56  ;;  %v4651_v4 = vadd.f32 %v4650_v63, %v13968_v18  ;;  %v4853_v24 = vmax.f32 %v4649_v13, 0.0  ;;  %v11873_v13 = vld [vmem:[#allocation13 + $0x34] ss:$8 sps:$4 sm:$0xff]  }
 0x55d   : > { %v4652_v3 = vpop.f32.mrf.mxu0  ;;  %7208 = vmatprep.subr.bf16.mxu0 %v11873_v13 }
 0x55e   : > { %v4653_v12 = vadd.f32 %v4652_v3, %v13965_v35  ;;  %5382 = vmatprep.mubr.bf16.mxu1 %v4942_v37  ;;  %v4854_v17 = vmax.f32 %v4651_v4, 0.0  ;;  %7209 = vmatpush1.bf16.msra.mxu0 %v11871_v60 }
 0x55f   : > { %v4654_v43 = vpop.f32.mrf.mxu0  ;;  %5383 = vmatmul.mubr.bf16.gmra.mxu1 %v4941_v6  ;;  %v12041_v6 = vld [vmem:[%s12753_s29 + $0x60] sm:$0xff]  }
 0x560   : > { %v4655_v22 = vadd.f32 %v4654_v43, %v13968_v18  ;;  %v4855_v19 = vmax.f32 %v4653_v12, 0.0 }
 0x561   : > { %v4658_v15 = vpop.f32.mrf.mxu0  ;;  %10881 = vmatmul.mubr.msk.bf16.gmra.mxu0 %vm1331_vm0, %v12038_v21 }
 0x562   : > { %v4856_v40 = vmax.f32 %v4655_v22, 0.0  ;;  %5695 = vmatprep.mubr.bf16.mxu0 %v12421_v0  ;;  %v4943_v54 = vpack.c.bf16 %v4855_v19, %v4853_v24  ;;  %v4659_v29 = vadd.f32 %v4658_v15, %v13965_v35 }
 0x563   : > { %v4660_v8 = vpop.f32.mrf.mxu0 }
 0x564   : > { %v4944_v26 = vpack.c.bf16 %v4856_v40, %v4854_v17  ;;  %v4661_v11 = vadd.f32 %v4660_v8, %v13968_v18  ;;  %v4857_v23 = vmax.f32 %v4659_v29, 0.0 }
 0x565   : > { %v4662_v27 = vpop.f32.mrf.mxu0 }
 0x566   : > { %v4663_v61 = vadd.f32 %v4662_v27, %v13965_v35  ;;  %5392 = vmatprep.mubr.bf16.mxu1 %v4944_v26  ;;  %v4858_v10 = vmax.f32 %v4661_v11, 0.0 }
 0x567   : > { %v4664_v32 = vpop.f32.mrf.mxu0  ;;  %5393 = vmatmul.mubr.bf16.gmra.mxu1 %v4943_v54  ;;  %v12042_v54 = vld [vmem:[%s12753_s29 + $0x68] sm:$0xff]  }
 0x568   : > { %v4665_v38 = vadd.f32 %v4664_v32, %v13968_v18  ;;  %v4859_v34 = vmax.f32 %v4663_v61, 0.0 }
 0x569   : > { %v4668_v2 = vpop.f32.mrf.mxu0  ;;  %10882 = vmatmul.mubr.msk.bf16.gmra.mxu0 %vm1331_vm0, %v12039_v36 }
 0x56a   : > { %v4860_v31 = vmax.f32 %v4665_v38, 0.0  ;;  %5705 = vmatprep.mubr.bf16.mxu0 %v12421_v0  ;;  %v4945_v33 = vpack.c.bf16 %v4859_v34, %v4857_v23  ;;  %v4669_v42 = vadd.f32 %v4668_v2, %v13965_v35 }
 0x56b   : > { %v4670_v41 = vpop.f32.mrf.mxu0 }
 0x56c   : > { %v4946_v20 = vpack.c.bf16 %v4860_v31, %v4858_v10  ;;  %v4671_v5 = vadd.f32 %v4670_v41, %v13968_v18  ;;  %v4861_v30 = vmax.f32 %v4669_v42, 0.0  ;;  %v11876_v42 = vld [vmem:[#allocation13 + $0x24] ss:$8 sps:$4 sm:$0xff]  }
 0x56d   : > { %v4672_v49 = vpop.f32.mrf.mxu0  ;;  %7210 = vmatprep.subr.bf16.mxu0 %v11876_v42 }
 0x56e   : > { %v4673_v46 = vadd.f32 %v4672_v49, %v13965_v35  ;;  %5402 = vmatprep.mubr.bf16.mxu1 %v4946_v20  ;;  %v4862_v16 = vmax.f32 %v4671_v5, 0.0 }
 0x56f   : > { %v4674_v9 = vpop.f32.mrf.mxu0  ;;  %5403 = vmatmul.mubr.bf16.gmra.mxu1 %v4945_v33 }
 0x570   : > { %v4675_v47 = vadd.f32 %v4674_v9, %v13968_v18  ;;  %v4863_v50 = vmax.f32 %v4673_v46, 0.0  ;;  %v11874_v9 = vld [vmem:[#allocation13 + $0x20] ss:$8 sps:$4 sm:$0xff]  }
 0x571   : > { %v4678_v7 = vpop.f32.mrf.mxu0  ;;  %10883 = vmatmul.mubr.msk.bf16.gmra.mxu0 %vm1331_vm0, %v12040_v51 }
 0x572   : > { %v4864_v39 = vmax.f32 %v4675_v47, 0.0  ;;  %5715 = vmatprep.mubr.bf16.mxu0 %v12421_v0  ;;  %v4947_v48 = vpack.c.bf16 %v4863_v50, %v4861_v30  ;;  %v4679_v58 = vadd.f32 %v4678_v7, %v13965_v35  ;;  %7211 = vmatpush1.bf16.msra.mxu0 %v11874_v9  ;;  %v12047_v9 = vld [vmem:[%s12753_s29 + $0x90] sm:$0xff]  }
 0x573   : > { %v4680_v52 = vpop.f32.mrf.mxu0 }
 0x574   : > { %v4948_v14 = vpack.c.bf16 %v4864_v39, %v4862_v16  ;;  %v4681_v55 = vadd.f32 %v4680_v52, %v13968_v18  ;;  %v4865_v12 = vmax.f32 %v4679_v58, 0.0 }
 0x575   : > { %v4682_v53 = vpop.f32.mrf.mxu0 }
 0x576   : > { %v4683_v56 = vadd.f32 %v4682_v53, %v13965_v35  ;;  %5412 = vmatprep.mubr.bf16.mxu1 %v4948_v14  ;;  %v4866_v1 = vmax.f32 %v4681_v55, 0.0 }
 0x577   : > { %v4684_v57 = vpop.f32.mrf.mxu0  ;;  %5413 = vmatmul.mubr.bf16.gmra.mxu1 %v4947_v48  ;;  %v12044_v48 = vld [vmem:[%s12753_s29 + $0x78] sm:$0xff]  }
 0x578   : > { %v4685_v59 = vadd.f32 %v4684_v57, %v13968_v18  ;;  %v4867_v37 = vmax.f32 %v4683_v56, 0.0 }
 0x579   : > { %v4688_v63 = vpop.f32.mrf.mxu0  ;;  %10884 = vmatmul.mubr.msk.bf16.gmra.mxu0 %vm1331_vm0, %v12041_v6 }
 0x57a   : > { %v4868_v3 = vmax.f32 %v4685_v59, 0.0  ;;  %5725 = vmatprep.mubr.bf16.mxu0 %v12421_v0  ;;  %v4949_v22 = vpack.c.bf16 %v4867_v37, %v4865_v12  ;;  %v4689_v40 = vadd.f32 %v4688_v63, %v13965_v35 }
 0x57b   : > { %v4690_v4 = vpop.f32.mrf.mxu0 }
 0x57c   : > { %v4950_v43 = vpack.c.bf16 %v4868_v3, %v4866_v1  ;;  %v4691_v15 = vadd.f32 %v4690_v4, %v13968_v18  ;;  %v4869_v61 = vmax.f32 %v4689_v40, 0.0 }
 0x57d   : > { %v4692_v62 = vpop.f32.mrf.mxu0 }
 0x57e   : > { %v4693_v17 = vadd.f32 %v4692_v62, %v13965_v35  ;;  %5422 = vmatprep.mubr.bf16.mxu1 %v4950_v43  ;;  %v4870_v24 = vmax.f32 %v4691_v15, 0.0  ;;  %v12045_v43 = vld [vmem:[%s12753_s29 + $0x80] sm:$0xff]  }
 0x57f   : > { %v4694_v19 = vpop.f32.mrf.mxu0  ;;  %5423 = vmatmul.mubr.bf16.gmra.mxu1 %v4949_v22 }
 0x580   : > { %v4695_v21 = vadd.f32 %v4694_v19, %v13968_v18  ;;  %v4871_v26 = vmax.f32 %v4693_v17, 0.0  ;;  %v11877_v17 = vld [vmem:[#allocation13 + $0x10] ss:$8 sps:$4 sm:$0xff]   ;;  %v11879_v19 = vld [vmem:[#allocation13 + $0x14] ss:$8 sps:$4 sm:$0xff]  }
 0x581   : > { %v4698_v8 = vpop.f32.mrf.mxu0  ;;  %10885 = vmatmul.mubr.msk.bf16.gmra.mxu0 %vm1331_vm0, %v12042_v54  ;;  %7212 = vmatprep.subr.bf16.mxu0 %v11879_v19 }
 0x582   : > { %v4872_v27 = vmax.f32 %v4695_v21, 0.0  ;;  %5735 = vmatprep.mubr.bf16.mxu0 %v12421_v0  ;;  %v4951_v38 = vpack.c.bf16 %v4871_v26, %v4869_v61  ;;  %v4699_v31 = vadd.f32 %v4698_v8, %v13965_v35  ;;  %7213 = vmatpush1.bf16.msra.mxu0 %v11877_v17 }
 0x583   : > { %v4700_v11 = vpop.f32.mrf.mxu0 }
 0x584   : > { %v4952_v32 = vpack.c.bf16 %v4872_v27, %v4870_v24  ;;  %v4701_v2 = vadd.f32 %v4700_v11, %v13968_v18  ;;  %v4873_v33 = vmax.f32 %v4699_v31, 0.0 }
 0x585   : > { %v4702_v29 = vpop.f32.mrf.mxu0 }
 0x586   : > { %v4703_v10 = vadd.f32 %v4702_v29, %v13965_v35  ;;  %5432 = vmatprep.mubr.bf16.mxu1 %v4952_v32  ;;  %v4874_v23 = vmax.f32 %v4701_v2, 0.0  ;;  %v12046_v32 = vld [vmem:[%s12753_s29 + $0x88] sm:$0xff]  }
 0x587   : > { %v4704_v34 = vpop.f32.mrf.mxu0  ;;  %5433 = vmatmul.mubr.bf16.gmra.mxu1 %v4951_v38 }
 0x588   : > { %v4705_v36 = vadd.f32 %v4704_v34, %v13968_v18  ;;  %v4875_v20 = vmax.f32 %v4703_v10, 0.0 }
 0x589   : > { %v4708_v41 = vpop.f32.mrf.mxu0  ;;  %10886 = vmatmul.mubr.msk.bf16.gmra.mxu0 %vm1331_vm0, %v12043_v44 }
 0x58a   : > { %v4876_v49 = vmax.f32 %v4705_v36, 0.0  ;;  %5745 = vmatprep.mubr.bf16.mxu0 %v12421_v0  ;;  %v4953_v47 = vpack.c.bf16 %v4875_v20, %v4873_v33  ;;  %v4709_v39 = vadd.f32 %v4708_v41, %v13965_v35 }
 0x58b   : > { %v4710_v45 = vpop.f32.mrf.mxu0 }
 0x58c   : > { %v4954_v5 = vpack.c.bf16 %v4876_v49, %v4874_v23  ;;  %v4711_v7 = vadd.f32 %v4710_v45, %v13968_v18  ;;  %v4877_v55 = vmax.f32 %v4709_v39, 0.0 }
 0x58d   : > { %v4712_v46 = vpop.f32.mrf.mxu0 }
 0x58e   : > { %v4713_v16 = vadd.f32 %v4712_v46, %v13965_v35  ;;  %5442 = vmatprep.mubr.bf16.mxu1 %v4954_v5  ;;  %v4878_v52 = vmax.f32 %v4711_v7, 0.0 }
 0x58f   : > { %v4714_v50 = vpop.f32.mrf.mxu0  ;;  %5443 = vmatmul.mubr.bf16.gmra.mxu1 %v4953_v47 }
 0x590   : > { %v4715_v51 = vadd.f32 %v4714_v50, %v13968_v18  ;;  %v4879_v30 = vmax.f32 %v4713_v16, 0.0 }
 0x591   : > { %v4718_v53 = vpop.f32.mrf.mxu0  ;;  %10887 = vmatmul.mubr.msk.bf16.gmra.mxu0 %vm1331_vm0, %v12044_v48 }
 0x592   : > { %v4880_v14 = vmax.f32 %v4715_v51, 0.0  ;;  %5755 = vmatprep.mubr.bf16.mxu0 %v12421_v0  ;;  %v4955_v58 = vpack.c.bf16 %v4879_v30, %v4877_v55  ;;  %v4719_v37 = vadd.f32 %v4718_v53, %v13965_v35  ;;  %v11880_v51 = vld [vmem:[#allocation13] ss:$8 sps:$4 sm:$0xff]  }
 0x593   : > { %v4720_v56 = vpop.f32.mrf.mxu0 }
 0x594   : > { %v4956_v57 = vpack.c.bf16 %v4880_v14, %v4878_v52  ;;  %v4721_v63 = vadd.f32 %v4720_v56, %v13968_v18  ;;  %v4881_v13 = vmax.f32 %v4719_v37, 0.0  ;;  %v11882_v52 = vld [vmem:[#allocation13 + $0x4] ss:$8 sps:$4 sm:$0xff]  }
 0x595   : > { %v4722_v59 = vpop.f32.mrf.mxu0  ;;  %7214 = vmatprep.subr.bf16.mxu0 %v11882_v52 }
 0x596   : > { %5452 = vmatprep.mubr.bf16.mxu1 %v4956_v57  ;;  %v4723_v1 = vadd.f32 %v4722_v59, %v13965_v35  ;;  %v4882_v62 = vmax.f32 %v4721_v63, 0.0  ;;  %7215 = vmatpush1.bf16.msra.mxu0 %v11880_v51 }
 0x597   : > { %v4724_v3 = vpop.f32.mrf.mxu0  ;;  %5453 = vmatmul.mubr.bf16.gmra.mxu1 %v4955_v58 }
 0x598   : > { %v4725_v6 = vadd.f32 %v4724_v3, %v13968_v18  ;;  %v4883_v4 = vmax.f32 %v4723_v1, 0.0  ;;  %v12048_v3 = vld [vmem:[%s12753_s29 + $0x98] sm:$0xff]  }
 0x599   : > { %v4728_v12 = vpop.f32.mrf.mxu0  ;;  %10888 = vmatmul.mubr.msk.bf16.gmra.mxu0 %vm1331_vm0, %v12045_v43 }
 0x59a   : > { %v4884_v60 = vmax.f32 %v4725_v6, 0.0  ;;  %5765 = vmatprep.mubr.bf16.mxu0 %v12421_v0  ;;  %v4957_v40 = vpack.c.bf16 %v4883_v4, %v4881_v13  ;;  %v4729_v26 = vadd.f32 %v4728_v12, %v13965_v35 }
 0x59b   : > { %v4730_v22 = vpop.f32.mrf.mxu0 }
 0x59c   : > { %v4958_v15 = vpack.c.bf16 %v4884_v60, %v4882_v62  ;;  %v4731_v8 = vadd.f32 %v4730_v22, %v13968_v18  ;;  %v4885_v2 = vmax.f32 %v4729_v26, 0.0 }
 0x59d   : > { %v4732_v21 = vpop.f32.mrf.mxu0 }
 0x59e   : > { %v4733_v24 = vadd.f32 %v4732_v21, %v13965_v35  ;;  %5462 = vmatprep.mubr.bf16.mxu1 %v4958_v15  ;;  %v4886_v29 = vmax.f32 %v4731_v8, 0.0 }
 0x59f   : > { %v4734_v27 = vpop.f32.mrf.mxu0  ;;  %5463 = vmatmul.mubr.bf16.gmra.mxu1 %v4957_v40 }
 0x5a0   : > { %v4735_v54 = vadd.f32 %v4734_v27, %v13968_v18  ;;  %v4887_v11 = vmax.f32 %v4733_v24, 0.0 }
 0x5a1   : > { %v4738_v61 = vpop.f32.mrf.mxu0  ;;  %10889 = vmatmul.mubr.msk.bf16.gmra.mxu0 %vm1331_vm0, %v12046_v32 }
 0x5a2   : > { %v4888_v38 = vmax.f32 %v4735_v54, 0.0  ;;  %5775 = vmatprep.mubr.bf16.mxu0 %v12421_v0  ;;  %v4959_v31 = vpack.c.bf16 %v4887_v11, %v4885_v2  ;;  %v4739_v20 = vadd.f32 %v4738_v61, %v13965_v35  ;;  %v12049_v11 = vld [vmem:[%s12753_s29 + $0xa0] sm:$0xff]  }
 0x5a3   : > { %v4740_v10 = vpop.f32.mrf.mxu0 }
 0x5a4   : > { %v4960_v34 = vpack.c.bf16 %v4888_v38, %v4886_v29  ;;  %v4741_v41 = vadd.f32 %v4740_v10, %v13968_v18  ;;  %v4889_v7 = vmax.f32 %v4739_v20, 0.0 }
 0x5a5   : > { %v4742_v36 = vpop.f32.mrf.mxu0 }
 0x5a6   : > { %v4743_v23 = vadd.f32 %v4742_v36, %v13965_v35  ;;  %5472 = vmatprep.mubr.bf16.mxu1 %v4960_v34  ;;  %v4890_v42 = vmax.f32 %v4741_v41, 0.0  ;;  %v11883_v34 = vld [vmem:[#allocation13 + $0xf0] ss:$8 sps:$4 sm:$0xff]  }
 0x5a7   : > { %v4744_v49 = vpop.f32.mrf.mxu0  ;;  %v14164_v44 = vpop.f32.mrf.mxu1  ;;  %5473 = vmatmul.mubr.bf16.gmra.mxu1 %v4959_v31  ;;  %v11885_v31 = vld [vmem:[#allocation13 + $0xf4] ss:$8 sps:$4 sm:$0xff]  }
 0x5a8   : > { %v4745_v45 = vadd.f32 %v4744_v49, %v13968_v18  ;;  %v4891_v33 = vmax.f32 %v4743_v23, 0.0  ;;  %7216 = vmatprep.subr.bf16.mxu0 %v11885_v31 }
 0x5a9   : > { %v4748_v5 = vpop.f32.mrf.mxu0  ;;  %v14167_v46 = vpop.f32.mrf.mxu1  ;;  %10890 = vmatmul.mubr.msk.bf16.gmra.mxu0 %vm1331_vm0, %v12047_v9 }
 0x5aa   : > { %v4892_v47 = vmax.f32 %v4745_v45, 0.0  ;;  %5785 = vmatprep.mubr.bf16.mxu0 %v12421_v0  ;;  %v4961_v30 = vpack.c.bf16 %v4891_v33, %v4889_v7  ;;  %v4749_v56 = vadd.f32 %v4748_v5, %v13965_v35  ;;  %7217 = vmatpush2.bf16.msra.mxu0 %v11883_v34 }
 0x5ab   : > { %v4750_v16 = vpop.f32.mrf.mxu0  ;;  %v14172_v50 = vpop.f32.mrf.mxu1 }
 0x5ac   : > { %v4962_v39 = vpack.c.bf16 %v4892_v47, %v4890_v42  ;;  %v4751_v48 = vadd.f32 %v4750_v16, %v13968_v18  ;;  %v4893_v12 = vmax.f32 %v4749_v56, 0.0  ;;  %v12050_v16 = vld [vmem:[%s12753_s29 + $0xa8] sm:$0xff]  }
 0x5ad   : > { %v4752_v14 = vpop.f32.mrf.mxu0  ;;  %v14174_v53 = vpop.f32.mrf.mxu1 }
 0x5ae   : > { %v4753_v55 = vadd.f32 %v4752_v14, %v13965_v35  ;;  %5482 = vmatprep.mubr.bf16.mxu1 %v4962_v39  ;;  %v4894_v6 = vmax.f32 %v4751_v48, 0.0 }
 0x5af   : > { %v4754_v57 = vpop.f32.mrf.mxu0  ;;  %v14179_v58 = vpop.f32.mrf.mxu1  ;;  %5483 = vmatmul.mubr.bf16.gmra.mxu1 %v4961_v30 }
 0x5b0   : > { %v4755_v59 = vadd.f32 %v4754_v57, %v13968_v18  ;;  %v4895_v63 = vmax.f32 %v4753_v55, 0.0 }
 0x5b1   : > { %v4758_v1 = vpop.f32.mrf.mxu0  ;;  %v14182_v37 = vpop.f32.mrf.mxu1  ;;  %10891 = vmatmul.mubr.msk.bf16.gmra.mxu0 %vm1331_vm0, %v12048_v3 }
 0x5b2   : > { %v4896_v4 = vmax.f32 %v4755_v59, 0.0  ;;  %5795 = vmatprep.mubr.bf16.mxu0 %v12421_v0  ;;  %v4963_v13 = vpack.c.bf16 %v4895_v63, %v4893_v12  ;;  %v4759_v40 = vadd.f32 %v4758_v1, %v13965_v35  ;;  %v12051_v1 = vld [vmem:[%s12753_s29 + $0xb0] sm:$0xff]  }
 0x5b3   : > { %v4760_v43 = vpop.f32.mrf.mxu0  ;;  %v14187_v62 = vpop.f32.mrf.mxu1  ;;  %v11888_v12 = vld [vmem:[#allocation13 + $0xe4] ss:$8 sps:$4 sm:$0xff]  }
 0x5b4   : > { %v4964_v60 = vpack.c.bf16 %v4896_v4, %v4894_v6  ;;  %v4761_v17 = vadd.f32 %v4760_v43, %v13968_v18  ;;  %v4897_v29 = vmax.f32 %v4759_v40, 0.0  ;;  %v11886_v4 = vld [vmem:[#allocation13 + $0xe0] ss:$8 sps:$4 sm:$0xff]   ;;  %7218 = vmatprep.subr.bf16.mxu0 %v11888_v12  ;;  %v12052_v40 = vld [vmem:[%s12753_s29 + $0xb8] sm:$0xff]  }
 0x5b5   : > { %v4762_v22 = vpop.f32.mrf.mxu0  ;;  %v14189_v15 = vpop.f32.mrf.mxu1  ;;  %7219 = vmatpush2.bf16.msra.mxu0 %v11886_v4  ;;  %v12054_v4 = vld [vmem:[%s12753_s29 + $0xc8] sm:$0xff]  }
 0x5b6   : > { %v4763_v19 = vadd.f32 %v4762_v22, %v13965_v35  ;;  %5492 = vmatprep.mubr.bf16.mxu1 %v4964_v60  ;;  %v4898_v61 = vmax.f32 %v4761_v17, 0.0 }
 0x5b7   : > { %v4764_v21 = vpop.f32.mrf.mxu0  ;;  %v14194_v8 = vpop.f32.mrf.mxu1  ;;  %5493 = vmatmul.mubr.bf16.gmra.mxu1 %v4963_v13 }
 0x5b8   : > { %v4765_v24 = vadd.f32 %v4764_v21, %v13968_v18  ;;  %v4899_v26 = vmax.f32 %v4763_v19, 0.0 }
 0x5b9   : > { %v4768_v27 = vpop.f32.mrf.mxu0  ;;  %v14197_v54 = vpop.f32.mrf.mxu1  ;;  %10892 = vmatmul.mubr.msk.bf16.gmra.mxu0 %vm1331_vm0, %v12049_v11 }
 0x5ba   : > { %v4900_v32 = vmax.f32 %v4765_v24, 0.0  ;;  %5805 = vmatprep.mubr.bf16.mxu0 %v12421_v0  ;;  %v4965_v36 = vpack.c.bf16 %v4899_v26, %v4897_v29  ;;  %v4769_v45 = vadd.f32 %v4768_v27, %v13965_v35 }
 0x5bb   : > { %v4770_v38 = vpop.f32.mrf.mxu0  ;;  %v14202_v2 = vpop.f32.mrf.mxu1 }
 0x5bc   : > { %v4966_v10 = vpack.c.bf16 %v4900_v32, %v4898_v61  ;;  %v4771_v20 = vadd.f32 %v4770_v38, %v13968_v18  ;;  %v12053_v38 = vld [vmem:[%s12753_s29 + $0xc0] sm:$0xff]  }
 0x5bd   : > { %v4772_v41 = vpop.f32.mrf.mxu0  ;;  %v14204_v23 = vpop.f32.mrf.mxu1 }
 0x5be   : > { %v4773_v49 = vadd.f32 %v4772_v41, %v13965_v35  ;;  %5502 = vmatprep.mubr.bf16.mxu1 %v4966_v10  ;;  %v4902_v39 = vmax.f32 %v4771_v20, 0.0  ;;  %v4901_v35 = vmax.f32 %v4769_v45, 0.0  ;;  %v5009_v10 = vld [vmem:[%s16622_s14] sm:$0x3] }
 0x5bf   : > { %v4774_v33 = vpop.f32.mrf.mxu0  ;;  %v14209_v5 = vpop.f32.mrf.mxu1  ;;  %5503 = vmatmul.mubr.bf16.gmra.mxu1 %v4965_v36  ;;  %v14266_v41 = vrot.slane %v5009_v10, %v12984_v25  ;;  %v11889_v20 = vld [vmem:[#allocation13 + $0xd0] ss:$8 sps:$4 sm:$0xff]  }
 0x5c0   : > { %v4775_v9 = vadd.f32 %v4774_v33, %v13968_v18  ;;  %v4903_v42 = vmax.f32 %v4773_v49, 0.0  ;;  %v11891_v49 = vld [vmem:[#allocation13 + $0xd4] ss:$8 sps:$4 sm:$0xff]   ;;  %v14269_v33 = vrot.slane %v5009_v10, %v12992_v28 }
 0x5c1   : > { %v5204_v47 = vpop.f32.mrf.mxu0  ;;  %v14212_v7 = vpop.f32.mrf.mxu1  ;;  %10893 = vmatmul.mubr.msk.bf16.gmra.mxu0 %vm1331_vm0, %v12050_v16  ;;  %7220 = vmatprep.subr.bf16.mxu0 %v11891_v49 }
 0x5c2   : > { %v4904_v51 = vmax.f32 %v4775_v9, 0.0  ;;  %5815 = vmatprep.mubr.bf16.mxu0 %v12421_v0  ;;  %v4967_v48 = vpack.c.bf16 %v4903_v42, %v4901_v35  ;;  %7221 = vmatpush2.bf16.msra.mxu0 %v11889_v20 }
 0x5c3   : > { %v5206_v52 = vpop.f32.mrf.mxu0  ;;  %v14217_v30 = vpop.f32.mrf.mxu1 }
 0x5c4   : > { %v4968_v14 = vpack.c.bf16 %v4904_v51, %v4902_v39 }
 0x5c5   : > { %v5208_v55 = vpop.f32.mrf.mxu0  ;;  %v14219_v18 = vpop.f32.mrf.mxu1 }
 0x5c6   : > { %5512 = vmatprep.mubr.bf16.mxu1 %v4968_v14 }
 0x5c7   : > { %v5210_v56 = vpop.f32.mrf.mxu0  ;;  %v14221_v57 = vpop.f32.mrf.mxu1  ;;  %5513 = vmatmul.mubr.bf16.gmra.mxu1 %v4967_v48 }
 0x5c9   : > { %v14223_v59 = vpop.f32.mrf.mxu0  ;;  %v14225_v63 = vpop.f32.mrf.mxu1  ;;  %10894 = vmatmul.mubr.msk.bf16.gmra.mxu0 %vm1331_vm0, %v12051_v1 }
 0x5ca   : > { %5825 = vmatprep.mubr.bf16.mxu0 %v12421_v0 }
 0x5cb   : > { %v5216_v3 = vpop.f32.mrf.mxu0  ;;  %v14230_v6 = vpop.f32.mrf.mxu1 }
 0x5cd   : > { %v5218_v43 = vpop.f32.mrf.mxu0  ;;  %v14232_v60 = vpop.f32.mrf.mxu1 }
 0x5cf   : > { %v5220_v13 = vpop.f32.mrf.mxu0  ;;  %v14234_v22 = vpop.f32.mrf.mxu1 }
 0x5d1   : > { %v14236_v17 = vpop.f32.mrf.mxu0  ;;  %v14238_v19 = vpop.f32.mrf.mxu1  ;;  %10895 = vmatmul.mubr.msk.bf16.gmra.mxu0 %vm1331_vm0, %v12052_v40 }
 0x5d2   : > { %5835 = vmatprep.mubr.bf16.mxu0 %v12421_v0 }
 0x5d3   : > { %v14243_v21 = vpop.f32.mrf.mxu0  ;;  %v14245_v24 = vpop.f32.mrf.mxu1 }
 0x5d5   : > { %v14247_v26 = vpop.f32.mrf.mxu0  ;;  %v14249_v27 = vpop.f32.mrf.mxu1 }
 0x5d7   : > { %v14251_v11 = vpop.f32.mrf.mxu0  ;;  %v14253_v61 = vpop.f32.mrf.mxu1 }
 0x5d9   : > { %v14255_v32 = vpop.f32.mrf.mxu1  ;;  %v5597_v29 = vpop.f32.mrf.mxu0  ;;  %10896 = vmatmul.mubr.msk.bf16.gmra.mxu0 %vm1331_vm0, %v12053_v38 }
 0x5da   : > { %5845 = vmatprep.mubr.bf16.mxu0 %v12421_v0  ;;  %v5598_v45 = vadd.f32 %v5597_v29, %v5204_v47 }
 0x5db   : > { %v14263_v34 = vpop.f32.mrf.mxu1  ;;  %v5599_v31 = vpop.f32.mrf.mxu0 }
 0x5dc   : > { %v5600_v36 = vadd.f32 %v5599_v31, %v5206_v52  ;;  %v5927_v48 = vadd.f32 %v14269_v33, %v5598_v45 }
 0x5dd   : > { %v14271_v9 = vpop.f32.mrf.mxu1  ;;  %v5601_v42 = vpop.f32.mrf.mxu0 }
 0x5de   : > { %v5602_v16 = vadd.f32 %v5601_v42, %v5208_v55  ;;  %v5928_v35 = vadd.f32 %v14266_v41, %v5600_v36 }
 0x5df   : > { %v14273_v39 = vpop.f32.mrf.mxu1  ;;  %v5603_v51 = vpop.f32.mrf.mxu0 }
 0x5e0   : > { %v5929_v52 = vadd.f32 %v14269_v33, %v5602_v16  ;;  %v5604_v14 = vadd.f32 %v5603_v51, %v5210_v56  ;;  %v6056_v38 = vmax.f32 %v5928_v35, 0.0  ;;  %v6055_v56 = vmax.f32 %v5927_v48, 0.0 }
 0x5e1   : > { %v14278_v47 = vpop.f32.mrf.mxu1  ;;  %v5607_v1 = vpop.f32.mrf.mxu0  ;;  %10897 = vmatmul.mubr.msk.bf16.gmra.mxu0 %vm1331_vm0, %v12054_v4 }
 0x5e2   : > { %v5930_v55 = vadd.f32 %v14266_v41, %v5604_v14  ;;  %5855 = vmatprep.mubr.bf16.mxu0 %v12421_v0  ;;  %v6057_v12 = vmax.f32 %v5929_v52, 0.0  ;;  %v5608_v36 = vadd.f32 %v5607_v1, %v14223_v59  ;;  %v12055_v1 = vld [vmem:[%s12753_s29 + $0xd0] sm:$0xff]  }
 0x5e3   : > { %v14284_v40 = vpop.f32.mrf.mxu1  ;;  %v5609_v29 = vpop.f32.mrf.mxu0 }
 0x5e4   : > { %v6058_v10 = vmax.f32 %v5930_v55, 0.0  ;;  %v5610_v31 = vadd.f32 %v5609_v29, %v5216_v3  ;;  %v6183_v16 = vpack.c.bf16 %v6057_v12, %v6055_v56  ;;  %v5931_v3 = vadd.f32 %v14269_v33, %v5608_v36  ;;  %v11894_v56 = vld [vmem:[#allocation13 + $0xc4] ss:$8 sps:$4 sm:$0xff]  }
 0x5e5   : > { %v14287_v20 = vpop.f32.mrf.mxu1  ;;  %v5611_v49 = vpop.f32.mrf.mxu0  ;;  %7222 = vmatprep.subr.bf16.mxu0 %v11894_v56 }
 0x5e6   : > { %v5612_v45 = vadd.f32 %v5611_v49, %v5218_v43  ;;  %v6184_v42 = vpack.c.bf16 %v6058_v10, %v6056_v38  ;;  %v5932_v52 = vadd.f32 %v14266_v41, %v5610_v31  ;;  %v11892_v31 = vld [vmem:[#allocation13 + $0xc0] ss:$8 sps:$4 sm:$0xff]   ;;  %v6059_v36 = vmax.f32 %v5931_v3, 0.0 }
 0x5e7   : > { %v14289_v51 = vpop.f32.mrf.mxu1  ;;  %v5613_v14 = vpop.f32.mrf.mxu0  ;;  %7223 = vmatpush2.bf16.msra.mxu0 %v11892_v31 }
 0x5e8   : > { %v5933_v4 = vadd.f32 %v14269_v33, %v5612_v45  ;;  %v5614_v35 = vadd.f32 %v5613_v14, %v5220_v13  ;;  %6483 = vmatprep.mubr.bf16.mxu1 %v6184_v42  ;;  %v6060_v38 = vmax.f32 %v5932_v52, 0.0 }
 0x5e9   : > { %v14294_v48 = vpop.f32.mrf.mxu1  ;;  %v5617_v59 = vpop.f32.mrf.mxu0  ;;  %10898 = vmatmul.mubr.msk.bf16.gmra.mxu0 %vm1331_vm0, %v12055_v1  ;;  %6484 = vmatmul.mubr.bf16.vlgmr.msra.gmra.mxu1 %v6183_v16 }
 0x5ea   : > { %v5934_v43 = vadd.f32 %v14266_v41, %v5614_v35  ;;  %5865 = vmatprep.mubr.bf16.mxu0 %v12421_v0  ;;  %v6061_v55 = vmax.f32 %v5933_v4, 0.0  ;;  %v5618_v49 = vadd.f32 %v5617_v59, %v14236_v17 }
 0x5eb   : > { %v14300_v12 = vpop.f32.mrf.mxu1  ;;  %v5619_v29 = vpop.f32.mrf.mxu0 }
 0x5ec   : > { %v6062_v13 = vmax.f32 %v5934_v43, 0.0  ;;  %v5620_v10 = vadd.f32 %v5619_v29, %v14243_v21  ;;  %v6185_v4 = vpack.c.bf16 %v6061_v55, %v6059_v36  ;;  %v5935_v17 = vadd.f32 %v14269_v33, %v5618_v49 }
 0x5ed   : > { %v14304_v45 = vpop.f32.mrf.mxu1  ;;  %v5621_v42 = vpop.f32.mrf.mxu0 }
 0x5ee   : > { %v5622_v16 = vadd.f32 %v5621_v42, %v14247_v26  ;;  %v6186_v14 = vpack.c.bf16 %v6062_v13, %v6060_v38  ;;  %v5936_v21 = vadd.f32 %v14266_v41, %v5620_v10  ;;  %v12056_v26 = vld [vmem:[%s12753_s29 + $0xd8] sm:$0xff]   ;;  %v6063_v56 = vmax.f32 %v5935_v17, 0.0 }
 0x5ef   : > { %v14307_v35 = vpop.f32.mrf.mxu1  ;;  %v5623_v52 = vpop.f32.mrf.mxu0 }
 0x5f0   : > { %v5937_v1 = vadd.f32 %v14269_v33, %v5622_v16  ;;  %v5624_v3 = vadd.f32 %v5623_v52, %v14251_v11  ;;  %6493 = vmatprep.mubr.bf16.mxu1 %v6186_v14  ;;  %v6064_v10 = vmax.f32 %v5936_v21, 0.0 }
 0x5f1   : > { %v14313_v59 = vpop.f32.mrf.mxu1  ;;  %v5627_v43 = vpop.f32.mrf.mxu0  ;;  %10899 = vmatmul.mubr.msk.bf16.gmra.mxu0 %vm1331_vm0, %v12056_v26  ;;  %6494 = vmatmul.mubr.bf16.gmra.mxu1 %v6185_v4  ;;  %v12057_v26 = vld [vmem:[%s12753_s29 + $0xe0] sm:$0xff]  }
 0x5f2   : > { %v5938_v55 = vadd.f32 %v14266_v41, %v5624_v3  ;;  %5875 = vmatprep.mubr.bf16.mxu0 %v12421_v0  ;;  %v6065_v29 = vmax.f32 %v5937_v1, 0.0  ;;  %v5628_v36 = vadd.f32 %v5627_v43, %v14164_v44 }
 0x5f3   : > { %v14319_v38 = vpop.f32.mrf.mxu1  ;;  %v5629_v13 = vpop.f32.mrf.mxu0 }
 0x5f4   : > { %v6066_v11 = vmax.f32 %v5938_v55, 0.0  ;;  %v5630_v31 = vadd.f32 %v5629_v13, %v14167_v46  ;;  %v6187_v4 = vpack.c.bf16 %v6065_v29, %v6063_v56  ;;  %v5939_v17 = vadd.f32 %v14269_v33, %v5628_v36  ;;  %v11897_v56 = vld [vmem:[#allocation13 + $0xb4] ss:$8 sps:$4 sm:$0xff]  }
 0x5f5   : > { %v14323_v49 = vpop.f32.mrf.mxu1  ;;  %v5631_v42 = vpop.f32.mrf.mxu0  ;;  %7224 = vmatprep.subr.bf16.mxu0 %v11897_v56 }
 0x5f6   : > { %v5632_v16 = vadd.f32 %v5631_v42, %v14172_v50  ;;  %v6188_v14 = vpack.c.bf16 %v6066_v11, %v6064_v10  ;;  %v5940_v3 = vadd.f32 %v14266_v41, %v5630_v31  ;;  %v11895_v31 = vld [vmem:[#allocation13 + $0xb0] ss:$8 sps:$4 sm:$0xff]   ;;  %v6067_v36 = vmax.f32 %v5939_v17, 0.0 }
 0x5f7   : > { %v14326_v52 = vpop.f32.mrf.mxu1  ;;  %v5633_v1 = vpop.f32.mrf.mxu0  ;;  %7225 = vmatpush2.bf16.msra.mxu0 %v11895_v31 }
 0x5f8   : > { %v5941_v21 = vadd.f32 %v14269_v33, %v5632_v16  ;;  %v5634_v46 = vadd.f32 %v5633_v1, %v14174_v53  ;;  %6503 = vmatprep.mubr.bf16.mxu1 %v6188_v14  ;;  %v6068_v10 = vmax.f32 %v5940_v3, 0.0 }
 0x5f9   : > { %v14332_v44 = vpop.f32.mrf.mxu1  ;;  %v5637_v43 = vpop.f32.mrf.mxu0  ;;  %10900 = vmatmul.mubr.msk.bf16.gmra.mxu0 %vm1331_vm0, %v12057_v26  ;;  %6504 = vmatmul.mubr.bf16.gmra.mxu1 %v6187_v4 }
 0x5fa   : > { %v5942_v50 = vadd.f32 %v14266_v41, %v5634_v46  ;;  %5885 = vmatprep.mubr.bf16.mxu0 %v12421_v0  ;;  %v6069_v55 = vmax.f32 %v5941_v21, 0.0  ;;  %v5638_v42 = vadd.f32 %v5637_v43, %v14179_v58 }
 0x5fb   : > { %v14338_v29 = vpop.f32.mrf.mxu1  ;;  %v5639_v13 = vpop.f32.mrf.mxu0 }
 0x5fc   : > { %v6070_v53 = vmax.f32 %v5942_v50, 0.0  ;;  %v5640_v11 = vadd.f32 %v5639_v13, %v14182_v37  ;;  %v6189_v21 = vpack.c.bf16 %v6069_v55, %v6067_v36  ;;  %v5943_v58 = vadd.f32 %v14269_v33, %v5638_v42 }
 0x5fd   : > { %v14342_v16 = vpop.f32.mrf.mxu1  ;;  %v5641_v14 = vpop.f32.mrf.mxu0 }
 0x5fe   : > { %v5642_v4 = vadd.f32 %v5641_v14, %v14187_v62  ;;  %v6190_v1 = vpack.c.bf16 %v6070_v53, %v6068_v10  ;;  %v5944_v37 = vadd.f32 %v14266_v41, %v5640_v11  ;;  %v12058_v62 = vld [vmem:[%s12753_s29 + $0xe8] sm:$0xff]   ;;  %v6071_v56 = vmax.f32 %v5943_v58, 0.0  ;;  %v11898_v58 = vld [vmem:[#allocation14 + $0x70] ss:$8 sps:$4 sm:$0xff]  }
 0x5ff   : > { %v14345_v46 = vpop.f32.mrf.mxu1  ;;  %v5643_v3 = vpop.f32.mrf.mxu0 }
 0x600   : > { %v5945_v26 = vadd.f32 %v14269_v33, %v5642_v4  ;;  %v5644_v17 = vadd.f32 %v5643_v3, %v14189_v15  ;;  %6513 = vmatprep.mubr.bf16.mxu1 %v6190_v1  ;;  %v6072_v11 = vmax.f32 %v5944_v37, 0.0 }
 0x601   : > { %v14351_v43 = vpop.f32.mrf.mxu1  ;;  %v5647_v50 = vpop.f32.mrf.mxu0  ;;  %10901 = vmatmul.mubr.msk.bf16.gmra.mxu0 %vm1331_vm0, %v12058_v62  ;;  %6514 = vmatmul.mubr.bf16.gmra.mxu1 %v6189_v21 }
 0x602   : > { %v5946_v55 = vadd.f32 %v14266_v41, %v5644_v17  ;;  %5895 = vmatprep.mubr.bf16.mxu0 %v12421_v0  ;;  %v6073_v13 = vmax.f32 %v5945_v26, 0.0  ;;  %v5648_v36 = vadd.f32 %v5647_v50, %v14194_v8  ;;  %v11900_v8 = vld [vmem:[#allocation14 + $0x74] ss:$8 sps:$4 sm:$0xff]  }
 0x603   : > { %v14357_v10 = vpop.f32.mrf.mxu1  ;;  %v5649_v53 = vpop.f32.mrf.mxu0  ;;  %7949 = vmatprep.subr.bf16.mxu1 %v11900_v8 }
 0x604   : > { %v6074_v15 = vmax.f32 %v5946_v55, 0.0  ;;  %v5650_v31 = vadd.f32 %v5649_v53, %v14197_v54  ;;  %v6191_v21 = vpack.c.bf16 %v6073_v13, %v6071_v56  ;;  %v5947_v50 = vadd.f32 %v14269_v33, %v5648_v36  ;;  %7950 = vmatpush1.bf16.msra.mxu1 %v11898_v58  ;;  %v11901_v36 = vld [vmem:[#allocation13 + $0xa0] ss:$8 sps:$4 sm:$0xff]  }
 0x605   : > { %v14361_v42 = vpop.f32.mrf.mxu1  ;;  %v5651_v14 = vpop.f32.mrf.mxu0 }
 0x606   : > { %v5652_v4 = vadd.f32 %v5651_v14, %v14202_v2  ;;  %v6192_v1 = vpack.c.bf16 %v6074_v15, %v6072_v11  ;;  %v5948_v17 = vadd.f32 %v14266_v41, %v5650_v31  ;;  %v12059_v2 = vld [vmem:[%s12753_s29 + $0xf0] sm:$0xff]  }
 0x607   : > { %v14364_v3 = vpop.f32.mrf.mxu1  ;;  %v5653_v26 = vpop.f32.mrf.mxu0  ;;  %v11903_v14 = vld [vmem:[#allocation13 + $0xa4] ss:$8 sps:$4 sm:$0xff]  }
 0x608   : > { %v5949_v37 = vadd.f32 %v14269_v33, %v5652_v4  ;;  %v5654_v54 = vadd.f32 %v5653_v26, %v14204_v23  ;;  %6523 = vmatprep.mubr.bf16.mxu1 %v6192_v1  ;;  %v6076_v15 = vmax.f32 %v5948_v17, 0.0  ;;  %v6075_v4 = vmax.f32 %v5947_v50, 0.0  ;;  %7226 = vmatprep.subr.bf16.mxu0 %v11903_v14 }
 0x609   : > { %v14370_v62 = vpop.f32.mrf.mxu1  ;;  %v5657_v55 = vpop.f32.mrf.mxu0  ;;  %10902 = vmatmul.mubr.msk.bf16.gmra.mxu0 %vm1331_vm0, %v12059_v2  ;;  %6524 = vmatmul.mubr.bf16.gmra.mxu1 %v6191_v21 }
 0x60a   : > { %v5950_v13 = vadd.f32 %v14266_v41, %v5654_v54  ;;  %5905 = vmatprep.mubr.bf16.mxu0 %v12421_v0  ;;  %v6077_v53 = vmax.f32 %v5949_v37, 0.0  ;;  %v5658_v1 = vadd.f32 %v5657_v55, %v14209_v5  ;;  %7227 = vmatpush2.bf16.msra.mxu0 %v11901_v36 }
 0x60b   : > { %v14376_v11 = vpop.f32.mrf.mxu1  ;;  %v5659_v23 = vpop.f32.mrf.mxu0 }
 0x60c   : > { %v6078_v31 = vmax.f32 %v5950_v13, 0.0  ;;  %v5660_v56 = vadd.f32 %v5659_v23, %v14212_v7  ;;  %v6193_v8 = vpack.c.bf16 %v6077_v53, %v6075_v4  ;;  %v5951_v5 = vadd.f32 %v14269_v33, %v5658_v1 }
 0x60d   : > { %v14380_v21 = vpop.f32.mrf.mxu1  ;;  %v5661_v26 = vpop.f32.mrf.mxu0 }
 0x60e   : > { %v5662_v54 = vadd.f32 %v5661_v26, %v14217_v30  ;;  %v6194_v37 = vpack.c.bf16 %v6078_v31, %v6076_v15  ;;  %v5952_v7 = vadd.f32 %v14266_v41, %v5660_v56  ;;  %v12060_v30 = vld [vmem:[%s12753_s29 + $0xf8] sm:$0xff]   ;;  %v6079_v14 = vmax.f32 %v5951_v5, 0.0  ;;  %v11906_v5 = vld [vmem:[#allocation14 + $0x64] ss:$8 sps:$4 sm:$0xff]   ;;  %s14808_s29 = scalar_lea.vmem %s16729_s5, %s10629_s11  ;;  %s16366_s11 = scalar_lea.vmem [#allocation19], %s10627_s19 }
 0x60f   : > { %v14383_v2 = vpop.f32.mrf.mxu1  ;;  %v5663_v17 = vpop.f32.mrf.mxu0  ;;  %7951 = vmatprep.subr.bf16.mxu1 %v11906_v5  ;;  %s10431_s7 = sshll.u32 %s16366_s11, 4  ;;  %s16559_s19 = scalar_lea.hbm %s16914_s8, %s11113_s27  ;;  %s16561_s7 = int_to_ptr.vmem [resolvable:$true] %s10431_s7 }
 0x610   : > { %v5953_v58 = vadd.f32 %v14269_v33, %v5662_v54  ;;  %v5664_v50 = vadd.f32 %v5663_v17, %v14219_v18  ;;  %6533 = vmatprep.mubr.bf16.mxu1 %v6194_v37  ;;  %v6080_v56 = vmax.f32 %v5952_v7, 0.0  ;;  %s12321_s5 = scalar_lea.vmem %s16561_s7, 8192  ;;  %s12325_s27 = sshll.u32 %s12422_s28, 4  ;;  %s12326_s27 = int_to_ptr.vmem [resolvable:$false] %s12325_s27 }
 0x611   : > { %v14389_v55 = vpop.f32.mrf.mxu1  ;;  %v5667_v13 = vpop.f32.mrf.mxu0  ;;  %10903 = vmatmul.mubr.msk.bf16.gmra.mxu0 %vm1331_vm0, %v12060_v30  ;;  %6534 = vmatmul.mubr.bf16.gmra.mxu1 %v6193_v8  ;;  %p12322_p6 = scmp.ne.s32.totalorder %s16561_s7, %s12321_s5  ;;  %p12328_p1 = scmp.lt.s32.totalorder %s16561_s7, %s12326_s27 }
 0x612   : > { %v5954_v53 = vadd.f32 %v14266_v41, %v5664_v50  ;;  %v6081_v23 = vmax.f32 %v5953_v58, 0.0  ;;  %v5668_v4 = vadd.f32 %v5667_v13, %v14221_v57 }
 0x613   : > { %v14394_v15 = vpop.f32.mrf.mxu1  ;;  %v5669_v31 = vpop.f32.mrf.mxu0  ;;  %p12323_p13 = pnand %p12322_p6, %p16916_p10 }
 0x614   : > { %v6082_v36 = vmax.f32 %v5954_v53, 0.0  ;;  %v5670_v18 = vadd.f32 %v5669_v31, %v14225_v63  ;;  %v6195_v8 = vpack.c.bf16 %v6081_v23, %v6079_v14  ;;  %v11904_v63 = vld [vmem:[#allocation14 + $0x60] ss:$8 sps:$4 sm:$0xff]   ;;  %v5955_v57 = vadd.f32 %v14269_v33, %v5668_v4  ;;  %v11907_v14 = vld [vmem:[#allocation13 + $0x90] ss:$8 sps:$4 sm:$0xff]  }
 0x615   : > { %v14398_v1 = vpop.f32.mrf.mxu1  ;;  %v5671_v26 = vpop.f32.mrf.mxu0  ;;  %7952 = vmatpush1.bf16.msra.mxu1 %v11904_v63  ;;  %p12324_p0 = pneg %p12323_p13 }
 0x616   : > { %v5672_v54 = vadd.f32 %v5671_v26, %v14230_v6  ;;  %v6196_v37 = vpack.c.bf16 %v6082_v36, %v6080_v56  ;;  %v5956_v50 = vadd.f32 %v14266_v41, %v5670_v18  ;;  %v11909_v26 = vld [vmem:[#allocation13 + $0x94] ss:$8 sps:$4 sm:$0xff]  }
 0x617   : > { %v14401_v17 = vpop.f32.mrf.mxu1  ;;  %v5673_v58 = vpop.f32.mrf.mxu0  ;;  %7228 = vmatprep.subr.bf16.mxu0 %v11909_v26 }
 0x618   : > { %v5957_v7 = vadd.f32 %v14269_v33, %v5672_v54  ;;  %v5674_v30 = vadd.f32 %v5673_v58, %v14232_v60  ;;  %6543 = vmatprep.mubr.bf16.mxu1 %v6196_v37  ;;  %v6084_v36 = vmax.f32 %v5956_v50, 0.0  ;;  %v6083_v54 = vmax.f32 %v5955_v57, 0.0  ;;  %7229 = vmatpush2.bf16.msra.mxu0 %v11907_v14 }
 0x619   : > { %v14407_v13 = vpop.f32.mrf.mxu1  ;;  %v5677_v53 = vpop.f32.mrf.mxu0  ;;  %6544 = vmatmul.mubr.bf16.gmra.mxu1 %v6195_v8 }
 0x61a   : > { %v5958_v6 = vadd.f32 %v14266_v41, %v5674_v30  ;;  %v6085_v23 = vmax.f32 %v5957_v7, 0.0  ;;  %v5678_v4 = vadd.f32 %v5677_v53, %v14234_v22 }
 0x61b   : > { %v14410_v31 = vpop.f32.mrf.mxu1  ;;  %v5679_v56 = vpop.f32.mrf.mxu0 }
 0x61c   : > { %v6086_v18 = vmax.f32 %v5958_v6, 0.0  ;;  %v5680_v60 = vadd.f32 %v5679_v56, %v14238_v19  ;;  %v6197_v7 = vpack.c.bf16 %v6085_v23, %v6083_v54  ;;  %v5959_v22 = vadd.f32 %v14269_v33, %v5678_v4 }
 0x61d   : > { %v14414_v37 = vpop.f32.mrf.mxu1  ;;  %v5681_v8 = vpop.f32.mrf.mxu0 }
 0x61e   : > { %v5682_v58 = vadd.f32 %v5681_v8, %v14245_v24  ;;  %v6198_v30 = vpack.c.bf16 %v6086_v18, %v6084_v36  ;;  %v5960_v50 = vadd.f32 %v14266_v41, %v5680_v60  ;;  %v6087_v26 = vmax.f32 %v5959_v22, 0.0  ;;  %v11912_v22 = vld [vmem:[#allocation14 + $0x54] ss:$8 sps:$4 sm:$0xff]  }
 0x61f   : > { %v14417_v5 = vpop.f32.mrf.mxu1  ;;  %v5683_v63 = vpop.f32.mrf.mxu0  ;;  %7953 = vmatprep.subr.bf16.mxu1 %v11912_v22 }
 0x620   : > { %v5961_v19 = vadd.f32 %v14269_v33, %v5682_v58  ;;  %v5684_v57 = vadd.f32 %v5683_v63, %v14249_v27  ;;  %6553 = vmatprep.mubr.bf16.mxu1 %v6198_v30  ;;  %v6088_v18 = vmax.f32 %v5960_v50, 0.0 }
 0x621   : > { %v14423_v53 = vpop.f32.mrf.mxu1  ;;  %v5687_v6 = vpop.f32.mrf.mxu0  ;;  %6554 = vmatmul.mubr.bf16.gmra.mxu1 %v6197_v7 }
 0x622   : > { %v5962_v24 = vadd.f32 %v14266_v41, %v5684_v57  ;;  %v6089_v23 = vmax.f32 %v5961_v19, 0.0  ;;  %v5688_v27 = vadd.f32 %v5687_v6, %v14253_v61 }
 0x623   : > { %v14426_v56 = vpop.f32.mrf.mxu1  ;;  %v5689_v36 = vpop.f32.mrf.mxu0 }
 0x624   : > { %v6090_v14 = vmax.f32 %v5962_v24, 0.0  ;;  %v5690_v60 = vadd.f32 %v5689_v36, %v14255_v32  ;;  %v6199_v30 = vpack.c.bf16 %v6089_v23, %v6087_v26  ;;  %v11910_v32 = vld [vmem:[#allocation14 + $0x50] ss:$8 sps:$4 sm:$0xff]   ;;  %v5963_v61 = vadd.f32 %v14269_v33, %v5688_v27  ;;  %v11913_v26 = vld [vmem:[#allocation13 + $0x80] ss:$8 sps:$4 sm:$0xff]  }
 0x625   : > { %v14430_v54 = vpop.f32.mrf.mxu1  ;;  %v5691_v4 = vpop.f32.mrf.mxu0  ;;  %7954 = vmatpush1.bf16.msra.mxu1 %v11910_v32 }
 0x626   : > { %v5692_v8 = vadd.f32 %v5691_v4, %v14263_v34  ;;  %v6200_v58 = vpack.c.bf16 %v6090_v14, %v6088_v18  ;;  %v5964_v19 = vadd.f32 %v14266_v41, %v5690_v60  ;;  %v11915_v4 = vld [vmem:[#allocation13 + $0x84] ss:$8 sps:$4 sm:$0xff]  }
 0x627   : > { %v14433_v7 = vpop.f32.mrf.mxu1  ;;  %v5693_v63 = vpop.f32.mrf.mxu0  ;;  %7230 = vmatprep.subr.bf16.mxu0 %v11915_v4 }
 0x628   : > { %v5965_v50 = vadd.f32 %v14269_v33, %v5692_v8  ;;  %v5694_v57 = vadd.f32 %v5693_v63, %v14271_v9  ;;  %6563 = vmatprep.mubr.bf16.mxu1 %v6200_v58  ;;  %v6092_v14 = vmax.f32 %v5964_v19, 0.0  ;;  %v6091_v8 = vmax.f32 %v5963_v61, 0.0  ;;  %7231 = vmatpush2.bf16.msra.mxu0 %v11913_v26 }
 0x629   : > { %v14439_v6 = vpop.f32.mrf.mxu1  ;;  %v5697_v24 = vpop.f32.mrf.mxu0  ;;  %6564 = vmatmul.mubr.bf16.gmra.mxu1 %v6199_v30 }
 0x62a   : > { %v5966_v34 = vadd.f32 %v14266_v41, %v5694_v57  ;;  %v6093_v23 = vmax.f32 %v5965_v50, 0.0  ;;  %v5698_v27 = vadd.f32 %v5697_v24, %v14273_v39 }
 0x62b   : > { %v14442_v36 = vpop.f32.mrf.mxu1  ;;  %v5699_v18 = vpop.f32.mrf.mxu0 }
 0x62c   : > { %v6094_v60 = vmax.f32 %v5966_v34, 0.0  ;;  %v5700_v9 = vadd.f32 %v5699_v18, %v14278_v47  ;;  %v6201_v50 = vpack.c.bf16 %v6093_v23, %v6091_v8  ;;  %v5967_v39 = vadd.f32 %v14269_v33, %v5698_v27 }
 0x62d   : > { %v14446_v58 = vpop.f32.mrf.mxu1  ;;  %v5701_v30 = vpop.f32.mrf.mxu0 }
 0x62e   : > { %v5702_v63 = vadd.f32 %v5701_v30, %v14284_v40  ;;  %v6202_v57 = vpack.c.bf16 %v6094_v60, %v6092_v14  ;;  %v5968_v19 = vadd.f32 %v14266_v41, %v5700_v9  ;;  %v6095_v4 = vmax.f32 %v5967_v39, 0.0  ;;  %v11918_v39 = vld [vmem:[#allocation14 + $0x44] ss:$8 sps:$4 sm:$0xff]  }
 0x62f   : > { %v14449_v22 = vpop.f32.mrf.mxu1  ;;  %v5703_v32 = vpop.f32.mrf.mxu0  ;;  %7955 = vmatprep.subr.bf16.mxu1 %v11918_v39 }
 0x630   : > { %v5969_v47 = vadd.f32 %v14269_v33, %v5702_v63  ;;  %v5704_v61 = vadd.f32 %v5703_v32, %v14287_v20  ;;  %6573 = vmatprep.mubr.bf16.mxu1 %v6202_v57  ;;  %v6096_v60 = vmax.f32 %v5968_v19, 0.0 }
 0x631   : > { %v14455_v24 = vpop.f32.mrf.mxu1  ;;  %v5707_v34 = vpop.f32.mrf.mxu0  ;;  %6574 = vmatmul.mubr.bf16.gmra.mxu1 %v6201_v50 }
 0x632   : > { %v5970_v40 = vadd.f32 %v14266_v41, %v5704_v61  ;;  %v6097_v23 = vmax.f32 %v5969_v47, 0.0  ;;  %v5708_v20 = vadd.f32 %v5707_v34, %v14289_v51 }
 0x633   : > { %v14458_v18 = vpop.f32.mrf.mxu1  ;;  %v5709_v14 = vpop.f32.mrf.mxu0 }
 0x634   : > { %v6098_v26 = vmax.f32 %v5970_v40, 0.0  ;;  %v5710_v9 = vadd.f32 %v5709_v14, %v14294_v48  ;;  %v6203_v57 = vpack.c.bf16 %v6097_v23, %v6095_v4  ;;  %v11916_v48 = vld [vmem:[#allocation14 + $0x40] ss:$8 sps:$4 sm:$0xff]   ;;  %v5971_v51 = vadd.f32 %v14269_v33, %v5708_v20 }
 0x635   : > { %v14462_v8 = vpop.f32.mrf.mxu1  ;;  %v5711_v27 = vpop.f32.mrf.mxu0  ;;  %7956 = vmatpush1.bf16.msra.mxu1 %v11916_v48 }
 0x636   : > { %v5712_v30 = vadd.f32 %v5711_v27, %v14300_v12  ;;  %v6204_v63 = vpack.c.bf16 %v6098_v26, %v6096_v60  ;;  %v5972_v47 = vadd.f32 %v14266_v41, %v5710_v9  ;;  %v6099_v4 = vmax.f32 %v5971_v51, 0.0 }
 0x637   : > { %v14465_v50 = vpop.f32.mrf.mxu1  ;;  %v5713_v32 = vpop.f32.mrf.mxu0 }
 0x638   : > { %v5973_v19 = vadd.f32 %v14269_v33, %v5712_v30  ;;  %v5714_v61 = vadd.f32 %v5713_v32, %v14304_v45  ;;  %6583 = vmatprep.mubr.bf16.mxu1 %v6204_v63  ;;  %v6100_v26 = vmax.f32 %v5972_v47, 0.0 }
 0x639   : > { %v14471_v34 = vpop.f32.mrf.mxu1  ;;  %v5717_v40 = vpop.f32.mrf.mxu0  ;;  %6584 = vmatmul.mubr.bf16.gmra.mxu1 %v6203_v57 }
 0x63a   : > { %v5974_v12 = vadd.f32 %v14266_v41, %v5714_v61  ;;  %v6101_v23 = vmax.f32 %v5973_v19, 0.0  ;;  %v5718_v27 = vadd.f32 %v5717_v40, %v14307_v35 }
 0x63b   : > { %v14474_v14 = vpop.f32.mrf.mxu1  ;;  %v5719_v60 = vpop.f32.mrf.mxu0 }
 0x63c   : > { %v6102_v9 = vmax.f32 %v5974_v12, 0.0  ;;  %v5720_v45 = vadd.f32 %v5719_v60, %v14313_v59  ;;  %v6205_v32 = vpack.c.bf16 %v6101_v23, %v6099_v4  ;;  %v5975_v59 = vadd.f32 %v14269_v33, %v5718_v27 }
 0x63d   : > { %v14478_v20 = vpop.f32.mrf.mxu1  ;;  %v5721_v30 = vpop.f32.mrf.mxu0 }
 0x63e   : > { %v5722_v63 = vadd.f32 %v5721_v30, %v14319_v38  ;;  %v6206_v57 = vpack.c.bf16 %v6102_v9, %v6100_v26  ;;  %v5976_v39 = vadd.f32 %v14266_v41, %v5720_v45  ;;  %v6103_v45 = vmax.f32 %v5975_v59, 0.0  ;;  %v11921_v59 = vld [vmem:[#allocation14 + $0x34] ss:$8 sps:$4 sm:$0xff]  }
 0x63f   : > { %v14481_v61 = vpop.f32.mrf.mxu1  ;;  %v5723_v19 = vpop.f32.mrf.mxu0  ;;  %7957 = vmatprep.subr.bf16.mxu1 %v11921_v59 }
 0x640   : > { %v5977_v47 = vadd.f32 %v14269_v33, %v5722_v63  ;;  %v5724_v48 = vadd.f32 %v5723_v19, %v14323_v49  ;;  %6593 = vmatprep.mubr.bf16.mxu1 %v6206_v57  ;;  %v6104_v60 = vmax.f32 %v5976_v39, 0.0 }
 0x641   : > { %v14487_v35 = vpop.f32.mrf.mxu1  ;;  %v5727_v51 = vpop.f32.mrf.mxu0  ;;  %6594 = vmatmul.mubr.bf16.gmra.mxu1 %v6205_v32 }
 0x642   : > { %v5978_v38 = vadd.f32 %v14266_v41, %v5724_v48  ;;  %v6105_v40 = vmax.f32 %v5977_v47, 0.0  ;;  %v5728_v49 = vadd.f32 %v5727_v51, %v14326_v52 }
 0x643   : > { %v14490_v12 = vpop.f32.mrf.mxu1  ;;  %v5729_v23 = vpop.f32.mrf.mxu0 }
 0x644   : > { %v6106_v26 = vmax.f32 %v5978_v38, 0.0  ;;  %v5730_v9 = vadd.f32 %v5729_v23, %v14332_v44  ;;  %v6207_v57 = vpack.c.bf16 %v6105_v40, %v6103_v45  ;;  %v11919_v44 = vld [vmem:[#allocation14 + $0x30] ss:$8 sps:$4 sm:$0xff]   ;;  %v5979_v52 = vadd.f32 %v14269_v33, %v5728_v49 }
 0x645   : > { %v14494_v4 = vpop.f32.mrf.mxu1  ;;  %v5731_v27 = vpop.f32.mrf.mxu0  ;;  %7958 = vmatpush1.bf16.msra.mxu1 %v11919_v44 }
 0x646   : > { %v5732_v30 = vadd.f32 %v5731_v27, %v14338_v29  ;;  %v6208_v63 = vpack.c.bf16 %v6106_v26, %v6104_v60  ;;  %v5980_v47 = vadd.f32 %v14266_v41, %v5730_v9  ;;  %v6107_v45 = vmax.f32 %v5979_v52, 0.0 }
 0x647   : > { %v14497_v32 = vpop.f32.mrf.mxu1  ;;  %v5733_v19 = vpop.f32.mrf.mxu0 }
 0x648   : > { %v5981_v39 = vadd.f32 %v14269_v33, %v5732_v30  ;;  %v5734_v48 = vadd.f32 %v5733_v19, %v14342_v16  ;;  %6603 = vmatprep.mubr.bf16.mxu1 %v6208_v63  ;;  %v6108_v26 = vmax.f32 %v5980_v47, 0.0 }
 0x649   : > { %v14503_v51 = vpop.f32.mrf.mxu1  ;;  %v5737_v38 = vpop.f32.mrf.mxu0  ;;  %6604 = vmatmul.mubr.bf16.gmra.mxu1 %v6207_v57 }
 0x64a   : > { %v5982_v29 = vadd.f32 %v14266_v41, %v5734_v48  ;;  %v6109_v40 = vmax.f32 %v5981_v39, 0.0  ;;  %v5738_v27 = vadd.f32 %v5737_v38, %v14345_v46 }
 0x64b   : > { %v14506_v23 = vpop.f32.mrf.mxu1  ;;  %v5739_v60 = vpop.f32.mrf.mxu0 }
 0x64c   : > { %v6110_v9 = vmax.f32 %v5982_v29, 0.0  ;;  %v5740_v16 = vadd.f32 %v5739_v60, %v14351_v43  ;;  %v6209_v19 = vpack.c.bf16 %v6109_v40, %v6107_v45  ;;  %v5983_v43 = vadd.f32 %v14269_v33, %v5738_v27 }
 0x64d   : > { %v14510_v49 = vpop.f32.mrf.mxu1  ;;  %v5741_v30 = vpop.f32.mrf.mxu0 }
 0x64e   : > { %v5742_v63 = vadd.f32 %v5741_v30, %v14357_v10  ;;  %v6210_v57 = vpack.c.bf16 %v6110_v9, %v6108_v26  ;;  %v5984_v59 = vadd.f32 %v14266_v41, %v5740_v16  ;;  %v6111_v16 = vmax.f32 %v5983_v43, 0.0  ;;  %v11924_v43 = vld [vmem:[#allocation14 + $0x24] ss:$8 sps:$4 sm:$0xff]  }
 0x64f   : > { %v14513_v48 = vpop.f32.mrf.mxu1  ;;  %v5743_v39 = vpop.f32.mrf.mxu0  ;;  %7959 = vmatprep.subr.bf16.mxu1 %v11924_v43 }
 0x650   : > { %v5985_v47 = vadd.f32 %v14269_v33, %v5742_v63  ;;  %v5744_v44 = vadd.f32 %v5743_v39, %v14361_v42  ;;  %6613 = vmatprep.mubr.bf16.mxu1 %v6210_v57  ;;  %v6112_v60 = vmax.f32 %v5984_v59, 0.0 }
 0x651   : > { %v14519_v46 = vpop.f32.mrf.mxu1  ;;  %v5747_v52 = vpop.f32.mrf.mxu0  ;;  %6614 = vmatmul.mubr.bf16.gmra.mxu1 %v6209_v19 }
 0x652   : > { %v5986_v10 = vadd.f32 %v14266_v41, %v5744_v44  ;;  %v6113_v38 = vmax.f32 %v5985_v47, 0.0  ;;  %v5748_v42 = vadd.f32 %v5747_v52, %v14364_v3 }
 0x653   : > { %v14522_v29 = vpop.f32.mrf.mxu1  ;;  %v5749_v40 = vpop.f32.mrf.mxu0 }
 0x654   : > { %v6114_v26 = vmax.f32 %v5986_v10, 0.0  ;;  %v5750_v9 = vadd.f32 %v5749_v40, %v14370_v62  ;;  %v6211_v57 = vpack.c.bf16 %v6113_v38, %v6111_v16  ;;  %v11922_v62 = vld [vmem:[#allocation14 + $0x20] ss:$8 sps:$4 sm:$0xff]   ;;  %v5987_v3 = vadd.f32 %v14269_v33, %v5748_v42 }
 0x655   : > { %v14526_v45 = vpop.f32.mrf.mxu1  ;;  %v5751_v27 = vpop.f32.mrf.mxu0  ;;  %7960 = vmatpush1.bf16.msra.mxu1 %v11922_v62 }
 0x656   : > { %v5752_v30 = vadd.f32 %v5751_v27, %v14376_v11  ;;  %v6212_v63 = vpack.c.bf16 %v6114_v26, %v6112_v60  ;;  %v5988_v47 = vadd.f32 %v14266_v41, %v5750_v9  ;;  %v6115_v16 = vmax.f32 %v5987_v3, 0.0 }
 0x657   : > { %v14529_v19 = vpop.f32.mrf.mxu1  ;;  %v5753_v39 = vpop.f32.mrf.mxu0 }
 0x658   : > { %v5989_v59 = vadd.f32 %v14269_v33, %v5752_v30  ;;  %v5754_v44 = vadd.f32 %v5753_v39, %v14380_v21  ;;  %6623 = vmatprep.mubr.bf16.mxu1 %v6212_v63  ;;  %v6116_v26 = vmax.f32 %v5988_v47, 0.0 }
 0x659   : > { %v14535_v52 = vpop.f32.mrf.mxu1  ;;  %v5757_v10 = vpop.f32.mrf.mxu0  ;;  %6624 = vmatmul.mubr.bf16.gmra.mxu1 %v6211_v57 }
 0x65a   : > { %v5990_v11 = vadd.f32 %v14266_v41, %v5754_v44  ;;  %v6117_v38 = vmax.f32 %v5989_v59, 0.0  ;;  %v5758_v27 = vadd.f32 %v5757_v10, %v14383_v2 }
 0x65b   : > { %v14538_v40 = vpop.f32.mrf.mxu1  ;;  %v5759_v60 = vpop.f32.mrf.mxu0 }
 0x65c   : > { %v6118_v9 = vmax.f32 %v5990_v11, 0.0  ;;  %v5760_v21 = vadd.f32 %v5759_v60, %v14389_v55  ;;  %v6213_v39 = vpack.c.bf16 %v6117_v38, %v6115_v16  ;;  %v5991_v55 = vadd.f32 %v14269_v33, %v5758_v27 }
 0x65d   : > { %v14542_v42 = vpop.f32.mrf.mxu1  ;;  %v5761_v30 = vpop.f32.mrf.mxu0 }
 0x65e   : > { %v5762_v63 = vadd.f32 %v5761_v30, %v14394_v15  ;;  %v6214_v57 = vpack.c.bf16 %v6118_v9, %v6116_v26  ;;  %v5992_v43 = vadd.f32 %v14266_v41, %v5760_v21  ;;  %v6119_v21 = vmax.f32 %v5991_v55, 0.0 }
 0x65f   : > { %v14545_v44 = vpop.f32.mrf.mxu1  ;;  %v5763_v59 = vpop.f32.mrf.mxu0 }
 0x660   : > { %v5993_v47 = vadd.f32 %v14269_v33, %v5762_v63  ;;  %v5764_v62 = vadd.f32 %v5763_v59, %v14398_v1  ;;  %6633 = vmatprep.mubr.bf16.mxu1 %v6214_v57  ;;  %v6120_v60 = vmax.f32 %v5992_v43, 0.0  ;;  %v11925_v57 = vld [vmem:[#allocation14 + $0x10] ss:$8 sps:$4 sm:$0xff]  }
 0x661   : > { %v14551_v2 = vpop.f32.mrf.mxu1  ;;  %v5767_v3 = vpop.f32.mrf.mxu0  ;;  %6634 = vmatmul.mubr.bf16.gmra.mxu1 %v6213_v39  ;;  %v11927_v39 = vld [vmem:[#allocation14 + $0x14] ss:$8 sps:$4 sm:$0xff]  }
 0x662   : > { %v5994_v15 = vadd.f32 %v14266_v41, %v5764_v62  ;;  %v6121_v10 = vmax.f32 %v5993_v47, 0.0  ;;  %v5768_v1 = vadd.f32 %v5767_v3, %v14401_v17  ;;  %7961 = vmatprep.subr.bf16.mxu1 %v11927_v39 }
 0x663   : > { %v14554_v11 = vpop.f32.mrf.mxu1  ;;  %v5769_v38 = vpop.f32.mrf.mxu0  ;;  %7962 = vmatpush1.bf16.msra.mxu1 %v11925_v57 }
 0x664   : > { %v6122_v26 = vmax.f32 %v5994_v15, 0.0  ;;  %v5770_v9 = vadd.f32 %v5769_v38, %v14407_v13  ;;  %v6215_v59 = vpack.c.bf16 %v6121_v10, %v6119_v21  ;;  %v5995_v17 = vadd.f32 %v14269_v33, %v5768_v1 }
 0x665   : > { %v14558_v16 = vpop.f32.mrf.mxu1  ;;  %v5771_v27 = vpop.f32.mrf.mxu0 }
 0x666   : > { %v5772_v30 = vadd.f32 %v5771_v27, %v14410_v31  ;;  %v6216_v63 = vpack.c.bf16 %v6122_v26, %v6120_v60  ;;  %v5996_v43 = vadd.f32 %v14266_v41, %v5770_v9 }
 0x667   : > { %v14561_v47 = vpop.f32.mrf.mxu1  ;;  %v5773_v62 = vpop.f32.mrf.mxu0 }
 0x668   : > { %v5997_v15 = vadd.f32 %v14269_v33, %v5772_v30  ;;  %v5774_v13 = vadd.f32 %v5773_v62, %v14414_v37  ;;  %6643 = vmatprep.mubr.bf16.mxu1 %v6216_v63  ;;  %v6124_v26 = vmax.f32 %v5996_v43, 0.0  ;;  %v6123_v37 = vmax.f32 %v5995_v17, 0.0 }
 0x669   : > { %v14567_v55 = vpop.f32.mrf.mxu1  ;;  %v5777_v31 = vpop.f32.mrf.mxu0  ;;  %6644 = vmatmul.mubr.bf16.gmra.mxu1 %v6215_v59 }
 0x66a   : > { %v5998_v3 = vadd.f32 %v14266_v41, %v5774_v13  ;;  %v6125_v10 = vmax.f32 %v5997_v15, 0.0  ;;  %v5778_v27 = vadd.f32 %v5777_v31, %v14417_v5 }
 0x66b   : > { %v14570_v38 = vpop.f32.mrf.mxu1  ;;  %v5779_v60 = vpop.f32.mrf.mxu0 }
 0x66c   : > { %v6126_v9 = vmax.f32 %v5998_v3, 0.0  ;;  %v5780_v21 = vadd.f32 %v5779_v60, %v14423_v53  ;;  %v6217_v59 = vpack.c.bf16 %v6125_v10, %v6123_v37  ;;  %v5999_v53 = vadd.f32 %v14269_v33, %v5778_v27 }
 0x66d   : > { %v14574_v30 = vpop.f32.mrf.mxu1  ;;  %v5781_v1 = vpop.f32.mrf.mxu0 }
 0x66e   : > { %v5782_v63 = vadd.f32 %v5781_v1, %v14426_v56  ;;  %v6218_v39 = vpack.c.bf16 %v6126_v9, %v6124_v26  ;;  %v6000_v15 = vadd.f32 %v14266_v41, %v5780_v21  ;;  %v6127_v21 = vmax.f32 %v5999_v53, 0.0 }
 0x66f   : > { %v14577_v62 = vpop.f32.mrf.mxu1  ;;  %v5783_v57 = vpop.f32.mrf.mxu0 }
 0x670   : > { %v6001_v43 = vadd.f32 %v14269_v33, %v5782_v63  ;;  %v5784_v13 = vadd.f32 %v5783_v57, %v14430_v54  ;;  %6653 = vmatprep.mubr.bf16.mxu1 %v6218_v39  ;;  %v6128_v60 = vmax.f32 %v6000_v15, 0.0  ;;  %v11928_v63 = vld [vmem:[#allocation14] ss:$8 sps:$4 sm:$0xff]   ;;  %v11930_v39 = vld [vmem:[#allocation14 + $0x4] ss:$8 sps:$4 sm:$0xff]  }
 0x671   : > { %v14583_v5 = vpop.f32.mrf.mxu1  ;;  %v5787_v17 = vpop.f32.mrf.mxu0  ;;  %6654 = vmatmul.mubr.bf16.gmra.mxu1 %v6217_v59  ;;  %7963 = vmatprep.subr.bf16.mxu1 %v11930_v39 }
 0x672   : > { %v6002_v56 = vadd.f32 %v14266_v41, %v5784_v13  ;;  %v6129_v31 = vmax.f32 %v6001_v43, 0.0  ;;  %v5788_v54 = vadd.f32 %v5787_v17, %v14433_v7  ;;  %7964 = vmatpush1.bf16.msra.mxu1 %v11928_v63 }
 0x673   : > { %v14586_v3 = vpop.f32.mrf.mxu1  ;;  %v5789_v10 = vpop.f32.mrf.mxu0 }
 0x674   : > { %v6130_v26 = vmax.f32 %v6002_v56, 0.0  ;;  %v5790_v9 = vadd.f32 %v5789_v10, %v14439_v6  ;;  %v6219_v59 = vpack.c.bf16 %v6129_v31, %v6127_v21  ;;  %v6003_v7 = vadd.f32 %v14269_v33, %v5788_v54 }
 0x675   : > { %v5791_v37 = vpop.f32.mrf.mxu0  ;;  %v14591_v57 = vpop.f32.mrf.mxu1 }
 0x676   : > { %v5792_v27 = vadd.f32 %v5791_v37, %v14442_v36  ;;  %v6220_v1 = vpack.c.bf16 %v6130_v26, %v6128_v60  ;;  %v6004_v13 = vadd.f32 %v14266_v41, %v5790_v9  ;;  %v6131_v9 = vmax.f32 %v6003_v7, 0.0 }
 0x677   : > { %v5793_v43 = vpop.f32.mrf.mxu0  ;;  %v14598_v17 = vpop.f32.mrf.mxu1 }
 0x678   : > { %v6005_v15 = vadd.f32 %v14269_v33, %v5792_v27  ;;  %v5794_v56 = vadd.f32 %v5793_v43, %v14446_v58  ;;  %6663 = vmatprep.mubr.bf16.mxu1 %v6220_v1  ;;  %v6132_v10 = vmax.f32 %v6004_v13, 0.0 }
 0x679   : > { %v5797_v6 = vpop.f32.mrf.mxu0  ;;  %6664 = vmatmul.mubr.bf16.gmra.mxu1 %v6219_v59  ;;  %v14603_v1 = vpop.f32.mrf.mxu1 }
 0x67a   : > { %v6006_v36 = vadd.f32 %v14266_v41, %v5794_v56  ;;  %v6133_v53 = vmax.f32 %v6005_v15, 0.0  ;;  %v5798_v58 = vadd.f32 %v5797_v6, %v14449_v22 }
 0x67b   : > { %v5799_v31 = vpop.f32.mrf.mxu0  ;;  %v14610_v15 = vpop.f32.mrf.mxu1 }
 0x67c   : > { %v6134_v60 = vmax.f32 %v6006_v36, 0.0  ;;  %v5800_v26 = vadd.f32 %v5799_v31, %v14455_v24  ;;  %v6221_v27 = vpack.c.bf16 %v6133_v53, %v6131_v9  ;;  %v6007_v24 = vadd.f32 %v14269_v33, %v5798_v58  ;;  %v11933_v9 = vld [vmem:[#allocation14 + $0xf4] ss:$8 sps:$4 sm:$0xff]  }
 0x67d   : > { %v5801_v21 = vpop.f32.mrf.mxu0  ;;  %v14615_v58 = vpop.f32.mrf.mxu1  ;;  %7965 = vmatprep.subr.bf16.mxu1 %v11933_v9 }
 0x67e   : > { %v5802_v37 = vadd.f32 %v5801_v21, %v14458_v18  ;;  %v6222_v54 = vpack.c.bf16 %v6134_v60, %v6132_v10  ;;  %v6008_v63 = vadd.f32 %v14266_v41, %v5800_v26  ;;  %v6135_v53 = vmax.f32 %v6007_v24, 0.0  ;;  %v11931_v26 = vld [vmem:[#allocation14 + $0xf0] ss:$8 sps:$4 sm:$0xff]  }
 0x67f   : > { %v5803_v39 = vpop.f32.mrf.mxu0  ;;  %7966 = vmatpush2.bf16.msra.mxu1 %v11931_v26 }
 0x680   : > { %v6009_v59 = vadd.f32 %v14269_v33, %v5802_v37  ;;  %v5804_v43 = vadd.f32 %v5803_v39, %v14462_v8  ;;  %6673 = vmatprep.mubr.bf16.mxu1 %v6222_v54  ;;  %v6136_v7 = vmax.f32 %v6008_v63, 0.0  ;;  %v14622_v63 = vpop.f32.mrf.mxu1 }
 0x681   : > { %v5807_v13 = vpop.f32.mrf.mxu0  ;;  %6674 = vmatmul.mubr.bf16.gmra.mxu1 %v6221_v27 }
 0x682   : > { %v6010_v22 = vadd.f32 %v14266_v41, %v5804_v43  ;;  %v6137_v18 = vmax.f32 %v6009_v59, 0.0  ;;  %v5808_v31 = vadd.f32 %v5807_v13, %v14465_v50 }
 0x683   : > { %v5809_v56 = vpop.f32.mrf.mxu0 }
 0x684   : > { %v6138_v6 = vmax.f32 %v6010_v22, 0.0  ;;  %v5810_v36 = vadd.f32 %v5809_v56, %v14471_v34  ;;  %v6223_v21 = vpack.c.bf16 %v6137_v18, %v6135_v53  ;;  %v6011_v50 = vadd.f32 %v14269_v33, %v5808_v31 }
 0x685   : > { %v5811_v10 = vpop.f32.mrf.mxu0 }
 0x686   : > { %v5812_v8 = vadd.f32 %v5811_v10, %v14474_v14  ;;  %v6224_v60 = vpack.c.bf16 %v6138_v6, %v6136_v7  ;;  %v6012_v54 = vadd.f32 %v14266_v41, %v5810_v36  ;;  %v6139_v18 = vmax.f32 %v6011_v50, 0.0  ;;  %v14627_v36 = vpop.f32.mrf.mxu1 }
 0x687   : > { %v5813_v37 = vpop.f32.mrf.mxu0 }
 0x688   : > { %v6013_v27 = vadd.f32 %v14269_v33, %v5812_v8  ;;  %v5814_v39 = vadd.f32 %v5813_v37, %v14478_v20  ;;  %6683 = vmatprep.mubr.bf16.mxu1 %v6224_v60  ;;  %v6140_v24 = vmax.f32 %v6012_v54, 0.0  ;;  %v14634_v9 = vpop.f32.mrf.mxu1 }
 0x689   : > { %v5817_v34 = vpop.f32.mrf.mxu0  ;;  %6684 = vmatmul.mubr.bf16.gmra.mxu1 %v6223_v21 }
 0x68a   : > { %v6014_v14 = vadd.f32 %v14266_v41, %v5814_v39  ;;  %v6141_v59 = vmax.f32 %v6013_v27, 0.0  ;;  %v5818_v20 = vadd.f32 %v5817_v34, %v14481_v61 }
 0x68b   : > { %v5819_v43 = vpop.f32.mrf.mxu0 }
 0x68c   : > { %v6142_v13 = vmax.f32 %v6014_v14, 0.0  ;;  %v5820_v22 = vadd.f32 %v5819_v43, %v14487_v35  ;;  %v6225_v53 = vpack.c.bf16 %v6141_v59, %v6139_v18  ;;  %v6015_v35 = vadd.f32 %v14269_v33, %v5818_v20  ;;  %v11934_v59 = vld [vmem:[#allocation14 + $0xe0] ss:$8 sps:$4 sm:$0xff]   ;;  %v11936_v43 = vld [vmem:[#allocation14 + $0xe4] ss:$8 sps:$4 sm:$0xff]  }
 0x68d   : > { %v5821_v56 = vpop.f32.mrf.mxu0  ;;  %7967 = vmatprep.subr.bf16.mxu1 %v11936_v43 }
 0x68e   : > { %v5822_v7 = vadd.f32 %v5821_v56, %v14490_v12  ;;  %v6226_v6 = vpack.c.bf16 %v6142_v13, %v6140_v24  ;;  %v6016_v10 = vadd.f32 %v14266_v41, %v5820_v22  ;;  %v6143_v39 = vmax.f32 %v6015_v35, 0.0  ;;  %v14639_v24 = vpop.f32.mrf.mxu1  ;;  %7968 = vmatpush2.bf16.msra.mxu1 %v11934_v59 }
 0x68f   : > { %v5823_v31 = vpop.f32.mrf.mxu0 }
 0x690   : > { %v6017_v8 = vadd.f32 %v14269_v33, %v5822_v7  ;;  %v5824_v60 = vadd.f32 %v5823_v31, %v14494_v4  ;;  %6693 = vmatprep.mubr.bf16.mxu1 %v6226_v6  ;;  %v6144_v37 = vmax.f32 %v6016_v10, 0.0  ;;  %v14646_v7 = vpop.f32.mrf.mxu1 }
 0x691   : > { %v5827_v26 = vpop.f32.mrf.mxu0  ;;  %6694 = vmatmul.mubr.bf16.gmra.mxu1 %v6225_v53 }
 0x692   : > { %v6018_v61 = vadd.f32 %v14266_v41, %v5824_v60  ;;  %v6145_v12 = vmax.f32 %v6017_v8, 0.0  ;;  %v5828_v50 = vadd.f32 %v5827_v26, %v14497_v32 }
 0x693   : > { %v5829_v21 = vpop.f32.mrf.mxu0 }
 0x694   : > { %v6146_v54 = vmax.f32 %v6018_v61, 0.0  ;;  %v5830_v27 = vadd.f32 %v5829_v21, %v14503_v51  ;;  %v6227_v13 = vpack.c.bf16 %v6145_v12, %v6143_v39  ;;  %v6019_v32 = vadd.f32 %v14269_v33, %v5828_v50  ;;  %v14651_v12 = vpop.f32.mrf.mxu1 }
 0x695   : > { %v5831_v34 = vpop.f32.mrf.mxu0 }
 0x696   : > { %v5832_v4 = vadd.f32 %v5831_v34, %v14506_v23  ;;  %v6228_v14 = vpack.c.bf16 %v6146_v54, %v6144_v37  ;;  %v6020_v18 = vadd.f32 %v14266_v41, %v5830_v27  ;;  %v6147_v60 = vmax.f32 %v6019_v32, 0.0  ;;  %v14658_v34 = vpop.f32.mrf.mxu1  ;;  %v11939_v32 = vld [vmem:[#allocation14 + $0xd4] ss:$8 sps:$4 sm:$0xff]  }
 0x697   : > { %v5833_v22 = vpop.f32.mrf.mxu0  ;;  %7969 = vmatprep.subr.bf16.mxu1 %v11939_v32 }
 0x698   : > { %v6021_v20 = vadd.f32 %v14269_v33, %v5832_v4  ;;  %v5834_v56 = vadd.f32 %v5833_v22, %v14510_v49  ;;  %6703 = vmatprep.mubr.bf16.mxu1 %v6228_v14  ;;  %v6148_v31 = vmax.f32 %v6020_v18, 0.0 }
 0x699   : > { %v5837_v51 = vpop.f32.mrf.mxu0  ;;  %6704 = vmatmul.mubr.bf16.gmra.mxu1 %v6227_v13 }
 0x69a   : > { %v6022_v23 = vadd.f32 %v14266_v41, %v5834_v56  ;;  %v6149_v6 = vmax.f32 %v6021_v20, 0.0  ;;  %v5838_v49 = vadd.f32 %v5837_v51, %v14513_v48  ;;  %v11937_v56 = vld [vmem:[#allocation14 + $0xd0] ss:$8 sps:$4 sm:$0xff]   ;;  %v14663_v51 = vpop.f32.mrf.mxu1 }
 0x69b   : > { %v5839_v53 = vpop.f32.mrf.mxu0  ;;  %7970 = vmatpush2.bf16.msra.mxu1 %v11937_v56 }
 0x69c   : > { %v6150_v10 = vmax.f32 %v6022_v23, 0.0  ;;  %v5840_v8 = vadd.f32 %v5839_v53, %v14519_v46  ;;  %v6229_v21 = vpack.c.bf16 %v6149_v6, %v6147_v60  ;;  %v6023_v46 = vadd.f32 %v14269_v33, %v5838_v49 }
 0x69d   : > { %v5841_v35 = vpop.f32.mrf.mxu0 }
 0x69e   : > { %v5842_v26 = vadd.f32 %v5841_v35, %v14522_v29  ;;  %v6230_v61 = vpack.c.bf16 %v6150_v10, %v6148_v31  ;;  %v6024_v54 = vadd.f32 %v14266_v41, %v5840_v8  ;;  %v6151_v13 = vmax.f32 %v6023_v46, 0.0 }
 0x69f   : > { %v5843_v37 = vpop.f32.mrf.mxu0 }
 0x6a0   : > { %v6025_v27 = vadd.f32 %v14269_v33, %v5842_v26  ;;  %v5844_v39 = vadd.f32 %v5843_v37, %v14526_v45  ;;  %6713 = vmatprep.mubr.bf16.mxu1 %v6230_v61  ;;  %v6152_v14 = vmax.f32 %v6024_v54, 0.0 }
 0x6a1   : > { %v5847_v50 = vpop.f32.mrf.mxu0  ;;  %6714 = vmatmul.mubr.bf16.gmra.mxu1 %v6229_v21 }
 0x6a2   : > { %v6026_v48 = vadd.f32 %v14266_v41, %v5844_v39  ;;  %v6153_v29 = vmax.f32 %v6025_v27, 0.0  ;;  %v5848_v22 = vadd.f32 %v5847_v50, %v14529_v19 }
 0x6a3   : > { %v5849_v4 = vpop.f32.mrf.mxu0 }
 0x6a4   : > { %v6154_v59 = vmax.f32 %v6026_v48, 0.0  ;;  %v5850_v43 = vadd.f32 %v5849_v4, %v14535_v52  ;;  %v6231_v23 = vpack.c.bf16 %v6153_v29, %v6151_v13  ;;  %v6027_v19 = vadd.f32 %v14269_v33, %v5848_v22 }
 0x6a5   : > { %v5851_v18 = vpop.f32.mrf.mxu0 }
 0x6a6   : > { %v5852_v45 = vadd.f32 %v5851_v18, %v14538_v40  ;;  %v6232_v20 = vpack.c.bf16 %v6154_v59, %v6152_v14  ;;  %v6028_v53 = vadd.f32 %v14266_v41, %v5850_v43  ;;  %v6279_v40 = vld [vmem:[%s16624_s16] sm:$0x3]  ;;  %v6155_v54 = vmax.f32 %v6027_v19, 0.0 }
 0x6a7   : > { %v5853_v6 = vpop.f32.mrf.mxu0  ;;  %v14674_v26 = vrot.slane %v6279_v40, %v12984_v25  ;;  %v14677_v37 = vrot.slane %v6279_v40, %v12992_v28 }
 0x6a8   : > { %v6029_v31 = vadd.f32 %v14269_v33, %v5852_v45  ;;  %v5854_v10 = vadd.f32 %v5853_v6, %v14542_v42  ;;  %6723 = vmatprep.mubr.bf16.mxu1 %v6232_v20  ;;  %v6156_v61 = vmax.f32 %v6028_v53, 0.0 }
 0x6a9   : > { %v5857_v52 = vpop.f32.mrf.mxu0  ;;  %v6485_v8 = vpop.f32.mrf.mxu1  ;;  %6724 = vmatmul.mubr.bf16.gmra.mxu1 %v6231_v23 }
 0x6aa   : > { %v6030_v60 = vadd.f32 %v14266_v41, %v5854_v10  ;;  %v6157_v49 = vmax.f32 %v6029_v31, 0.0  ;;  %v5858_v27 = vadd.f32 %v5857_v52, %v14545_v44  ;;  %v6486_v22 = vadd.f32 %v6485_v8, %v14677_v37 }
 0x6ab   : > { %v5859_v35 = vpop.f32.mrf.mxu0  ;;  %v6487_v42 = vpop.f32.mrf.mxu1 }
 0x6ac   : > { %v6158_v21 = vmax.f32 %v6030_v60, 0.0  ;;  %v5860_v39 = vadd.f32 %v5859_v35, %v14551_v2  ;;  %v6233_v14 = vpack.c.bf16 %v6157_v49, %v6155_v54  ;;  %v6488_v59 = vadd.f32 %v6487_v42, %v14674_v26 }
 0x6ad   : > { %v5861_v46 = vpop.f32.mrf.mxu0  ;;  %v6489_v50 = vpop.f32.mrf.mxu1  ;;  %v6031_v45 = vadd.f32 %v14269_v33, %v5858_v27  ;;  %v6804_v19 = vmax.f32 %v6486_v22, 0.0 }
 0x6ae   : > { %v5862_v48 = vadd.f32 %v5861_v46, %v14554_v11  ;;  %v6490_v29 = vadd.f32 %v6489_v50, %v14677_v37  ;;  %v6234_v4 = vpack.c.bf16 %v6158_v21, %v6156_v61  ;;  %v6032_v11 = vadd.f32 %v14266_v41, %v5860_v39  ;;  %v11940_v39 = vld [vmem:[#allocation14 + $0xc0] ss:$8 sps:$4 sm:$0xff]   ;;  %v11942_v46 = vld [vmem:[#allocation14 + $0xc4] ss:$8 sps:$4 sm:$0xff]  }
 0x6af   : > { %v5863_v43 = vpop.f32.mrf.mxu0  ;;  %v6491_v13 = vpop.f32.mrf.mxu1  ;;  %v6805_v53 = vmax.f32 %v6488_v59, 0.0  ;;  %v6159_v40 = vmax.f32 %v6031_v45, 0.0  ;;  %7971 = vmatprep.subr.bf16.mxu1 %v11942_v46 }
 0x6b0   : > { %v6033_v18 = vadd.f32 %v14269_v33, %v5862_v48  ;;  %v5864_v44 = vadd.f32 %v5863_v43, %v14558_v16  ;;  %v6492_v2 = vadd.f32 %v6491_v13, %v14674_v26  ;;  %6733 = vmatprep.mubr.bf16.mxu1 %v6234_v4  ;;  %v6806_v32 = vmax.f32 %v6490_v29, 0.0  ;;  %7972 = vmatpush2.bf16.msra.mxu1 %v11940_v39 }
 0x6b1   : > { %v5867_v20 = vpop.f32.mrf.mxu0  ;;  %v6495_v56 = vpop.f32.mrf.mxu1  ;;  %6734 = vmatmul.mubr.bf16.gmra.mxu1 %v6233_v14  ;;  %v6160_v8 = vmax.f32 %v6032_v11, 0.0 }
 0x6b2   : > { %v6034_v23 = vadd.f32 %v14266_v41, %v5864_v44  ;;  %v6807_v6 = vmax.f32 %v6492_v2, 0.0  ;;  %v6161_v52 = vmax.f32 %v6033_v18, 0.0  ;;  %v6932_v61 = vpack.c.bf16 %v6806_v32, %v6804_v19 }
 0x6b3   : > { %v5869_v31 = vpop.f32.mrf.mxu0  ;;  %v6497_v10 = vpop.f32.mrf.mxu1  ;;  %v5868_v21 = vadd.f32 %v5867_v20, %v14561_v47  ;;  %v6496_v50 = vadd.f32 %v6495_v56, %v14677_v37 }
 0x6b4   : > { %v6162_v16 = vmax.f32 %v6034_v23, 0.0  ;;  %v5870_v60 = vadd.f32 %v5869_v31, %v14567_v55  ;;  %v6933_v42 = vpack.c.bf16 %v6807_v6, %v6805_v53  ;;  %v6498_v48 = vadd.f32 %v6497_v10, %v14674_v26 }
 0x6b5   : > { %v5871_v49 = vpop.f32.mrf.mxu0  ;;  %v6499_v35 = vpop.f32.mrf.mxu1  ;;  %v6235_v14 = vpack.c.bf16 %v6161_v52, %v6159_v40  ;;  %v6035_v18 = vadd.f32 %v14269_v33, %v5868_v21  ;;  %v6808_v56 = vmax.f32 %v6496_v50, 0.0 }
 0x6b6   : > { %v5872_v54 = vadd.f32 %v5871_v49, %v14570_v38  ;;  %v6500_v27 = vadd.f32 %v6499_v35, %v14677_v37  ;;  %7232 = vmatprep.mubr.bf16.mxu0 %v6933_v42  ;;  %v6236_v55 = vpack.c.bf16 %v6162_v16, %v6160_v8  ;;  %v6036_v47 = vadd.f32 %v14266_v41, %v5870_v60 }
 0x6b7   : > { %v5873_v29 = vpop.f32.mrf.mxu0  ;;  %v6501_v4 = vpop.f32.mrf.mxu1  ;;  %7233 = vmatmul.mubr.bf16.vlgmr.msra.gmra.mxu0 %v6932_v61  ;;  %v6809_v45 = vmax.f32 %v6498_v48, 0.0  ;;  %v6163_v16 = vmax.f32 %v6035_v18, 0.0 }
 0x6b8   : > { %v6037_v59 = vadd.f32 %v14269_v33, %v5872_v54  ;;  %v5874_v43 = vadd.f32 %v5873_v29, %v14574_v30  ;;  %v6502_v38 = vadd.f32 %v6501_v4, %v14674_v26  ;;  %6743 = vmatprep.mubr.bf16.mxu1 %v6236_v55  ;;  %v6810_v44 = vmax.f32 %v6500_v27, 0.0 }
 0x6b9   : > { %v5877_v13 = vpop.f32.mrf.mxu0  ;;  %v6505_v22 = vpop.f32.mrf.mxu1  ;;  %6744 = vmatmul.mubr.bf16.gmra.mxu1 %v6235_v14  ;;  %v6164_v6 = vmax.f32 %v6036_v47, 0.0 }
 0x6ba   : > { %v6038_v2 = vadd.f32 %v14266_v41, %v5874_v43  ;;  %v6811_v11 = vmax.f32 %v6502_v38, 0.0  ;;  %v6165_v32 = vmax.f32 %v6037_v59, 0.0  ;;  %v5878_v53 = vadd.f32 %v5877_v13, %v14577_v62 }
 0x6bb   : > { %v5879_v20 = vpop.f32.mrf.mxu0  ;;  %v6507_v30 = vpop.f32.mrf.mxu1  ;;  %v6934_v40 = vpack.c.bf16 %v6810_v44, %v6808_v56  ;;  %v6506_v62 = vadd.f32 %v6505_v22, %v14677_v37  ;;  %v11943_v56 = vld [vmem:[#allocation14 + $0xb0] ss:$8 sps:$4 sm:$0xff]  }
 0x6bc   : > { %v6166_v23 = vmax.f32 %v6038_v2, 0.0  ;;  %v5880_v31 = vadd.f32 %v5879_v20, %v14583_v5  ;;  %v6935_v52 = vpack.c.bf16 %v6811_v11, %v6809_v45  ;;  %v6508_v49 = vadd.f32 %v6507_v30, %v14674_v26 }
 0x6bd   : > { %v5881_v10 = vpop.f32.mrf.mxu0  ;;  %v6509_v19 = vpop.f32.mrf.mxu1  ;;  %v6237_v21 = vpack.c.bf16 %v6165_v32, %v6163_v16  ;;  %v6039_v27 = vadd.f32 %v14269_v33, %v5878_v53  ;;  %v6812_v43 = vmax.f32 %v6506_v62, 0.0  ;;  %v11945_v32 = vld [vmem:[#allocation14 + $0xb4] ss:$8 sps:$4 sm:$0xff]  }
 0x6be   : > { %v5882_v8 = vadd.f32 %v5881_v10, %v14586_v3  ;;  %v6510_v60 = vadd.f32 %v6509_v19, %v14677_v37  ;;  %7242 = vmatprep.mubr.bf16.mxu0 %v6935_v52  ;;  %v6238_v61 = vpack.c.bf16 %v6166_v23, %v6164_v6  ;;  %v6040_v3 = vadd.f32 %v14266_v41, %v5880_v31 }
 0x6bf   : > { %v5883_v35 = vpop.f32.mrf.mxu0  ;;  %v6511_v42 = vpop.f32.mrf.mxu1  ;;  %7243 = vmatmul.mubr.bf16.gmra.mxu0 %v6934_v40  ;;  %v6813_v4 = vmax.f32 %v6508_v49, 0.0  ;;  %v6167_v38 = vmax.f32 %v6039_v27, 0.0  ;;  %7973 = vmatprep.subr.bf16.mxu1 %v11945_v32 }
 0x6c0   : > { %v6041_v5 = vadd.f32 %v14269_v33, %v5882_v8  ;;  %v5884_v54 = vadd.f32 %v5883_v35, %v14591_v57  ;;  %v6512_v39 = vadd.f32 %v6511_v42, %v14674_v26  ;;  %6753 = vmatprep.mubr.bf16.mxu1 %v6238_v61  ;;  %v6814_v48 = vmax.f32 %v6510_v60, 0.0  ;;  %7974 = vmatpush2.bf16.msra.mxu1 %v11943_v56 }
 0x6c1   : > { %v5887_v46 = vpop.f32.mrf.mxu0  ;;  %v6515_v50 = vpop.f32.mrf.mxu1  ;;  %6754 = vmatmul.mubr.bf16.gmra.mxu1 %v6237_v21  ;;  %v6168_v13 = vmax.f32 %v6040_v3, 0.0 }
 0x6c2   : > { %v6042_v29 = vadd.f32 %v14266_v41, %v5884_v54  ;;  %v6815_v55 = vmax.f32 %v6512_v39, 0.0  ;;  %v6169_v57 = vmax.f32 %v6041_v5, 0.0  ;;  %v6936_v45 = vpack.c.bf16 %v6814_v48, %v6812_v43 }
 0x6c3   : > { %v5889_v14 = vpop.f32.mrf.mxu0  ;;  %v6517_v59 = vpop.f32.mrf.mxu1  ;;  %v5888_v11 = vadd.f32 %v5887_v46, %v14598_v17  ;;  %v6516_v23 = vadd.f32 %v6515_v50, %v14677_v37 }
 0x6c4   : > { %v6170_v47 = vmax.f32 %v6042_v29, 0.0  ;;  %v5890_v22 = vadd.f32 %v5889_v14, %v14603_v1  ;;  %v6937_v2 = vpack.c.bf16 %v6815_v55, %v6813_v4  ;;  %v6518_v6 = vadd.f32 %v6517_v59, %v14674_v26 }
 0x6c5   : > { %v5891_v18 = vpop.f32.mrf.mxu0  ;;  %v6519_v44 = vpop.f32.mrf.mxu1  ;;  %v6239_v10 = vpack.c.bf16 %v6169_v57, %v6167_v38  ;;  %v6043_v8 = vadd.f32 %v14269_v33, %v5888_v11  ;;  %v6816_v21 = vmax.f32 %v6516_v23, 0.0 }
 0x6c6   : > { %v5892_v20 = vadd.f32 %v5891_v18, %v14610_v15  ;;  %v6520_v30 = vadd.f32 %v6519_v44, %v14677_v37  ;;  %7252 = vmatprep.mubr.bf16.mxu0 %v6937_v2  ;;  %v6240_v1 = vpack.c.bf16 %v6170_v47, %v6168_v13  ;;  %v6044_v17 = vadd.f32 %v14266_v41, %v5890_v22 }
 0x6c7   : > { %v5893_v53 = vpop.f32.mrf.mxu0  ;;  %v6521_v31 = vpop.f32.mrf.mxu1  ;;  %7253 = vmatmul.mubr.bf16.gmra.mxu0 %v6936_v45  ;;  %v6817_v35 = vmax.f32 %v6518_v6, 0.0  ;;  %v6171_v48 = vmax.f32 %v6043_v8, 0.0  ;;  %v11948_v8 = vld [vmem:[#allocation14 + $0xa4] ss:$8 sps:$4 sm:$0xff]  }
 0x6c8   : > { %v6045_v19 = vadd.f32 %v14269_v33, %v5892_v20  ;;  %v5894_v52 = vadd.f32 %v5893_v53, %v14615_v58  ;;  %v6522_v15 = vadd.f32 %v6521_v31, %v14674_v26  ;;  %6763 = vmatprep.mubr.bf16.mxu1 %v6240_v1  ;;  %v6818_v60 = vmax.f32 %v6520_v30, 0.0  ;;  %7975 = vmatprep.subr.bf16.mxu1 %v11948_v8 }
 0x6c9   : > { %v5897_v16 = vpop.f32.mrf.mxu0  ;;  %v6525_v40 = vpop.f32.mrf.mxu1  ;;  %6764 = vmatmul.mubr.bf16.gmra.mxu1 %v6239_v10  ;;  %v6172_v54 = vmax.f32 %v6044_v17, 0.0 }
 0x6ca   : > { %v6046_v49 = vadd.f32 %v14266_v41, %v5894_v52  ;;  %v6819_v42 = vmax.f32 %v6522_v15, 0.0  ;;  %v6173_v62 = vmax.f32 %v6045_v19, 0.0  ;;  %v5898_v27 = vadd.f32 %v5897_v16, %v14622_v63 }
 0x6cb   : > { %v5899_v61 = vpop.f32.mrf.mxu0  ;;  %v6527_v58 = vpop.f32.mrf.mxu1  ;;  %v6938_v29 = vpack.c.bf16 %v6818_v60, %v6816_v21  ;;  %v6526_v63 = vadd.f32 %v6525_v40, %v14677_v37  ;;  %v11946_v40 = vld [vmem:[#allocation14 + $0xa0] ss:$8 sps:$4 sm:$0xff]  }
 0x6cc   : > { %v6174_v5 = vmax.f32 %v6046_v49, 0.0  ;;  %v5900_v3 = vadd.f32 %v5899_v61, %v14627_v36  ;;  %v6939_v50 = vpack.c.bf16 %v6819_v42, %v6817_v35  ;;  %v6528_v14 = vadd.f32 %v6527_v58, %v14674_v26  ;;  %7976 = vmatpush2.bf16.msra.mxu1 %v11946_v40 }
 0x6cd   : > { %v5901_v39 = vpop.f32.mrf.mxu0  ;;  %v6529_v46 = vpop.f32.mrf.mxu1  ;;  %v6241_v47 = vpack.c.bf16 %v6173_v62, %v6171_v48  ;;  %v6047_v13 = vadd.f32 %v14269_v33, %v5898_v27 }
 0x6ce   : > { %v5902_v4 = vadd.f32 %v5901_v39, %v14634_v9  ;;  %v6530_v55 = vadd.f32 %v6529_v46, %v14677_v37  ;;  %7262 = vmatprep.mubr.bf16.mxu0 %v6939_v50  ;;  %v6242_v57 = vpack.c.bf16 %v6174_v5, %v6172_v54  ;;  %v6048_v9 = vadd.f32 %v14266_v41, %v5900_v3 }
 0x6cf   : > { %v5903_v59 = vpop.f32.mrf.mxu0  ;;  %v6531_v43 = vpop.f32.mrf.mxu1  ;;  %7263 = vmatmul.mubr.bf16.gmra.mxu0 %v6938_v29  ;;  %v6821_v11 = vmax.f32 %v6528_v14, 0.0  ;;  %v6175_v53 = vmax.f32 %v6047_v13, 0.0 }
 0x6d0   : > { %v6049_v36 = vadd.f32 %v14269_v33, %v5902_v4  ;;  %v5904_v38 = vadd.f32 %v5903_v59, %v14639_v24  ;;  %v6532_v22 = vadd.f32 %v6531_v43, %v14674_v26  ;;  %6773 = vmatprep.mubr.bf16.mxu1 %v6242_v57  ;;  %v6822_v2 = vmax.f32 %v6530_v55, 0.0 }
 0x6d1   : > { %v5907_v18 = vpop.f32.mrf.mxu0  ;;  %v6535_v44 = vpop.f32.mrf.mxu1  ;;  %6774 = vmatmul.mubr.bf16.gmra.mxu1 %v6241_v47  ;;  %v6820_v24 = vmax.f32 %v6526_v63, 0.0  ;;  %v6176_v31 = vmax.f32 %v6048_v9, 0.0 }
 0x6d2   : > { %v6050_v45 = vadd.f32 %v14266_v41, %v5904_v38  ;;  %v6177_v20 = vmax.f32 %v6049_v36, 0.0  ;;  %v6823_v30 = vmax.f32 %v6532_v22, 0.0  ;;  %v5908_v1 = vadd.f32 %v5907_v18, %v14646_v7 }
 0x6d3   : > { %v5909_v56 = vpop.f32.mrf.mxu0  ;;  %v6537_v32 = vpop.f32.mrf.mxu1  ;;  %v6940_v17 = vpack.c.bf16 %v6822_v2, %v6820_v24  ;;  %v6536_v49 = vadd.f32 %v6535_v44, %v14677_v37 }
 0x6d4   : > { %v6178_v23 = vmax.f32 %v6050_v45, 0.0  ;;  %v5910_v6 = vadd.f32 %v5909_v56, %v14651_v12  ;;  %v6941_v52 = vpack.c.bf16 %v6823_v30, %v6821_v11  ;;  %v6243_v60 = vpack.c.bf16 %v6177_v20, %v6175_v53  ;;  %v11949_v56 = vld [vmem:[#allocation14 + $0x90] ss:$8 sps:$4 sm:$0xff]  }
 0x6d5   : > { %v5911_v10 = vpop.f32.mrf.mxu0  ;;  %v6539_v19 = vpop.f32.mrf.mxu1  ;;  %v6538_v35 = vadd.f32 %v6537_v32, %v14674_v26  ;;  %v6824_v50 = vmax.f32 %v6536_v49, 0.0  ;;  %v11951_v32 = vld [vmem:[#allocation14 + $0x94] ss:$8 sps:$4 sm:$0xff]  }
 0x6d6   : > { %v5912_v15 = vadd.f32 %v5911_v10, %v14658_v34  ;;  %v6540_v16 = vadd.f32 %v6539_v19, %v14677_v37  ;;  %7272 = vmatprep.mubr.bf16.mxu0 %v6941_v52  ;;  %v6244_v61 = vpack.c.bf16 %v6178_v23, %v6176_v31  ;;  %v6052_v7 = vadd.f32 %v14266_v41, %v5910_v6 }
 0x6d7   : > { %v5913_v12 = vpop.f32.mrf.mxu0  ;;  %v6541_v42 = vpop.f32.mrf.mxu1  ;;  %7273 = vmatmul.mubr.bf16.gmra.mxu0 %v6940_v17  ;;  %v6051_v34 = vadd.f32 %v14269_v33, %v5908_v1  ;;  %v6825_v3 = vmax.f32 %v6538_v35, 0.0  ;;  %7977 = vmatprep.subr.bf16.mxu1 %v11951_v32 }
 0x6d8   : > { %v6053_v58 = vadd.f32 %v14269_v33, %v5912_v15  ;;  %v5914_v21 = vadd.f32 %v5913_v12, %v14663_v51  ;;  %v6542_v62 = vadd.f32 %v6541_v42, %v14674_v26  ;;  %6783 = vmatprep.mubr.bf16.mxu1 %v6244_v61  ;;  %v6826_v54 = vmax.f32 %v6540_v16, 0.0  ;;  %7978 = vmatpush2.bf16.msra.mxu1 %v11949_v56 }
 0x6d9   : > { %v6545_v5 = vpop.f32.mrf.mxu1  ;;  %6784 = vmatmul.mubr.bf16.gmra.mxu1 %v6243_v60  ;;  %v6180_v48 = vmax.f32 %v6052_v7, 0.0  ;;  %v6179_v4 = vmax.f32 %v6051_v34, 0.0 }
 0x6da   : > { %v6054_v27 = vadd.f32 %v14266_v41, %v5914_v21  ;;  %v6827_v39 = vmax.f32 %v6542_v62, 0.0  ;;  %v6181_v29 = vmax.f32 %v6053_v58, 0.0  ;;  %v6942_v33 = vpack.c.bf16 %v6826_v54, %v6824_v50 }
 0x6db   : > { %v6547_v46 = vpop.f32.mrf.mxu1  ;;  %v6546_v63 = vadd.f32 %v6545_v5, %v14677_v37 }
 0x6dc   : > { %v6182_v51 = vmax.f32 %v6054_v27, 0.0  ;;  %v6943_v14 = vpack.c.bf16 %v6827_v39, %v6825_v3  ;;  %v6548_v59 = vadd.f32 %v6547_v46, %v14674_v26  ;;  %v6245_v41 = vpack.c.bf16 %v6181_v29, %v6179_v4  ;;  %v11952_v3 = vld [vmem:[#allocation14 + $0x80] ss:$8 sps:$4 sm:$0xff]   ;;  %v11954_v39 = vld [vmem:[#allocation14 + $0x84] ss:$8 sps:$4 sm:$0xff]  }
 0x6dd   : > { %v6549_v55 = vpop.f32.mrf.mxu1  ;;  %v6828_v44 = vmax.f32 %v6546_v63, 0.0  ;;  %7979 = vmatprep.subr.bf16.mxu1 %v11954_v39 }
 0x6de   : > { %v6550_v43 = vadd.f32 %v6549_v55, %v14677_v37  ;;  %v6246_v57 = vpack.c.bf16 %v6182_v51, %v6180_v48  ;;  %7282 = vmatprep.mubr.bf16.mxu0 %v6943_v14  ;;  %v6829_v13 = vmax.f32 %v6548_v59, 0.0  ;;  %7980 = vmatpush2.bf16.msra.mxu1 %v11952_v3 }
 0x6df   : > { %v6551_v47 = vpop.f32.mrf.mxu1  ;;  %7283 = vmatmul.mubr.bf16.gmra.mxu0 %v6942_v33  ;;  %9057 = vmatprep.subr.bf16.mxu1 %v12421_v0 }
 0x6e0   : > { %v6552_v36 = vadd.f32 %v6551_v47, %v14674_v26  ;;  %6793 = vmatprep.mubr.bf16.mxu1 %v6246_v57  ;;  %v6830_v9 = vmax.f32 %v6550_v43, 0.0 }
 0x6e1   : > { %v6555_v38 = vpop.f32.mrf.mxu1  ;;  %6794 = vmatmul.mubr.bf16.gmra.mxu1 %v6245_v41 }
 0x6e2   : > { %v6831_v22 = vmax.f32 %v6552_v36, 0.0  ;;  %v6944_v11 = vpack.c.bf16 %v6830_v9, %v6828_v44  ;;  %v6556_v23 = vadd.f32 %v6555_v38, %v14677_v37 }
 0x6e3   : > { %v6557_v18 = vpop.f32.mrf.mxu1 }
 0x6e4   : > { %v6945_v2 = vpack.c.bf16 %v6831_v22, %v6829_v13  ;;  %v6558_v20 = vadd.f32 %v6557_v18, %v14674_v26  ;;  %v6832_v52 = vmax.f32 %v6556_v23, 0.0 }
 0x6e5   : > { %v6559_v45 = vpop.f32.mrf.mxu1 }
 0x6e6   : > { %v6560_v30 = vadd.f32 %v6559_v45, %v14677_v37  ;;  %7292 = vmatprep.mubr.bf16.mxu0 %v6945_v2  ;;  %v6833_v31 = vmax.f32 %v6558_v20, 0.0 }
 0x6e7   : > { %v6561_v24 = vpop.f32.mrf.mxu1  ;;  %7293 = vmatmul.mubr.bf16.gmra.mxu0 %v6944_v11 }
 0x6e8   : > { %v6562_v6 = vadd.f32 %v6561_v24, %v14674_v26  ;;  %v6834_v1 = vmax.f32 %v6560_v30, 0.0 }
 0x6e9   : > { %v6565_v53 = vpop.f32.mrf.mxu1 }
 0x6ea   : > { %v6835_v10 = vmax.f32 %v6562_v6, 0.0  ;;  %v6946_v16 = vpack.c.bf16 %v6834_v1, %v6832_v52  ;;  %v6566_v49 = vadd.f32 %v6565_v53, %v14677_v37 }
 0x6eb   : > { %v6567_v19 = vpop.f32.mrf.mxu1 }
 0x6ec   : > { %v6947_v17 = vpack.c.bf16 %v6835_v10, %v6833_v31  ;;  %v6568_v40 = vadd.f32 %v6567_v19, %v14674_v26  ;;  %v6836_v21 = vmax.f32 %v6566_v49, 0.0 }
 0x6ed   : > { %v6569_v15 = vpop.f32.mrf.mxu1 }
 0x6ee   : > { %v6570_v8 = vadd.f32 %v6569_v15, %v14677_v37  ;;  %7302 = vmatprep.mubr.bf16.mxu0 %v6947_v17  ;;  %v6837_v42 = vmax.f32 %v6568_v40, 0.0 }
 0x6ef   : > { %v6571_v60 = vpop.f32.mrf.mxu1  ;;  %7303 = vmatmul.mubr.bf16.gmra.mxu0 %v6946_v16 }
 0x6f0   : > { %v6572_v35 = vadd.f32 %v6571_v60, %v14674_v26  ;;  %v6838_v61 = vmax.f32 %v6570_v8, 0.0 }
 0x6f1   : > { %v6575_v12 = vpop.f32.mrf.mxu1 }
 0x6f2   : > { %v6839_v7 = vmax.f32 %v6572_v35, 0.0  ;;  %v6948_v5 = vpack.c.bf16 %v6838_v61, %v6836_v21  ;;  %v6576_v50 = vadd.f32 %v6575_v12, %v14677_v37 }
 0x6f3   : > { %v6577_v58 = vpop.f32.mrf.mxu1 }
 0x6f4   : > { %v6949_v34 = vpack.c.bf16 %v6839_v7, %v6837_v42  ;;  %v6578_v54 = vadd.f32 %v6577_v58, %v14674_v26  ;;  %v6840_v33 = vmax.f32 %v6576_v50, 0.0 }
 0x6f5   : > { %v6579_v62 = vpop.f32.mrf.mxu1 }
 0x6f6   : > { %v6580_v27 = vadd.f32 %v6579_v62, %v14677_v37  ;;  %7312 = vmatprep.mubr.bf16.mxu0 %v6949_v34  ;;  %v6841_v51 = vmax.f32 %v6578_v54, 0.0 }
 0x6f7   : > { %v6581_v46 = vpop.f32.mrf.mxu1  ;;  %7313 = vmatmul.mubr.bf16.gmra.mxu0 %v6948_v5 }
 0x6f8   : > { %v6582_v48 = vadd.f32 %v6581_v46, %v14674_v26  ;;  %v6842_v4 = vmax.f32 %v6580_v27, 0.0 }
 0x6f9   : > { %v6585_v29 = vpop.f32.mrf.mxu1 }
 0x6fa   : > { %v6843_v55 = vmax.f32 %v6582_v48, 0.0  ;;  %v6950_v57 = vpack.c.bf16 %v6842_v4, %v6840_v33  ;;  %v6586_v36 = vadd.f32 %v6585_v29, %v14677_v37 }
 0x6fb   : > { %v6587_v14 = vpop.f32.mrf.mxu1 }
 0x6fc   : > { %v6951_v59 = vpack.c.bf16 %v6843_v55, %v6841_v51  ;;  %v6588_v47 = vadd.f32 %v6587_v14, %v14674_v26  ;;  %v6844_v2 = vmax.f32 %v6586_v36, 0.0 }
 0x6fd   : > { %v6589_v43 = vpop.f32.mrf.mxu1 }
 0x6fe   : > { %v6590_v41 = vadd.f32 %v6589_v43, %v14677_v37  ;;  %7322 = vmatprep.mubr.bf16.mxu0 %v6951_v59  ;;  %v6845_v9 = vmax.f32 %v6588_v47, 0.0 }
 0x6ff   : > { %v6591_v63 = vpop.f32.mrf.mxu1  ;;  %7323 = vmatmul.mubr.bf16.gmra.mxu0 %v6950_v57 }
 0x700   : > { %v6592_v38 = vadd.f32 %v6591_v63, %v14674_v26  ;;  %v6846_v22 = vmax.f32 %v6590_v41, 0.0 }
 0x701   : > { %v6595_v13 = vpop.f32.mrf.mxu1 }
 0x702   : > { %v6847_v18 = vmax.f32 %v6592_v38, 0.0  ;;  %v6952_v20 = vpack.c.bf16 %v6846_v22, %v6844_v2  ;;  %v6596_v24 = vadd.f32 %v6595_v13, %v14677_v37 }
 0x703   : > { %v6597_v44 = vpop.f32.mrf.mxu1 }
 0x704   : > { %v6953_v45 = vpack.c.bf16 %v6847_v18, %v6845_v9  ;;  %v6598_v30 = vadd.f32 %v6597_v44, %v14674_v26  ;;  %v6848_v19 = vmax.f32 %v6596_v24, 0.0 }
 0x705   : > { %v6599_v11 = vpop.f32.mrf.mxu1 }
 0x706   : > { %v6600_v56 = vadd.f32 %v6599_v11, %v14677_v37  ;;  %7332 = vmatprep.mubr.bf16.mxu0 %v6953_v45  ;;  %v6849_v53 = vmax.f32 %v6598_v30, 0.0 }
 0x707   : > { %v6601_v32 = vpop.f32.mrf.mxu1  ;;  %7333 = vmatmul.mubr.bf16.gmra.mxu0 %v6952_v20 }
 0x708   : > { %v6602_v23 = vadd.f32 %v6601_v32, %v14674_v26  ;;  %v6850_v31 = vmax.f32 %v6600_v56, 0.0 }
 0x709   : > { %v6605_v6 = vpop.f32.mrf.mxu1 }
 0x70a   : > { %v6851_v1 = vmax.f32 %v6602_v23, 0.0  ;;  %v6954_v15 = vpack.c.bf16 %v6850_v31, %v6848_v19  ;;  %v6606_v60 = vadd.f32 %v6605_v6, %v14677_v37 }
 0x70b   : > { %v6607_v10 = vpop.f32.mrf.mxu1 }
 0x70c   : > { %v6955_v52 = vpack.c.bf16 %v6851_v1, %v6849_v53  ;;  %v6608_v16 = vadd.f32 %v6607_v10, %v14674_v26  ;;  %v6852_v58 = vmax.f32 %v6606_v60, 0.0 }
 0x70d   : > { %v6609_v17 = vpop.f32.mrf.mxu1 }
 0x70e   : > { %v6610_v40 = vadd.f32 %v6609_v17, %v14677_v37  ;;  %7342 = vmatprep.mubr.bf16.mxu0 %v6955_v52  ;;  %v6853_v12 = vmax.f32 %v6608_v16, 0.0  ;;  %v11958_v16 = vld [vmem:[%s16630_s22 + $0x8] sm:$0xff]  }
 0x70f   : > { %v6611_v8 = vpop.f32.mrf.mxu1  ;;  %7343 = vmatmul.mubr.bf16.gmra.mxu0 %v6954_v15  ;;  %11188 = vmatprep.subr.bf16.mxu0 %v11958_v16 }
 0x710   : > { %v6612_v49 = vadd.f32 %v6611_v8, %v14674_v26  ;;  %v6854_v42 = vmax.f32 %v6610_v40, 0.0  ;;  %11189 = vmatpush3.bf16.msra.mxu0 %v11958_v16 }
 0x711   : > { %v6615_v35 = vpop.f32.mrf.mxu1 }
 0x712   : > { %v6855_v61 = vmax.f32 %v6612_v49, 0.0  ;;  %v6956_v62 = vpack.c.bf16 %v6854_v42, %v6852_v58  ;;  %v6616_v3 = vadd.f32 %v6615_v35, %v14677_v37 }
 0x713   : > { %v6617_v7 = vpop.f32.mrf.mxu1 }
 0x714   : > { %v6957_v21 = vpack.c.bf16 %v6855_v61, %v6853_v12  ;;  %v6618_v5 = vadd.f32 %v6617_v7, %v14674_v26  ;;  %v6856_v4 = vmax.f32 %v6616_v3, 0.0  ;;  %v11959_v61 = vld [vmem:[%s16630_s22] sm:$0xff]  }
 0x715   : > { %v6619_v34 = vpop.f32.mrf.mxu1  ;;  %11190 = vmatprep.subr.bf16.mxu0 %v11959_v61 }
 0x716   : > { %v6620_v54 = vadd.f32 %v6619_v34, %v14677_v37  ;;  %7352 = vmatprep.mubr.bf16.mxu0 %v6957_v21  ;;  %v6857_v50 = vmax.f32 %v6618_v5, 0.0  ;;  %11191 = vmatpush3.bf16.msra.mxu0 %v11959_v61 }
 0x717   : > { %v6621_v27 = vpop.f32.mrf.mxu1  ;;  %7353 = vmatmul.mubr.bf16.gmra.mxu0 %v6956_v62  ;;  %9657 = vmatprep.subr.bf16.mxu0 %v12421_v0 }
 0x718   : > { %v6622_v39 = vadd.f32 %v6621_v27, %v14674_v26  ;;  %v6858_v48 = vmax.f32 %v6620_v54, 0.0 }
 0x719   : > { %v6625_v46 = vpop.f32.mrf.mxu1 }
 0x71a   : > { %v6859_v29 = vmax.f32 %v6622_v39, 0.0  ;;  %v6958_v33 = vpack.c.bf16 %v6858_v48, %v6856_v4  ;;  %v6626_v47 = vadd.f32 %v6625_v46, %v14677_v37 }
 0x71b   : > { %v6627_v51 = vpop.f32.mrf.mxu1 }
 0x71c   : > { %v6959_v55 = vpack.c.bf16 %v6859_v29, %v6857_v50  ;;  %v6628_v59 = vadd.f32 %v6627_v51, %v14674_v26  ;;  %v6860_v22 = vmax.f32 %v6626_v47, 0.0 }
 0x71d   : > { %v6629_v14 = vpop.f32.mrf.mxu1 }
 0x71e   : > { %v6630_v43 = vadd.f32 %v6629_v14, %v14677_v37  ;;  %7362 = vmatprep.mubr.bf16.mxu0 %v6959_v55  ;;  %v6861_v36 = vmax.f32 %v6628_v59, 0.0 }
 0x71f   : > { %v6631_v57 = vpop.f32.mrf.mxu1  ;;  %7363 = vmatmul.mubr.bf16.gmra.mxu0 %v6958_v33 }
 0x720   : > { %v6632_v41 = vadd.f32 %v6631_v57, %v14674_v26  ;;  %v6862_v38 = vmax.f32 %v6630_v43, 0.0 }
 0x721   : > { %v6635_v63 = vpop.f32.mrf.mxu1 }
 0x722   : > { %v6863_v13 = vmax.f32 %v6632_v41, 0.0  ;;  %v6960_v2 = vpack.c.bf16 %v6862_v38, %v6860_v22  ;;  %v6636_v30 = vadd.f32 %v6635_v63, %v14677_v37 }
 0x723   : > { %v6637_v9 = vpop.f32.mrf.mxu1 }
 0x724   : > { %v6961_v18 = vpack.c.bf16 %v6863_v13, %v6861_v36  ;;  %v6638_v45 = vadd.f32 %v6637_v9, %v14674_v26  ;;  %v6864_v31 = vmax.f32 %v6636_v30, 0.0 }
 0x725   : > { %v6639_v44 = vpop.f32.mrf.mxu1 }
 0x726   : > { %v6640_v11 = vadd.f32 %v6639_v44, %v14677_v37  ;;  %7372 = vmatprep.mubr.bf16.mxu0 %v6961_v18  ;;  %v6865_v24 = vmax.f32 %v6638_v45, 0.0 }
 0x727   : > { %v6641_v20 = vpop.f32.mrf.mxu1  ;;  %7373 = vmatmul.mubr.bf16.gmra.mxu0 %v6960_v2 }
 0x728   : > { %v6642_v56 = vadd.f32 %v6641_v20, %v14674_v26  ;;  %v6866_v23 = vmax.f32 %v6640_v11, 0.0 }
 0x729   : > { %v6645_v32 = vpop.f32.mrf.mxu1 }
 0x72a   : > { %v6867_v6 = vmax.f32 %v6642_v56, 0.0  ;;  %v6962_v19 = vpack.c.bf16 %v6866_v23, %v6864_v31  ;;  %v6646_v40 = vadd.f32 %v6645_v32, %v14677_v37 }
 0x72b   : > { %v6647_v53 = vpop.f32.mrf.mxu1 }
 0x72c   : > { %v6963_v1 = vpack.c.bf16 %v6867_v6, %v6865_v24  ;;  %v6648_v52 = vadd.f32 %v6647_v53, %v14674_v26  ;;  %v6868_v7 = vmax.f32 %v6646_v40, 0.0 }
 0x72d   : > { %v6649_v10 = vpop.f32.mrf.mxu1 }
 0x72e   : > { %v6650_v17 = vadd.f32 %v6649_v10, %v14677_v37  ;;  %7382 = vmatprep.mubr.bf16.mxu0 %v6963_v1  ;;  %v6869_v49 = vmax.f32 %v6648_v52, 0.0 }
 0x72f   : > { %v6651_v15 = vpop.f32.mrf.mxu1  ;;  %7383 = vmatmul.mubr.bf16.gmra.mxu0 %v6962_v19 }
 0x730   : > { %v6652_v8 = vadd.f32 %v6651_v15, %v14674_v26  ;;  %v6870_v35 = vmax.f32 %v6650_v17, 0.0 }
 0x731   : > { %v6655_v60 = vpop.f32.mrf.mxu1 }
 0x732   : > { %v6871_v12 = vmax.f32 %v6652_v8, 0.0  ;;  %v6964_v62 = vpack.c.bf16 %v6870_v35, %v6868_v7  ;;  %v6656_v27 = vadd.f32 %v6655_v60, %v14677_v37 }
 0x733   : > { %v6657_v42 = vpop.f32.mrf.mxu1 }
 0x734   : > { %v6965_v58 = vpack.c.bf16 %v6871_v12, %v6869_v49  ;;  %v6658_v21 = vadd.f32 %v6657_v42, %v14674_v26  ;;  %v6872_v51 = vmax.f32 %v6656_v27, 0.0 }
 0x735   : > { %v6659_v34 = vpop.f32.mrf.mxu1 }
 0x736   : > { %v6660_v5 = vadd.f32 %v6659_v34, %v14677_v37  ;;  %7392 = vmatprep.mubr.bf16.mxu0 %v6965_v58  ;;  %v6873_v39 = vmax.f32 %v6658_v21, 0.0 }
 0x737   : > { %v6661_v54 = vpop.f32.mrf.mxu1  ;;  %7393 = vmatmul.mubr.bf16.gmra.mxu0 %v6964_v62 }
 0x738   : > { %v6662_v3 = vadd.f32 %v6661_v54, %v14674_v26  ;;  %v6874_v50 = vmax.f32 %v6660_v5, 0.0 }
 0x739   : > { %v6665_v46 = vpop.f32.mrf.mxu1 }
 0x73a   : > { %v6875_v48 = vmax.f32 %v6662_v3, 0.0  ;;  %v6966_v33 = vpack.c.bf16 %v6874_v50, %v6872_v51  ;;  %v6666_v57 = vadd.f32 %v6665_v46, %v14677_v37 }
 0x73b   : > { %v6667_v29 = vpop.f32.mrf.mxu1 }
 0x73c   : > { %v6668_v4 = vadd.f32 %v6667_v29, %v14674_v26  ;;  %v6967_v55 = vpack.c.bf16 %v6875_v48, %v6873_v39  ;;  %v6876_v9 = vmax.f32 %v6666_v57, 0.0 }
 0x73d   : > { %v6669_v14 = vpop.f32.mrf.mxu1 }
 0x73e   : > { %v6670_v59 = vadd.f32 %v6669_v14, %v14677_v37  ;;  %7402 = vmatprep.mubr.bf16.mxu0 %v6967_v55  ;;  %v6877_v47 = vmax.f32 %v6668_v4, 0.0 }
 0x73f   : > { %v6671_v43 = vpop.f32.mrf.mxu1  ;;  %7403 = vmatmul.mubr.bf16.gmra.mxu0 %v6966_v33 }
 0x740   : > { %v6672_v41 = vadd.f32 %v6671_v43, %v14674_v26  ;;  %v6878_v36 = vmax.f32 %v6670_v59, 0.0 }
 0x741   : > { %v6675_v63 = vpop.f32.mrf.mxu1 }
 0x742   : > { %v6879_v38 = vmax.f32 %v6672_v41, 0.0  ;;  %v6968_v2 = vpack.c.bf16 %v6878_v36, %v6876_v9  ;;  %v6676_v20 = vadd.f32 %v6675_v63, %v14677_v37 }
 0x743   : > { %v6677_v13 = vpop.f32.mrf.mxu1 }
 0x744   : > { %v6969_v22 = vpack.c.bf16 %v6879_v38, %v6877_v47  ;;  %v6678_v18 = vadd.f32 %v6677_v13, %v14674_v26  ;;  %v6880_v53 = vmax.f32 %v6676_v20, 0.0 }
 0x745   : > { %v6679_v44 = vpop.f32.mrf.mxu1 }
 0x746   : > { %v6680_v45 = vadd.f32 %v6679_v44, %v14677_v37  ;;  %7412 = vmatprep.mubr.bf16.mxu0 %v6969_v22  ;;  %v6881_v56 = vmax.f32 %v6678_v18, 0.0 }
 0x747   : > { %v6681_v11 = vpop.f32.mrf.mxu1  ;;  %7413 = vmatmul.mubr.bf16.gmra.mxu0 %v6968_v2 }
 0x748   : > { %v6682_v30 = vadd.f32 %v6681_v11, %v14674_v26  ;;  %v6882_v24 = vmax.f32 %v6680_v45, 0.0 }
 0x749   : > { %v6685_v32 = vpop.f32.mrf.mxu1 }
 0x74a   : > { %v6883_v23 = vmax.f32 %v6682_v30, 0.0  ;;  %v6970_v10 = vpack.c.bf16 %v6882_v24, %v6880_v53  ;;  %v6686_v15 = vadd.f32 %v6685_v32, %v14677_v37 }
 0x74b   : > { %v6687_v6 = vpop.f32.mrf.mxu1 }
 0x74c   : > { %v6971_v31 = vpack.c.bf16 %v6883_v23, %v6881_v56  ;;  %v6688_v19 = vadd.f32 %v6687_v6, %v14674_v26  ;;  %v6884_v12 = vmax.f32 %v6686_v15, 0.0 }
 0x74d   : > { %v6689_v1 = vpop.f32.mrf.mxu1 }
 0x74e   : > { %v6690_v52 = vadd.f32 %v6689_v1, %v14677_v37  ;;  %7422 = vmatprep.mubr.bf16.mxu0 %v6971_v31  ;;  %v6885_v8 = vmax.f32 %v6688_v19, 0.0 }
 0x74f   : > { %v6691_v17 = vpop.f32.mrf.mxu1  ;;  %7423 = vmatmul.mubr.bf16.gmra.mxu0 %v6970_v10 }
 0x750   : > { %v6692_v16 = vadd.f32 %v6691_v17, %v14674_v26  ;;  %v6886_v60 = vmax.f32 %v6690_v52, 0.0 }
 0x751   : > { %v6695_v40 = vpop.f32.mrf.mxu1 }
 0x752   : > { %v6887_v49 = vmax.f32 %v6692_v16, 0.0  ;;  %v6972_v7 = vpack.c.bf16 %v6886_v60, %v6884_v12  ;;  %v6696_v62 = vadd.f32 %v6695_v40, %v14677_v37 }
 0x753   : > { %v6697_v35 = vpop.f32.mrf.mxu1 }
 0x754   : > { %v6973_v42 = vpack.c.bf16 %v6887_v49, %v6885_v8  ;;  %v6698_v58 = vadd.f32 %v6697_v35, %v14674_v26  ;;  %v6888_v50 = vmax.f32 %v6696_v62, 0.0 }
 0x755   : > { %v6699_v61 = vpop.f32.mrf.mxu1 }
 0x756   : > { %v6700_v21 = vadd.f32 %v6699_v61, %v14677_v37  ;;  %7432 = vmatprep.mubr.bf16.mxu0 %v6973_v42  ;;  %v6889_v27 = vmax.f32 %v6698_v58, 0.0 }
 0x757   : > { %v6701_v34 = vpop.f32.mrf.mxu1  ;;  %7433 = vmatmul.mubr.bf16.gmra.mxu0 %v6972_v7 }
 0x758   : > { %v6702_v5 = vadd.f32 %v6701_v34, %v14674_v26  ;;  %v6890_v3 = vmax.f32 %v6700_v21, 0.0  ;;  %v7028_v34 = vld [vmem:[%s16626_s18] sm:$0x3] }
 0x759   : > { %v6705_v54 = vpop.f32.mrf.mxu1 }
 0x75a   : > { %v6891_v39 = vmax.f32 %v6702_v5, 0.0  ;;  %v6974_v51 = vpack.c.bf16 %v6890_v3, %v6888_v50  ;;  %v6706_v33 = vadd.f32 %v6705_v54, %v14677_v37  ;;  %v14853_v50 = vrot.slane %v7028_v34, %v12992_v28 }
 0x75b   : > { %v6707_v46 = vpop.f32.mrf.mxu1 }
 0x75c   : > { %v6975_v48 = vpack.c.bf16 %v6891_v39, %v6889_v27  ;;  %v6708_v4 = vadd.f32 %v6707_v46, %v14674_v26  ;;  %v6892_v36 = vmax.f32 %v6706_v33, 0.0  ;;  %v14850_v39 = vrot.slane %v7028_v34, %v12984_v25 }
 0x75d   : > { %v6709_v29 = vpop.f32.mrf.mxu1 }
 0x75e   : > { %v6710_v55 = vadd.f32 %v6709_v29, %v14677_v37  ;;  %7442 = vmatprep.mubr.bf16.mxu0 %v6975_v48  ;;  %v6893_v57 = vmax.f32 %v6708_v4, 0.0 }
 0x75f   : > { %v6711_v14 = vpop.f32.mrf.mxu1  ;;  %7443 = vmatmul.mubr.bf16.gmra.mxu0 %v6974_v51 }
 0x760   : > { %v6712_v59 = vadd.f32 %v6711_v14, %v14674_v26  ;;  %v6894_v47 = vmax.f32 %v6710_v55, 0.0 }
 0x761   : > { %v6715_v43 = vpop.f32.mrf.mxu1 }
 0x762   : > { %v6895_v41 = vmax.f32 %v6712_v59, 0.0  ;;  %v6976_v9 = vpack.c.bf16 %v6894_v47, %v6892_v36  ;;  %v6716_v2 = vadd.f32 %v6715_v43, %v14677_v37 }
 0x763   : > { %v6717_v63 = vpop.f32.mrf.mxu1 }
 0x764   : > { %v6977_v38 = vpack.c.bf16 %v6895_v41, %v6893_v57  ;;  %v6718_v22 = vadd.f32 %v6717_v63, %v14674_v26  ;;  %v6896_v24 = vmax.f32 %v6716_v2, 0.0 }
 0x765   : > { %v6719_v13 = vpop.f32.mrf.mxu1 }
 0x766   : > { %v6720_v18 = vadd.f32 %v6719_v13, %v14677_v37  ;;  %7452 = vmatprep.mubr.bf16.mxu0 %v6977_v38  ;;  %v6897_v20 = vmax.f32 %v6718_v22, 0.0 }
 0x767   : > { %v6721_v44 = vpop.f32.mrf.mxu1  ;;  %7453 = vmatmul.mubr.bf16.gmra.mxu0 %v6976_v9 }
 0x768   : > { %v6722_v45 = vadd.f32 %v6721_v44, %v14674_v26  ;;  %v6898_v30 = vmax.f32 %v6720_v18, 0.0 }
 0x769   : > { %v6725_v11 = vpop.f32.mrf.mxu1 }
 0x76a   : > { %v6899_v56 = vmax.f32 %v6722_v45, 0.0  ;;  %v6978_v53 = vpack.c.bf16 %v6898_v30, %v6896_v24  ;;  %v6726_v19 = vadd.f32 %v6725_v11, %v14677_v37 }
 0x76b   : > { %v6727_v32 = vpop.f32.mrf.mxu1 }
 0x76c   : > { %v6979_v23 = vpack.c.bf16 %v6899_v56, %v6897_v20  ;;  %v6728_v31 = vadd.f32 %v6727_v32, %v14674_v26  ;;  %v6900_v60 = vmax.f32 %v6726_v19, 0.0 }
 0x76d   : > { %v6729_v6 = vpop.f32.mrf.mxu1 }
 0x76e   : > { %v6730_v1 = vadd.f32 %v6729_v6, %v14677_v37  ;;  %7462 = vmatprep.mubr.bf16.mxu0 %v6979_v23  ;;  %v6901_v15 = vmax.f32 %v6728_v31, 0.0  ;;  %v11955_v6 = vld [vmem:[%s16629_s21 + $0x38] sm:$0xff]  }
 0x76f   : > { %v6731_v10 = vpop.f32.mrf.mxu1  ;;  %7463 = vmatmul.mubr.bf16.gmra.mxu0 %v6978_v53 }
 0x770   : > { %v6732_v52 = vadd.f32 %v6731_v10, %v14674_v26  ;;  %v6902_v16 = vmax.f32 %v6730_v1, 0.0 }
 0x771   : > { %v6735_v17 = vpop.f32.mrf.mxu1 }
 0x772   : > { %v6903_v40 = vmax.f32 %v6732_v52, 0.0  ;;  %v6980_v12 = vpack.c.bf16 %v6902_v16, %v6900_v60  ;;  %v6736_v58 = vadd.f32 %v6735_v17, %v14677_v37 }
 0x773   : > { %v6737_v8 = vpop.f32.mrf.mxu1 }
 0x774   : > { %v6981_v49 = vpack.c.bf16 %v6903_v40, %v6901_v15  ;;  %v6738_v42 = vadd.f32 %v6737_v8, %v14674_v26  ;;  %v6904_v48 = vmax.f32 %v6736_v58, 0.0 }
 0x775   : > { %v6739_v35 = vpop.f32.mrf.mxu1 }
 0x776   : > { %v6740_v61 = vadd.f32 %v6739_v35, %v14677_v37  ;;  %7472 = vmatprep.mubr.bf16.mxu0 %v6981_v49  ;;  %v6905_v5 = vmax.f32 %v6738_v42, 0.0 }
 0x777   : > { %v6741_v7 = vpop.f32.mrf.mxu1  ;;  %v7234_v62 = vpop.f32.mrf.mxu0  ;;  %7473 = vmatmul.mubr.bf16.gmra.mxu0 %v6980_v12  ;;  %v11956_v12 = vld [vmem:[%s16629_s21 + $0x30] sm:$0xff]  }
 0x778   : > { %v6742_v21 = vadd.f32 %v6741_v7, %v14674_v26  ;;  %v6906_v54 = vmax.f32 %v6740_v61, 0.0  ;;  %v7235_v57 = vadd.f32 %v7234_v62, %v14853_v50 }
 0x779   : > { %v6745_v3 = vpop.f32.mrf.mxu1  ;;  %v7236_v46 = vpop.f32.mrf.mxu0 }
 0x77a   : > { %v6907_v27 = vmax.f32 %v6742_v21, 0.0  ;;  %v6982_v14 = vpack.c.bf16 %v6906_v54, %v6904_v48  ;;  %v7237_v33 = vadd.f32 %v7236_v46, %v14850_v39  ;;  %v6746_v13 = vadd.f32 %v6745_v3, %v14677_v37 }
 0x77b   : > { %v6747_v29 = vpop.f32.mrf.mxu1  ;;  %v7238_v51 = vpop.f32.mrf.mxu0  ;;  %v7553_v11 = vmax.f32 %v7235_v57, 0.0 }
 0x77c   : > { %v6983_v4 = vpack.c.bf16 %v6907_v27, %v6905_v5  ;;  %v7239_v55 = vadd.f32 %v7238_v51, %v14853_v50  ;;  %v6748_v63 = vadd.f32 %v6747_v29, %v14674_v26  ;;  %v7554_v44 = vmax.f32 %v7237_v33, 0.0  ;;  %v11957_v51 = vld [vmem:[%s16629_s21 + $0x28] sm:$0xff]  }
 0x77d   : > { %v6749_v59 = vpop.f32.mrf.mxu1  ;;  %v7240_v43 = vpop.f32.mrf.mxu0  ;;  %v6908_v53 = vmax.f32 %v6746_v13, 0.0 }
 0x77e   : > { %7482 = vmatprep.mubr.bf16.mxu0 %v6983_v4  ;;  %v6750_v47 = vadd.f32 %v6749_v59, %v14677_v37  ;;  %v7241_v41 = vadd.f32 %v7240_v43, %v14850_v39  ;;  %v7555_v9 = vmax.f32 %v7239_v55, 0.0  ;;  %v6909_v56 = vmax.f32 %v6748_v63, 0.0 }
 0x77f   : > { %v6751_v36 = vpop.f32.mrf.mxu1  ;;  %v7244_v38 = vpop.f32.mrf.mxu0  ;;  %7483 = vmatmul.mubr.bf16.gmra.mxu0 %v6982_v14 }
 0x780   : > { %v7556_v22 = vmax.f32 %v7241_v41, 0.0  ;;  %v6752_v18 = vadd.f32 %v6751_v36, %v14674_v26  ;;  %v6910_v20 = vmax.f32 %v6750_v47, 0.0  ;;  %v14868_v31 = vpack.c.bf16 %v7555_v9, %v7553_v11 }
 0x781   : > { %v6755_v2 = vpop.f32.mrf.mxu1  ;;  %v7246_v45 = vpop.f32.mrf.mxu0  ;;  %v7245_v16 = vadd.f32 %v7244_v38, %v14853_v50 }
 0x782   : > { %v6911_v30 = vmax.f32 %v6752_v18, 0.0  ;;  %v14863_v23 = vpack.c.bf16 %v7556_v22, %v7554_v44  ;;  %v7247_v10 = vadd.f32 %v7246_v45, %v14850_v39  ;;  %v6984_v15 = vpack.c.bf16 %v6910_v20, %v6908_v53  ;;  %v11960_v22 = vld [vmem:[%s16629_s21 + $0x20] sm:$0xff]  }
 0x783   : > { %v6757_v32 = vpop.f32.mrf.mxu1  ;;  %v7248_v24 = vpop.f32.mrf.mxu0  ;;  %v6756_v42 = vadd.f32 %v6755_v2, %v14677_v37  ;;  %v7557_v5 = vmax.f32 %v7245_v16, 0.0 }
 0x784   : > { %v7249_v1 = vadd.f32 %v7248_v24, %v14853_v50  ;;  %7981 = vmatprep.mubr.bf16.mxu1 %v14863_v23  ;;  %v6985_v17 = vpack.c.bf16 %v6911_v30, %v6909_v56  ;;  %v6758_v60 = vadd.f32 %v6757_v32, %v14674_v26  ;;  %v7558_v21 = vmax.f32 %v7247_v10, 0.0 }
 0x785   : > { %v6759_v19 = vpop.f32.mrf.mxu1  ;;  %v7250_v52 = vpop.f32.mrf.mxu0  ;;  %7982 = vmatmul.mubr.bf16.vlgmr.msra.gmra.mxu1 %v14868_v31  ;;  %v6912_v4 = vmax.f32 %v6756_v42, 0.0 }
 0x786   : > { %v6760_v40 = vadd.f32 %v6759_v19, %v14677_v37  ;;  %v7251_v8 = vadd.f32 %v7250_v52, %v14850_v39  ;;  %9058 = vmatpush1.bf16.msra.mxu1 %v11955_v6  ;;  %7492 = vmatprep.mubr.bf16.mxu0 %v6985_v17  ;;  %v7559_v61 = vmax.f32 %v7249_v1, 0.0  ;;  %v6913_v3 = vmax.f32 %v6758_v60, 0.0  ;;  %v11965_v19 = vld [vmem:[%s16629_s21 + $0x18] sm:$0xff]  }
 0x787   : > { %v6761_v49 = vpop.f32.mrf.mxu1  ;;  %v7254_v35 = vpop.f32.mrf.mxu0  ;;  %7493 = vmatmul.mubr.bf16.gmra.mxu0 %v6984_v15  ;;  %9059 = vmatprep.subr.bf16.mxu1 %v12421_v0 }
 0x788   : > { %v7560_v7 = vmax.f32 %v7251_v8, 0.0  ;;  %v6762_v58 = vadd.f32 %v6761_v49, %v14674_v26  ;;  %v6914_v54 = vmax.f32 %v6760_v40, 0.0  ;;  %v14889_v55 = vpack.c.bf16 %v7559_v61, %v7557_v5 }
 0x789   : > { %v6765_v34 = vpop.f32.mrf.mxu1  ;;  %v7256_v62 = vpop.f32.mrf.mxu0  ;;  %v7255_v41 = vadd.f32 %v7254_v35, %v14853_v50 }
 0x78a   : > { %v6915_v27 = vmax.f32 %v6762_v58, 0.0  ;;  %v14884_v29 = vpack.c.bf16 %v7560_v7, %v7558_v21  ;;  %9060 = vmatpush1.bf16.msra.mxu1 %v11956_v12  ;;  %v7257_v33 = vadd.f32 %v7256_v62, %v14850_v39  ;;  %v6986_v47 = vpack.c.bf16 %v6914_v54, %v6912_v4  ;;  %v11970_v21 = vld [vmem:[%s16629_s21 + $0x10] sm:$0xff]  }
 0x78b   : > { %v6767_v46 = vpop.f32.mrf.mxu1  ;;  %v7258_v48 = vpop.f32.mrf.mxu0  ;;  %9061 = vmatprep.subr.bf16.mxu1 %v12421_v0  ;;  %v6766_v18 = vadd.f32 %v6765_v34, %v14677_v37  ;;  %v7561_v56 = vmax.f32 %v7255_v41, 0.0 }
 0x78c   : > { %v7259_v14 = vadd.f32 %v7258_v48, %v14853_v50  ;;  %7991 = vmatprep.mubr.bf16.mxu1 %v14884_v29  ;;  %v6987_v57 = vpack.c.bf16 %v6915_v27, %v6913_v3  ;;  %v6768_v38 = vadd.f32 %v6767_v46, %v14674_v26  ;;  %v7562_v11 = vmax.f32 %v7257_v33, 0.0 }
 0x78d   : > { %v6769_v59 = vpop.f32.mrf.mxu1  ;;  %v7260_v43 = vpop.f32.mrf.mxu0  ;;  %7992 = vmatmul.mubr.bf16.gmra.mxu1 %v14889_v55  ;;  %v6916_v52 = vmax.f32 %v6766_v18, 0.0 }
 0x78e   : > { %v6770_v63 = vadd.f32 %v6769_v59, %v14677_v37  ;;  %v7261_v36 = vadd.f32 %v7260_v43, %v14850_v39  ;;  %7502 = vmatprep.mubr.bf16.mxu0 %v6987_v57  ;;  %9062 = vmatpush1.bf16.msra.mxu1 %v11957_v51  ;;  %v7563_v44 = vmax.f32 %v7259_v14, 0.0  ;;  %v6917_v6 = vmax.f32 %v6768_v38, 0.0  ;;  %v11975_v57 = vld [vmem:[%s16629_s21 + $0x8] sm:$0xff]  }
 0x78f   : > { %v6771_v13 = vpop.f32.mrf.mxu1  ;;  %v7264_v9 = vpop.f32.mrf.mxu0  ;;  %7503 = vmatmul.mubr.bf16.gmra.mxu0 %v6986_v47  ;;  %9063 = vmatprep.subr.bf16.mxu1 %v12421_v0 }
 0x790   : > { %v7564_v2 = vmax.f32 %v7261_v36, 0.0  ;;  %v6772_v45 = vadd.f32 %v6771_v13, %v14674_v26  ;;  %v6918_v32 = vmax.f32 %v6770_v63, 0.0  ;;  %v14911_v17 = vpack.c.bf16 %v7563_v44, %v7561_v56 }
 0x791   : > { %v6775_v20 = vpop.f32.mrf.mxu1  ;;  %v7266_v30 = vpop.f32.mrf.mxu0  ;;  %v7265_v35 = vadd.f32 %v7264_v9, %v14853_v50 }
 0x792   : > { %v6919_v24 = vmax.f32 %v6772_v45, 0.0  ;;  %v14906_v10 = vpack.c.bf16 %v7564_v2, %v7562_v11  ;;  %9064 = vmatpush1.bf16.msra.mxu1 %v11960_v22  ;;  %v7267_v16 = vadd.f32 %v7266_v30, %v14850_v39  ;;  %v6988_v49 = vpack.c.bf16 %v6918_v32, %v6916_v52  ;;  %v11980_v30 = vld [vmem:[%s16629_s21] sm:$0xff]  }
 0x793   : > { %v6777_v53 = vpop.f32.mrf.mxu1  ;;  %v7268_v1 = vpop.f32.mrf.mxu0  ;;  %9065 = vmatprep.subr.bf16.mxu1 %v12421_v0  ;;  %v6776_v34 = vadd.f32 %v6775_v20, %v14677_v37  ;;  %v7565_v48 = vmax.f32 %v7265_v35, 0.0  ;;  %v11989_v35 = vld [vmem:[%s16629_s21 + $0x78] sm:$0xff]  }
 0x794   : > { %v7269_v15 = vadd.f32 %v7268_v1, %v14853_v50  ;;  %8001 = vmatprep.mubr.bf16.mxu1 %v14906_v10  ;;  %v6989_v60 = vpack.c.bf16 %v6919_v24, %v6917_v6  ;;  %v6778_v61 = vadd.f32 %v6777_v53, %v14674_v26  ;;  %v7566_v27 = vmax.f32 %v7267_v16, 0.0 }
 0x795   : > { %v6779_v40 = vpop.f32.mrf.mxu1  ;;  %v7270_v8 = vpop.f32.mrf.mxu0  ;;  %8002 = vmatmul.mubr.bf16.gmra.mxu1 %v14911_v17  ;;  %v6920_v47 = vmax.f32 %v6776_v34, 0.0 }
 0x796   : > { %v6780_v12 = vadd.f32 %v6779_v40, %v14677_v37  ;;  %v7271_v42 = vadd.f32 %v7270_v8, %v14850_v39  ;;  %7512 = vmatprep.mubr.bf16.mxu0 %v6989_v60  ;;  %9066 = vmatpush1.bf16.msra.mxu1 %v11965_v19  ;;  %v7567_v62 = vmax.f32 %v7269_v15, 0.0  ;;  %v6921_v14 = vmax.f32 %v6778_v61, 0.0 }
 0x797   : > { %v6781_v7 = vpop.f32.mrf.mxu1  ;;  %v7274_v58 = vpop.f32.mrf.mxu0  ;;  %7513 = vmatmul.mubr.bf16.gmra.mxu0 %v6988_v49  ;;  %9067 = vmatprep.subr.bf16.mxu1 %v12421_v0 }
 0x798   : > { %v7568_v5 = vmax.f32 %v7271_v42, 0.0  ;;  %v6782_v54 = vadd.f32 %v6781_v7, %v14674_v26  ;;  %v6922_v51 = vmax.f32 %v6780_v12, 0.0  ;;  %v14933_v41 = vpack.c.bf16 %v7567_v62, %v7565_v48 }
 0x799   : > { %v6785_v3 = vpop.f32.mrf.mxu1  ;;  %v7276_v46 = vpop.f32.mrf.mxu0  ;;  %v7275_v18 = vadd.f32 %v7274_v58, %v14853_v50 }
 0x79a   : > { %v6923_v4 = vmax.f32 %v6782_v54, 0.0  ;;  %v14928_v43 = vpack.c.bf16 %v7568_v5, %v7566_v27  ;;  %9068 = vmatpush1.bf16.msra.mxu1 %v11970_v21  ;;  %v7277_v36 = vadd.f32 %v7276_v46, %v14850_v39  ;;  %v6990_v22 = vpack.c.bf16 %v6922_v51, %v6920_v47 }
 0x79b   : > { %v6787_v33 = vpop.f32.mrf.mxu1  ;;  %v7278_v59 = vpop.f32.mrf.mxu0  ;;  %9069 = vmatprep.subr.bf16.mxu1 %v12421_v0  ;;  %v6786_v56 = vadd.f32 %v6785_v3, %v14677_v37  ;;  %v7569_v52 = vmax.f32 %v7275_v18, 0.0 }
 0x79c   : > { %v7279_v63 = vadd.f32 %v7278_v59, %v14853_v50  ;;  %8011 = vmatprep.mubr.bf16.mxu1 %v14928_v43  ;;  %v6991_v9 = vpack.c.bf16 %v6923_v4, %v6921_v14  ;;  %v6788_v45 = vadd.f32 %v6787_v33, %v14674_v26  ;;  %v7570_v53 = vmax.f32 %v7277_v36, 0.0  ;;  %v11998_v4 = vld [vmem:[%s16629_s21 + $0x70] sm:$0xff]  }
 0x79d   : > { %v6789_v38 = vpop.f32.mrf.mxu1  ;;  %v7280_v13 = vpop.f32.mrf.mxu0  ;;  %8012 = vmatmul.mubr.bf16.gmra.mxu1 %v14933_v41  ;;  %v6924_v12 = vmax.f32 %v6786_v56, 0.0 }
 0x79e   : > { %v6790_v44 = vadd.f32 %v6789_v38, %v14677_v37  ;;  %v7281_v2 = vadd.f32 %v7280_v13, %v14850_v39  ;;  %7522 = vmatprep.mubr.bf16.mxu0 %v6991_v9  ;;  %9070 = vmatpush1.bf16.msra.mxu1 %v11975_v57  ;;  %v7571_v32 = vmax.f32 %v7279_v63, 0.0  ;;  %v6925_v40 = vmax.f32 %v6788_v45, 0.0 }
 0x79f   : > { %v6791_v11 = vpop.f32.mrf.mxu1  ;;  %v7284_v20 = vpop.f32.mrf.mxu0  ;;  %7523 = vmatmul.mubr.bf16.gmra.mxu0 %v6990_v22  ;;  %9071 = vmatprep.subr.bf16.mxu1 %v12421_v0 }
 0x7a0   : > { %v7572_v24 = vmax.f32 %v7281_v2, 0.0  ;;  %v6792_v6 = vadd.f32 %v6791_v11, %v14674_v26  ;;  %v6926_v15 = vmax.f32 %v6790_v44, 0.0  ;;  %v14955_v42 = vpack.c.bf16 %v7571_v32, %v7569_v52 }
 0x7a1   : > { %v6795_v1 = vpop.f32.mrf.mxu1  ;;  %v7286_v19 = vpop.f32.mrf.mxu0  ;;  %v7285_v58 = vadd.f32 %v7284_v20, %v14853_v50  ;;  %v11961_v20 = vld [vmem:[%s14808_s29] sm:$0xff]  }
 0x7a2   : > { %v6927_v16 = vmax.f32 %v6792_v6, 0.0  ;;  %v14950_v49 = vpack.c.bf16 %v7572_v24, %v7570_v53  ;;  %9072 = vmatpush1.bf16.msra.mxu1 %v11980_v30  ;;  %v7287_v61 = vadd.f32 %v7286_v19, %v14850_v39  ;;  %v6992_v5 = vpack.c.bf16 %v6926_v15, %v6924_v12 }
 0x7a3   : > { %v6797_v8 = vpop.f32.mrf.mxu1  ;;  %v7288_v60 = vpop.f32.mrf.mxu0  ;;  %9073 = vmatprep.subr.bf16.mxu1 %v12421_v0  ;;  %v6796_v14 = vadd.f32 %v6795_v1, %v14677_v37  ;;  %v7573_v47 = vmax.f32 %v7285_v58, 0.0 }
 0x7a4   : > { %v7289_v7 = vadd.f32 %v7288_v60, %v14853_v50  ;;  %8021 = vmatprep.mubr.bf16.mxu1 %v14950_v49  ;;  %v6993_v62 = vpack.c.bf16 %v6927_v16, %v6925_v40  ;;  %v6798_v54 = vadd.f32 %v6797_v8, %v14674_v26  ;;  %v7574_v33 = vmax.f32 %v7287_v61, 0.0  ;;  %v11963_v61 = vld [vmem:[%s14808_s29 + $0x10] sm:$0xff]  }
 0x7a5   : > { %v6799_v21 = vpop.f32.mrf.mxu1  ;;  %v7290_v34 = vpop.f32.mrf.mxu0  ;;  %8022 = vmatmul.mubr.bf16.gmra.mxu1 %v14955_v42 }
 0x7a6   : > { %v6800_v27 = vadd.f32 %v6799_v21, %v14677_v37  ;;  %v7291_v3 = vadd.f32 %v7290_v34, %v14850_v39  ;;  %v7575_v46 = vmax.f32 %v7289_v7, 0.0  ;;  %7532 = vmatprep.mubr.bf16.mxu0 %v6993_v62  ;;  %9074 = vmatpush2.bf16.msra.mxu1 %v11989_v35  ;;  %v6929_v36 = vmax.f32 %v6798_v54, 0.0  ;;  %v12007_v37 = vld [vmem:[%s16629_s21 + $0x68] sm:$0xff]   ;;  %v11983_v7 = vld [vmem:[#allocation17 + $0x38] sm:$0xff]  }
 0x7a7   : > { %v6801_v48 = vpop.f32.mrf.mxu1  ;;  %v7294_v51 = vpop.f32.mrf.mxu0  ;;  %7533 = vmatmul.mubr.bf16.gmra.mxu0 %v6992_v5  ;;  %9075 = vmatprep.subr.bf16.mxu1 %v12421_v0  ;;  %v11962_v35 = vld [vmem:[%s14808_s29 + $0x8] sm:$0xff]  }
 0x7a8   : > { %v7576_v59 = vmax.f32 %v7291_v3, 0.0  ;;  %v6802_v57 = vadd.f32 %v6801_v48, %v14674_v26  ;;  %v6930_v38 = vmax.f32 %v6800_v27, 0.0  ;;  %v14974_v22 = vpack.c.bf16 %v7575_v46, %v7573_v47  ;;  %v12016_v27 = vld [vmem:[%s16629_s21 + $0x60] sm:$0xff]   ;;  %v11984_v46 = vld [vmem:[#allocation17 + $0x30] sm:$0xff]  }
 0x7a9   : > { %v7296_v63 = vpop.f32.mrf.mxu0  ;;  %v6928_v26 = vmax.f32 %v6796_v14, 0.0  ;;  %v7295_v56 = vadd.f32 %v7294_v51, %v14853_v50 }
 0x7aa   : > { %v6931_v13 = vmax.f32 %v6802_v57, 0.0  ;;  %v14972_v9 = vpack.c.bf16 %v7576_v59, %v7574_v33  ;;  %9076 = vmatpush2.bf16.msra.mxu1 %v11998_v4  ;;  %v7297_v44 = vadd.f32 %v7296_v63, %v14850_v39  ;;  %v11964_v57 = vld [vmem:[%s14808_s29 + $0x18] sm:$0xff]   ;;  %v11966_v63 = vld [vmem:[%s14808_s29 + $0x20] sm:$0xff]  }
 0x7ab   : > { %v7298_v18 = vpop.f32.mrf.mxu0  ;;  %9077 = vmatprep.subr.bf16.mxu1 %v12421_v0  ;;  %v6994_v30 = vpack.c.bf16 %v6930_v38, %v6928_v26  ;;  %v7577_v52 = vmax.f32 %v7295_v56, 0.0 }
 0x7ac   : > { %v7299_v2 = vadd.f32 %v7298_v18, %v14853_v50  ;;  %8031 = vmatprep.mubr.bf16.mxu1 %v14972_v9  ;;  %v6995_v45 = vpack.c.bf16 %v6931_v13, %v6929_v36  ;;  %v7578_v6 = vmax.f32 %v7297_v44, 0.0  ;;  %v11987_v36 = vld [vmem:[#allocation17 + $0x28] sm:$0xff]  }
 0x7ad   : > { %v7300_v11 = vpop.f32.mrf.mxu0  ;;  %8032 = vmatmul.mubr.bf16.gmra.mxu1 %v14974_v22 }
 0x7ae   : > { %v7301_v32 = vadd.f32 %v7300_v11, %v14850_v39  ;;  %7542 = vmatprep.mubr.bf16.mxu0 %v6995_v45  ;;  %9078 = vmatpush2.bf16.msra.mxu1 %v12007_v37  ;;  %v7579_v53 = vmax.f32 %v7299_v2, 0.0  ;;  %v11988_v45 = vld [vmem:[#allocation17 + $0x20] sm:$0xff]  }
 0x7af   : > { %v7304_v24 = vpop.f32.mrf.mxu0  ;;  %7543 = vmatmul.mubr.bf16.gmra.mxu0 %v6994_v30  ;;  %9079 = vmatprep.subr.bf16.mxu1 %v12421_v0 }
 0x7b0   : > { %v7580_v1 = vmax.f32 %v7301_v32, 0.0  ;;  %11192 = vmatprep.mubr.msk.bf16.mxu0 %vm8575_vm1, %v11961_v20  ;;  %v14991_v40 = vpack.c.bf16 %v7579_v53, %v7577_v52  ;;  %v7305_v58 = vadd.f32 %v7304_v24, %v14853_v50 }
 0x7b1   : > { %v7306_v19 = vpop.f32.mrf.mxu0 }
 0x7b2   : > { %v14989_v15 = vpack.c.bf16 %v7580_v1, %v7578_v6  ;;  %v7307_v8 = vadd.f32 %v7306_v19, %v14850_v39  ;;  %v7581_v48 = vmax.f32 %v7305_v58, 0.0  ;;  %9080 = vmatpush2.bf16.msra.mxu1 %v12016_v27  ;;  %v11967_v6 = vld [vmem:[%s14808_s29 + $0x28] sm:$0xff]   ;;  %v11968_v1 = vld [vmem:[%s14808_s29 + $0x30] sm:$0xff]   ;;  %v11992_v19 = vld [vmem:[#allocation17 + $0x18] sm:$0xff]  }
 0x7b3   : > { %v7308_v16 = vpop.f32.mrf.mxu0  ;;  %9081 = vmatprep.subr.bf16.mxu1 %v12421_v0  ;;  %v11993_v58 = vld [vmem:[#allocation17 + $0x10] sm:$0xff]  }
 0x7b4   : > { %v7309_v60 = vadd.f32 %v7308_v16, %v14853_v50  ;;  %8041 = vmatprep.mubr.bf16.mxu1 %v14989_v15  ;;  %v7582_v62 = vmax.f32 %v7307_v8, 0.0 }
 0x7b5   : > { %v7310_v12 = vpop.f32.mrf.mxu0  ;;  %8042 = vmatmul.mubr.bf16.gmra.mxu1 %v14991_v40 }
 0x7b6   : > { %v7311_v21 = vadd.f32 %v7310_v12, %v14850_v39  ;;  %v7583_v5 = vmax.f32 %v7309_v60, 0.0 }
 0x7b7   : > { %v7314_v34 = vpop.f32.mrf.mxu0  ;;  %11193 = vmatmul.mubr.msk.bf16.vlgmr.msra.gmra.mxu0 %vm8575_vm1, %v11962_v35 }
 0x7b8   : > { %v7584_v54 = vmax.f32 %v7311_v21, 0.0  ;;  %11196 = vmatprep.mubr.msk.bf16.mxu0 %vm8575_vm1, %v11963_v61  ;;  %9658 = vmatpush1.bf16.msra.mxu0 %v11983_v7  ;;  %v15010_v14 = vpack.c.bf16 %v7583_v5, %v7581_v48  ;;  %v7315_v38 = vadd.f32 %v7314_v34, %v14853_v50  ;;  %v12017_v61 = vld [vmem:[%s16629_s21 + $0x58] sm:$0xff]   ;;  %v11971_v48 = vld [vmem:[%s14808_s29 + $0x40] sm:$0xff]  }
 0x7b9   : > { %v7316_v3 = vpop.f32.mrf.mxu0  ;;  %9659 = vmatprep.subr.bf16.mxu0 %v12421_v0  ;;  %9082 = vmatpush2.bf16.msra.mxu1 %v12017_v61 }
 0x7ba   : > { %v15006_v51 = vpack.c.bf16 %v7584_v54, %v7582_v62  ;;  %v7317_v33 = vadd.f32 %v7316_v3, %v14850_v39  ;;  %v7585_v11 = vmax.f32 %v7315_v38, 0.0  ;;  %9083 = vmatprep.subr.bf16.mxu1 %v12421_v0  ;;  %v11969_v3 = vld [vmem:[%s14808_s29 + $0x38] sm:$0xff]  }
 0x7bb   : > { %v7318_v4 = vpop.f32.mrf.mxu0 }
 0x7bc   : > { %v7319_v59 = vadd.f32 %v7318_v4, %v14853_v50  ;;  %8051 = vmatprep.mubr.bf16.mxu1 %v15006_v51  ;;  %9660 = vmatpush1.bf16.msra.mxu0 %v11984_v46  ;;  %v7586_v37 = vmax.f32 %v7317_v33, 0.0  ;;  %v11996_v4 = vld [vmem:[#allocation17 + $0x8] sm:$0xff]  }
 0x7bd   : > { %v7320_v47 = vpop.f32.mrf.mxu0  ;;  %8052 = vmatmul.mubr.bf16.gmra.mxu1 %v15010_v14  ;;  %9661 = vmatprep.subr.bf16.mxu0 %v12421_v0 }
 0x7be   : > { %v7321_v13 = vadd.f32 %v7320_v47, %v14850_v39  ;;  %v7587_v26 = vmax.f32 %v7319_v59, 0.0 }
 0x7bf   : > { %v7324_v18 = vpop.f32.mrf.mxu0  ;;  %11197 = vmatmul.mubr.msk.bf16.gmra.mxu0 %vm8575_vm1, %v11964_v57 }
 0x7c0   : > { %v7588_v44 = vmax.f32 %v7321_v13, 0.0  ;;  %11200 = vmatprep.mubr.msk.bf16.mxu0 %vm8575_vm1, %v11966_v63  ;;  %9662 = vmatpush1.bf16.msra.mxu0 %v11987_v36  ;;  %v15026_v56 = vpack.c.bf16 %v7587_v26, %v7585_v11  ;;  %v7325_v52 = vadd.f32 %v7324_v18, %v14853_v50  ;;  %v11997_v13 = vld [vmem:[#allocation17] sm:$0xff]  }
 0x7c1   : > { %v7326_v2 = vpop.f32.mrf.mxu0  ;;  %9663 = vmatprep.subr.bf16.mxu0 %v12421_v0  ;;  %v11972_v11 = vld [vmem:[%s14808_s29 + $0x48] sm:$0xff]  }
 0x7c2   : > { %v15023_v20 = vpack.c.bf16 %v7588_v44, %v7586_v37  ;;  %v7327_v32 = vadd.f32 %v7326_v2, %v14850_v39  ;;  %v7589_v21 = vmax.f32 %v7325_v52, 0.0 }
 0x7c3   : > { %v7328_v30 = vpop.f32.mrf.mxu0 }
 0x7c4   : > { %v7329_v24 = vadd.f32 %v7328_v30, %v14853_v50  ;;  %8061 = vmatprep.mubr.bf16.mxu1 %v15023_v20  ;;  %9664 = vmatpush1.bf16.msra.mxu0 %v11988_v45  ;;  %v7590_v60 = vmax.f32 %v7327_v32, 0.0  ;;  %v11973_v32 = vld [vmem:[%s14808_s29 + $0x50] sm:$0xff]  }
 0x7c5   : > { %v7330_v53 = vpop.f32.mrf.mxu0  ;;  %8062 = vmatmul.mubr.bf16.gmra.mxu1 %v15026_v56  ;;  %9665 = vmatprep.subr.bf16.mxu0 %v12421_v0 }
 0x7c6   : > { %v7331_v16 = vadd.f32 %v7330_v53, %v14850_v39  ;;  %v7591_v35 = vmax.f32 %v7329_v24, 0.0  ;;  %v12001_v24 = vld [vmem:[#allocation17 + $0x78] sm:$0xff]  }
 0x7c7   : > { %v7334_v8 = vpop.f32.mrf.mxu0  ;;  %11201 = vmatmul.mubr.msk.bf16.gmra.mxu0 %vm8575_vm1, %v11967_v6 }
 0x7c8   : > { %v7592_v12 = vmax.f32 %v7331_v16, 0.0  ;;  %11204 = vmatprep.mubr.msk.bf16.mxu0 %vm8575_vm1, %v11968_v1  ;;  %9666 = vmatpush1.bf16.msra.mxu0 %v11992_v19  ;;  %v15046_v5 = vpack.c.bf16 %v7591_v35, %v7589_v21  ;;  %v7335_v33 = vadd.f32 %v7334_v8, %v14853_v50  ;;  %v12018_v35 = vld [vmem:[%s16629_s21 + $0x50] sm:$0xff]  }
 0x7c9   : > { %v7336_v7 = vpop.f32.mrf.mxu0  ;;  %9667 = vmatprep.subr.bf16.mxu0 %v12421_v0  ;;  %9084 = vmatpush2.bf16.msra.mxu1 %v12018_v35  ;;  %v12019_v35 = vld [vmem:[%s16629_s21 + $0x48] sm:$0xff]  }
 0x7ca   : > { %v15042_v34 = vpack.c.bf16 %v7592_v12, %v7590_v60  ;;  %v7337_v54 = vadd.f32 %v7336_v7, %v14850_v39  ;;  %v7593_v18 = vmax.f32 %v7335_v33, 0.0  ;;  %v12002_v60 = vld [vmem:[#allocation17 + $0x70] sm:$0xff]   ;;  %9085 = vmatprep.subr.bf16.mxu1 %v12421_v0 }
 0x7cb   : > { %v7338_v62 = vpop.f32.mrf.mxu0 }
 0x7cc   : > { %v7339_v27 = vadd.f32 %v7338_v62, %v14853_v50  ;;  %8071 = vmatprep.mubr.bf16.mxu1 %v15042_v34  ;;  %9668 = vmatpush1.bf16.msra.mxu0 %v11993_v58  ;;  %v7594_v47 = vmax.f32 %v7337_v54, 0.0  ;;  %v11974_v54 = vld [vmem:[%s14808_s29 + $0x58] sm:$0xff]  }
 0x7cd   : > { %v7340_v46 = vpop.f32.mrf.mxu0  ;;  %8072 = vmatmul.mubr.bf16.gmra.mxu1 %v15046_v5  ;;  %9669 = vmatprep.subr.bf16.mxu0 %v12421_v0 }
 0x7ce   : > { %v7341_v59 = vadd.f32 %v7340_v46, %v14850_v39  ;;  %v7595_v63 = vmax.f32 %v7339_v27, 0.0  ;;  %v12005_v46 = vld [vmem:[#allocation17 + $0x68] sm:$0xff]   ;;  %9086 = vmatpush2.bf16.msra.mxu1 %v12019_v35 }
 0x7cf   : > { %v7344_v57 = vpop.f32.mrf.mxu0  ;;  %11205 = vmatmul.mubr.msk.bf16.gmra.mxu0 %vm8575_vm1, %v11969_v3  ;;  %v11976_v3 = vld [vmem:[%s14808_s29 + $0x60] sm:$0xff]   ;;  %9087 = vmatprep.subr.bf16.mxu1 %v12421_v0 }
 0x7d0   : > { %v7596_v36 = vmax.f32 %v7341_v59, 0.0  ;;  %11208 = vmatprep.mubr.msk.bf16.mxu0 %vm8575_vm1, %v11971_v48  ;;  %9670 = vmatpush1.bf16.msra.mxu0 %v11996_v4  ;;  %v15062_v44 = vpack.c.bf16 %v7595_v63, %v7593_v18  ;;  %v7345_v6 = vadd.f32 %v7344_v57, %v14853_v50 }
 0x7d1   : > { %v7346_v38 = vpop.f32.mrf.mxu0  ;;  %9671 = vmatprep.subr.bf16.mxu0 %v12421_v0 }
 0x7d2   : > { %v15059_v37 = vpack.c.bf16 %v7596_v36, %v7594_v47  ;;  %v7347_v2 = vadd.f32 %v7346_v38, %v14850_v39  ;;  %v7597_v12 = vmax.f32 %v7345_v6, 0.0  ;;  %v12006_v36 = vld [vmem:[#allocation17 + $0x60] sm:$0xff]  }
 0x7d3   : > { %v7348_v26 = vpop.f32.mrf.mxu0 }
 0x7d4   : > { %v7349_v45 = vadd.f32 %v7348_v26, %v14853_v50  ;;  %8081 = vmatprep.mubr.bf16.mxu1 %v15059_v37  ;;  %9672 = vmatpush1.bf16.msra.mxu0 %v11997_v13  ;;  %v7598_v19 = vmax.f32 %v7347_v2, 0.0 }
 0x7d5   : > { %v7350_v30 = vpop.f32.mrf.mxu0  ;;  %8082 = vmatmul.mubr.bf16.gmra.mxu1 %v15062_v44  ;;  %9673 = vmatprep.subr.bf16.mxu0 %v12421_v0 }
 0x7d6   : > { %v7351_v53 = vadd.f32 %v7350_v30, %v14850_v39  ;;  %v7599_v52 = vmax.f32 %v7349_v45, 0.0 }
 0x7d7   : > { %v7354_v1 = vpop.f32.mrf.mxu0  ;;  %11209 = vmatmul.mubr.msk.bf16.gmra.mxu0 %vm8575_vm1, %v11972_v11  ;;  %v11977_v11 = vld [vmem:[%s14808_s29 + $0x68] sm:$0xff]  }
 0x7d8   : > { %v7600_v16 = vmax.f32 %v7351_v53, 0.0  ;;  %11212 = vmatprep.mubr.msk.bf16.mxu0 %vm8575_vm1, %v11973_v32  ;;  %9674 = vmatpush2.bf16.msra.mxu0 %v12001_v24  ;;  %v15081_v58 = vpack.c.bf16 %v7599_v52, %v7597_v12  ;;  %v7355_v48 = vadd.f32 %v7354_v1, %v14853_v50  ;;  %v11978_v32 = vld [vmem:[%s14808_s29 + $0x70] sm:$0xff]   ;;  %v12010_v24 = vld [vmem:[#allocation17 + $0x58] sm:$0xff]  }
 0x7d9   : > { %v7356_v8 = vpop.f32.mrf.mxu0  ;;  %9675 = vmatprep.subr.bf16.mxu0 %v12421_v0 }
 0x7da   : > { %v15078_v61 = vpack.c.bf16 %v7600_v16, %v7598_v19  ;;  %v7357_v21 = vadd.f32 %v7356_v8, %v14850_v39  ;;  %v7601_v38 = vmax.f32 %v7355_v48, 0.0  ;;  %v11981_v48 = vld [vmem:[%s14808_s29 + $0x80] sm:$0xff]  }
 0x7db   : > { %v7358_v7 = vpop.f32.mrf.mxu0 }
 0x7dc   : > { %v7359_v62 = vadd.f32 %v7358_v7, %v14853_v50  ;;  %8091 = vmatprep.mubr.bf16.mxu1 %v15078_v61  ;;  %9676 = vmatpush2.bf16.msra.mxu0 %v12002_v60  ;;  %v7602_v59 = vmax.f32 %v7357_v21, 0.0  ;;  %v12011_v60 = vld [vmem:[#allocation17 + $0x50] sm:$0xff]  }
 0x7dd   : > { %v7360_v27 = vpop.f32.mrf.mxu0  ;;  %8092 = vmatmul.mubr.bf16.gmra.mxu1 %v15081_v58  ;;  %9677 = vmatprep.subr.bf16.mxu0 %v12421_v0 }
 0x7de   : > { %v7361_v4 = vadd.f32 %v7360_v27, %v14850_v39  ;;  %v7603_v57 = vmax.f32 %v7359_v62, 0.0 }
 0x7df   : > { %v7364_v33 = vpop.f32.mrf.mxu0  ;;  %11213 = vmatmul.mubr.msk.bf16.gmra.mxu0 %vm8575_vm1, %v11974_v54 }
 0x7e0   : > { %v7604_v47 = vmax.f32 %v7361_v4, 0.0  ;;  %11216 = vmatprep.mubr.msk.bf16.mxu0 %vm8575_vm1, %v11976_v3  ;;  %9678 = vmatpush2.bf16.msra.mxu0 %v12005_v46  ;;  %v15098_v26 = vpack.c.bf16 %v7603_v57, %v7601_v38  ;;  %v7365_v6 = vadd.f32 %v7364_v33, %v14853_v50  ;;  %v11979_v3 = vld [vmem:[%s14808_s29 + $0x78] sm:$0xff]   ;;  %v12014_v4 = vld [vmem:[#allocation17 + $0x48] sm:$0xff]  }
 0x7e1   : > { %v7366_v63 = vpop.f32.mrf.mxu0  ;;  %9679 = vmatprep.subr.bf16.mxu0 %v12421_v0 }
 0x7e2   : > { %v15095_v13 = vpack.c.bf16 %v7604_v47, %v7602_v59  ;;  %v7367_v2 = vadd.f32 %v7366_v63, %v14850_v39  ;;  %v7605_v12 = vmax.f32 %v7365_v6, 0.0  ;;  %v11982_v6 = vld [vmem:[%s14808_s29 + $0x88] sm:$0xff]  }
 0x7e3   : > { %v7368_v18 = vpop.f32.mrf.mxu0 }
 0x7e4   : > { %v7369_v45 = vadd.f32 %v7368_v18, %v14853_v50  ;;  %8101 = vmatprep.mubr.bf16.mxu1 %v15095_v13  ;;  %9680 = vmatpush2.bf16.msra.mxu0 %v12006_v36  ;;  %v7606_v19 = vmax.f32 %v7367_v2, 0.0  ;;  %v12015_v18 = vld [vmem:[#allocation17 + $0x40] sm:$0xff]  }
 0x7e5   : > { %v7370_v30 = vpop.f32.mrf.mxu0  ;;  %8102 = vmatmul.mubr.bf16.gmra.mxu1 %v15098_v26  ;;  %9681 = vmatprep.subr.bf16.mxu0 %v12421_v0 }
 0x7e6   : > { %v7371_v53 = vadd.f32 %v7370_v30, %v14850_v39  ;;  %v7607_v52 = vmax.f32 %v7369_v45, 0.0 }
 0x7e7   : > { %v7374_v1 = vpop.f32.mrf.mxu0  ;;  %11217 = vmatmul.mubr.msk.bf16.gmra.mxu0 %vm8575_vm1, %v11977_v11 }
 0x7e8   : > { %v7608_v16 = vmax.f32 %v7371_v53, 0.0  ;;  %11220 = vmatprep.mubr.msk.bf16.mxu0 %vm8575_vm1, %v11978_v32  ;;  %9682 = vmatpush2.bf16.msra.mxu0 %v12010_v24  ;;  %v15117_v62 = vpack.c.bf16 %v7607_v52, %v7605_v12  ;;  %v7375_v33 = vadd.f32 %v7374_v1, %v14853_v50  ;;  %v11985_v1 = vld [vmem:[%s14808_s29 + $0x90] sm:$0xff]   ;;  %v12020_v12 = vld [vmem:[%s16629_s21 + $0x40] sm:$0xff]  }
 0x7e9   : > { %v7376_v8 = vpop.f32.mrf.mxu0  ;;  %9683 = vmatprep.subr.bf16.mxu0 %v12421_v0  ;;  %9088 = vmatpush2.bf16.msra.mxu1 %v12020_v12 }
 0x7ea   : > { %v15114_v7 = vpack.c.bf16 %v7608_v16, %v7606_v19  ;;  %v7377_v54 = vadd.f32 %v7376_v8, %v14850_v39  ;;  %v7609_v2 = vmax.f32 %v7375_v33, 0.0 }
 0x7eb   : > { %v7378_v21 = vpop.f32.mrf.mxu0 }
 0x7ec   : > { %v7379_v27 = vadd.f32 %v7378_v21, %v14853_v50  ;;  %8111 = vmatprep.mubr.bf16.mxu1 %v15114_v7  ;;  %9684 = vmatpush2.bf16.msra.mxu0 %v12011_v60  ;;  %v7610_v47 = vmax.f32 %v7377_v54, 0.0 }
 0x7ed   : > { %v7380_v46 = vpop.f32.mrf.mxu0  ;;  %8112 = vmatmul.mubr.bf16.gmra.mxu1 %v15117_v62  ;;  %9685 = vmatprep.subr.bf16.mxu0 %v12421_v0 }
 0x7ee   : > { %v7381_v59 = vadd.f32 %v7380_v46, %v14850_v39  ;;  %v7611_v63 = vmax.f32 %v7379_v27, 0.0 }
 0x7ef   : > { %v7384_v57 = vpop.f32.mrf.mxu0  ;;  %11221 = vmatmul.mubr.msk.bf16.gmra.mxu0 %vm8575_vm1, %v11979_v3 }
 0x7f0   : > { %v7612_v36 = vmax.f32 %v7381_v59, 0.0  ;;  %11224 = vmatprep.mubr.msk.bf16.mxu0 %vm8575_vm1, %v11981_v48  ;;  %9686 = vmatpush2.bf16.msra.mxu0 %v12014_v4  ;;  %v15134_v30 = vpack.c.bf16 %v7611_v63, %v7609_v2  ;;  %v7385_v19 = vadd.f32 %v7384_v57, %v14853_v50  ;;  %v11986_v4 = vld [vmem:[%s14808_s29 + $0x98] sm:$0xff]   ;;  %v11990_v59 = vld [vmem:[%s14808_s29 + $0xa0] sm:$0xff]  }
 0x7f1   : > { %v7386_v38 = vpop.f32.mrf.mxu0  ;;  %9687 = vmatprep.subr.bf16.mxu0 %v12421_v0 }
 0x7f2   : > { %v15131_v45 = vpack.c.bf16 %v7612_v36, %v7610_v47  ;;  %v7387_v32 = vadd.f32 %v7386_v38, %v14850_v39  ;;  %v7613_v21 = vmax.f32 %v7385_v19, 0.0  ;;  %v11991_v19 = vld [vmem:[%s14808_s29 + $0xa8] sm:$0xff]  }
 0x7f3   : > { %v7388_v11 = vpop.f32.mrf.mxu0 }
 0x7f4   : > { %v7389_v24 = vadd.f32 %v7388_v11, %v14853_v50  ;;  %8121 = vmatprep.mubr.bf16.mxu1 %v15131_v45  ;;  %9688 = vmatpush2.bf16.msra.mxu0 %v12015_v18  ;;  %v7614_v16 = vmax.f32 %v7387_v32, 0.0 }
 0x7f5   : > { %v7390_v53 = vpop.f32.mrf.mxu0  ;;  %8122 = vmatmul.mubr.bf16.gmra.mxu1 %v15134_v30 }
 0x7f6   : > { %v7391_v52 = vadd.f32 %v7390_v53, %v14850_v39  ;;  %v7615_v8 = vmax.f32 %v7389_v24, 0.0 }
 0x7f7   : > { %v7394_v0 = vpop.f32.mrf.mxu0  ;;  %11225 = vmatmul.mubr.msk.bf16.gmra.mxu0 %vm8575_vm1, %v11982_v6 }
 0x7f8   : > { %v7616_v60 = vmax.f32 %v7391_v52, 0.0  ;;  %11228 = vmatprep.mubr.msk.bf16.mxu0 %vm8575_vm1, %v11985_v1  ;;  %v15151_v3 = vpack.c.bf16 %v7615_v8, %v7613_v21  ;;  %v7395_v57 = vadd.f32 %v7394_v0, %v14853_v50  ;;  %v11994_v0 = vld [vmem:[%s14808_s29 + $0xb0] sm:$0xff]  }
 0x7f9   : > { %v7396_v35 = vpop.f32.mrf.mxu0 }
 0x7fa   : > { %v15149_v54 = vpack.c.bf16 %v7616_v60, %v7614_v16  ;;  %v7397_v46 = vadd.f32 %v7396_v35, %v14850_v39  ;;  %v7617_v11 = vmax.f32 %v7395_v57, 0.0 }
 0x7fb   : > { %v7398_v27 = vpop.f32.mrf.mxu0 }
 0x7fc   : > { %v7399_v48 = vadd.f32 %v7398_v27, %v14853_v50  ;;  %8131 = vmatprep.mubr.bf16.mxu1 %v15149_v54  ;;  %v7618_v36 = vmax.f32 %v7397_v46, 0.0 }
 0x7fd   : > { %v7400_v33 = vpop.f32.mrf.mxu0  ;;  %8132 = vmatmul.mubr.bf16.gmra.mxu1 %v15151_v3 }
 0x7fe   : > { %v7401_v47 = vadd.f32 %v7400_v33, %v14850_v39  ;;  %v7619_v38 = vmax.f32 %v7399_v48, 0.0 }
 0x7ff   : > { %v7404_v63 = vpop.f32.mrf.mxu0  ;;  %11229 = vmatmul.mubr.msk.bf16.gmra.mxu0 %vm8575_vm1, %v11986_v4 }
 0x800   : > { %v7620_v18 = vmax.f32 %v7401_v47, 0.0  ;;  %11232 = vmatprep.mubr.msk.bf16.mxu0 %vm8575_vm1, %v11990_v59  ;;  %v15165_v6 = vpack.c.bf16 %v7619_v38, %v7617_v11  ;;  %v7405_v16 = vadd.f32 %v7404_v63, %v14853_v50  ;;  %v11995_v47 = vld [vmem:[%s14808_s29 + $0xb8] sm:$0xff]  }
 0x801   : > { %v7406_v2 = vpop.f32.mrf.mxu0 }
 0x802   : > { %v15163_v32 = vpack.c.bf16 %v7620_v18, %v7618_v36  ;;  %v7407_v53 = vadd.f32 %v7406_v2, %v14850_v39  ;;  %v7621_v46 = vmax.f32 %v7405_v16, 0.0  ;;  %v11999_v36 = vld [vmem:[%s14808_s29 + $0xc0] sm:$0xff]  }
 0x803   : > { %v7408_v24 = vpop.f32.mrf.mxu0 }
 0x804   : > { %v7409_v1 = vadd.f32 %v7408_v24, %v14853_v50  ;;  %8141 = vmatprep.mubr.bf16.mxu1 %v15163_v32  ;;  %v7622_v35 = vmax.f32 %v7407_v53, 0.0 }
 0x805   : > { %v7410_v52 = vpop.f32.mrf.mxu0  ;;  %8142 = vmatmul.mubr.bf16.gmra.mxu1 %v15165_v6 }
 0x806   : > { %v7411_v8 = vadd.f32 %v7410_v52, %v14850_v39  ;;  %v7623_v12 = vmax.f32 %v7409_v1, 0.0 }
 0x807   : > { %v7414_v60 = vpop.f32.mrf.mxu0  ;;  %11233 = vmatmul.mubr.msk.bf16.gmra.mxu0 %vm8575_vm1, %v11991_v19 }
 0x808   : > { %v7624_v21 = vmax.f32 %v7411_v8, 0.0  ;;  %11236 = vmatprep.mubr.msk.bf16.mxu0 %vm8575_vm1, %v11994_v0  ;;  %v15179_v33 = vpack.c.bf16 %v7623_v12, %v7621_v46  ;;  %v7415_v38 = vadd.f32 %v7414_v60, %v14853_v50 }
 0x809   : > { %v7416_v27 = vpop.f32.mrf.mxu0 }
 0x80a   : > { %v15177_v48 = vpack.c.bf16 %v7624_v21, %v7622_v35  ;;  %v7417_v59 = vadd.f32 %v7416_v27, %v14850_v39  ;;  %v7625_v19 = vmax.f32 %v7415_v38, 0.0  ;;  %v12000_v35 = vld [vmem:[%s14808_s29 + $0xc8] sm:$0xff]   ;;  %v12003_v21 = vld [vmem:[%s14808_s29 + $0xd0] sm:$0xff]  }
 0x80b   : > { %v7418_v4 = vpop.f32.mrf.mxu0 }
 0x80c   : > { %v7419_v57 = vadd.f32 %v7418_v4, %v14853_v50  ;;  %8151 = vmatprep.mubr.bf16.mxu1 %v15177_v48  ;;  %v7626_v11 = vmax.f32 %v7417_v59, 0.0 }
 0x80d   : > { %v7420_v63 = vpop.f32.mrf.mxu0  ;;  %8152 = vmatmul.mubr.bf16.gmra.mxu1 %v15179_v33 }
 0x80e   : > { %v7421_v18 = vadd.f32 %v7420_v63, %v14850_v39  ;;  %v7627_v24 = vmax.f32 %v7419_v57, 0.0 }
 0x80f   : > { %v7424_v2 = vpop.f32.mrf.mxu0  ;;  %11237 = vmatmul.mubr.msk.bf16.gmra.mxu0 %vm8575_vm1, %v11995_v47 }
 0x810   : > { %v7628_v53 = vmax.f32 %v7421_v18, 0.0  ;;  %11240 = vmatprep.mubr.msk.bf16.mxu0 %vm8575_vm1, %v11999_v36  ;;  %v15193_v16 = vpack.c.bf16 %v7627_v24, %v7625_v19  ;;  %v7425_v27 = vadd.f32 %v7424_v2, %v14853_v50  ;;  %v12008_v19 = vld [vmem:[%s14808_s29 + $0xe0] sm:$0xff]  }
 0x811   : > { %v7426_v1 = vpop.f32.mrf.mxu0 }
 0x812   : > { %v15191_v52 = vpack.c.bf16 %v7628_v53, %v7626_v11  ;;  %16731 = vst [vmem:[#allocation34_spill] sm:$0xff] %v15193_v16  ;;  %v7427_v8 = vadd.f32 %v7426_v1, %v14850_v39  ;;  %v7629_v36 = vmax.f32 %v7425_v27, 0.0  ;;  %v12004_v53 = vld [vmem:[%s14808_s29 + $0xd8] sm:$0xff]  }
 0x813   : > { %v7428_v0 = vpop.f32.mrf.mxu0 }
 0x814   : > { %16730 = vst [vmem:[#allocation33_spill] sm:$0xff] %v15191_v52  ;;  %v7429_v60 = vadd.f32 %v7428_v0, %v14853_v50  ;;  %8161 = vmatprep.mubr.bf16.mxu1 %v15191_v52  ;;  %v7630_v59 = vmax.f32 %v7427_v8, 0.0 }
 0x815   : > { %v7430_v12 = vpop.f32.mrf.mxu0  ;;  %8162 = vmatmul.mubr.bf16.gmra.mxu1 %v15193_v16 }
 0x816   : > { %v7431_v46 = vadd.f32 %v7430_v12, %v14850_v39  ;;  %v7631_v57 = vmax.f32 %v7429_v60, 0.0 }
 0x817   : > { %v7434_v4 = vpop.f32.mrf.mxu0  ;;  %11241 = vmatmul.mubr.msk.bf16.gmra.mxu0 %vm8575_vm1, %v12000_v35 }
 0x818   : > { %v7632_v47 = vmax.f32 %v7431_v46, 0.0  ;;  %11244 = vmatprep.mubr.msk.bf16.mxu0 %vm8575_vm1, %v12003_v21  ;;  %v15207_v2 = vpack.c.bf16 %v7631_v57, %v7629_v36  ;;  %v7435_v0 = vadd.f32 %v7434_v4, %v14853_v50  ;;  %v12009_v36 = vld [vmem:[%s14808_s29 + $0xe8] sm:$0xff]  }
 0x819   : > { %v7436_v63 = vpop.f32.mrf.mxu0 }
 0x81a   : > { %v15205_v38 = vpack.c.bf16 %v7632_v47, %v7630_v59  ;;  %16733 = vst [vmem:[#allocation36_spill] sm:$0xff] %v15207_v2  ;;  %v7437_v11 = vadd.f32 %v7436_v63, %v14850_v39  ;;  %v7633_v46 = vmax.f32 %v7435_v0, 0.0 }
 0x81b   : > { %v7438_v18 = vpop.f32.mrf.mxu0 }
 0x81c   : > { %16732 = vst [vmem:[#allocation35_spill] sm:$0xff] %v15205_v38  ;;  %v7439_v24 = vadd.f32 %v7438_v18, %v14853_v50  ;;  %8171 = vmatprep.mubr.bf16.mxu1 %v15205_v38  ;;  %v7634_v35 = vmax.f32 %v7437_v11, 0.0  ;;  %v12012_v11 = vld [vmem:[%s14808_s29 + $0xf0] sm:$0xff]  }
 0x81d   : > { %v7440_v1 = vpop.f32.mrf.mxu0  ;;  %8172 = vmatmul.mubr.bf16.gmra.mxu1 %v15207_v2 }
 0x81e   : > { %v7441_v8 = vadd.f32 %v7440_v1, %v14850_v39  ;;  %v7635_v12 = vmax.f32 %v7439_v24, 0.0 }
 0x81f   : > { %v7444_v60 = vpop.f32.mrf.mxu0  ;;  %11245 = vmatmul.mubr.msk.bf16.gmra.mxu0 %vm8575_vm1, %v12004_v53 }
 0x820   : > { %v7636_v21 = vmax.f32 %v7441_v8, 0.0  ;;  %11248 = vmatprep.mubr.msk.bf16.mxu0 %vm8575_vm1, %v12008_v19  ;;  %v15221_v4 = vpack.c.bf16 %v7635_v12, %v7633_v46  ;;  %v7445_v24 = vadd.f32 %v7444_v60, %v14853_v50 }
 0x821   : > { %v7446_v27 = vpop.f32.mrf.mxu0 }
 0x822   : > { %v15219_v59 = vpack.c.bf16 %v7636_v21, %v7634_v35  ;;  %16735 = vst [vmem:[#allocation38_spill] sm:$0xff] %v15221_v4  ;;  %v7447_v47 = vadd.f32 %v7446_v27, %v14850_v39  ;;  %v7637_v12 = vmax.f32 %v7445_v24, 0.0 }
 0x823   : > { %v7448_v57 = vpop.f32.mrf.mxu0 }
 0x824   : > { %16734 = vst [vmem:[#allocation37_spill] sm:$0xff] %v15219_v59  ;;  %v7449_v63 = vadd.f32 %v7448_v57, %v14853_v50  ;;  %8181 = vmatprep.mubr.bf16.mxu1 %v15219_v59  ;;  %v7638_v19 = vmax.f32 %v7447_v47, 0.0  ;;  %v12013_v47 = vld [vmem:[%s14808_s29 + $0xf8] sm:$0xff]   ;;  %s12327_s29 = scalar_lea.vmem %s12326_s27, 16384 }
 0x825   : > { %v7450_v18 = vpop.f32.mrf.mxu0  ;;  %8182 = vmatmul.mubr.bf16.gmra.mxu1 %v15221_v4  ;;  %p12329_p2 = scmp.lt.s32.totalorder %s12327_s29, %s12321_s5 }
 0x826   : > { %v7451_v53 = vadd.f32 %v7450_v18, %v14850_v39  ;;  %v7639_v0 = vmax.f32 %v7449_v63, 0.0 }
 0x827   : > { %v7454_v1 = vpop.f32.mrf.mxu0  ;;  %11249 = vmatmul.mubr.msk.bf16.gmra.mxu0 %vm8575_vm1, %v12009_v36  ;;  %p12330_p12 = por %p12329_p2, %p12328_p1 }
 0x828   : > { %v7640_v8 = vmax.f32 %v7451_v53, 0.0  ;;  %11252 = vmatprep.mubr.msk.bf16.mxu0 %vm8575_vm1, %v12012_v11  ;;  %v15235_v46 = vpack.c.bf16 %v7639_v0, %v7637_v12  ;;  %v7455_v18 = vadd.f32 %v7454_v1, %v14853_v50 }
 0x829   : > { %v7456_v35 = vpop.f32.mrf.mxu0  ;;  %p12331_p3 = pnand %p12330_p12, %p12324_p0 }
 0x82a   : > { %v15233_v21 = vpack.c.bf16 %v7640_v8, %v7638_v19  ;;  %16737 = vst [vmem:[#allocation40_spill] sm:$0xff] %v15235_v46  ;;  %v7457_v60 = vadd.f32 %v7456_v35, %v14850_v39  ;;  %v7641_v8 = vmax.f32 %v7455_v18, 0.0 }
 0x82b   : > { %v7458_v27 = vpop.f32.mrf.mxu0 }
 0x82c   : > { %16736 = vst [vmem:[#allocation39_spill] sm:$0xff] %v15233_v21  ;;  %v7459_v57 = vadd.f32 %v7458_v27, %v14853_v50  ;;  %8191 = vmatprep.mubr.bf16.mxu1 %v15233_v21  ;;  %v7642_v24 = vmax.f32 %v7457_v60, 0.0 }
 0x82d   : > { %v7460_v63 = vpop.f32.mrf.mxu0  ;;  %8192 = vmatmul.mubr.bf16.gmra.mxu1 %v15235_v46 }
 0x82e   : > { %v7461_v36 = vadd.f32 %v7460_v63, %v14850_v39  ;;  %v7643_v53 = vmax.f32 %v7459_v57, 0.0 }
 0x82f   : > { %v7464_v11 = vpop.f32.mrf.mxu0  ;;  %11253 = vmatmul.mubr.msk.bf16.gmra.mxu0 %vm8575_vm1, %v12013_v47 }
 0x830   : > { %v7644_v19 = vmax.f32 %v7461_v36, 0.0  ;;  %9689 = vmatprep.mubr.bf16.mxu0 %v14863_v23  ;;  %v15248_v27 = vpack.c.bf16 %v7643_v53, %v7641_v8  ;;  %v7465_v57 = vadd.f32 %v7464_v11, %v14853_v50 }
 0x831   : > { %v7466_v0 = vpop.f32.mrf.mxu0 }
 0x832   : > { %v15246_v35 = vpack.c.bf16 %v7644_v19, %v7642_v24  ;;  %16739 = vst [vmem:[#allocation42_spill] sm:$0xff] %v15248_v27  ;;  %v7467_v1 = vadd.f32 %v7466_v0, %v14850_v39  ;;  %v7645_v19 = vmax.f32 %v7465_v57, 0.0 }
 0x833   : > { %v7468_v12 = vpop.f32.mrf.mxu0 }
 0x834   : > { %16738 = vst [vmem:[#allocation41_spill] sm:$0xff] %v15246_v35  ;;  %v7469_v63 = vadd.f32 %v7468_v12, %v14853_v50  ;;  %8201 = vmatprep.mubr.bf16.mxu1 %v15246_v35  ;;  %v7646_v18 = vmax.f32 %v7467_v1, 0.0 }
 0x835   : > { %v7470_v60 = vpop.f32.mrf.mxu0  ;;  %8202 = vmatmul.mubr.bf16.gmra.mxu1 %v15248_v27 }
 0x836   : > { %v7471_v47 = vadd.f32 %v7470_v60, %v14850_v39  ;;  %v7647_v36 = vmax.f32 %v7469_v63, 0.0 }
 0x837   : > { %v7474_v23 = vpop.f32.mrf.mxu0  ;;  %9690 = vmatmul.mubr.bf16.vlgmr.msra.gmra.mxu0 %v14868_v31 }
 0x838   : > { %v7648_v24 = vmax.f32 %v7471_v47, 0.0  ;;  %9697 = vmatprep.mubr.bf16.mxu0 %v14884_v29  ;;  %v15260_v12 = vpack.c.bf16 %v7647_v36, %v7645_v19  ;;  %v7475_v63 = vadd.f32 %v7474_v23, %v14853_v50 }
 0x839   : > { %v7476_v53 = vpop.f32.mrf.mxu0 }
 0x83a   : > { %v15258_v0 = vpack.c.bf16 %v7648_v24, %v7646_v18  ;;  %16741 = vst [vmem:[#allocation44_spill] sm:$0xff] %v15260_v12  ;;  %v7477_v11 = vadd.f32 %v7476_v53, %v14850_v39  ;;  %v7649_v24 = vmax.f32 %v7475_v63, 0.0 }
 0x83b   : > { %v7478_v8 = vpop.f32.mrf.mxu0 }
 0x83c   : > { %16740 = vst [vmem:[#allocation43_spill] sm:$0xff] %v15258_v0  ;;  %v7479_v60 = vadd.f32 %v7478_v8, %v14853_v50  ;;  %8211 = vmatprep.mubr.bf16.mxu1 %v15258_v0  ;;  %v7650_v57 = vmax.f32 %v7477_v11, 0.0 }
 0x83d   : > { %v7480_v1 = vpop.f32.mrf.mxu0  ;;  %8212 = vmatmul.mubr.bf16.gmra.mxu1 %v15260_v12 }
 0x83e   : > { %v7481_v31 = vadd.f32 %v7480_v1, %v14850_v39  ;;  %v7651_v47 = vmax.f32 %v7479_v60, 0.0 }
 0x83f   : > { %v7484_v29 = vpop.f32.mrf.mxu0  ;;  %9698 = vmatmul.mubr.bf16.gmra.mxu0 %v14889_v55 }
 0x840   : > { %v7652_v18 = vmax.f32 %v7481_v31, 0.0  ;;  %9705 = vmatprep.mubr.bf16.mxu0 %v14906_v10  ;;  %v15272_v8 = vpack.c.bf16 %v7651_v47, %v7649_v24  ;;  %v7485_v60 = vadd.f32 %v7484_v29, %v14853_v50 }
 0x841   : > { %v7486_v36 = vpop.f32.mrf.mxu0 }
 0x842   : > { %v15270_v53 = vpack.c.bf16 %v7652_v18, %v7650_v57  ;;  %16743 = vst [vmem:[#allocation46_spill] sm:$0xff] %v15272_v8  ;;  %v7487_v23 = vadd.f32 %v7486_v36, %v14850_v39  ;;  %v7653_v36 = vmax.f32 %v7485_v60, 0.0 }
 0x843   : > { %v7488_v19 = vpop.f32.mrf.mxu0 }
 0x844   : > { %16742 = vst [vmem:[#allocation45_spill] sm:$0xff] %v15270_v53  ;;  %v7489_v1 = vadd.f32 %v7488_v19, %v14853_v50  ;;  %8221 = vmatprep.mubr.bf16.mxu1 %v15270_v53  ;;  %v7654_v10 = vmax.f32 %v7487_v23, 0.0 }
 0x845   : > { %v7490_v11 = vpop.f32.mrf.mxu0  ;;  %v15279_v31 = vpop.f32.mrf.mxu1  ;;  %8222 = vmatmul.mubr.bf16.gmra.mxu1 %v15272_v8 }
 0x846   : > { %v7491_v55 = vadd.f32 %v7490_v11, %v14850_v39  ;;  %v7655_v63 = vmax.f32 %v7489_v1, 0.0 }
 0x847   : > { %v7494_v47 = vpop.f32.mrf.mxu0  ;;  %v15282_v18 = vpop.f32.mrf.mxu1  ;;  %9706 = vmatmul.mubr.bf16.gmra.mxu0 %v14911_v17 }
 0x848   : > { %v7656_v57 = vmax.f32 %v7491_v55, 0.0  ;;  %9713 = vmatprep.mubr.bf16.mxu0 %v14928_v43  ;;  %v15290_v11 = vpack.c.bf16 %v7655_v63, %v7653_v36  ;;  %v7495_v17 = vadd.f32 %v7494_v47, %v14853_v50 }
 0x849   : > { %v7496_v24 = vpop.f32.mrf.mxu0  ;;  %v15286_v19 = vpop.f32.mrf.mxu1 }
 0x84a   : > { %v15288_v29 = vpack.c.bf16 %v7656_v57, %v7654_v10  ;;  %16745 = vst [vmem:[#allocation48_spill] sm:$0xff] %v15290_v11  ;;  %v7497_v23 = vadd.f32 %v7496_v24, %v14850_v39 }
 0x84b   : > { %v7498_v53 = vpop.f32.mrf.mxu0  ;;  %v15292_v8 = vpop.f32.mrf.mxu1 }
 0x84c   : > { %16744 = vst [vmem:[#allocation47_spill] sm:$0xff] %v15288_v29  ;;  %8231 = vmatprep.mubr.bf16.mxu1 %v15288_v29  ;;  %v7499_v1 = vadd.f32 %v7498_v53, %v14853_v50  ;;  %v7658_v36 = vmax.f32 %v7497_v23, 0.0  ;;  %v7657_v53 = vmax.f32 %v7495_v17, 0.0 }
 0x84d   : > { %v7500_v43 = vpop.f32.mrf.mxu0  ;;  %v15298_v60 = vpop.f32.mrf.mxu1  ;;  %8232 = vmatmul.mubr.bf16.gmra.mxu1 %v15290_v11 }
 0x84e   : > { %v7501_v55 = vadd.f32 %v7500_v43, %v14850_v39  ;;  %v7659_v10 = vmax.f32 %v7499_v1, 0.0 }
 0x84f   : > { %v7504_v63 = vpop.f32.mrf.mxu0  ;;  %v15302_v57 = vpop.f32.mrf.mxu1  ;;  %9714 = vmatmul.mubr.bf16.gmra.mxu0 %v14933_v41  ;;  %v15317_v41 = vld [vmem:[#allocation16 + $0x38] sm:$0xff]  }
 0x850   : > { %v7660_v29 = vmax.f32 %v7501_v55, 0.0  ;;  %9721 = vmatprep.mubr.bf16.mxu0 %v14950_v49  ;;  %v15310_v0 = vpack.c.bf16 %v7659_v10, %v7657_v53  ;;  %v7505_v49 = vadd.f32 %v7504_v63, %v14853_v50  ;;  %11256 = vmatprep.subr.bf16.mxu1 %v15317_v41 }
 0x851   : > { %v7506_v24 = vpop.f32.mrf.mxu0  ;;  %v15306_v47 = vpop.f32.mrf.mxu1 }
 0x852   : > { %v15308_v12 = vpack.c.bf16 %v7660_v29, %v7658_v36  ;;  %16747 = vst [vmem:[#allocation50_spill] sm:$0xff] %v15310_v0  ;;  %v7507_v1 = vadd.f32 %v7506_v24, %v14850_v39  ;;  %v7661_v63 = vmax.f32 %v7505_v49, 0.0 }
 0x853   : > { %v7508_v11 = vpop.f32.mrf.mxu0  ;;  %v15312_v43 = vpop.f32.mrf.mxu1 }
 0x854   : > { %16746 = vst [vmem:[#allocation49_spill] sm:$0xff] %v15308_v12  ;;  %v7509_v27 = vadd.f32 %v7508_v11, %v14853_v50  ;;  %8241 = vmatprep.mubr.bf16.mxu1 %v15308_v12  ;;  %v7662_v11 = vmax.f32 %v7507_v1, 0.0 }
 0x855   : > { %v7510_v23 = vpop.f32.mrf.mxu0  ;;  %v15320_v17 = vpop.f32.mrf.mxu1  ;;  %8242 = vmatmul.mubr.bf16.gmra.mxu1 %v15310_v0 }
 0x856   : > { %v7511_v29 = vadd.f32 %v7510_v23, %v14850_v39  ;;  %v7663_v55 = vmax.f32 %v7509_v27, 0.0 }
 0x857   : > { %v7514_v10 = vpop.f32.mrf.mxu0  ;;  %v15325_v36 = vpop.f32.mrf.mxu1  ;;  %9722 = vmatmul.mubr.bf16.gmra.mxu0 %v14955_v42 }
 0x858   : > { %v7664_v53 = vmax.f32 %v7511_v29, 0.0  ;;  %9729 = vmatprep.mubr.bf16.mxu0 %v14972_v9  ;;  %v15333_v0 = vpack.c.bf16 %v7663_v55, %v7661_v63  ;;  %v7515_v42 = vadd.f32 %v7514_v10, %v14853_v50 }
 0x859   : > { %v7516_v24 = vpop.f32.mrf.mxu0  ;;  %v15329_v12 = vpop.f32.mrf.mxu1 }
 0x85a   : > { %v15331_v35 = vpack.c.bf16 %v7664_v53, %v7662_v11  ;;  %16749 = vst [vmem:[#allocation52_spill] sm:$0xff] %v15333_v0  ;;  %v7517_v27 = vadd.f32 %v7516_v24, %v14850_v39  ;;  %v7665_v24 = vmax.f32 %v7515_v42, 0.0 }
 0x85b   : > { %v7518_v23 = vpop.f32.mrf.mxu0  ;;  %v15335_v46 = vpop.f32.mrf.mxu1 }
 0x85c   : > { %16748 = vst [vmem:[#allocation51_spill] sm:$0xff] %v15331_v35  ;;  %v7519_v21 = vadd.f32 %v7518_v23, %v14853_v50  ;;  %8251 = vmatprep.mubr.bf16.mxu1 %v15331_v35  ;;  %v7666_v53 = vmax.f32 %v7517_v27, 0.0 }
 0x85d   : > { %v7520_v9 = vpop.f32.mrf.mxu0  ;;  %v15341_v1 = vpop.f32.mrf.mxu1  ;;  %8252 = vmatmul.mubr.bf16.gmra.mxu1 %v15333_v0 }
 0x85e   : > { %v7521_v49 = vadd.f32 %v7520_v9, %v14850_v39  ;;  %v7667_v29 = vmax.f32 %v7519_v21, 0.0 }
 0x85f   : > { %v7524_v55 = vpop.f32.mrf.mxu0  ;;  %v15345_v11 = vpop.f32.mrf.mxu1  ;;  %9730 = vmatmul.mubr.bf16.gmra.mxu0 %v14974_v22 }
 0x860   : > { %v7668_v63 = vmax.f32 %v7521_v49, 0.0  ;;  %9737 = vmatprep.mubr.bf16.mxu0 %v14989_v15  ;;  %v15353_v4 = vpack.c.bf16 %v7667_v29, %v7665_v24  ;;  %v7525_v22 = vadd.f32 %v7524_v55, %v14853_v50 }
 0x861   : > { %v7526_v23 = vpop.f32.mrf.mxu0  ;;  %v15349_v10 = vpop.f32.mrf.mxu1 }
 0x862   : > { %v15351_v35 = vpack.c.bf16 %v7668_v63, %v7666_v53  ;;  %16751 = vst [vmem:[#allocation54_spill] sm:$0xff] %v15353_v4  ;;  %v7527_v21 = vadd.f32 %v7526_v23, %v14850_v39 }
 0x863   : > { %v7528_v0 = vpop.f32.mrf.mxu0  ;;  %v15355_v9 = vpop.f32.mrf.mxu1 }
 0x864   : > { %16750 = vst [vmem:[#allocation53_spill] sm:$0xff] %v15351_v35  ;;  %v7529_v59 = vadd.f32 %v7528_v0, %v14853_v50  ;;  %8261 = vmatprep.mubr.bf16.mxu1 %v15351_v35  ;;  %v7670_v63 = vmax.f32 %v7527_v21, 0.0  ;;  %v7669_v0 = vmax.f32 %v7525_v22, 0.0 }
 0x865   : > { %v7530_v15 = vpop.f32.mrf.mxu0  ;;  %v15361_v27 = vpop.f32.mrf.mxu1  ;;  %8262 = vmatmul.mubr.bf16.gmra.mxu1 %v15353_v4 }
 0x866   : > { %v7531_v42 = vadd.f32 %v7530_v15, %v14850_v39  ;;  %v7671_v49 = vmax.f32 %v7529_v59, 0.0 }
 0x867   : > { %v7534_v29 = vpop.f32.mrf.mxu0  ;;  %v15365_v53 = vpop.f32.mrf.mxu1  ;;  %9738 = vmatmul.mubr.bf16.gmra.mxu0 %v14991_v40 }
 0x868   : > { %v7672_v24 = vmax.f32 %v7531_v42, 0.0  ;;  %9745 = vmatprep.mubr.bf16.mxu0 %v15006_v51  ;;  %v15373_v2 = vpack.c.bf16 %v7671_v49, %v7669_v0  ;;  %v7535_v40 = vadd.f32 %v7534_v29, %v14853_v50 }
 0x869   : > { %v7536_v23 = vpop.f32.mrf.mxu0  ;;  %v15369_v55 = vpop.f32.mrf.mxu1 }
 0x86a   : > { %v15371_v35 = vpack.c.bf16 %v7672_v24, %v7670_v63  ;;  %16753 = vst [vmem:[#allocation56_spill] sm:$0xff] %v15373_v2  ;;  %v7537_v59 = vadd.f32 %v7536_v23, %v14850_v39 }
 0x86b   : > { %v7538_v4 = vpop.f32.mrf.mxu0  ;;  %v15375_v15 = vpop.f32.mrf.mxu1 }
 0x86c   : > { %16752 = vst [vmem:[#allocation55_spill] sm:$0xff] %v15371_v35  ;;  %v7539_v38 = vadd.f32 %v7538_v4, %v14853_v50  ;;  %8271 = vmatprep.mubr.bf16.mxu1 %v15371_v35  ;;  %v7674_v24 = vmax.f32 %v7537_v59, 0.0  ;;  %v7673_v4 = vmax.f32 %v7535_v40, 0.0 }
 0x86d   : > { %v7540_v51 = vpop.f32.mrf.mxu0  ;;  %v15381_v21 = vpop.f32.mrf.mxu1  ;;  %8272 = vmatmul.mubr.bf16.gmra.mxu1 %v15373_v2 }
 0x86e   : > { %v7541_v22 = vadd.f32 %v7540_v51, %v14850_v39  ;;  %v7675_v42 = vmax.f32 %v7539_v38, 0.0 }
 0x86f   : > { %v7544_v49 = vpop.f32.mrf.mxu0  ;;  %v15385_v63 = vpop.f32.mrf.mxu1  ;;  %9746 = vmatmul.mubr.bf16.gmra.mxu0 %v15010_v14  ;;  %v7777_v14 = vld [vmem:[%s16628_s20] sm:$0x3] }
 0x870   : > { %v7676_v0 = vmax.f32 %v7541_v22, 0.0  ;;  %9753 = vmatprep.mubr.bf16.mxu0 %v15023_v20  ;;  %v15393_v16 = vpack.c.bf16 %v7675_v42, %v7673_v4  ;;  %v7545_v20 = vadd.f32 %v7544_v49, %v14853_v50  ;;  %v15408_v22 = vrot.slane %v7777_v14, %v12984_v25 }
 0x871   : > { %v7546_v23 = vpop.f32.mrf.mxu0  ;;  %v15389_v29 = vpop.f32.mrf.mxu1 }
 0x872   : > { %v15391_v35 = vpack.c.bf16 %v7676_v0, %v7674_v24  ;;  %16754 = vst [vmem:[#allocation57_spill] sm:$0xff] %v15393_v16  ;;  %v7547_v38 = vadd.f32 %v7546_v23, %v14850_v39  ;;  %v7677_v23 = vmax.f32 %v7545_v20, 0.0 }
 0x873   : > { %v7548_v2 = vpop.f32.mrf.mxu0  ;;  %v15395_v51 = vpop.f32.mrf.mxu1 }
 0x874   : > { %v7549_v52 = vadd.f32 %v7548_v2, %v14853_v50  ;;  %8281 = vmatprep.mubr.bf16.mxu1 %v15391_v35  ;;  %v7990_v50 = vadd.f32 %v15292_v8, %v15408_v22  ;;  %v7678_v49 = vmax.f32 %v7547_v38, 0.0 }
 0x875   : > { %v7550_v59 = vpop.f32.mrf.mxu0  ;;  %v15404_v40 = vpop.f32.mrf.mxu1  ;;  %8282 = vmatmul.mubr.bf16.gmra.mxu1 %v15393_v16 }
 0x876   : > { %v7551_v42 = vadd.f32 %v7550_v59, %v14850_v39  ;;  %v7679_v24 = vmax.f32 %v7549_v52, 0.0  ;;  %v7986_v39 = vadd.f32 %v15282_v18, %v15408_v22 }
 0x877   : > { %v15411_v2 = vpop.f32.mrf.mxu1  ;;  %v15413_v0 = vpop.f32.mrf.mxu0  ;;  %9754 = vmatmul.mubr.bf16.gmra.mxu0 %v15026_v56 }
 0x878   : > { %16755 = vst [vmem:[#allocation58_spill] sm:$0xff] %v15413_v0  ;;  %v7680_v4 = vmax.f32 %v7551_v42, 0.0  ;;  %9761 = vmatprep.mubr.bf16.mxu0 %v15042_v34  ;;  %v15427_v59 = vpack.c.bf16 %v7679_v24, %v7677_v23  ;;  %v8303_v8 = vpack.c.bf16 %v7990_v50, %v7986_v39  ;;  %v15435_v34 = vrot.slane %v7777_v14, %v12992_v28 }
 0x879   : > { %v15419_v16 = vpop.f32.mrf.mxu1  ;;  %v15421_v25 = vpop.f32.mrf.mxu0  ;;  %v8000_v28 = vadd.f32 %v15312_v43, %v15408_v22 }
 0x87a   : > { %v15425_v52 = vpack.c.bf16 %v7680_v4, %v7678_v49  ;;  %v7988_v18 = vadd.f32 %v15286_v19, %v15435_v34  ;;  %v7984_v14 = vadd.f32 %v15279_v31, %v15435_v34  ;;  %v7996_v19 = vadd.f32 %v15302_v57, %v15408_v22 }
 0x87b   : > { %v15429_v56 = vpop.f32.mrf.mxu1  ;;  %v15431_v0 = vpop.f32.mrf.mxu0  ;;  %v7998_v31 = vadd.f32 %v15306_v47, %v15435_v34  ;;  %v8006_v47 = vadd.f32 %v15325_v36, %v15408_v22  ;;  %v8020_v36 = vadd.f32 %v15355_v9, %v15408_v22 }
 0x87c   : > { %8291 = vmatprep.mubr.bf16.mxu1 %v15425_v52  ;;  %v8302_v4 = vpack.c.bf16 %v7988_v18, %v7984_v14  ;;  %v8010_v18 = vadd.f32 %v15335_v46, %v15408_v22 }
 0x87d   : > { %v15437_v38 = vpop.f32.mrf.mxu1  ;;  %8292 = vmatmul.mubr.bf16.gmra.mxu1 %v15427_v59  ;;  %v15440_v20 = vpop.f32.mrf.mxu0 }
 0x87e   : > { %9089 = vmatprep.mubr.bf16.mxu1 %v8303_v8  ;;  %v8305_v8 = vpack.c.bf16 %v8000_v28, %v7996_v19  ;;  %v7994_v28 = vadd.f32 %v15298_v60, %v15435_v34  ;;  %v8008_v60 = vadd.f32 %v15329_v12, %v15435_v34  ;;  %v8016_v12 = vadd.f32 %v15345_v11, %v15408_v22 }
 0x87f   : > { %v15444_v42 = vpop.f32.mrf.mxu1  ;;  %v15446_v24 = vpop.f32.mrf.mxu0  ;;  %9762 = vmatmul.mubr.bf16.gmra.mxu0 %v15046_v5  ;;  %v12022_v5 = vld [vmem:[#allocation16 + $0x30] sm:$0xff]  }
 0x880   : > { %16756 = vst [vmem:[#allocation59_spill] sm:$0xff] %v15446_v24  ;;  %9769 = vmatprep.mubr.bf16.mxu0 %v15059_v37  ;;  %v8304_v19 = vpack.c.bf16 %v7998_v31, %v7994_v28 }
 0x881   : > { %v15454_v50 = vpop.f32.mrf.mxu1  ;;  %v15456_v49 = vpop.f32.mrf.mxu0 }
 0x883   : > { %v15460_v23 = vpop.f32.mrf.mxu1  ;;  %v15462_v39 = vpop.f32.mrf.mxu0 }
 0x885   : > { %v15464_v43 = vpop.f32.mrf.mxu1  ;;  %v15466_v37 = vpop.f32.mrf.mxu0  ;;  %9090 = vmatmul.mubr.bf16.vlgmr.msra.gmra.mxu1 %v8302_v4 }
 0x886   : > { %9097 = vmatprep.mubr.bf16.mxu1 %v8305_v8  ;;  %11257 = vmatpush3.bf16.msra.mxu1 %v15317_v41  ;;  %v8307_v8 = vpack.c.bf16 %v8010_v18, %v8006_v47 }
 0x887   : > { %v15471_v24 = vpop.f32.mrf.mxu1  ;;  %v15473_v57 = vpop.f32.mrf.mxu0  ;;  %9770 = vmatmul.mubr.bf16.gmra.mxu0 %v15062_v44  ;;  %11258 = vmatprep.subr.bf16.mxu1 %v12022_v5 }
 0x888   : > { %16757 = vst [vmem:[#allocation60_spill] sm:$0xff] %v15473_v57  ;;  %9777 = vmatprep.mubr.bf16.mxu0 %v15078_v61 }
 0x889   : > { %v15481_v14 = vpop.f32.mrf.mxu1  ;;  %v15483_v41 = vpop.f32.mrf.mxu0 }
 0x88a   : > { %16758 = vst [vmem:[#allocation61_spill] sm:$0xff] %v15483_v41  ;;  %11259 = vmatpush3.bf16.msra.mxu1 %v12022_v5  ;;  %v8004_v5 = vadd.f32 %v15320_v17, %v15435_v34  ;;  %v8018_v17 = vadd.f32 %v15349_v10, %v15435_v34  ;;  %v8026_v10 = vadd.f32 %v15365_v53, %v15408_v22 }
 0x88b   : > { %v15487_v4 = vpop.f32.mrf.mxu1  ;;  %v15489_v44 = vpop.f32.mrf.mxu0  ;;  %v8040_v53 = vadd.f32 %v15395_v51, %v15408_v22 }
 0x88c   : > { %v8306_v28 = vpack.c.bf16 %v8008_v60, %v8004_v5  ;;  %v8030_v60 = vadd.f32 %v15375_v15, %v15408_v22 }
 0x88d   : > { %v15491_v46 = vpop.f32.mrf.mxu1  ;;  %v15493_v61 = vpop.f32.mrf.mxu0  ;;  %9098 = vmatmul.mubr.bf16.gmra.mxu1 %v8304_v19 }
 0x88e   : > { %9105 = vmatprep.mubr.bf16.mxu1 %v8307_v8  ;;  %v12023_v8 = vld [vmem:[#allocation16 + $0x28] sm:$0xff]  }
 0x88f   : > { %v15497_v57 = vpop.f32.mrf.mxu1  ;;  %v15499_v41 = vpop.f32.mrf.mxu0  ;;  %9778 = vmatmul.mubr.bf16.gmra.mxu0 %v15081_v58  ;;  %v8309_v58 = vpack.c.bf16 %v8020_v36, %v8016_v12  ;;  %11260 = vmatprep.subr.bf16.mxu1 %v12023_v8  ;;  %v8014_v36 = vadd.f32 %v15341_v1, %v15435_v34 }
 0x890   : > { %16759 = vst [vmem:[#allocation62_spill] sm:$0xff] %v15499_v41  ;;  %9785 = vmatprep.mubr.bf16.mxu0 %v15095_v13  ;;  %11261 = vmatpush3.bf16.msra.mxu1 %v12023_v8  ;;  %v8311_v8 = vpack.c.bf16 %v8030_v60, %v8026_v10 }
 0x891   : > { %v15507_v31 = vpop.f32.mrf.mxu1  ;;  %v15509_v18 = vpop.f32.mrf.mxu0 }
 0x893   : > { %v15513_v47 = vpop.f32.mrf.mxu1  ;;  %v15515_v19 = vpop.f32.mrf.mxu0 }
 0x895   : > { %v15517_v9 = vpop.f32.mrf.mxu1  ;;  %v15519_v13 = vpop.f32.mrf.mxu0  ;;  %9106 = vmatmul.mubr.bf16.gmra.mxu1 %v8306_v28  ;;  %v8308_v28 = vpack.c.bf16 %v8018_v17, %v8014_v36  ;;  %v8024_v17 = vadd.f32 %v15361_v27, %v15435_v34 }
 0x896   : > { %9113 = vmatprep.mubr.bf16.mxu1 %v8309_v58 }
 0x897   : > { %v15523_v41 = vpop.f32.mrf.mxu1  ;;  %v15525_v11 = vpop.f32.mrf.mxu0  ;;  %9786 = vmatmul.mubr.bf16.gmra.mxu0 %v15098_v26 }
 0x898   : > { %16760 = vst [vmem:[#allocation63_spill] sm:$0xff] %v15525_v11  ;;  %9793 = vmatprep.mubr.bf16.mxu0 %v15114_v7  ;;  %v8028_v7 = vadd.f32 %v15369_v55, %v15435_v34  ;;  %v8036_v55 = vadd.f32 %v15385_v63, %v15408_v22  ;;  %v8050_v63 = vadd.f32 %v15429_v56, %v15408_v22 }
 0x899   : > { %v15533_v5 = vpop.f32.mrf.mxu1  ;;  %v15535_v12 = vpop.f32.mrf.mxu0 }
 0x89a   : > { %16761 = vst [vmem:[#allocation64_spill] sm:$0xff] %v15535_v12  ;;  %v8310_v10 = vpack.c.bf16 %v8028_v7, %v8024_v17  ;;  %v8034_v7 = vadd.f32 %v15381_v21, %v15435_v34 }
 0x89b   : > { %v15539_v58 = vpop.f32.mrf.mxu1  ;;  %v15541_v26 = vpop.f32.mrf.mxu0 }
 0x89d   : > { %v15543_v11 = vpop.f32.mrf.mxu1  ;;  %v15545_v15 = vpop.f32.mrf.mxu0  ;;  %9114 = vmatmul.mubr.bf16.gmra.mxu1 %v8308_v28 }
 0x89e   : > { %9121 = vmatprep.mubr.bf16.mxu1 %v8311_v8 }
 0x89f   : > { %v15549_v1 = vpop.f32.mrf.mxu1  ;;  %v15551_v12 = vpop.f32.mrf.mxu0  ;;  %9794 = vmatmul.mubr.bf16.gmra.mxu0 %v15117_v62  ;;  %v8313_v62 = vpack.c.bf16 %v8040_v53, %v8036_v55 }
 0x8a0   : > { %16762 = vst [vmem:[#allocation65_spill] sm:$0xff] %v15551_v12  ;;  %9801 = vmatprep.mubr.bf16.mxu0 %v15131_v45  ;;  %v8038_v45 = vadd.f32 %v15389_v29, %v15435_v34  ;;  %v8046_v29 = vadd.f32 %v15411_v2, %v15408_v22  ;;  %v8060_v2 = vadd.f32 %v15460_v23, %v15408_v22 }
 0x8a1   : > { %v15559_v60 = vpop.f32.mrf.mxu1  ;;  %v15561_v36 = vpop.f32.mrf.mxu0 }
 0x8a2   : > { %16763 = vst [vmem:[#allocation66_spill] sm:$0xff] %v15561_v36  ;;  %v8312_v55 = vpack.c.bf16 %v8038_v45, %v8034_v7  ;;  %v8044_v45 = vadd.f32 %v15404_v40, %v15435_v34  ;;  %v8058_v40 = vadd.f32 %v15454_v50, %v15435_v34  ;;  %v8066_v50 = vadd.f32 %v15471_v24, %v15408_v22 }
 0x8a3   : > { %v15565_v28 = vpop.f32.mrf.mxu1  ;;  %v15567_v8 = vpop.f32.mrf.mxu0  ;;  %v8080_v24 = vadd.f32 %v15513_v47, %v15408_v22 }
 0x8a5   : > { %v15569_v12 = vpop.f32.mrf.mxu1  ;;  %v15571_v51 = vpop.f32.mrf.mxu0  ;;  %9122 = vmatmul.mubr.bf16.gmra.mxu1 %v8310_v10 }
 0x8a6   : > { %9129 = vmatprep.mubr.bf16.mxu1 %v8313_v62 }
 0x8a7   : > { %v15575_v27 = vpop.f32.mrf.mxu1  ;;  %v15577_v36 = vpop.f32.mrf.mxu0  ;;  %9802 = vmatmul.mubr.bf16.gmra.mxu0 %v15134_v30  ;;  %v8315_v30 = vpack.c.bf16 %v8050_v63, %v8046_v29 }
 0x8a8   : > { %16764 = vst [vmem:[#allocation67_spill] sm:$0xff] %v15577_v36  ;;  %9809 = vmatprep.mubr.bf16.mxu0 %v15149_v54  ;;  %v8048_v54 = vadd.f32 %v15419_v16, %v15435_v34  ;;  %v8056_v16 = vadd.f32 %v15444_v42, %v15408_v22 }
 0x8a9   : > { %v15585_v53 = vpop.f32.mrf.mxu1  ;;  %v15587_v17 = vpop.f32.mrf.mxu0 }
 0x8aa   : > { %16765 = vst [vmem:[#allocation68_spill] sm:$0xff] %v15587_v17  ;;  %v8314_v29 = vpack.c.bf16 %v8048_v54, %v8044_v45  ;;  %v8070_v54 = vadd.f32 %v15487_v4, %v15408_v22 }
 0x8ab   : > { %v15591_v10 = vpop.f32.mrf.mxu1  ;;  %v15593_v62 = vpop.f32.mrf.mxu0 }
 0x8ad   : > { %v15595_v36 = vpop.f32.mrf.mxu1  ;;  %v15597_v56 = vpop.f32.mrf.mxu0  ;;  %9130 = vmatmul.mubr.bf16.gmra.mxu1 %v8312_v55 }
 0x8ae   : > { %9137 = vmatprep.mubr.bf16.mxu1 %v8315_v30 }
 0x8af   : > { %v15601_v21 = vpop.f32.mrf.mxu1  ;;  %v15603_v17 = vpop.f32.mrf.mxu0  ;;  %9810 = vmatmul.mubr.bf16.gmra.mxu0 %v15151_v3  ;;  %v8317_v3 = vpack.c.bf16 %v8060_v2, %v8056_v16  ;;  %v8054_v2 = vadd.f32 %v15437_v38, %v15435_v34 }
 0x8b0   : > { %16766 = vst [vmem:[#allocation69_spill] sm:$0xff] %v15603_v17  ;;  %9817 = vmatprep.mubr.bf16.mxu0 %v15163_v32  ;;  %v12024_v17 = vld [vmem:[#allocation16 + $0x20] sm:$0xff]  }
 0x8b1   : > { %v15611_v63 = vpop.f32.mrf.mxu1  ;;  %v15613_v7 = vpop.f32.mrf.mxu0  ;;  %11262 = vmatprep.subr.bf16.mxu1 %v12024_v17 }
 0x8b2   : > { %16767 = vst [vmem:[#allocation70_spill] sm:$0xff] %v15613_v7  ;;  %11263 = vmatpush3.bf16.msra.mxu1 %v12024_v17  ;;  %v8319_v17 = vpack.c.bf16 %v8070_v54, %v8066_v50  ;;  %v8064_v54 = vadd.f32 %v15464_v43, %v15435_v34  ;;  %v8078_v43 = vadd.f32 %v15507_v31, %v15435_v34 }
 0x8b3   : > { %v15617_v55 = vpop.f32.mrf.mxu1  ;;  %v15619_v30 = vpop.f32.mrf.mxu0  ;;  %v8086_v31 = vadd.f32 %v15523_v41, %v15408_v22  ;;  %v16784_v41 = vld [vmem:[#allocation36_spill] sm:$0xff] }
 0x8b5   : > { %v15621_v23 = vpop.f32.mrf.mxu1  ;;  %v15623_v32 = vpop.f32.mrf.mxu0  ;;  %9138 = vmatmul.mubr.bf16.gmra.mxu1 %v8314_v29  ;;  %v8316_v29 = vpack.c.bf16 %v8058_v40, %v8054_v2  ;;  %v16773_v40 = vld [vmem:[#allocation33_spill] sm:$0xff] }
 0x8b6   : > { %9145 = vmatprep.mubr.bf16.mxu1 %v8317_v3 }
 0x8b7   : > { %v15627_v7 = vpop.f32.mrf.mxu1  ;;  %v15629_v42 = vpop.f32.mrf.mxu0  ;;  %9818 = vmatmul.mubr.bf16.gmra.mxu0 %v15165_v6 }
 0x8b8   : > { %16768 = vst [vmem:[#allocation71_spill] sm:$0xff] %v15629_v42  ;;  %9825 = vmatprep.mubr.bf16.mxu0 %v15177_v48  ;;  %v8068_v48 = vadd.f32 %v15481_v14, %v15435_v34  ;;  %v8076_v14 = vadd.f32 %v15497_v57, %v15408_v22  ;;  %v16778_v57 = vld [vmem:[#allocation34_spill] sm:$0xff] }
 0x8b9   : > { %v15637_v45 = vpop.f32.mrf.mxu1  ;;  %v15639_v16 = vpop.f32.mrf.mxu0 }
 0x8ba   : > { %16769 = vst [vmem:[#allocation72_spill] sm:$0xff] %v15639_v16 }
 0x8bb   : > { %v15643_v3 = vpop.f32.mrf.mxu1  ;;  %v15645_v6 = vpop.f32.mrf.mxu0 }
 0x8bc   : > { %16770 = vst [vmem:[#allocation73_spill] sm:$0xff] %v15645_v6 }
 0x8bd   : > { %v15647_v42 = vpop.f32.mrf.mxu1  ;;  %v15649_v4 = vpop.f32.mrf.mxu0  ;;  %9146 = vmatmul.mubr.bf16.gmra.mxu1 %v8316_v29  ;;  %v8318_v29 = vpack.c.bf16 %v8068_v48, %v8064_v54  ;;  %v8090_v48 = vadd.f32 %v15539_v58, %v15408_v22  ;;  %v16779_v54 = vld [vmem:[#allocation35_spill] sm:$0xff] }
 0x8be   : > { %16771 = vst [vmem:[#allocation74_spill] sm:$0xff] %v15649_v4  ;;  %9153 = vmatprep.mubr.bf16.mxu1 %v8319_v17 }
 0x8bf   : > { %v15653_v38 = vpop.f32.mrf.mxu1  ;;  %v15655_v16 = vpop.f32.mrf.mxu0  ;;  %9826 = vmatmul.mubr.bf16.gmra.mxu0 %v15179_v33  ;;  %v8321_v33 = vpack.c.bf16 %v8080_v24, %v8076_v14  ;;  %v8074_v24 = vadd.f32 %v15491_v46, %v15435_v34  ;;  %v8088_v46 = vadd.f32 %v15533_v5, %v15435_v34  ;;  %v8096_v5 = vadd.f32 %v15549_v1, %v15408_v22  ;;  %v16790_v1 = vld [vmem:[#allocation38_spill] sm:$0xff] }
 0x8c0   : > { %16772 = vst [vmem:[#allocation75_spill] sm:$0xff] %v15655_v16  ;;  %9833 = vmatprep.mubr.bf16.mxu0 %v16773_v40 }
 0x8c1   : > { %v15663_v2 = vpop.f32.mrf.mxu1  ;;  %v15665_v50 = vpop.f32.mrf.mxu0 }
 0x8c2   : > { %16774 = vst [vmem:[#allocation33_spill] sm:$0xff] %v15665_v50 }
 0x8c3   : > { %v15669_v17 = vpop.f32.mrf.mxu1  ;;  %v15671_v16 = vpop.f32.mrf.mxu0 }
 0x8c4   : > { %16775 = vst [vmem:[#allocation76_spill] sm:$0xff] %v15671_v16 }
 0x8c5   : > { %v15673_v6 = vpop.f32.mrf.mxu1  ;;  %v15675_v47 = vpop.f32.mrf.mxu0  ;;  %9154 = vmatmul.mubr.bf16.gmra.mxu1 %v8318_v29 }
 0x8c6   : > { %16776 = vst [vmem:[#allocation77_spill] sm:$0xff] %v15675_v47  ;;  %9161 = vmatprep.mubr.bf16.mxu1 %v8321_v33  ;;  %v8320_v33 = vpack.c.bf16 %v8078_v43, %v8074_v24  ;;  %v8100_v43 = vadd.f32 %v15565_v28, %v15408_v22  ;;  %v16785_v24 = vld [vmem:[#allocation37_spill] sm:$0xff] }
 0x8c7   : > { %v15679_v40 = vpop.f32.mrf.mxu1  ;;  %v15681_v50 = vpop.f32.mrf.mxu0  ;;  %9834 = vmatmul.mubr.bf16.gmra.mxu0 %v16778_v57  ;;  %v8323_v57 = vpack.c.bf16 %v8090_v48, %v8086_v31  ;;  %v8084_v48 = vadd.f32 %v15517_v9, %v15435_v34  ;;  %v8098_v9 = vadd.f32 %v15559_v60, %v15435_v34  ;;  %v8106_v60 = vadd.f32 %v15575_v27, %v15408_v22 }
 0x8c8   : > { %16777 = vst [vmem:[#allocation78_spill] sm:$0xff] %v15681_v50  ;;  %9841 = vmatprep.mubr.bf16.mxu0 %v16779_v54 }
 0x8c9   : > { %v15689_v14 = vpop.f32.mrf.mxu1  ;;  %v15691_v29 = vpop.f32.mrf.mxu0 }
 0x8ca   : > { %16780 = vst [vmem:[#allocation34_spill] sm:$0xff] %v15691_v29 }
 0x8cb   : > { %v15695_v16 = vpop.f32.mrf.mxu1  ;;  %v15697_v50 = vpop.f32.mrf.mxu0 }
 0x8cc   : > { %16781 = vst [vmem:[#allocation35_spill] sm:$0xff] %v15697_v50 }
 0x8cd   : > { %v15699_v47 = vpop.f32.mrf.mxu1  ;;  %v15701_v58 = vpop.f32.mrf.mxu0  ;;  %9162 = vmatmul.mubr.bf16.gmra.mxu1 %v8320_v33 }
 0x8ce   : > { %16782 = vst [vmem:[#allocation79_spill] sm:$0xff] %v15701_v58  ;;  %9169 = vmatprep.mubr.bf16.mxu1 %v8323_v57  ;;  %v8322_v57 = vpack.c.bf16 %v8088_v46, %v8084_v48  ;;  %v8110_v46 = vadd.f32 %v15591_v10, %v15408_v22  ;;  %v16791_v48 = vld [vmem:[#allocation39_spill] sm:$0xff] }
 0x8cf   : > { %v15705_v54 = vpop.f32.mrf.mxu1  ;;  %v15707_v29 = vpop.f32.mrf.mxu0  ;;  %9842 = vmatmul.mubr.bf16.gmra.mxu0 %v16784_v41  ;;  %v8325_v41 = vpack.c.bf16 %v8100_v43, %v8096_v5  ;;  %v12025_v43 = vld [vmem:[#allocation16 + $0x18] sm:$0xff]   ;;  %v8094_v5 = vadd.f32 %v15543_v11, %v15435_v34  ;;  %v8108_v11 = vadd.f32 %v15585_v53, %v15435_v34  ;;  %v8116_v53 = vadd.f32 %v15601_v21, %v15408_v22  ;;  %v16802_v21 = vld [vmem:[#allocation42_spill] sm:$0xff] }
 0x8d0   : > { %16783 = vst [vmem:[#allocation80_spill] sm:$0xff] %v15707_v29  ;;  %9849 = vmatprep.mubr.bf16.mxu0 %v16785_v24  ;;  %11264 = vmatprep.subr.bf16.mxu1 %v12025_v43  ;;  %v8327_v10 = vpack.c.bf16 %v8110_v46, %v8106_v60  ;;  %v8104_v46 = vadd.f32 %v15569_v12, %v15435_v34 }
 0x8d1   : > { %v15715_v31 = vpop.f32.mrf.mxu1  ;;  %v15717_v33 = vpop.f32.mrf.mxu0  ;;  %11265 = vmatpush3.bf16.msra.mxu1 %v12025_v43  ;;  %v16797_v43 = vld [vmem:[#allocation41_spill] sm:$0xff]  ;;  %v8118_v12 = vadd.f32 %v15611_v63, %v15435_v34  ;;  %v8126_v63 = vadd.f32 %v15627_v7, %v15408_v22  ;;  %v16808_v7 = vld [vmem:[#allocation44_spill] sm:$0xff] }
 0x8d2   : > { %16786 = vst [vmem:[#allocation36_spill] sm:$0xff] %v15717_v33 }
 0x8d3   : > { %v15721_v50 = vpop.f32.mrf.mxu1  ;;  %v15723_v29 = vpop.f32.mrf.mxu0 }
 0x8d4   : > { %16787 = vst [vmem:[#allocation37_spill] sm:$0xff] %v15723_v29 }
 0x8d5   : > { %v15725_v58 = vpop.f32.mrf.mxu1  ;;  %v15727_v28 = vpop.f32.mrf.mxu0  ;;  %9170 = vmatmul.mubr.bf16.gmra.mxu1 %v8322_v57 }
 0x8d6   : > { %16788 = vst [vmem:[#allocation81_spill] sm:$0xff] %v15727_v28  ;;  %9177 = vmatprep.mubr.bf16.mxu1 %v8325_v41 }
 0x8d7   : > { %v15731_v24 = vpop.f32.mrf.mxu1  ;;  %v15733_v33 = vpop.f32.mrf.mxu0  ;;  %9850 = vmatmul.mubr.bf16.gmra.mxu0 %v16790_v1 }
 0x8d8   : > { %16789 = vst [vmem:[#allocation82_spill] sm:$0xff] %v15733_v33  ;;  %9857 = vmatprep.mubr.bf16.mxu0 %v16791_v48  ;;  %v8324_v33 = vpack.c.bf16 %v8098_v9, %v8094_v5  ;;  %v16796_v9 = vld [vmem:[#allocation40_spill] sm:$0xff]  ;;  %v8120_v5 = vadd.f32 %v15617_v55, %v15408_v22 }
 0x8d9   : > { %v15741_v57 = vpop.f32.mrf.mxu1  ;;  %v15743_v41 = vpop.f32.mrf.mxu0 }
 0x8da   : > { %16792 = vst [vmem:[#allocation38_spill] sm:$0xff] %v15743_v41 }
 0x8db   : > { %v15747_v29 = vpop.f32.mrf.mxu1  ;;  %v15749_v1 = vpop.f32.mrf.mxu0 }
 0x8dc   : > { %16793 = vst [vmem:[#allocation39_spill] sm:$0xff] %v15749_v1 }
 0x8dd   : > { %v15751_v48 = vpop.f32.mrf.mxu1  ;;  %v15753_v28 = vpop.f32.mrf.mxu0  ;;  %9178 = vmatmul.mubr.bf16.gmra.mxu1 %v8324_v33 }
 0x8de   : > { %16794 = vst [vmem:[#allocation83_spill] sm:$0xff] %v15753_v28  ;;  %9185 = vmatprep.mubr.bf16.mxu1 %v8327_v10  ;;  %v8326_v10 = vpack.c.bf16 %v8108_v11, %v8104_v46  ;;  %v8130_v11 = vadd.f32 %v15643_v3, %v15408_v22  ;;  %v16803_v46 = vld [vmem:[#allocation43_spill] sm:$0xff] }
 0x8df   : > { %v15757_v41 = vpop.f32.mrf.mxu1  ;;  %v15759_v27 = vpop.f32.mrf.mxu0  ;;  %9858 = vmatmul.mubr.bf16.gmra.mxu0 %v16796_v9  ;;  %v8329_v9 = vpack.c.bf16 %v8120_v5, %v8116_v53  ;;  %v8114_v5 = vadd.f32 %v15595_v36, %v15435_v34  ;;  %v8128_v36 = vadd.f32 %v15637_v45, %v15435_v34  ;;  %v8136_v45 = vadd.f32 %v15653_v38, %v15408_v22  ;;  %v16814_v38 = vld [vmem:[#allocation46_spill] sm:$0xff] }
 0x8e0   : > { %16795 = vst [vmem:[#allocation84_spill] sm:$0xff] %v15759_v27  ;;  %9865 = vmatprep.mubr.bf16.mxu0 %v16797_v43 }
 0x8e1   : > { %v15767_v60 = vpop.f32.mrf.mxu1  ;;  %v15769_v33 = vpop.f32.mrf.mxu0 }
 0x8e2   : > { %16798 = vst [vmem:[#allocation40_spill] sm:$0xff] %v15769_v33 }
 0x8e3   : > { %v15773_v1 = vpop.f32.mrf.mxu1  ;;  %v15775_v27 = vpop.f32.mrf.mxu0 }
 0x8e4   : > { %16799 = vst [vmem:[#allocation41_spill] sm:$0xff] %v15775_v27 }
 0x8e5   : > { %v15777_v28 = vpop.f32.mrf.mxu1  ;;  %v15779_v55 = vpop.f32.mrf.mxu0  ;;  %9186 = vmatmul.mubr.bf16.gmra.mxu1 %v8326_v10 }
 0x8e6   : > { %16800 = vst [vmem:[#allocation85_spill] sm:$0xff] %v15779_v55  ;;  %9193 = vmatprep.mubr.bf16.mxu1 %v8329_v9  ;;  %v8328_v9 = vpack.c.bf16 %v8118_v12, %v8114_v5  ;;  %v8140_v12 = vadd.f32 %v15669_v17, %v15408_v22  ;;  %v16809_v5 = vld [vmem:[#allocation45_spill] sm:$0xff] }
 0x8e7   : > { %v15783_v43 = vpop.f32.mrf.mxu1  ;;  %v15785_v33 = vpop.f32.mrf.mxu0  ;;  %9866 = vmatmul.mubr.bf16.gmra.mxu0 %v16802_v21  ;;  %v8331_v21 = vpack.c.bf16 %v8130_v11, %v8126_v63  ;;  %v8124_v11 = vadd.f32 %v15621_v23, %v15435_v34  ;;  %v8138_v23 = vadd.f32 %v15663_v2, %v15435_v34  ;;  %v8146_v2 = vadd.f32 %v15679_v40, %v15408_v22 }
 0x8e8   : > { %16801 = vst [vmem:[#allocation86_spill] sm:$0xff] %v15785_v33  ;;  %9873 = vmatprep.mubr.bf16.mxu0 %v16803_v46 }
 0x8e9   : > { %v15793_v53 = vpop.f32.mrf.mxu1  ;;  %v15795_v10 = vpop.f32.mrf.mxu0 }
 0x8ea   : > { %16804 = vst [vmem:[#allocation42_spill] sm:$0xff] %v15795_v10 }
 0x8eb   : > { %v15799_v27 = vpop.f32.mrf.mxu1  ;;  %v15801_v33 = vpop.f32.mrf.mxu0 }
 0x8ec   : > { %16805 = vst [vmem:[#allocation43_spill] sm:$0xff] %v15801_v33 }
 0x8ed   : > { %v15803_v55 = vpop.f32.mrf.mxu1  ;;  %v15805_v3 = vpop.f32.mrf.mxu0  ;;  %9194 = vmatmul.mubr.bf16.gmra.mxu1 %v8328_v9 }
 0x8ee   : > { %16806 = vst [vmem:[#allocation87_spill] sm:$0xff] %v15805_v3  ;;  %9201 = vmatprep.mubr.bf16.mxu1 %v8331_v21  ;;  %v8330_v21 = vpack.c.bf16 %v8128_v36, %v8124_v11  ;;  %v12026_v36 = vld [vmem:[#allocation16 + $0x10] sm:$0xff]   ;;  %v8150_v11 = vadd.f32 %v15695_v16, %v15408_v22 }
 0x8ef   : > { %v15809_v46 = vpop.f32.mrf.mxu1  ;;  %v15811_v10 = vpop.f32.mrf.mxu0  ;;  %9874 = vmatmul.mubr.bf16.gmra.mxu0 %v16808_v7  ;;  %v8333_v7 = vpack.c.bf16 %v8140_v12, %v8136_v45  ;;  %v16815_v12 = vld [vmem:[#allocation47_spill] sm:$0xff]  ;;  %v8134_v45 = vadd.f32 %v15647_v42, %v15435_v34  ;;  %11266 = vmatprep.subr.bf16.mxu1 %v12026_v36  ;;  %v8148_v42 = vadd.f32 %v15689_v14, %v15435_v34 }
 0x8f0   : > { %16807 = vst [vmem:[#allocation88_spill] sm:$0xff] %v15811_v10  ;;  %9881 = vmatprep.mubr.bf16.mxu0 %v16809_v5  ;;  %11267 = vmatpush3.bf16.msra.mxu1 %v12026_v36  ;;  %v8335_v16 = vpack.c.bf16 %v8150_v11, %v8146_v2  ;;  %v12028_v36 = vld [vmem:[#allocation16] sm:$0xff]   ;;  %v8160_v11 = vadd.f32 %v15721_v50, %v15408_v22 }
 0x8f1   : > { %v15819_v63 = vpop.f32.mrf.mxu1  ;;  %v15821_v9 = vpop.f32.mrf.mxu0  ;;  %v8156_v14 = vadd.f32 %v15705_v54, %v15408_v22  ;;  %v16822_v54 = vld [vmem:[#allocation50_spill] sm:$0xff] }
 0x8f2   : > { %16810 = vst [vmem:[#allocation44_spill] sm:$0xff] %v15821_v9 }
 0x8f3   : > { %v15825_v33 = vpop.f32.mrf.mxu1  ;;  %v15827_v10 = vpop.f32.mrf.mxu0 }
 0x8f4   : > { %16811 = vst [vmem:[#allocation45_spill] sm:$0xff] %v15827_v10 }
 0x8f5   : > { %v15829_v3 = vpop.f32.mrf.mxu1  ;;  %v15831_v17 = vpop.f32.mrf.mxu0  ;;  %9202 = vmatmul.mubr.bf16.gmra.mxu1 %v8330_v21 }
 0x8f6   : > { %16812 = vst [vmem:[#allocation89_spill] sm:$0xff] %v15831_v17  ;;  %9209 = vmatprep.mubr.bf16.mxu1 %v8333_v7  ;;  %v12027_v17 = vld [vmem:[#allocation16 + $0x8] sm:$0xff]  }
 0x8f7   : > { %v15835_v5 = vpop.f32.mrf.mxu1  ;;  %v15837_v9 = vpop.f32.mrf.mxu0  ;;  %9882 = vmatmul.mubr.bf16.gmra.mxu0 %v16814_v38  ;;  %11268 = vmatprep.subr.bf16.mxu1 %v12027_v17 }
 0x8f8   : > { %16813 = vst [vmem:[#allocation90_spill] sm:$0xff] %v15837_v9  ;;  %9889 = vmatprep.mubr.bf16.mxu0 %v16815_v12  ;;  %v8332_v9 = vpack.c.bf16 %v8138_v23, %v8134_v45  ;;  %11269 = vmatpush3.bf16.msra.mxu1 %v12027_v17  ;;  %v16818_v23 = vld [vmem:[#allocation48_spill] sm:$0xff]  ;;  %v16819_v45 = vld [vmem:[#allocation49_spill] sm:$0xff] }
 0x8f9   : > { %v15845_v21 = vpop.f32.mrf.mxu1  ;;  %v9693_v7 = vpop.f32.mrf.mxu0  ;;  %11270 = vmatprep.subr.bf16.mxu1 %v12028_v36 }
 0x8fb   : > { %v15849_v10 = vpop.f32.mrf.mxu1  ;;  %v15851_v38 = vpop.f32.mrf.mxu0 }
 0x8fc   : > { %16816 = vst [vmem:[#allocation46_spill] sm:$0xff] %v15851_v38  ;;  %11271 = vmatpush3.bf16.msra.mxu1 %v12028_v36  ;;  %v8337_v38 = vpack.c.bf16 %v8160_v11, %v8156_v14  ;;  %v16823_v36 = vld [vmem:[#allocation51_spill] sm:$0xff]  ;;  %v8154_v11 = vadd.f32 %v15699_v47, %v15435_v34  ;;  %v8168_v47 = vadd.f32 %v15741_v57, %v15435_v34 }
 0x8fd   : > { %v15853_v4 = vpop.f32.mrf.mxu1  ;;  %9210 = vmatmul.mubr.bf16.gmra.mxu1 %v8332_v9  ;;  %v9696_v12 = vpop.f32.mrf.mxu0  ;;  %v8144_v9 = vadd.f32 %v15673_v6, %v15435_v34  ;;  %v8158_v6 = vadd.f32 %v15715_v31, %v15435_v34  ;;  %v8166_v31 = vadd.f32 %v15731_v24, %v15408_v22  ;;  %v8180_v24 = vadd.f32 %v15773_v1, %v15408_v22 }
 0x8fe   : > { %9217 = vmatprep.mubr.bf16.mxu1 %v8335_v16  ;;  %v8176_v57 = vadd.f32 %v15757_v41, %v15408_v22  ;;  %v8190_v41 = vadd.f32 %v15799_v27, %v15408_v22 }
 0x8ff   : > { %v15857_v7 = vpop.f32.mrf.mxu1  ;;  %v15859_v40 = vpop.f32.mrf.mxu0  ;;  %9890 = vmatmul.mubr.bf16.gmra.mxu0 %v16818_v23  ;;  %v8334_v16 = vpack.c.bf16 %v8148_v42, %v8144_v9  ;;  %v8170_v42 = vadd.f32 %v15747_v29, %v15408_v22  ;;  %v8336_v14 = vpack.c.bf16 %v8158_v6, %v8154_v11  ;;  %v16827_v6 = vld [vmem:[#allocation53_spill] sm:$0xff] }
 0x900   : > { %16817 = vst [vmem:[#allocation47_spill] sm:$0xff] %v15859_v40  ;;  %9897 = vmatprep.mubr.bf16.mxu0 %v16819_v45 }
 0x901   : > { %v15867_v2 = vpop.f32.mrf.mxu1  ;;  %v9701_v17 = vpop.f32.mrf.mxu0 }
 0x903   : > { %v15871_v12 = vpop.f32.mrf.mxu1  ;;  %v15873_v23 = vpop.f32.mrf.mxu0 }
 0x904   : > { %16820 = vst [vmem:[#allocation48_spill] sm:$0xff] %v15873_v23  ;;  %v16826_v23 = vld [vmem:[#allocation52_spill] sm:$0xff] }
 0x905   : > { %v15875_v50 = vpop.f32.mrf.mxu1  ;;  %9218 = vmatmul.mubr.bf16.gmra.mxu1 %v8334_v16  ;;  %v9704_v45 = vpop.f32.mrf.mxu0 }
 0x906   : > { %9225 = vmatprep.mubr.bf16.mxu1 %v8337_v38 }
 0x907   : > { %v15879_v17 = vpop.f32.mrf.mxu1  ;;  %v15881_v40 = vpop.f32.mrf.mxu0  ;;  %9898 = vmatmul.mubr.bf16.gmra.mxu0 %v16822_v54  ;;  %v8339_v54 = vpack.c.bf16 %v8170_v42, %v8166_v31  ;;  %v8164_v42 = vadd.f32 %v15725_v58, %v15435_v34  ;;  %v8178_v58 = vadd.f32 %v15767_v60, %v15435_v34  ;;  %v8186_v60 = vadd.f32 %v15783_v43, %v15408_v22 }
 0x908   : > { %16821 = vst [vmem:[#allocation49_spill] sm:$0xff] %v15881_v40  ;;  %9905 = vmatprep.mubr.bf16.mxu0 %v16823_v36  ;;  %v8200_v43 = vadd.f32 %v15825_v33, %v15408_v22 }
 0x909   : > { %v15889_v9 = vpop.f32.mrf.mxu1  ;;  %v9709_v38 = vpop.f32.mrf.mxu0 }
 0x90b   : > { %v15893_v16 = vpop.f32.mrf.mxu1  ;;  %v15895_v45 = vpop.f32.mrf.mxu0 }
 0x90c   : > { %16824 = vst [vmem:[#allocation50_spill] sm:$0xff] %v15895_v45 }
 0x90d   : > { %v15897_v40 = vpop.f32.mrf.mxu1  ;;  %9226 = vmatmul.mubr.bf16.gmra.mxu1 %v8336_v14  ;;  %v9712_v29 = vpop.f32.mrf.mxu0  ;;  %v8338_v14 = vpack.c.bf16 %v8168_v47, %v8164_v42  ;;  %v16831_v47 = vld [vmem:[#allocation55_spill] sm:$0xff] }
 0x90e   : > { %9233 = vmatprep.mubr.bf16.mxu1 %v8339_v54 }
 0x90f   : > { %v15901_v36 = vpop.f32.mrf.mxu1  ;;  %v15903_v38 = vpop.f32.mrf.mxu0  ;;  %9906 = vmatmul.mubr.bf16.gmra.mxu0 %v16826_v23  ;;  %v8341_v23 = vpack.c.bf16 %v8180_v24, %v8176_v57  ;;  %v8174_v24 = vadd.f32 %v15751_v48, %v15435_v34  ;;  %v8188_v48 = vadd.f32 %v15793_v53, %v15435_v34  ;;  %v8196_v53 = vadd.f32 %v15809_v46, %v15408_v22 }
 0x910   : > { %16825 = vst [vmem:[#allocation51_spill] sm:$0xff] %v15903_v38  ;;  %9913 = vmatprep.mubr.bf16.mxu0 %v16827_v6  ;;  %v16830_v38 = vld [vmem:[#allocation54_spill] sm:$0xff]  ;;  %v8210_v46 = vadd.f32 %v15849_v10, %v15408_v22 }
 0x911   : > { %v15911_v11 = vpop.f32.mrf.mxu1  ;;  %v9717_v31 = vpop.f32.mrf.mxu0 }
 0x913   : > { %v15915_v54 = vpop.f32.mrf.mxu1  ;;  %v15917_v29 = vpop.f32.mrf.mxu0 }
 0x914   : > { %16828 = vst [vmem:[#allocation52_spill] sm:$0xff] %v15917_v29  ;;  %v16833_v29 = vld [vmem:[#allocation56_spill] sm:$0xff] }
 0x915   : > { %v15919_v45 = vpop.f32.mrf.mxu1  ;;  %9234 = vmatmul.mubr.bf16.gmra.mxu1 %v8338_v14  ;;  %v9720_v1 = vpop.f32.mrf.mxu0  ;;  %v8340_v14 = vpack.c.bf16 %v8178_v58, %v8174_v24  ;;  %v8184_v58 = vadd.f32 %v15777_v28, %v15435_v34 }
 0x916   : > { %9241 = vmatprep.mubr.bf16.mxu1 %v8341_v23 }
 0x917   : > { %v15923_v6 = vpop.f32.mrf.mxu1  ;;  %v15925_v31 = vpop.f32.mrf.mxu0  ;;  %9914 = vmatmul.mubr.bf16.gmra.mxu0 %v16830_v38  ;;  %v8343_v38 = vpack.c.bf16 %v8190_v41, %v8186_v60  ;;  %v8342_v60 = vpack.c.bf16 %v8188_v48, %v8184_v58  ;;  %v8194_v48 = vadd.f32 %v15803_v55, %v15435_v34 }
 0x918   : > { %16829 = vst [vmem:[#allocation53_spill] sm:$0xff] %v15925_v31  ;;  %9921 = vmatprep.mubr.bf16.mxu0 %v16831_v47 }
 0x919   : > { %v15933_v42 = vpop.f32.mrf.mxu1  ;;  %v9725_v57 = vpop.f32.mrf.mxu0 }
 0x91b   : > { %v15937_v23 = vpop.f32.mrf.mxu1  ;;  %v15939_v1 = vpop.f32.mrf.mxu0 }
 0x91c   : > { %16832 = vst [vmem:[#allocation54_spill] sm:$0xff] %v15939_v1  ;;  %v16835_v1 = vld [vmem:[#allocation57_spill] sm:$0xff] }
 0x91d   : > { %v15941_v31 = vpop.f32.mrf.mxu1  ;;  %9242 = vmatmul.mubr.bf16.gmra.mxu1 %v8340_v14  ;;  %v9728_v27 = vpop.f32.mrf.mxu0 }
 0x91e   : > { %9249 = vmatprep.mubr.bf16.mxu1 %v8343_v38 }
 0x91f   : > { %v15945_v47 = vpop.f32.mrf.mxu1  ;;  %v15947_v57 = vpop.f32.mrf.mxu0  ;;  %9922 = vmatmul.mubr.bf16.gmra.mxu0 %v16833_v29  ;;  %v8345_v29 = vpack.c.bf16 %v8200_v43, %v8196_v53 }
 0x920   : > { %9929 = vmatprep.mubr.bf16.mxu0 %v15391_v35  ;;  %v8198_v35 = vadd.f32 %v15819_v63, %v15435_v34  ;;  %v8206_v63 = vadd.f32 %v15835_v5, %v15408_v22  ;;  %v8220_v5 = vadd.f32 %v15871_v12, %v15408_v22 }
 0x921   : > { %v15955_v41 = vpop.f32.mrf.mxu1  ;;  %v9733_v24 = vpop.f32.mrf.mxu0 }
 0x922   : > { %v8344_v53 = vpack.c.bf16 %v8198_v35, %v8194_v48  ;;  %v8204_v35 = vadd.f32 %v15829_v3, %v15435_v34  ;;  %v8218_v3 = vadd.f32 %v15867_v2, %v15435_v34 }
 0x923   : > { %v15959_v14 = vpop.f32.mrf.mxu1  ;;  %v15961_v38 = vpop.f32.mrf.mxu0 }
 0x925   : > { %v15963_v27 = vpop.f32.mrf.mxu1  ;;  %9250 = vmatmul.mubr.bf16.gmra.mxu1 %v8342_v60  ;;  %v9736_v33 = vpop.f32.mrf.mxu0 }
 0x926   : > { %9257 = vmatprep.mubr.bf16.mxu1 %v8345_v29 }
 0x927   : > { %v15967_v28 = vpop.f32.mrf.mxu1  ;;  %v15969_v24 = vpop.f32.mrf.mxu0  ;;  %9930 = vmatmul.mubr.bf16.gmra.mxu0 %v16835_v1  ;;  %v8347_v1 = vpack.c.bf16 %v8210_v46, %v8206_v63  ;;  %v8216_v63 = vadd.f32 %v15857_v7, %v15408_v22  ;;  %v8230_v7 = vadd.f32 %v15893_v16, %v15408_v22 }
 0x928   : > { %16834 = vst [vmem:[#allocation55_spill] sm:$0xff] %v15969_v24  ;;  %9937 = vmatprep.mubr.bf16.mxu0 %v15425_v52  ;;  %v8208_v52 = vadd.f32 %v15845_v21, %v15435_v34 }
 0x929   : > { %v15977_v43 = vpop.f32.mrf.mxu1  ;;  %v9741_v58 = vpop.f32.mrf.mxu0 }
 0x92b   : > { %v15981_v60 = vpop.f32.mrf.mxu1  ;;  %v15983_v29 = vpop.f32.mrf.mxu0 }
 0x92c   : > { %16836 = vst [vmem:[#allocation56_spill] sm:$0xff] %v15983_v29 }
 0x92d   : > { %v15985_v33 = vpop.f32.mrf.mxu1  ;;  %9258 = vmatmul.mubr.bf16.gmra.mxu1 %v8344_v53  ;;  %v9744_v10 = vpop.f32.mrf.mxu0  ;;  %v8346_v53 = vpack.c.bf16 %v8208_v52, %v8204_v35  ;;  %v8214_v52 = vadd.f32 %v15853_v4, %v15435_v34  ;;  %v8228_v4 = vadd.f32 %v15889_v9, %v15435_v34 }
 0x92e   : > { %9265 = vmatprep.mubr.bf16.mxu1 %v8347_v1  ;;  %v8349_v10 = vpack.c.bf16 %v8220_v5, %v8216_v63  ;;  %v8226_v63 = vadd.f32 %v15879_v17, %v15408_v22  ;;  %v8240_v17 = vadd.f32 %v15915_v54, %v15408_v22 }
 0x92f   : > { %v15989_v55 = vpop.f32.mrf.mxu1  ;;  %v15991_v58 = vpop.f32.mrf.mxu0  ;;  %9938 = vmatmul.mubr.bf16.gmra.mxu0 %v15427_v59 }
 0x931   : > { %v15998_v46 = vpop.f32.mrf.mxu1  ;;  %v9749_v48 = vpop.f32.mrf.mxu0 }
 0x933   : > { %v16002_v21 = vpop.f32.mrf.mxu1  ;;  %v16004_v1 = vpop.f32.mrf.mxu0 }
 0x934   : > { %16837 = vst [vmem:[#allocation57_spill] sm:$0xff] %v16004_v1 }
 0x935   : > { %v16006_v29 = vpop.f32.mrf.mxu1  ;;  %9266 = vmatmul.mubr.bf16.gmra.mxu1 %v8346_v53  ;;  %v9752_v59 = vpop.f32.mrf.mxu0  ;;  %v8348_v53 = vpack.c.bf16 %v8218_v3, %v8214_v52  ;;  %v8224_v3 = vadd.f32 %v15875_v50, %v15435_v34  ;;  %v8238_v50 = vadd.f32 %v15911_v11, %v15435_v34 }
 0x936   : > { %9273 = vmatprep.mubr.bf16.mxu1 %v8349_v10  ;;  %v8351_v59 = vpack.c.bf16 %v8230_v7, %v8226_v63 }
 0x937   : > { %v16010_v12 = vpop.f32.mrf.mxu1  ;;  %v16012_v48 = vpop.f32.mrf.mxu0  ;;  %v8350_v63 = vpack.c.bf16 %v8228_v4, %v8224_v3  ;;  %v8234_v4 = vadd.f32 %v15897_v40, %v15435_v34 }
 0x938   : > { %16838 = vst [vmem:[#allocation91_spill] sm:$0xff] %v16012_v48 }
 0x939   : > { %v16018_v35 = vpop.f32.mrf.mxu1  ;;  %v9757_v5 = vpop.f32.mrf.mxu0 }
 0x93b   : > { %v16022_v10 = vpop.f32.mrf.mxu1  ;;  %v16024_v2 = vpop.f32.mrf.mxu0 }
 0x93c   : > { %16839 = vst [vmem:[#allocation92_spill] sm:$0xff] %v16024_v2 }
 0x93d   : > { %v16026_v1 = vpop.f32.mrf.mxu1  ;;  %9274 = vmatmul.mubr.bf16.gmra.mxu1 %v8348_v53  ;;  %v9760_v48 = vpop.f32.mrf.mxu0 }
 0x93e   : > { %9281 = vmatprep.mubr.bf16.mxu1 %v8351_v59  ;;  %v8236_v48 = vadd.f32 %v15901_v36, %v15408_v22  ;;  %v8250_v36 = vadd.f32 %v15937_v23, %v15408_v22  ;;  %v8248_v23 = vadd.f32 %v15933_v42, %v15435_v34 }
 0x93f   : > { %v16030_v16 = vpop.f32.mrf.mxu1  ;;  %v16032_v5 = vpop.f32.mrf.mxu0 }
 0x940   : > { %16840 = vst [vmem:[#allocation93_spill] sm:$0xff] %v16032_v5  ;;  %v8353_v59 = vpack.c.bf16 %v8240_v17, %v8236_v48 }
 0x941   : > { %v16038_v52 = vpop.f32.mrf.mxu1  ;;  %v9765_v7 = vpop.f32.mrf.mxu0 }
 0x942   : > { %v8246_v7 = vadd.f32 %v15923_v6, %v15408_v22  ;;  %v8244_v6 = vadd.f32 %v15919_v45, %v15435_v34 }
 0x943   : > { %v16042_v53 = vpop.f32.mrf.mxu1  ;;  %v16044_v9 = vpop.f32.mrf.mxu0 }
 0x944   : > { %v8355_v11 = vpack.c.bf16 %v8250_v36, %v8246_v7  ;;  %v8354_v7 = vpack.c.bf16 %v8248_v23, %v8244_v6  ;;  %v8266_v6 = vadd.f32 %v15967_v28, %v15408_v22  ;;  %v8264_v28 = vadd.f32 %v15963_v27, %v15435_v34 }
 0x945   : > { %v16046_v2 = vpop.f32.mrf.mxu1  ;;  %9282 = vmatmul.mubr.bf16.gmra.mxu1 %v8350_v63  ;;  %v9768_v5 = vpop.f32.mrf.mxu0 }
 0x946   : > { %9289 = vmatprep.mubr.bf16.mxu1 %v8353_v59  ;;  %v8352_v5 = vpack.c.bf16 %v8238_v50, %v8234_v4  ;;  %v8256_v4 = vadd.f32 %v15945_v47, %v15408_v22  ;;  %v8254_v47 = vadd.f32 %v15941_v31, %v15435_v34 }
 0x947   : > { %v9093_v54 = vpop.f32.mrf.mxu1  ;;  %v16050_v24 = vpop.f32.mrf.mxu0 }
 0x948   : > { %16841 = vst [vmem:[#allocation94_spill] sm:$0xff] %v16050_v24 }
 0x949   : > { %v16056_v3 = vpop.f32.mrf.mxu1  ;;  %v9773_v17 = vpop.f32.mrf.mxu0 }
 0x94a   : > { %v8260_v17 = vadd.f32 %v15959_v14, %v15408_v22  ;;  %v8258_v14 = vadd.f32 %v15955_v41, %v15435_v34 }
 0x94b   : > { %v9096_v48 = vpop.f32.mrf.mxu1  ;;  %v16060_v63 = vpop.f32.mrf.mxu0 }
 0x94c   : > { %v8357_v42 = vpack.c.bf16 %v8260_v17, %v8256_v4  ;;  %v8356_v4 = vpack.c.bf16 %v8258_v14, %v8254_v47  ;;  %v8276_v47 = vadd.f32 %v15989_v55, %v15408_v22  ;;  %v8274_v55 = vadd.f32 %v15985_v33, %v15435_v34 }
 0x94d   : > { %v16062_v59 = vpop.f32.mrf.mxu1  ;;  %9290 = vmatmul.mubr.bf16.gmra.mxu1 %v8352_v5  ;;  %v9776_v54 = vpop.f32.mrf.mxu0 }
 0x94e   : > { %9297 = vmatprep.mubr.bf16.mxu1 %v8355_v11 }
 0x94f   : > { %v9101_v40 = vpop.f32.mrf.mxu1  ;;  %v16066_v24 = vpop.f32.mrf.mxu0 }
 0x951   : > { %v16072_v50 = vpop.f32.mrf.mxu1  ;;  %v9781_v36 = vpop.f32.mrf.mxu0 }
 0x952   : > { %v8270_v36 = vadd.f32 %v15981_v60, %v15408_v22  ;;  %v8268_v60 = vadd.f32 %v15977_v43, %v15435_v34 }
 0x953   : > { %v9104_v5 = vpop.f32.mrf.mxu1  ;;  %v16076_v48 = vpop.f32.mrf.mxu0 }
 0x954   : > { %v8359_v41 = vpack.c.bf16 %v8270_v36, %v8266_v6  ;;  %v8358_v6 = vpack.c.bf16 %v8268_v60, %v8264_v28 }
 0x955   : > { %v16078_v11 = vpop.f32.mrf.mxu1  ;;  %9298 = vmatmul.mubr.bf16.gmra.mxu1 %v8354_v7  ;;  %v9784_v54 = vpop.f32.mrf.mxu0 }
 0x956   : > { %9305 = vmatprep.mubr.bf16.mxu1 %v8357_v42 }
 0x957   : > { %v9109_v45 = vpop.f32.mrf.mxu1  ;;  %v16082_v40 = vpop.f32.mrf.mxu0 }
 0x959   : > { %v16088_v23 = vpop.f32.mrf.mxu1  ;;  %v9789_v17 = vpop.f32.mrf.mxu0 }
 0x95a   : > { %v8280_v17 = vadd.f32 %v16002_v21, %v15408_v22  ;;  %v8278_v21 = vadd.f32 %v15998_v46, %v15435_v34 }
 0x95b   : > { %v9112_v7 = vpop.f32.mrf.mxu1  ;;  %v16092_v5 = vpop.f32.mrf.mxu0 }
 0x95c   : > { %v8361_v43 = vpack.c.bf16 %v8280_v17, %v8276_v47  ;;  %v8286_v17 = vadd.f32 %v16010_v12, %v15408_v22  ;;  %v8360_v47 = vpack.c.bf16 %v8278_v21, %v8274_v55  ;;  %v9095_v12 = vadd.f32 %v16056_v3, %v15440_v20 }
 0x95d   : > { %v16094_v42 = vpop.f32.mrf.mxu1  ;;  %9306 = vmatmul.mubr.bf16.gmra.mxu1 %v8356_v4  ;;  %v9792_v54 = vpop.f32.mrf.mxu0  ;;  %v8284_v21 = vadd.f32 %v16006_v29, %v15435_v34 }
 0x95e   : > { %9313 = vmatprep.mubr.bf16.mxu1 %v8359_v41 }
 0x95f   : > { %v9117_v31 = vpop.f32.mrf.mxu1  ;;  %v16098_v45 = vpop.f32.mrf.mxu0 }
 0x961   : > { %v16104_v14 = vpop.f32.mrf.mxu1  ;;  %v9797_v36 = vpop.f32.mrf.mxu0 }
 0x962   : > { %v8290_v36 = vadd.f32 %v16022_v10, %v15408_v22  ;;  %v8288_v10 = vadd.f32 %v16018_v35, %v15435_v34  ;;  %v9092_v35 = vadd.f32 %v16046_v2, %v15421_v25  ;;  %v8298_v25 = vadd.f32 %v16038_v52, %v15435_v34 }
 0x963   : > { %v9120_v4 = vpop.f32.mrf.mxu1  ;;  %v16108_v7 = vpop.f32.mrf.mxu0  ;;  %v9103_v2 = vadd.f32 %v15431_v0, %v16072_v50  ;;  %v9108_v52 = vadd.f32 %v16078_v11, %v15456_v49  ;;  %v9119_v49 = vadd.f32 %v15462_v39, %v16104_v14 }
 0x965   : > { %v16110_v41 = vpop.f32.mrf.mxu1  ;;  %9314 = vmatmul.mubr.bf16.gmra.mxu1 %v8358_v6  ;;  %v9800_v54 = vpop.f32.mrf.mxu0 }
 0x966   : > { %9321 = vmatprep.mubr.bf16.mxu1 %v8361_v43  ;;  %v8363_v43 = vpack.c.bf16 %v8290_v36, %v8286_v17  ;;  %v8296_v17 = vadd.f32 %v16030_v16, %v15408_v22 }
 0x967   : > { %v9125_v27 = vpop.f32.mrf.mxu1  ;;  %v16114_v31 = vpop.f32.mrf.mxu0 }
 0x969   : > { %v9126_v60 = vpop.f32.mrf.mxu1  ;;  %v9805_v28 = vpop.f32.mrf.mxu0 }
 0x96a   : > { %v8300_v28 = vadd.f32 %v16042_v53, %v15408_v22  ;;  %v16145_v53 = vld [vmem:[%s16631_s23] ss:$0 sm:$0xff] }
 0x96b   : > { %v9128_v6 = vpop.f32.mrf.mxu1  ;;  %v16122_v4 = vpop.f32.mrf.mxu0  ;;  %v9353_v29 = vadd.f32 %v16145_v53, %v9095_v12  ;;  %v9352_v22 = vadd.f32 %v16145_v53, %v9092_v35  ;;  %v8294_v12 = vadd.f32 %v16026_v1, %v15435_v34  ;;  %v9355_v50 = vadd.f32 %v16145_v53, %v9103_v2 }
 0x96c   : > { %v8365_v3 = vpack.c.bf16 %v8300_v28, %v8296_v17  ;;  %v9111_v28 = vadd.f32 %v16088_v23, %v15466_v37  ;;  %v9127_v2 = vadd.f32 %v9126_v60, %v15493_v61 }
 0x96d   : > { %v16124_v46 = vpop.f32.mrf.mxu1  ;;  %9322 = vmatmul.mubr.bf16.gmra.mxu1 %v8360_v47  ;;  %v9808_v54 = vpop.f32.mrf.mxu0  ;;  %v8362_v47 = vpack.c.bf16 %v8288_v10, %v8284_v21  ;;  %v16842_v21 = vld [vmem:[#allocation58_spill] sm:$0xff]  ;;  %v8364_v0 = vpack.c.bf16 %v8298_v25, %v8294_v12 }
 0x96e   : > { %9329 = vmatprep.mubr.bf16.mxu1 %v8363_v43  ;;  %v9357_v37 = vadd.f32 %v16145_v53, %v9111_v28 }
 0x96f   : > { %v9133_v27 = vpop.f32.mrf.mxu1  ;;  %v16128_v33 = vpop.f32.mrf.mxu0 }
 0x970   : > { %v9417_v27 = vmax.f32 %v9353_v29, 0.0  ;;  %v9356_v29 = vadd.f32 %v16145_v53, %v9108_v52  ;;  %v9421_v25 = vmax.f32 %v9357_v37, 0.0 }
 0x971   : > { %v16136_v36 = vpop.f32.mrf.mxu1  ;;  %v9813_v55 = vpop.f32.mrf.mxu0 }
 0x972   : > { %v9100_v55 = vadd.f32 %v16842_v21, %v16062_v59 }
 0x973   : > { %v9136_v6 = vpop.f32.mrf.mxu1  ;;  %v16147_v20 = vpop.f32.mrf.mxu0 }
 0x974   : > { %v9354_v34 = vadd.f32 %v16145_v53, %v9100_v55  ;;  %v9420_v55 = vmax.f32 %v9356_v29, 0.0 }
 0x975   : > { %v16150_v43 = vpop.f32.mrf.mxu1  ;;  %9330 = vmatmul.mubr.bf16.gmra.mxu1 %v8362_v47  ;;  %v9816_v54 = vpop.f32.mrf.mxu0  ;;  %v9416_v47 = vmax.f32 %v9352_v22, 0.0 }
 0x976   : > { %9337 = vmatprep.mubr.bf16.mxu1 %v8365_v3  ;;  %v9419_v54 = vmax.f32 %v9355_v50, 0.0  ;;  %v9361_v50 = vadd.f32 %v16145_v53, %v9127_v2 }
 0x977   : > { %v9141_v16 = vpop.f32.mrf.mxu1  ;;  %v16157_v10 = vpop.f32.mrf.mxu0  ;;  %v9480_v23 = vpack.c.bf16 %v9417_v27, %v9416_v47  ;;  %v16843_v27 = vld [vmem:[#allocation59_spill] sm:$0xff] }
 0x978   : > { %v9418_v16 = vmax.f32 %v9354_v34, 0.0  ;;  %v9116_v28 = vadd.f32 %v16843_v27, %v16094_v42  ;;  %v9425_v29 = vmax.f32 %v9361_v50, 0.0 }
 0x979   : > { %v9142_v17 = vpop.f32.mrf.mxu1  ;;  %v9821_v35 = vpop.f32.mrf.mxu0 }
 0x97a   : > { %v16844_v35 = vld [vmem:[#allocation61_spill] sm:$0xff]  ;;  %v9481_v52 = vpack.c.bf16 %v9419_v54, %v9418_v16  ;;  %v9358_v61 = vadd.f32 %v16145_v53, %v9116_v28  ;;  %v9143_v54 = vadd.f32 %v9142_v17, %v15519_v13  ;;  %v9140_v28 = vadd.f32 %v16150_v43, %v15509_v18 }
 0x97b   : > { %v9144_v6 = vpop.f32.mrf.mxu1  ;;  %v16168_v3 = vpop.f32.mrf.mxu0  ;;  %v9124_v47 = vadd.f32 %v16110_v41, %v16844_v35  ;;  %v9135_v41 = vadd.f32 %v15489_v44, %v16136_v36 }
 0x97c   : > { %v9482_v6 = vpack.c.bf16 %v9421_v25, %v9420_v55  ;;  %v9365_v35 = vadd.f32 %v16145_v53, %v9143_v54 }
 0x97d   : > { %v9147_v1 = vpop.f32.mrf.mxu1  ;;  %9338 = vmatmul.mubr.bf16.gmra.mxu1 %v8364_v0  ;;  %v9824_v59 = vpop.f32.mrf.mxu0  ;;  %v9359_v0 = vadd.f32 %v16145_v53, %v9119_v49  ;;  %v9360_v42 = vadd.f32 %v16145_v53, %v9124_v47  ;;  %v9422_v49 = vmax.f32 %v9358_v61, 0.0  ;;  %v9363_v55 = vadd.f32 %v16145_v53, %v9135_v41 }
 0x97e   : > { %11272 = vmatprep.mubr.bf16.mxu1 %v9480_v23  ;;  %v9429_v50 = vmax.f32 %v9365_v35, 0.0 }
 0x97f   : > { %v9149_v11 = vpop.f32.mrf.mxu1  ;;  %v16175_v22 = vpop.f32.mrf.mxu0  ;;  %v9423_v23 = vmax.f32 %v9359_v0, 0.0  ;;  %v9424_v27 = vmax.f32 %v9360_v42, 0.0  ;;  %v9427_v0 = vmax.f32 %v9363_v55, 0.0 }
 0x980   : > { %v16845_v11 = vld [vmem:[#allocation60_spill] sm:$0xff] }
 0x981   : > { %v9150_v12 = vpop.f32.mrf.mxu1  ;;  %v9829_v21 = vpop.f32.mrf.mxu0  ;;  %v9132_v25 = vadd.f32 %v16845_v11, %v16124_v46  ;;  %v9484_v47 = vpack.c.bf16 %v9425_v29, %v9424_v27  ;;  %v9364_v46 = vadd.f32 %v16145_v53, %v9140_v28  ;;  %v16847_v29 = vld [vmem:[#allocation64_spill] sm:$0xff] }
 0x982   : > { %v9483_v21 = vpack.c.bf16 %v9423_v23, %v9422_v49  ;;  %v9151_v18 = vadd.f32 %v15515_v19, %v9150_v12 }
 0x983   : > { %v9152_v39 = vpop.f32.mrf.mxu1  ;;  %v16183_v14 = vpop.f32.mrf.mxu0  ;;  %v9362_v13 = vadd.f32 %v16145_v53, %v9132_v25 }
 0x984   : > { %v9367_v11 = vadd.f32 %v16145_v53, %v9151_v18  ;;  %v16849_v18 = vld [vmem:[#allocation66_spill] sm:$0xff] }
 0x985   : > { %v9155_v60 = vpop.f32.mrf.mxu1  ;;  %v9832_v37 = vpop.f32.mrf.mxu0  ;;  %11273 = vmatmul.mubr.bf16.vlgmr.msra.gmra.mxu1 %v9481_v52  ;;  %v9426_v61 = vmax.f32 %v9362_v13, 0.0 }
 0x986   : > { %11276 = vmatprep.mubr.bf16.mxu1 %v9482_v6  ;;  %v16846_v37 = vld [vmem:[#allocation62_spill] sm:$0xff]  ;;  %v9156_v54 = vadd.f32 %v9155_v60, %v16847_v29  ;;  %v9431_v28 = vmax.f32 %v9367_v11, 0.0 }
 0x987   : > { %v9157_v34 = vpop.f32.mrf.mxu1  ;;  %v16190_v59 = vpop.f32.mrf.mxu0  ;;  %v9148_v42 = vadd.f32 %v16846_v37, %v9147_v1  ;;  %v9485_v49 = vpack.c.bf16 %v9427_v0, %v9426_v61 }
 0x988   : > { %v9428_v34 = vmax.f32 %v9364_v46, 0.0  ;;  %v9368_v1 = vadd.f32 %v16145_v53, %v9156_v54 }
 0x989   : > { %v9158_v2 = vpop.f32.mrf.mxu1  ;;  %v9837_v16 = vpop.f32.mrf.mxu0  ;;  %v9366_v27 = vadd.f32 %v16145_v53, %v9148_v42 }
 0x98a   : > { %v9159_v6 = vadd.f32 %v9158_v2, %v15545_v15  ;;  %v9486_v12 = vpack.c.bf16 %v9429_v50, %v9428_v34  ;;  %v9432_v0 = vmax.f32 %v9368_v1, 0.0 }
 0x98b   : > { %v9160_v44 = vpop.f32.mrf.mxu1  ;;  %v16198_v36 = vpop.f32.mrf.mxu0  ;;  %v9430_v35 = vmax.f32 %v9366_v27, 0.0 }
 0x98c   : > { %v9369_v19 = vadd.f32 %v16145_v53, %v9159_v6 }
 0x98d   : > { %v9163_v17 = vpop.f32.mrf.mxu1  ;;  %v9840_v52 = vpop.f32.mrf.mxu0  ;;  %11277 = vmatmul.mubr.bf16.gmra.mxu1 %v9483_v21  ;;  %v9487_v6 = vpack.c.bf16 %v9431_v28, %v9430_v35 }
 0x98e   : > { %11280 = vmatprep.mubr.bf16.mxu1 %v9484_v47  ;;  %v9433_v44 = vmax.f32 %v9369_v19, 0.0  ;;  %v16848_v47 = vld [vmem:[#allocation63_spill] sm:$0xff]  ;;  %v16850_v19 = vld [vmem:[#allocation65_spill] sm:$0xff] }
 0x98f   : > { %v9165_v43 = vpop.f32.mrf.mxu1  ;;  %v16204_v39 = vpop.f32.mrf.mxu0  ;;  %v9164_v13 = vadd.f32 %v16848_v47, %v9163_v17 }
 0x991   : > { %v9166_v23 = vpop.f32.mrf.mxu1  ;;  %v9845_v41 = vpop.f32.mrf.mxu0 }
 0x992   : > { %v9167_v60 = vadd.f32 %v15541_v26, %v9166_v23  ;;  %v9488_v23 = vpack.c.bf16 %v9433_v44, %v9432_v0  ;;  %v9370_v41 = vadd.f32 %v16145_v53, %v9164_v13 }
 0x993   : > { %v9168_v25 = vpop.f32.mrf.mxu1  ;;  %v16210_v16 = vpop.f32.mrf.mxu0 }
 0x994   : > { %v9371_v61 = vadd.f32 %v16145_v53, %v9167_v60  ;;  %v9434_v25 = vmax.f32 %v9370_v41, 0.0 }
 0x995   : > { %v9171_v15 = vpop.f32.mrf.mxu1  ;;  %v9848_v2 = vpop.f32.mrf.mxu0  ;;  %11281 = vmatmul.mubr.bf16.gmra.mxu1 %v9485_v49 }
 0x996   : > { %11284 = vmatprep.mubr.bf16.mxu1 %v9486_v12  ;;  %v9172_v43 = vadd.f32 %v9171_v15, %v16849_v18  ;;  %v9435_v54 = vmax.f32 %v9371_v61, 0.0 }
 0x997   : > { %v9173_v21 = vpop.f32.mrf.mxu1  ;;  %v16216_v55 = vpop.f32.mrf.mxu0 }
 0x998   : > { %v9372_v29 = vadd.f32 %v16145_v53, %v9172_v43  ;;  %v9489_v28 = vpack.c.bf16 %v9435_v54, %v9434_v25  ;;  %v16852_v25 = vld [vmem:[#allocation67_spill] sm:$0xff] }
 0x999   : > { %v9174_v52 = vpop.f32.mrf.mxu1  ;;  %v9853_v46 = vpop.f32.mrf.mxu0 }
 0x99a   : > { %v9175_v50 = vadd.f32 %v9174_v52, %v15571_v51  ;;  %v9436_v2 = vmax.f32 %v9372_v29, 0.0  ;;  %v16851_v46 = vld [vmem:[#allocation68_spill] sm:$0xff] }
 0x99b   : > { %v9176_v37 = vpop.f32.mrf.mxu1  ;;  %v16222_v42 = vpop.f32.mrf.mxu0 }
 0x99c   : > { %v9373_v26 = vadd.f32 %v16145_v53, %v9175_v50 }
 0x99d   : > { %v9179_v34 = vpop.f32.mrf.mxu1  ;;  %v9856_v17 = vpop.f32.mrf.mxu0  ;;  %11285 = vmatmul.mubr.bf16.gmra.mxu1 %v9487_v6 }
 0x99e   : > { %11288 = vmatprep.mubr.bf16.mxu1 %v9488_v23  ;;  %v9437_v11 = vmax.f32 %v9373_v26, 0.0  ;;  %v9180_v12 = vadd.f32 %v16850_v19, %v9179_v34 }
 0x99f   : > { %v9181_v49 = vpop.f32.mrf.mxu1  ;;  %v16227_v51 = vpop.f32.mrf.mxu0 }
 0x9a0   : > { %v9490_v35 = vpack.c.bf16 %v9437_v11, %v9436_v2  ;;  %v9374_v47 = vadd.f32 %v16145_v53, %v9180_v12 }
 0x9a1   : > { %v9182_v27 = vpop.f32.mrf.mxu1  ;;  %v9861_v15 = vpop.f32.mrf.mxu0 }
 0x9a2   : > { %v9183_v1 = vadd.f32 %v15567_v8, %v9182_v27  ;;  %v9438_v8 = vmax.f32 %v9374_v47, 0.0 }
 0x9a3   : > { %v9184_v60 = vpop.f32.mrf.mxu1  ;;  %v16231_v21 = vpop.f32.mrf.mxu0 }
 0x9a4   : > { %v9375_v44 = vadd.f32 %v16145_v53, %v9183_v1 }
 0x9a5   : > { %v9187_v13 = vpop.f32.mrf.mxu1  ;;  %v9864_v52 = vpop.f32.mrf.mxu0  ;;  %11289 = vmatmul.mubr.bf16.gmra.mxu1 %v9489_v28 }
 0x9a6   : > { %v9188_v0 = vadd.f32 %v9187_v13, %v16851_v46  ;;  %11292 = vmatprep.mubr.bf16.mxu1 %v9490_v35  ;;  %v9439_v18 = vmax.f32 %v9375_v44, 0.0 }
 0x9a7   : > { %v9189_v43 = vpop.f32.mrf.mxu1  ;;  %v16236_v50 = vpop.f32.mrf.mxu0 }
 0x9a8   : > { %v9376_v37 = vadd.f32 %v16145_v53, %v9188_v0  ;;  %v9491_v23 = vpack.c.bf16 %v9439_v18, %v9438_v8  ;;  %v16853_v0 = vld [vmem:[#allocation70_spill] sm:$0xff] }
 0x9a9   : > { %v9190_v6 = vpop.f32.mrf.mxu1  ;;  %v9869_v61 = vpop.f32.mrf.mxu0 }
 0x9aa   : > { %v9191_v26 = vadd.f32 %v9190_v6, %v15597_v56  ;;  %v9440_v49 = vmax.f32 %v9376_v37, 0.0 }
 0x9ab   : > { %v9192_v41 = vpop.f32.mrf.mxu1  ;;  %v16240_v34 = vpop.f32.mrf.mxu0 }
 0x9ac   : > { %v9377_v17 = vadd.f32 %v16145_v53, %v9191_v26 }
 0x9ad   : > { %v9195_v29 = vpop.f32.mrf.mxu1  ;;  %v9872_v54 = vpop.f32.mrf.mxu0  ;;  %11293 = vmatmul.mubr.bf16.gmra.mxu1 %v9491_v23 }
 0x9ae   : > { %v9441_v11 = vmax.f32 %v9377_v17, 0.0  ;;  %v9196_v19 = vadd.f32 %v16852_v25, %v9195_v29  ;;  %v16854_v25 = vld [vmem:[#allocation69_spill] sm:$0xff] }
 0x9af   : > { %v9197_v12 = vpop.f32.mrf.mxu1  ;;  %v16244_v27 = vpop.f32.mrf.mxu0 }
 0x9b0   : > { %v9492_v15 = vpack.c.bf16 %v9441_v11, %v9440_v49  ;;  %v9378_v56 = vadd.f32 %v16145_v53, %v9196_v19 }
 0x9b1   : > { %v9198_v2 = vpop.f32.mrf.mxu1  ;;  %v9877_v1 = vpop.f32.mrf.mxu0 }
 0x9b2   : > { %v9199_v28 = vadd.f32 %v15593_v62, %v9198_v2  ;;  %11296 = vmatprep.mubr.bf16.mxu1 %v9492_v15  ;;  %v9442_v52 = vmax.f32 %v9378_v56, 0.0 }
 0x9b3   : > { %v9200_v60 = vpop.f32.mrf.mxu1  ;;  %v16248_v44 = vpop.f32.mrf.mxu0 }
 0x9b4   : > { %v9379_v35 = vadd.f32 %v16145_v53, %v9199_v28 }
 0x9b5   : > { %v9203_v47 = vpop.f32.mrf.mxu1  ;;  %v9880_v13 = vpop.f32.mrf.mxu0 }
 0x9b6   : > { %v9443_v46 = vmax.f32 %v9379_v35, 0.0  ;;  %v9204_v18 = vadd.f32 %v9203_v47, %v16853_v0 }
 0x9b7   : > { %v9205_v43 = vpop.f32.mrf.mxu1  ;;  %v16252_v8 = vpop.f32.mrf.mxu0 }
 0x9b8   : > { %v9493_v6 = vpack.c.bf16 %v9443_v46, %v9442_v52  ;;  %v9380_v62 = vadd.f32 %v16145_v53, %v9204_v18  ;;  %v16855_v18 = vld [vmem:[#allocation72_spill] sm:$0xff] }
 0x9b9   : > { %v9206_v61 = vpop.f32.mrf.mxu1  ;;  %v9885_v37 = vpop.f32.mrf.mxu0 }
 0x9ba   : > { %v9207_v26 = vadd.f32 %v9206_v61, %v15623_v32  ;;  %11297 = vmatmul.mubr.bf16.gmra.mxu1 %v9493_v6  ;;  %v9444_v49 = vmax.f32 %v9380_v62, 0.0 }
 0x9bb   : > { %v9208_v23 = vpop.f32.mrf.mxu1  ;;  %v16256_v41 = vpop.f32.mrf.mxu0 }
 0x9bc   : > { %v9381_v17 = vadd.f32 %v16145_v53, %v9207_v26  ;;  %v16856_v23 = vld [vmem:[#allocation74_spill] sm:$0xff] }
 0x9bd   : > { %v9211_v29 = vpop.f32.mrf.mxu1  ;;  %v9888_v54 = vpop.f32.mrf.mxu0 }
 0x9be   : > { %v9445_v11 = vmax.f32 %v9381_v17, 0.0  ;;  %v9212_v19 = vadd.f32 %v16854_v25, %v9211_v29 }
 0x9bf   : > { %v9213_v12 = vpop.f32.mrf.mxu1  ;;  %v16260_v15 = vpop.f32.mrf.mxu0 }
 0x9c0   : > { %v9494_v2 = vpack.c.bf16 %v9445_v11, %v9444_v49  ;;  %v9382_v32 = vadd.f32 %v16145_v53, %v9212_v19 }
 0x9c1   : > { %v9214_v1 = vpop.f32.mrf.mxu1  ;;  %v9893_v56 = vpop.f32.mrf.mxu0 }
 0x9c2   : > { %v9215_v28 = vadd.f32 %v15619_v30, %v9214_v1  ;;  %11300 = vmatprep.mubr.bf16.mxu1 %v9494_v2  ;;  %v9446_v46 = vmax.f32 %v9382_v32, 0.0  ;;  %v16857_v2 = vld [vmem:[#allocation71_spill] sm:$0xff] }
 0x9c3   : > { %v9216_v60 = vpop.f32.mrf.mxu1  ;;  %v16264_v35 = vpop.f32.mrf.mxu0 }
 0x9c4   : > { %v9383_v47 = vadd.f32 %v16145_v53, %v9215_v28 }
 0x9c5   : > { %v9219_v13 = vpop.f32.mrf.mxu1  ;;  %v9896_v52 = vpop.f32.mrf.mxu0 }
 0x9c6   : > { %v9447_v0 = vmax.f32 %v9383_v47, 0.0  ;;  %v9220_v43 = vadd.f32 %v9219_v13, %v16855_v18  ;;  %v16858_v52 = vld [vmem:[#allocation73_spill] sm:$0xff] }
 0x9c7   : > { %v9221_v6 = vpop.f32.mrf.mxu1  ;;  %v16268_v61 = vpop.f32.mrf.mxu0 }
 0x9c8   : > { %v9495_v37 = vpack.c.bf16 %v9447_v0, %v9446_v46  ;;  %v9384_v30 = vadd.f32 %v16145_v53, %v9220_v43 }
 0x9c9   : > { %v9222_v62 = vpop.f32.mrf.mxu1  ;;  %v9901_v26 = vpop.f32.mrf.mxu0 }
 0x9ca   : > { %v9223_v17 = vadd.f32 %v9222_v62, %v16856_v23  ;;  %11301 = vmatmul.mubr.bf16.gmra.mxu1 %v9495_v37  ;;  %v9448_v19 = vmax.f32 %v9384_v30, 0.0  ;;  %v16859_v30 = vld [vmem:[#allocation33_spill] sm:$0xff] }
 0x9cb   : > { %v9224_v29 = vpop.f32.mrf.mxu1  ;;  %v16272_v54 = vpop.f32.mrf.mxu0 }
 0x9cc   : > { %v9385_v49 = vadd.f32 %v16145_v53, %v9223_v17 }
 0x9cd   : > { %v9227_v11 = vpop.f32.mrf.mxu1  ;;  %v9904_v25 = vpop.f32.mrf.mxu0 }
 0x9ce   : > { %v9449_v12 = vmax.f32 %v9385_v49, 0.0  ;;  %v9228_v1 = vadd.f32 %v16857_v2, %v9227_v11 }
 0x9cf   : > { %v9229_v56 = vpop.f32.mrf.mxu1  ;;  %v16276_v32 = vpop.f32.mrf.mxu0 }
 0x9d0   : > { %v9496_v28 = vpack.c.bf16 %v9449_v12, %v9448_v19  ;;  %v9386_v13 = vadd.f32 %v16145_v53, %v9228_v1  ;;  %v16860_v12 = vld [vmem:[#allocation77_spill] sm:$0xff] }
 0x9d1   : > { %v9230_v60 = vpop.f32.mrf.mxu1  ;;  %v9909_v47 = vpop.f32.mrf.mxu0 }
 0x9d2   : > { %v9231_v46 = vadd.f32 %v16858_v52, %v9230_v60  ;;  %11304 = vmatprep.mubr.bf16.mxu1 %v9496_v28  ;;  %v9450_v62 = vmax.f32 %v9386_v13, 0.0 }
 0x9d3   : > { %v9232_v0 = vpop.f32.mrf.mxu1  ;;  %v16280_v18 = vpop.f32.mrf.mxu0 }
 0x9d4   : > { %v9387_v43 = vadd.f32 %v16145_v53, %v9231_v46  ;;  %v16862_v46 = vld [vmem:[#allocation75_spill] sm:$0xff] }
 0x9d5   : > { %v9235_v6 = vpop.f32.mrf.mxu1  ;;  %v9912_v37 = vpop.f32.mrf.mxu0 }
 0x9d6   : > { %v9451_v26 = vmax.f32 %v9387_v43, 0.0  ;;  %v9236_v23 = vadd.f32 %v9235_v6, %v16859_v30 }
 0x9d7   : > { %v9237_v17 = vpop.f32.mrf.mxu1  ;;  %v16284_v29 = vpop.f32.mrf.mxu0 }
 0x9d8   : > { %v9497_v49 = vpack.c.bf16 %v9451_v26, %v9450_v62  ;;  %v9388_v19 = vadd.f32 %v16145_v53, %v9236_v23  ;;  %v16863_v23 = vld [vmem:[#allocation76_spill] sm:$0xff] }
 0x9d9   : > { %v9238_v11 = vpop.f32.mrf.mxu1  ;;  %v9917_v25 = vpop.f32.mrf.mxu0 }
 0x9da   : > { %v9239_v2 = vadd.f32 %v9238_v11, %v16860_v12  ;;  %11305 = vmatmul.mubr.bf16.gmra.mxu1 %v9497_v49  ;;  %v9452_v13 = vmax.f32 %v9388_v19, 0.0 }
 0x9db   : > { %v9240_v1 = vpop.f32.mrf.mxu1  ;;  %v16288_v56 = vpop.f32.mrf.mxu0 }
 0x9dc   : > { %16861 = vst [vmem:[#allocation58_spill] sm:$0xff] %v16288_v56  ;;  %v9389_v28 = vadd.f32 %v16145_v53, %v9239_v2 }
 0x9dd   : > { %v9243_v60 = vpop.f32.mrf.mxu1  ;;  %v9920_v47 = vpop.f32.mrf.mxu0 }
 0x9de   : > { %v9453_v52 = vmax.f32 %v9389_v28, 0.0  ;;  %v9244_v0 = vadd.f32 %v16862_v46, %v9243_v60  ;;  %v16864_v28 = vld [vmem:[#allocation34_spill] sm:$0xff] }
 0x9df   : > { %v9245_v43 = vpop.f32.mrf.mxu1  ;;  %v16292_v6 = vpop.f32.mrf.mxu0 }
 0x9e0   : > { %v9498_v37 = vpack.c.bf16 %v9453_v52, %v9452_v13  ;;  %v9390_v30 = vadd.f32 %v16145_v53, %v9244_v0 }
 0x9e1   : > { %v9246_v62 = vpop.f32.mrf.mxu1  ;;  %v9925_v26 = vpop.f32.mrf.mxu0 }
 0x9e2   : > { %v9247_v17 = vadd.f32 %v16863_v23, %v9246_v62  ;;  %11308 = vmatprep.mubr.bf16.mxu1 %v9498_v37  ;;  %v9454_v2 = vmax.f32 %v9390_v30, 0.0  ;;  %v16866_v37 = vld [vmem:[#allocation79_spill] sm:$0xff] }
 0x9e3   : > { %v9248_v49 = vpop.f32.mrf.mxu1  ;;  %v16296_v11 = vpop.f32.mrf.mxu0 }
 0x9e4   : > { %v9391_v25 = vadd.f32 %v16145_v53, %v9247_v17 }
 0x9e5   : > { %v9251_v19 = vpop.f32.mrf.mxu1  ;;  %v9928_v12 = vpop.f32.mrf.mxu0 }
 0x9e6   : > { %v9455_v1 = vmax.f32 %v9391_v25, 0.0  ;;  %v9252_v60 = vadd.f32 %v9251_v19, %v16864_v28  ;;  %v16868_v12 = vld [vmem:[#allocation78_spill] sm:$0xff] }
 0x9e7   : > { %v9253_v47 = vpop.f32.mrf.mxu1  ;;  %v16300_v13 = vpop.f32.mrf.mxu0 }
 0x9e8   : > { %16865 = vst [vmem:[#allocation59_spill] sm:$0xff] %v16300_v13  ;;  %v9499_v52 = vpack.c.bf16 %v9455_v1, %v9454_v2  ;;  %v9392_v43 = vadd.f32 %v16145_v53, %v9252_v60 }
 0x9e9   : > { %v9254_v46 = vpop.f32.mrf.mxu1  ;;  %v9933_v0 = vpop.f32.mrf.mxu0 }
 0x9ea   : > { %v9255_v62 = vadd.f32 %v9254_v46, %v16866_v37  ;;  %11309 = vmatmul.mubr.bf16.gmra.mxu1 %v9499_v52  ;;  %v9456_v25 = vmax.f32 %v9392_v43, 0.0  ;;  %v16870_v52 = vld [vmem:[#allocation35_spill] sm:$0xff] }
 0x9eb   : > { %v9256_v26 = vpop.f32.mrf.mxu1  ;;  %v16304_v23 = vpop.f32.mrf.mxu0 }
 0x9ec   : > { %16867 = vst [vmem:[#allocation61_spill] sm:$0xff] %v16304_v23  ;;  %v9393_v17 = vadd.f32 %v16145_v53, %v9255_v62 }
 0x9ed   : > { %v9259_v30 = vpop.f32.mrf.mxu1  ;;  %v9936_v49 = vpop.f32.mrf.mxu0 }
 0x9ee   : > { %v9457_v19 = vmax.f32 %v9393_v17, 0.0  ;;  %v9260_v28 = vadd.f32 %v16868_v12, %v9259_v30  ;;  %v16872_v12 = vld [vmem:[#allocation36_spill] sm:$0xff] }
 0x9ef   : > { %v9261_v47 = vpop.f32.mrf.mxu1  ;;  %v16308_v2 = vpop.f32.mrf.mxu0 }
 0x9f0   : > { %16869 = vst [vmem:[#allocation60_spill] sm:$0xff] %v16308_v2  ;;  %v9500_v1 = vpack.c.bf16 %v9457_v19, %v9456_v25  ;;  %v9394_v46 = vadd.f32 %v16145_v53, %v9260_v28  ;;  %v16873_v28 = vld [vmem:[#allocation81_spill] sm:$0xff] }
 0x9f1   : > { %v9262_v0 = vpop.f32.mrf.mxu1  ;;  %v9941_v60 = vpop.f32.mrf.mxu0 }
 0x9f2   : > { %v9263_v37 = vadd.f32 %v16870_v52, %v9262_v0  ;;  %11312 = vmatprep.mubr.bf16.mxu1 %v9500_v1  ;;  %v9458_v49 = vmax.f32 %v9394_v46, 0.0 }
 0x9f3   : > { %v9264_v26 = vpop.f32.mrf.mxu1  ;;  %v16312_v23 = vpop.f32.mrf.mxu0 }
 0x9f4   : > { %16871 = vst [vmem:[#allocation62_spill] sm:$0xff] %v16312_v23  ;;  %v9395_v62 = vadd.f32 %v16145_v53, %v9263_v37  ;;  %v16874_v23 = vld [vmem:[#allocation80_spill] sm:$0xff] }
 0x9f5   : > { %v9267_v43 = vpop.f32.mrf.mxu1  ;;  %v9944_v17 = vpop.f32.mrf.mxu0 }
 0x9f6   : > { %v9459_v30 = vmax.f32 %v9395_v62, 0.0  ;;  %v9268_v47 = vadd.f32 %v9267_v43, %v16872_v12  ;;  %v16875_v43 = vld [vmem:[#allocation37_spill] sm:$0xff] }
 0x9f7   : > { %v9269_v13 = vpop.f32.mrf.mxu1 }
 0x9f8   : > { %v9501_v25 = vpack.c.bf16 %v9459_v30, %v9458_v49  ;;  %v9396_v60 = vadd.f32 %v16145_v53, %v9268_v47 }
 0x9f9   : > { %v9270_v19 = vpop.f32.mrf.mxu1 }
 0x9fa   : > { %v9271_v2 = vadd.f32 %v9270_v19, %v16873_v28  ;;  %11313 = vmatmul.mubr.bf16.gmra.mxu1 %v9501_v25  ;;  %v9460_v26 = vmax.f32 %v9396_v60, 0.0 }
 0x9fb   : > { %v9272_v1 = vpop.f32.mrf.mxu1 }
 0x9fc   : > { %v9397_v0 = vadd.f32 %v16145_v53, %v9271_v2  ;;  %v16876_v2 = vld [vmem:[#allocation38_spill] sm:$0xff] }
 0x9fd   : > { %v9275_v52 = vpop.f32.mrf.mxu1 }
 0x9fe   : > { %v9461_v37 = vmax.f32 %v9397_v0, 0.0  ;;  %v9276_v17 = vadd.f32 %v16874_v23, %v9275_v52  ;;  %v16877_v52 = vld [vmem:[#allocation83_spill] sm:$0xff] }
 0x9ff   : > { %v9277_v46 = vpop.f32.mrf.mxu1 }
 0xa00   : > { %v9502_v62 = vpack.c.bf16 %v9461_v37, %v9460_v26  ;;  %v9398_v13 = vadd.f32 %v16145_v53, %v9276_v17 }
 0xa01   : > { %v9278_v56 = vpop.f32.mrf.mxu1 }
 0xa02   : > { %v9279_v49 = vadd.f32 %v16875_v43, %v9278_v56  ;;  %11316 = vmatprep.mubr.bf16.mxu1 %v9502_v62  ;;  %v9462_v25 = vmax.f32 %v9398_v13, 0.0  ;;  %v16878_v43 = vld [vmem:[#allocation82_spill] sm:$0xff] }
 0xa03   : > { %v9280_v30 = vpop.f32.mrf.mxu1 }
 0xa04   : > { %v9399_v12 = vadd.f32 %v16145_v53, %v9279_v49 }
 0xa05   : > { %v9283_v47 = vpop.f32.mrf.mxu1 }
 0xa06   : > { %v9463_v19 = vmax.f32 %v9399_v12, 0.0  ;;  %v9284_v28 = vadd.f32 %v9283_v47, %v16876_v2 }
 0xa07   : > { %v9285_v60 = vpop.f32.mrf.mxu1 }
 0xa08   : > { %v9503_v1 = vpack.c.bf16 %v9463_v19, %v9462_v25  ;;  %v9400_v23 = vadd.f32 %v16145_v53, %v9284_v28  ;;  %v16879_v25 = vld [vmem:[#allocation39_spill] sm:$0xff] }
 0xa09   : > { %v9286_v0 = vpop.f32.mrf.mxu1 }
 0xa0a   : > { %v9287_v26 = vadd.f32 %v9286_v0, %v16877_v52  ;;  %11317 = vmatmul.mubr.bf16.gmra.mxu1 %v9503_v1  ;;  %v9464_v46 = vmax.f32 %v9400_v23, 0.0  ;;  %v16880_v52 = vld [vmem:[#allocation40_spill] sm:$0xff] }
 0xa0b   : > { %v9288_v37 = vpop.f32.mrf.mxu1 }
 0xa0c   : > { %v9401_v56 = vadd.f32 %v16145_v53, %v9287_v26 }
 0xa0d   : > { %v9291_v17 = vpop.f32.mrf.mxu1 }
 0xa0e   : > { %v9465_v62 = vmax.f32 %v9401_v56, 0.0  ;;  %v9292_v49 = vadd.f32 %v16878_v43, %v9291_v17 }
 0xa0f   : > { %v9293_v13 = vpop.f32.mrf.mxu1 }
 0xa10   : > { %v9504_v30 = vpack.c.bf16 %v9465_v62, %v9464_v46  ;;  %v9402_v47 = vadd.f32 %v16145_v53, %v9292_v49  ;;  %v16881_v46 = vld [vmem:[#allocation85_spill] sm:$0xff] }
 0xa11   : > { %v9294_v12 = vpop.f32.mrf.mxu1 }
 0xa12   : > { %v9295_v19 = vadd.f32 %v16879_v25, %v9294_v12  ;;  %11320 = vmatprep.mubr.bf16.mxu1 %v9504_v30  ;;  %v9466_v1 = vmax.f32 %v9402_v47, 0.0  ;;  %v16882_v25 = vld [vmem:[#allocation84_spill] sm:$0xff] }
 0xa13   : > { %v9296_v2 = vpop.f32.mrf.mxu1 }
 0xa14   : > { %v9403_v28 = vadd.f32 %v16145_v53, %v9295_v19 }
 0xa15   : > { %v9299_v60 = vpop.f32.mrf.mxu1 }
 0xa16   : > { %v9467_v0 = vmax.f32 %v9403_v28, 0.0  ;;  %v9300_v26 = vadd.f32 %v9299_v60, %v16880_v52 }
 0xa17   : > { %v9301_v23 = vpop.f32.mrf.mxu1 }
 0xa18   : > { %v9505_v37 = vpack.c.bf16 %v9467_v0, %v9466_v1  ;;  %v9404_v17 = vadd.f32 %v16145_v53, %v9300_v26  ;;  %v16883_v1 = vld [vmem:[#allocation41_spill] sm:$0xff] }
 0xa19   : > { %v9302_v56 = vpop.f32.mrf.mxu1 }
 0xa1a   : > { %v9303_v62 = vadd.f32 %v9302_v56, %v16881_v46  ;;  %11321 = vmatmul.mubr.bf16.gmra.mxu1 %v9505_v37  ;;  %v9468_v30 = vmax.f32 %v9404_v17, 0.0  ;;  %v16884_v46 = vld [vmem:[#allocation42_spill] sm:$0xff] }
 0xa1b   : > { %v9304_v43 = vpop.f32.mrf.mxu1 }
 0xa1c   : > { %v9405_v49 = vadd.f32 %v16145_v53, %v9303_v62 }
 0xa1d   : > { %v9307_v13 = vpop.f32.mrf.mxu1 }
 0xa1e   : > { %v9469_v12 = vmax.f32 %v9405_v49, 0.0  ;;  %v9308_v19 = vadd.f32 %v16882_v25, %v9307_v13 }
 0xa1f   : > { %v9309_v47 = vpop.f32.mrf.mxu1 }
 0xa20   : > { %v9506_v2 = vpack.c.bf16 %v9469_v12, %v9468_v30  ;;  %v9406_v60 = vadd.f32 %v16145_v53, %v9308_v19  ;;  %v16885_v30 = vld [vmem:[#allocation87_spill] sm:$0xff] }
 0xa21   : > { %v9310_v28 = vpop.f32.mrf.mxu1 }
 0xa22   : > { %v9311_v0 = vadd.f32 %v16883_v1, %v9310_v28  ;;  %11324 = vmatprep.mubr.bf16.mxu1 %v9506_v2  ;;  %v9470_v37 = vmax.f32 %v9406_v60, 0.0  ;;  %v16886_v1 = vld [vmem:[#allocation86_spill] sm:$0xff] }
 0xa23   : > { %v9312_v52 = vpop.f32.mrf.mxu1 }
 0xa24   : > { %v9407_v26 = vadd.f32 %v16145_v53, %v9311_v0 }
 0xa25   : > { %v9315_v23 = vpop.f32.mrf.mxu1 }
 0xa26   : > { %v9471_v56 = vmax.f32 %v9407_v26, 0.0  ;;  %v9316_v62 = vadd.f32 %v9315_v23, %v16884_v46 }
 0xa27   : > { %v9317_v17 = vpop.f32.mrf.mxu1 }
 0xa28   : > { %v9507_v43 = vpack.c.bf16 %v9471_v56, %v9470_v37  ;;  %v9408_v13 = vadd.f32 %v16145_v53, %v9316_v62  ;;  %v16887_v37 = vld [vmem:[#allocation43_spill] sm:$0xff] }
 0xa29   : > { %v9318_v49 = vpop.f32.mrf.mxu1 }
 0xa2a   : > { %v9319_v12 = vadd.f32 %v9318_v49, %v16885_v30  ;;  %11325 = vmatmul.mubr.bf16.gmra.mxu1 %v9507_v43  ;;  %v9472_v2 = vmax.f32 %v9408_v13, 0.0  ;;  %v16888_v30 = vld [vmem:[#allocation44_spill] sm:$0xff] }
 0xa2b   : > { %v9320_v25 = vpop.f32.mrf.mxu1 }
 0xa2c   : > { %v9409_v19 = vadd.f32 %v16145_v53, %v9319_v12 }
 0xa2d   : > { %v9323_v47 = vpop.f32.mrf.mxu1 }
 0xa2e   : > { %v9473_v28 = vmax.f32 %v9409_v19, 0.0  ;;  %v9324_v0 = vadd.f32 %v16886_v1, %v9323_v47 }
 0xa2f   : > { %v9325_v60 = vpop.f32.mrf.mxu1 }
 0xa30   : > { %v9508_v52 = vpack.c.bf16 %v9473_v28, %v9472_v2  ;;  %v9410_v23 = vadd.f32 %v16145_v53, %v9324_v0  ;;  %v16889_v2 = vld [vmem:[#allocation89_spill] sm:$0xff] }
 0xa31   : > { %v9326_v26 = vpop.f32.mrf.mxu1 }
 0xa32   : > { %v9327_v56 = vadd.f32 %v16887_v37, %v9326_v26  ;;  %11328 = vmatprep.mubr.bf16.mxu1 %v9508_v52  ;;  %v9474_v43 = vmax.f32 %v9410_v23, 0.0  ;;  %v16890_v23 = vld [vmem:[#allocation88_spill] sm:$0xff] }
 0xa33   : > { %v9328_v46 = vpop.f32.mrf.mxu1 }
 0xa34   : > { %v9411_v62 = vadd.f32 %v16145_v53, %v9327_v56 }
 0xa35   : > { %v9331_v17 = vpop.f32.mrf.mxu1 }
 0xa36   : > { %v9475_v49 = vmax.f32 %v9411_v62, 0.0  ;;  %v9332_v12 = vadd.f32 %v9331_v17, %v16888_v30 }
 0xa37   : > { %v9333_v13 = vpop.f32.mrf.mxu1 }
 0xa38   : > { %v9509_v25 = vpack.c.bf16 %v9475_v49, %v9474_v43  ;;  %v9412_v47 = vadd.f32 %v16145_v53, %v9332_v12  ;;  %v16891_v43 = vld [vmem:[#allocation45_spill] sm:$0xff]  ;;  %v16361_v13 = vld [vmem:[%s16634_s26] ss:$0 sm:$0xff] }
 0xa39   : > { %v9334_v19 = vpop.f32.mrf.mxu1 }
 0xa3a   : > { %v9335_v28 = vadd.f32 %v9334_v19, %v16889_v2  ;;  %11329 = vmatmul.mubr.bf16.gmra.mxu1 %v9509_v25  ;;  %v9476_v52 = vmax.f32 %v9412_v47, 0.0  ;;  %v16892_v2 = vld [vmem:[#allocation47_spill] sm:$0xff] }
 0xa3b   : > { %v9336_v1 = vpop.f32.mrf.mxu1 }
 0xa3c   : > { %v9413_v0 = vadd.f32 %v16145_v53, %v9335_v28 }
 0xa3d   : > { %v9339_v60 = vpop.f32.mrf.mxu1 }
 0xa3e   : > { %v9477_v26 = vmax.f32 %v9413_v0, 0.0  ;;  %v9340_v37 = vadd.f32 %v16890_v23, %v9339_v60 }
 0xa3f   : > { %v9341_v56 = vpop.f32.mrf.mxu1 }
 0xa40   : > { %v9510_v46 = vpack.c.bf16 %v9477_v26, %v9476_v52  ;;  %v9414_v17 = vadd.f32 %v16145_v53, %v9340_v37  ;;  %v16893_v52 = vld [vmem:[#allocation90_spill] sm:$0xff]  ;;  %v16894_v37 = vld [vmem:[#allocation48_spill] sm:$0xff] }
 0xa41   : > { %v9342_v62 = vpop.f32.mrf.mxu1 }
 0xa42   : > { %v9343_v49 = vadd.f32 %v16891_v43, %v9342_v62  ;;  %11332 = vmatprep.mubr.bf16.mxu1 %v9510_v46  ;;  %v9478_v19 = vmax.f32 %v9414_v17, 0.0  ;;  %v16895_v17 = vld [vmem:[#allocation46_spill] sm:$0xff] }
 0xa43   : > { %v9344_v30 = vpop.f32.mrf.mxu1 }
 0xa44   : > { %v9415_v12 = vadd.f32 %v16145_v53, %v9343_v49 }
 0xa45   : > { %v11274_v25 = vpop.f32.mrf.mxu1 }
 0xa46   : > { %v9479_v47 = vmax.f32 %v9415_v12, 0.0  ;;  %v10037_v28 = vadd.f32 %v11274_v25, %v16892_v2  ;;  %v16896_v12 = vld [vmem:[#allocation51_spill] sm:$0xff]  ;;  %v16897_v2 = vld [vmem:[#allocation49_spill] sm:$0xff] }
 0xa47   : > { %v10028_v1 = vpop.f32.mrf.mxu1 }
 0xa48   : > { %v9511_v0 = vpack.c.bf16 %v9479_v47, %v9478_v19  ;;  %v10291_v60 = vadd.f32 %v16361_v13, %v10037_v28  ;;  %v10029_v26 = vadd.f32 %v10028_v1, %v16893_v52 }
 0xa49   : > { %v11275_v23 = vpop.f32.mrf.mxu1 }
 0xa4a   : > { %10355 = vst [vmem:[%s16366_s11 + $0x10] sm:$0xff] %v10291_v60  ;;  %v10289_v53 = vadd.f32 %v16361_v13, %v10029_v26  ;;  %v10040_v56 = vadd.f32 %v11275_v23, %v16894_v37  ;;  %11333 = vmatmul.mubr.bf16.gmra.mxu1 %v9511_v0  ;;  %v16898_v60 = vld [vmem:[#allocation52_spill] sm:$0xff] }
 0xa4b   : > { %v10031_v46 = vpop.f32.mrf.mxu1 }
 0xa4c   : > { %10353 = vst [vmem:[%s16366_s11] sm:$0xff] %v10289_v53  ;;  %v10292_v62 = vadd.f32 %v16361_v13, %v10040_v56  ;;  %v10032_v43 = vadd.f32 %v10031_v46, %v16895_v17  ;;  %v16899_v53 = vld [vmem:[#allocation50_spill] sm:$0xff] }
 0xa4d   : > { %v11278_v49 = vpop.f32.mrf.mxu1 }
 0xa4e   : > { %10356 = vst [vmem:[%s16366_s11 + $0x18] sm:$0xff] %v10292_v62  ;;  %v10290_v30 = vadd.f32 %v16361_v13, %v10032_v43  ;;  %v10053_v25 = vadd.f32 %v11278_v49, %v16896_v12  ;;  %v16900_v49 = vld [vmem:[#allocation53_spill] sm:$0xff] }
 0xa4f   : > { %v10044_v19 = vpop.f32.mrf.mxu1 }
 0xa50   : > { %10354 = vst [vmem:[%s16366_s11 + $0x8] sm:$0xff] %v10290_v30  ;;  %v10295_v47 = vadd.f32 %v16361_v13, %v10053_v25  ;;  %v10045_v28 = vadd.f32 %v10044_v19, %v16897_v2 }
 0xa51   : > { %v11279_v1 = vpop.f32.mrf.mxu1 }
 0xa52   : > { %10359 = vst [vmem:[%s16366_s11 + $0x30] sm:$0xff] %v10295_v47  ;;  %v10293_v0 = vadd.f32 %v16361_v13, %v10045_v28  ;;  %v10056_v52 = vadd.f32 %v11279_v1, %v16898_v60 }
 0xa53   : > { %v10047_v26 = vpop.f32.mrf.mxu1 }
 0xa54   : > { %10357 = vst [vmem:[%s16366_s11 + $0x20] sm:$0xff] %v10293_v0  ;;  %v10296_v23 = vadd.f32 %v16361_v13, %v10056_v52  ;;  %v10048_v37 = vadd.f32 %v10047_v26, %v16899_v53 }
 0xa55   : > { %v11282_v56 = vpop.f32.mrf.mxu1 }
 0xa56   : > { %10360 = vst [vmem:[%s16366_s11 + $0x38] sm:$0xff] %v10296_v23  ;;  %v10294_v46 = vadd.f32 %v16361_v13, %v10048_v37  ;;  %v10069_v62 = vadd.f32 %v11282_v56, %v15947_v57  ;;  %v16901_v57 = vld [vmem:[#allocation54_spill] sm:$0xff]  ;;  %v16903_v56 = vld [vmem:[#allocation57_spill] sm:$0xff] }
 0xa57   : > { %v10060_v17 = vpop.f32.mrf.mxu1 }
 0xa58   : > { %10358 = vst [vmem:[%s16366_s11 + $0x28] sm:$0xff] %v10294_v46  ;;  %v10299_v43 = vadd.f32 %v16361_v13, %v10069_v62  ;;  %v10061_v30 = vadd.f32 %v10060_v17, %v16900_v49 }
 0xa59   : > { %v11283_v12 = vpop.f32.mrf.mxu1 }
 0xa5a   : > { %10363 = vst [vmem:[%s16366_s11 + $0x50] sm:$0xff] %v10299_v43  ;;  %v10297_v25 = vadd.f32 %v16361_v13, %v10061_v30  ;;  %v10072_v19 = vadd.f32 %v11283_v12, %v15961_v38  ;;  %v16902_v38 = vld [vmem:[#allocation55_spill] sm:$0xff]  ;;  %v16905_v12 = vld [vmem:[#allocation93_spill] sm:$0xff] }
 0xa5b   : > { %v10063_v47 = vpop.f32.mrf.mxu1 }
 0xa5c   : > { %10361 = vst [vmem:[%s16366_s11 + $0x40] sm:$0xff] %v10297_v25  ;;  %v10300_v2 = vadd.f32 %v16361_v13, %v10072_v19  ;;  %v10064_v28 = vadd.f32 %v10063_v47, %v16901_v57 }
 0xa5d   : > { %v11286_v1 = vpop.f32.mrf.mxu1 }
 0xa5e   : > { %10364 = vst [vmem:[%s16366_s11 + $0x58] sm:$0xff] %v10300_v2  ;;  %v10298_v0 = vadd.f32 %v16361_v13, %v10064_v28  ;;  %v10085_v60 = vadd.f32 %v11286_v1, %v15991_v58  ;;  %v16904_v58 = vld [vmem:[#allocation56_spill] sm:$0xff]  ;;  %v16906_v2 = vld [vmem:[#allocation91_spill] sm:$0xff] }
 0xa5f   : > { %v10076_v52 = vpop.f32.mrf.mxu1 }
 0xa60   : > { %10362 = vst [vmem:[%s16366_s11 + $0x48] sm:$0xff] %v10298_v0  ;;  %v10303_v26 = vadd.f32 %v16361_v13, %v10085_v60  ;;  %v10077_v23 = vadd.f32 %v10076_v52, %v16902_v38 }
 0xa61   : > { %v11287_v53 = vpop.f32.mrf.mxu1 }
 0xa62   : > { %10367 = vst [vmem:[%s16366_s11 + $0x70] sm:$0xff] %v10303_v26  ;;  %v10301_v37 = vadd.f32 %v16361_v13, %v10077_v23  ;;  %v10088_v46 = vadd.f32 %v11287_v53, %v16903_v56  ;;  %v16907_v26 = vld [vmem:[#allocation92_spill] sm:$0xff] }
 0xa63   : > { %v10079_v62 = vpop.f32.mrf.mxu1 }
 0xa64   : > { %10365 = vst [vmem:[%s16366_s11 + $0x60] sm:$0xff] %v10301_v37  ;;  %v10304_v17 = vadd.f32 %v16361_v13, %v10088_v46  ;;  %v10080_v43 = vadd.f32 %v10079_v62, %v16904_v58 }
 0xa65   : > { %v11290_v49 = vpop.f32.mrf.mxu1 }
 0xa66   : > { %10368 = vst [vmem:[%s16366_s11 + $0x78] sm:$0xff] %v10304_v17  ;;  %v10302_v30 = vadd.f32 %v16361_v13, %v10080_v43  ;;  %v10101_v25 = vadd.f32 %v11290_v49, %v16905_v12 }
 0xa67   : > { %v10092_v19 = vpop.f32.mrf.mxu1 }
 0xa68   : > { %10366 = vst [vmem:[%s16366_s11 + $0x68] sm:$0xff] %v10302_v30  ;;  %v10307_v47 = vadd.f32 %v16361_v13, %v10101_v25  ;;  %v10093_v57 = vadd.f32 %v10092_v19, %v16906_v2 }
 0xa69   : > { %v11291_v28 = vpop.f32.mrf.mxu1 }
 0xa6a   : > { %10371 = vst [vmem:[%s16366_s11 + $0x90] sm:$0xff] %v10307_v47  ;;  %v10305_v1 = vadd.f32 %v16361_v13, %v10093_v57  ;;  %v10104_v0 = vadd.f32 %v11291_v28, %v16044_v9  ;;  %v16908_v9 = vld [vmem:[#allocation94_spill] sm:$0xff] }
 0xa6b   : > { %v10095_v60 = vpop.f32.mrf.mxu1 }
 0xa6c   : > { %10369 = vst [vmem:[%s16366_s11 + $0x80] sm:$0xff] %v10305_v1  ;;  %v10308_v52 = vadd.f32 %v16361_v13, %v10104_v0  ;;  %v10096_v38 = vadd.f32 %v10095_v60, %v16907_v26 }
 0xa6d   : > { %v11294_v23 = vpop.f32.mrf.mxu1 }
 0xa6e   : > { %10372 = vst [vmem:[%s16366_s11 + $0x98] sm:$0xff] %v10308_v52  ;;  %v10306_v53 = vadd.f32 %v16361_v13, %v10096_v38  ;;  %v10117_v37 = vadd.f32 %v11294_v23, %v16066_v24 }
 0xa6f   : > { %v10108_v56 = vpop.f32.mrf.mxu1 }
 0xa70   : > { %10370 = vst [vmem:[%s16366_s11 + $0x88] sm:$0xff] %v10306_v53  ;;  %v10311_v46 = vadd.f32 %v16361_v13, %v10117_v37  ;;  %v10109_v62 = vadd.f32 %v10108_v56, %v16908_v9 }
 0xa71   : > { %v11295_v17 = vpop.f32.mrf.mxu1 }
 0xa72   : > { %10375 = vst [vmem:[%s16366_s11 + $0xb0] sm:$0xff] %v10311_v46  ;;  %v10309_v58 = vadd.f32 %v16361_v13, %v10109_v62  ;;  %v10120_v43 = vadd.f32 %v11295_v17, %v16076_v48 }
 0xa73   : > { %v10111_v49 = vpop.f32.mrf.mxu1 }
 0xa74   : > { %10373 = vst [vmem:[%s16366_s11 + $0xa0] sm:$0xff] %v10309_v58  ;;  %v10312_v30 = vadd.f32 %v16361_v13, %v10120_v43  ;;  %v10112_v24 = vadd.f32 %v10111_v49, %v16060_v63 }
 0xa76   : > { %10376 = vst [vmem:[%s16366_s11 + $0xb8] sm:$0xff] %v10312_v30  ;;  %v10310_v12 = vadd.f32 %v16361_v13, %v10112_v24 }
 0xa78   : > { %10374 = vst [vmem:[%s16366_s11 + $0xa8] sm:$0xff] %v10310_v12 }
 0xa7a   : > { %v11298_v25 = vpop.f32.mrf.mxu1 }
 0xa7b   : > { %v10133_v19 = vadd.f32 %v11298_v25, %v16098_v45 }
 0xa7c   : > { %v10124_v47 = vpop.f32.mrf.mxu1 }
 0xa7d   : > { %v10315_v2 = vadd.f32 %v16361_v13, %v10133_v19  ;;  %v10125_v48 = vadd.f32 %v10124_v47, %v16082_v40 }
 0xa7e   : > { %v11299_v57 = vpop.f32.mrf.mxu1 }
 0xa7f   : > { %10379 = vst [vmem:[%s16366_s11 + $0xd0] sm:$0xff] %v10315_v2  ;;  %v10313_v28 = vadd.f32 %v16361_v13, %v10125_v48  ;;  %v10136_v63 = vadd.f32 %v11299_v57, %v16108_v7 }
 0xa80   : > { %v10127_v1 = vpop.f32.mrf.mxu1 }
 0xa81   : > { %10377 = vst [vmem:[%s16366_s11 + $0xc0] sm:$0xff] %v10313_v28  ;;  %v10316_v0 = vadd.f32 %v16361_v13, %v10136_v63  ;;  %v10128_v60 = vadd.f32 %v10127_v1, %v16092_v5 }
 0xa83   : > { %10380 = vst [vmem:[%s16366_s11 + $0xd8] sm:$0xff] %v10316_v0  ;;  %v10314_v45 = vadd.f32 %v16361_v13, %v10128_v60 }
 0xa85   : > { %10378 = vst [vmem:[%s16366_s11 + $0xc8] sm:$0xff] %v10314_v45 }
 0xa8a   : > { %v11302_v40 = vpop.f32.mrf.mxu1 }
 0xa8b   : > { %v10149_v52 = vadd.f32 %v11302_v40, %v16128_v33 }
 0xa8c   : > { %v10140_v26 = vpop.f32.mrf.mxu1 }
 0xa8d   : > { %v10319_v38 = vadd.f32 %v16361_v13, %v10149_v52  ;;  %v10141_v7 = vadd.f32 %v10140_v26, %v16114_v31 }
 0xa8e   : > { %v11303_v23 = vpop.f32.mrf.mxu1 }
 0xa8f   : > { %10383 = vst [vmem:[%s16366_s11 + $0xf0] sm:$0xff] %v10319_v38  ;;  %v10317_v53 = vadd.f32 %v16361_v13, %v10141_v7  ;;  %v10152_v5 = vadd.f32 %v11303_v23, %v16147_v20 }
 0xa90   : > { %v10143_v37 = vpop.f32.mrf.mxu1 }
 0xa91   : > { %10381 = vst [vmem:[%s16366_s11 + $0xe0] sm:$0xff] %v10317_v53  ;;  %v10320_v56 = vadd.f32 %v16361_v13, %v10152_v5  ;;  %v10144_v46 = vadd.f32 %v10143_v37, %v16122_v4 }
 0xa93   : > { %10384 = vst [vmem:[%s16366_s11 + $0xf8] sm:$0xff] %v10320_v56  ;;  %v10318_v33 = vadd.f32 %v16361_v13, %v10144_v46 }
 0xa95   : > { %10382 = vst [vmem:[%s16366_s11 + $0xe8] sm:$0xff] %v10318_v33 }
 0xa9a   : > { %v11306_v31 = vpop.f32.mrf.mxu1 }
 0xa9b   : > { %v10165_v9 = vadd.f32 %v11306_v31, %v16175_v22 }
 0xa9c   : > { %v10156_v62 = vpop.f32.mrf.mxu1 }
 0xa9d   : > { %v10323_v17 = vadd.f32 %v16361_v13, %v10165_v9  ;;  %v10157_v20 = vadd.f32 %v10156_v62, %v16157_v10 }
 0xa9e   : > { %v11307_v58 = vpop.f32.mrf.mxu1 }
 0xa9f   : > { %10387 = vst [vmem:[%s16366_s11 + $0x110] sm:$0xff] %v10323_v17  ;;  %v10321_v43 = vadd.f32 %v16361_v13, %v10157_v20  ;;  %v10168_v4 = vadd.f32 %v11307_v58, %v16183_v14 }
 0xaa0   : > { %v10159_v49 = vpop.f32.mrf.mxu1 }
 0xaa1   : > { %10385 = vst [vmem:[%s16366_s11 + $0x100] sm:$0xff] %v10321_v43  ;;  %v10324_v30 = vadd.f32 %v16361_v13, %v10168_v4  ;;  %v10160_v24 = vadd.f32 %v10159_v49, %v16168_v3 }
 0xaa3   : > { %10388 = vst [vmem:[%s16366_s11 + $0x118] sm:$0xff] %v10324_v30  ;;  %v10322_v22 = vadd.f32 %v16361_v13, %v10160_v24 }
 0xaa5   : > { %10386 = vst [vmem:[%s16366_s11 + $0x108] sm:$0xff] %v10322_v22 }
 0xaaa   : > { %v11310_v10 = vpop.f32.mrf.mxu1 }
 0xaab   : > { %v10181_v12 = vadd.f32 %v11310_v10, %v16204_v39 }
 0xaac   : > { %v10172_v25 = vpop.f32.mrf.mxu1 }
 0xaad   : > { %v10327_v19 = vadd.f32 %v16361_v13, %v10181_v12  ;;  %v10173_v14 = vadd.f32 %v10172_v25, %v16190_v59 }
 0xaae   : > { %v11311_v47 = vpop.f32.mrf.mxu1 }
 0xaaf   : > { %10391 = vst [vmem:[%s16366_s11 + $0x130] sm:$0xff] %v10327_v19  ;;  %v10325_v2 = vadd.f32 %v16361_v13, %v10173_v14  ;;  %v10184_v3 = vadd.f32 %v11311_v47, %v16210_v16 }
 0xab0   : > { %v10175_v48 = vpop.f32.mrf.mxu1 }
 0xab1   : > { %10389 = vst [vmem:[%s16366_s11 + $0x120] sm:$0xff] %v10325_v2  ;;  %v10328_v57 = vadd.f32 %v16361_v13, %v10184_v3  ;;  %v10176_v28 = vadd.f32 %v10175_v48, %v16198_v36 }
 0xab3   : > { %10392 = vst [vmem:[%s16366_s11 + $0x138] sm:$0xff] %v10328_v57  ;;  %v10326_v39 = vadd.f32 %v16361_v13, %v10176_v28  ;;  %v16909_v28 = vld [vmem:[#allocation58_spill] sm:$0xff] }
 0xab5   : > { %10390 = vst [vmem:[%s16366_s11 + $0x128] sm:$0xff] %v10326_v39 }
 0xaba   : > { %v11314_v59 = vpop.f32.mrf.mxu1 }
 0xabb   : > { %v10197_v63 = vadd.f32 %v11314_v59, %v16227_v51  ;;  %v16910_v59 = vld [vmem:[#allocation60_spill] sm:$0xff] }
 0xabc   : > { %v10188_v1 = vpop.f32.mrf.mxu1 }
 0xabd   : > { %v10331_v0 = vadd.f32 %v16361_v13, %v10197_v63  ;;  %v10189_v16 = vadd.f32 %v10188_v1, %v16216_v55 }
 0xabe   : > { %v11315_v60 = vpop.f32.mrf.mxu1 }
 0xabf   : > { %10395 = vst [vmem:[%s16366_s11 + $0x150] sm:$0xff] %v10331_v0  ;;  %v10329_v45 = vadd.f32 %v16361_v13, %v10189_v16  ;;  %v10200_v36 = vadd.f32 %v11315_v60, %v16231_v21  ;;  %v16911_v0 = vld [vmem:[#allocation59_spill] sm:$0xff] }
 0xac0   : > { %v10191_v40 = vpop.f32.mrf.mxu1 }
 0xac1   : > { %10393 = vst [vmem:[%s16366_s11 + $0x140] sm:$0xff] %v10329_v45  ;;  %v10332_v52 = vadd.f32 %v16361_v13, %v10200_v36  ;;  %v10192_v26 = vadd.f32 %v10191_v40, %v16222_v42  ;;  %v16912_v36 = vld [vmem:[#allocation62_spill] sm:$0xff] }
 0xac3   : > { %10396 = vst [vmem:[%s16366_s11 + $0x158] sm:$0xff] %v10332_v52  ;;  %v10330_v51 = vadd.f32 %v16361_v13, %v10192_v26 }
 0xac5   : > { %10394 = vst [vmem:[%s16366_s11 + $0x148] sm:$0xff] %v10330_v51  ;;  %v16913_v51 = vld [vmem:[#allocation61_spill] sm:$0xff] }
 0xaca   : > { %v11318_v55 = vpop.f32.mrf.mxu1 }
 0xacb   : > { %v10213_v38 = vadd.f32 %v11318_v55, %v16244_v27 }
 0xacc   : > { %v10204_v7 = vpop.f32.mrf.mxu1 }
 0xacd   : > { %v10335_v23 = vadd.f32 %v16361_v13, %v10213_v38  ;;  %v10205_v21 = vadd.f32 %v10204_v7, %v16236_v50 }
 0xace   : > { %v11319_v53 = vpop.f32.mrf.mxu1 }
 0xacf   : > { %10399 = vst [vmem:[%s16366_s11 + $0x170] sm:$0xff] %v10335_v23  ;;  %v10333_v5 = vadd.f32 %v16361_v13, %v10205_v21  ;;  %v10216_v42 = vadd.f32 %v11319_v53, %v16248_v44 }
 0xad0   : > { %v10207_v37 = vpop.f32.mrf.mxu1 }
 0xad1   : > { %10397 = vst [vmem:[%s16366_s11 + $0x160] sm:$0xff] %v10333_v5  ;;  %v10336_v56 = vadd.f32 %v16361_v13, %v10216_v42  ;;  %v10208_v46 = vadd.f32 %v10207_v37, %v16240_v34 }
 0xad3   : > { %10400 = vst [vmem:[%s16366_s11 + $0x178] sm:$0xff] %v10336_v56  ;;  %v10334_v27 = vadd.f32 %v16361_v13, %v10208_v46 }
 0xad5   : > { %10398 = vst [vmem:[%s16366_s11 + $0x168] sm:$0xff] %v10334_v27 }
 0xada   : > { %v11322_v50 = vpop.f32.mrf.mxu1 }
 0xadb   : > { %v10229_v33 = vadd.f32 %v11322_v50, %v16260_v15 }
 0xadc   : > { %v10220_v31 = vpop.f32.mrf.mxu1 }
 0xadd   : > { %v10339_v9 = vadd.f32 %v16361_v13, %v10229_v33  ;;  %v10221_v44 = vadd.f32 %v10220_v31, %v16252_v8 }
 0xade   : > { %v11323_v62 = vpop.f32.mrf.mxu1 }
 0xadf   : > { %10403 = vst [vmem:[%s16366_s11 + $0x190] sm:$0xff] %v10339_v9  ;;  %v10337_v17 = vadd.f32 %v16361_v13, %v10221_v44  ;;  %v10232_v34 = vadd.f32 %v11323_v62, %v16264_v35 }
 0xae0   : > { %v10223_v20 = vpop.f32.mrf.mxu1 }
 0xae1   : > { %10401 = vst [vmem:[%s16366_s11 + $0x180] sm:$0xff] %v10337_v17  ;;  %v10340_v58 = vadd.f32 %v16361_v13, %v10232_v34  ;;  %v10224_v43 = vadd.f32 %v10223_v20, %v16256_v41 }
 0xae3   : > { %10404 = vst [vmem:[%s16366_s11 + $0x198] sm:$0xff] %v10340_v58  ;;  %v10338_v15 = vadd.f32 %v16361_v13, %v10224_v43 }
 0xae5   : > { %10402 = vst [vmem:[%s16366_s11 + $0x188] sm:$0xff] %v10338_v15 }
 0xaea   : > { %v11326_v8 = vpop.f32.mrf.mxu1 }
 0xaeb   : > { %v10245_v4 = vadd.f32 %v11326_v8, %v16276_v32 }
 0xaec   : > { %v10236_v49 = vpop.f32.mrf.mxu1 }
 0xaed   : > { %v10343_v30 = vadd.f32 %v16361_v13, %v10245_v4  ;;  %v10237_v35 = vadd.f32 %v10236_v49, %v16268_v61 }
 0xaee   : > { %v11327_v24 = vpop.f32.mrf.mxu1 }
 0xaef   : > { %10407 = vst [vmem:[%s16366_s11 + $0x1b0] sm:$0xff] %v10343_v30  ;;  %v10341_v22 = vadd.f32 %v16361_v13, %v10237_v35  ;;  %v10248_v41 = vadd.f32 %v11327_v24, %v16280_v18 }
 0xaf0   : > { %v10239_v10 = vpop.f32.mrf.mxu1 }
 0xaf1   : > { %10405 = vst [vmem:[%s16366_s11 + $0x1a0] sm:$0xff] %v10341_v22  ;;  %v10344_v12 = vadd.f32 %v16361_v13, %v10248_v41  ;;  %v10240_v25 = vadd.f32 %v10239_v10, %v16272_v54 }
 0xaf3   : > { %10408 = vst [vmem:[%s16366_s11 + $0x1b8] sm:$0xff] %v10344_v12  ;;  %v10342_v32 = vadd.f32 %v16361_v13, %v10240_v25 }
 0xaf5   : > { %10406 = vst [vmem:[%s16366_s11 + $0x1a8] sm:$0xff] %v10342_v32 }
 0xafa   : > { %v11330_v61 = vpop.f32.mrf.mxu1 }
 0xafb   : > { %v10261_v19 = vadd.f32 %v11330_v61, %v16292_v6 }
 0xafc   : > { %v10252_v14 = vpop.f32.mrf.mxu1 }
 0xafd   : > { %v10347_v47 = vadd.f32 %v16361_v13, %v10261_v19  ;;  %v10253_v18 = vadd.f32 %v10252_v14, %v16284_v29 }
 0xafe   : > { %v11331_v2 = vpop.f32.mrf.mxu1 }
 0xaff   : > { %10411 = vst [vmem:[%s16366_s11 + $0x1d0] sm:$0xff] %v10347_v47  ;;  %v10345_v3 = vadd.f32 %v16361_v13, %v10253_v18  ;;  %v10264_v54 = vadd.f32 %v11331_v2, %v16296_v11 }
 0xb00   : > { %v10255_v48 = vpop.f32.mrf.mxu1 }
 0xb01   : > { %10409 = vst [vmem:[%s16366_s11 + $0x1c0] sm:$0xff] %v10345_v3  ;;  %v10348_v57 = vadd.f32 %v16361_v13, %v10264_v54  ;;  %v10256_v6 = vadd.f32 %v10255_v48, %v16909_v28 }
 0xb03   : > { %10412 = vst [vmem:[%s16366_s11 + $0x1d8] sm:$0xff] %v10348_v57  ;;  %v10346_v39 = vadd.f32 %v16361_v13, %v10256_v6 }
 0xb05   : > { %10410 = vst [vmem:[%s16366_s11 + $0x1c8] sm:$0xff] %v10346_v39 }
 0xb0a   : > { %v11334_v29 = vpop.f32.mrf.mxu1 }
 0xb0b   : > { %v10277_v63 = vadd.f32 %v11334_v29, %v16910_v59 }
 0xb0c   : > { %v10268_v1 = vpop.f32.mrf.mxu1 }
 0xb0d   : > { %v10351_v11 = vadd.f32 %v16361_v13, %v10277_v63  ;;  %v10269_v16 = vadd.f32 %v10268_v1, %v16911_v0 }
 0xb0e   : > { %v11335_v60 = vpop.f32.mrf.mxu1 }
 0xb0f   : > { %10415 = vst [vmem:[%s16366_s11 + $0x1f0] sm:$0xff] %v10351_v11  ;;  %v10349_v45 = vadd.f32 %v16361_v13, %v10269_v16  ;;  %v10280_v40 = vadd.f32 %v11335_v60, %v16912_v36 }
 0xb10   : > { %v10271_v52 = vpop.f32.mrf.mxu1 }
 0xb11   : > { %10413 = vst [vmem:[%s16366_s11 + $0x1e0] sm:$0xff] %v10349_v45  ;;  %v10352_v26 = vadd.f32 %v16361_v13, %v10280_v40  ;;  %v10272_v55 = vadd.f32 %v10271_v52, %v16913_v51 }
 0xb13   : > { %10416 = vst [vmem:[%s16366_s11 + $0x1f8] sm:$0xff] %v10352_v26  ;;  %v10350_v38 = vadd.f32 %v16361_v13, %v10272_v55 }
 0xb15   : > { %10414 = vst [vmem:[%s16366_s11 + $0x1e8] sm:$0xff] %v10350_v38 }
 0xb16   : > { %12334 = shalt.err (!%p12331_p3)
}
 0xb17   : > { %s12335_s30 = scalar_lea.hbm %s16559_s19, 8192  ;;  %s12339_s8 = scalar_lea.hbm %s16915_s3, 16384 }
 0xb18   : > { %p12336_p4 = scmp.ne.s32.totalorder %s16559_s19, %s12335_s30  ;;  %p12340_p8 = scmp.lt.s32.totalorder %s16559_s19, %s16915_s3 }
 0xb19   : > { %p12341_p11 = scmp.lt.s32.totalorder %s12339_s8, %s12335_s30 }
 0xb1a   : > { %p12337_p7 = pnand %p12336_p4, %p16916_p10 }
 0xb1b   : > { %p12342_p5 = por %p12341_p11, %p12340_p8 }
 0xb1c   : > { %p12338_p9 = pneg %p12337_p7 }
 0xb1e   : > { %p12343_p6 = pnand %p12342_p5, %p12338_p9 }
 0xb20   : > { %12346 = shalt.err (!%p12343_p6)
}
 0xb21   : > { %s12423_s5 = smov 128   ;;  %s12424_s27 = smov 8  }
 0xb22   : > { %11408 = dma.vmem_to_hbm [thread:$0]  (%p16916_p10), %s16561_s7, 8192, %s16559_s19, %s16568_s9, %s12423_s5, %s12423_s5, %s12424_s27  }
 0xb23 PF: > { %s16917_s29 = sld [smem:[#allocation29_spill]] }
 0xb24   : > { %s16918_s11 = sld [smem:[#allocation27_spill]] }
 0xb25   : > { %s16919_s6 = sld [smem:[#allocation32_spill]] }
 0xb29   : > { %p11465_p13 = scmp.ge.s32.totalorder %s16917_s29, 2 }
 0xb2a   : > { %s10446_s2 = sand.u32 1, %s16918_s11  }
 0xb2b   : > { %p16920_p0 = scmp.ne.s32.totalorder %s16919_s6, 0  ;;  %s10447_s0 = scalar_lea.sflag [#allocation4], %s10446_s2 }
 0xb2d   : > { %p11442_p1 = pnand %p11465_p13, %p16920_p0 }
 0xb2f   : > { %p11443_p2 = pneg %p11442_p1 }
 0xb31   : > { %12388 = dma.done.wait (%p11443_p2), %s10447_s0, 8192  }
 0xb32   : > { %12390 = vsyncadd (%p11443_p2), %s10447_s0, 4294959104  ;;  %s16921_s30 = sld [smem:[#allocation30_spill]]  ;;  %s16924_s7 = smov %s12397_s4 }
 0xb33   : > { %s16922_s8 = sld [smem:[#allocation28_spill]] }
 0xb34   : > { %s16923_s28 = sld [smem:[#allocation31_spill]] }
 0xb38   : > { %p43_p12 = scmp.ge.s32.totalorder %s16921_s30, 4  }
 0xb39   : > { %s16925_s4 = smov %s16922_s8 }
 0xb3a   : > { %s16926_s8 = smov %s16923_s28  ;;  %45 = sbr.rel (!%p43_p12) target bundleno = 25 (0x19), region = 207 }
 0xb3f   :  { %10452 = vsyncpa [#allocation3], 1 }
 0xb40   :  { %10454 = vsyncpa [#allocation3 + $0x1], 1 }
 0xb41   :  { %10455 = vsyncpa [#allocation6], 1 }
 0xb42   :  { %10456 = vsyncpa [#allocation9], 1 }
 0xb43   :  { %10457 = vsyncpa [#allocation12], 1 }
 0xb44   :  { %10458 = vsyncpa [#allocation15], 1 }
 0xb45   :  { %10459 = vsyncpa [#allocation18], 1 }
 0xb46   :  { %10460 = vsyncpa [#allocation4], 1 }
 0xb47   :  { %10462 = vsyncpa [#allocation4 + $0x1], 1 }

</bundles_post_ra>
